<compile_context>
chip_gen: v5e
topology: v5e:2x2
jax: 0.10.0
libtpu: 0.0.40
codegen_flags: <defaults>
</compile_context>

<pallas_src>
import jax
import jax.numpy as jnp
import numpy as np
from jax import lax
from jax.experimental import pallas as pl
from jax.experimental.pallas import tpu as pltpu


# --------------------------------------------------------------------------
# Parameter init (PyTorch layouts)
# --------------------------------------------------------------------------

def init_params(key, h, w, downsamplings, start_channels, latent_size):
    ks = jax.random.split(key, 4 + downsamplings)
    p = {}
    # start_conv: Conv2d(3, sc, 1, bias=False)  -> (sc, 3, 1, 1)
    p["start_w"] = jax.random.normal(ks[0], (start_channels, 3, 1, 1),
                                     jnp.float32) * 0.3
    down = []
    c = start_channels
    for i in range(downsamplings):
        fan_in = 9 * c
        down.append(jax.random.normal(ks[1 + i], (2 * c, c, 3, 3),
                                      jnp.float32) * (1.0 / fan_in ** 0.5))
        c *= 2
    p["down_w"] = down
    # end_conv: Conv2d(c, latent, 1, bias=False) -> (latent, c, 1, 1)
    p["end_w"] = jax.random.normal(ks[1 + downsamplings],
                                   (latent_size, c, 1, 1),
                                   jnp.float32) * (1.0 / c ** 0.5)
    hf, wf = h // 2 ** downsamplings, w // 2 ** downsamplings
    fin = latent_size * hf * wf
    p["fc_w"] = jax.random.normal(ks[2 + downsamplings], (latent_size, fin),
                                  jnp.float32) * (1.0 / fin ** 0.5)
    p["fc_b"] = jax.random.normal(ks[3 + downsamplings], (latent_size,),
                                  jnp.float32) * 0.05
    return p


# --------------------------------------------------------------------------
# Host-side prep: fold 1x1 convs, build selection / tap matrices
# --------------------------------------------------------------------------

def prepare_encoder(params, N, H, W, downsamplings, start_channels,
                    latent_size):
    sc = start_channels
    L = downsamplings
    assert L >= 1

    # Fold start_conv (1x1, linear) into the first 3x3 conv weight.
    ws = np.asarray(params["start_w"])[:, :, 0, 0]            # (sc, 3)
    wd0 = np.asarray(params["down_w"][0])                     # (2sc, sc, 3, 3)
    w_first = np.einsum("okyx,kc->ocyx", wd0, ws)             # (2sc, 3, 3, 3)
    conv_ws = [w_first] + [np.asarray(params["down_w"][i])
                           for i in range(1, L)]

    # Per-level static dims.
    level_dims = []
    Hi, Wi, Ci = H, W, 3
    for l in range(L):
        assert Hi % 2 == 0 and Wi % 2 == 0, "spatial dims must stay even"
        Cout = sc * 2 ** (l + 1)
        Ho, Wo = Hi // 2, Wi // 2
        level_dims.append((Hi, Wi, Ci, Ho, Wo, Cout))
        Hi, Wi, Ci = Ho, Wo, Cout
    Hf, Wf, Cf = Hi, Wi, Ci                                   # final dims

    g_list, w_list, p_list = [], [], []
    for (hi, wi, ci, ho, wo, cout), cw in zip(level_dims, conv_ws):
        # G_dy: (n, oh) <- (n, ih) row selection, ih = 2*oh + dy - 1 (pad=0)
        g = np.zeros((3, N * ho, N * hi), np.float32)
        for dy in range(3):
            for n in range(N):
                for oh in range(ho):
                    ih = 2 * oh + dy - 1
                    if 0 <= ih < hi:
                        g[dy, n * ho + oh, n * hi + ih] = 1.0
        g_list.append(g)

        # Wbig_dy: maps a flattened input row (w, c) to output row (w', c').
        wb = np.zeros((3, wi * ci, wo * cout), np.float32)
        for dy in range(3):
            for dx in range(3):
                blk = cw[:, :, dy, dx].T                       # (ci, cout)
                for ow in range(wo):
                    iw = 2 * ow + dx - 1
                    if 0 <= iw < wi:
                        wb[dy, iw * ci:(iw + 1) * ci,
                           ow * cout:(ow + 1) * cout] = blk
        w_list.append(wb)

        # P: (wo*cout, cout) 0/1 matrix, sums / broadcasts per channel.
        p = np.zeros((wo * cout, cout), np.float32)
        eye = np.eye(cout, dtype=np.float32)
        for ow in range(wo):
            p[ow * cout:(ow + 1) * cout, :] = eye
        p_list.append(p)

    # Fold end_conv (1x1) + NCHW flatten + end_fc into M_h matrices.
    we = np.asarray(params["end_w"])[:, :, 0, 0]               # (latent, Cf)
    fc = np.asarray(params["fc_w"]).reshape(latent_size, latent_size, Hf, Wf)
    M = np.einsum("kc,lkhw->hwcl", we, fc)                     # (Hf,Wf,Cf,lat)
    m_stk = M.reshape(Hf, Wf * Cf, latent_size).astype(np.float32)

    sel = np.zeros((Hf, N, N * Hf), np.float32)                # row picker
    for h in range(Hf):
        for n in range(N):
            sel[h, n, n * Hf + h] = 1.0
    bias2d = np.asarray(params["fc_b"]).reshape(1, latent_size)

    operands = ([jnp.asarray(a) for a in g_list] +
                [jnp.asarray(a) for a in w_list] +
                [jnp.asarray(a) for a in p_list] +
                [jnp.asarray(sel), jnp.asarray(m_stk),
                 jnp.asarray(bias2d.astype(np.float32))])
    return level_dims, (Hf, Wf, Cf), operands


# --------------------------------------------------------------------------
# The fused Pallas kernel
# --------------------------------------------------------------------------

def _make_kernel(level_dims, N, Hf, latent_size):
    L = len(level_dims)

    def kernel(*refs):
        x_ref = refs[0]
        g_refs = refs[1:1 + L]
        w_refs = refs[1 + L:1 + 2 * L]
        p_refs = refs[1 + 2 * L:1 + 3 * L]
        sel_ref = refs[1 + 3 * L]
        m_ref = refs[2 + 3 * L]
        b_ref = refs[3 + 3 * L]
        o_ref = refs[4 + 3 * L]

        a = x_ref[...]                                     # (N*H, W*3)
        for l, (_hi, _wi, _ci, ho, wo, cout) in enumerate(level_dims):
            # --- conv 3x3, stride 2, pad 1 (as 3 tap matmul pairs) ---
            z = None
            for dy in range(3):
                rows = jnp.dot(g_refs[l][dy], a,
                               preferred_element_type=jnp.float32)
                t = jnp.dot(rows, w_refs[l][dy],
                            preferred_element_type=jnp.float32)
                z = t if z is None else z + t              # (N*ho, wo*cout)

            # --- BatchNorm2d(affine=False), batch stats, eps=1e-5 + ReLU ---
            p = p_refs[l][...]                             # (wo*cout, cout)
            pt = p.T
            cnt = float(N * ho * wo)
            mean = jnp.dot(jnp.sum(z, axis=0, keepdims=True), p,
                           preferred_element_type=jnp.float32) / cnt
            d = z - jnp.dot(mean, pt, preferred_element_type=jnp.float32)
            var = jnp.dot(jnp.sum(d * d, axis=0, keepdims=True), p,
                          preferred_element_type=jnp.float32) / cnt
            inv = lax.rsqrt(var + 1e-5)
            a = jnp.maximum(
                d * jnp.dot(inv, pt, preferred_element_type=jnp.float32), 0.0)

        # --- fused end_conv (1x1) + flatten + end_fc ---
        out = None
        for h in range(Hf):
            rows = jnp.dot(sel_ref[h], a,
                           preferred_element_type=jnp.float32)    # (N, Wf*Cf)
            t = jnp.dot(rows, m_ref[h],
                        preferred_element_type=jnp.float32)       # (N, latent)
            out = t if out is None else out + t
        o_ref[...] = out + b_ref[...]

    return kernel


def _zeros_map(nd):
    return lambda i: (0,) * nd


def make_encoder_fn(level_dims, N, latent_size, Hf):
    kernel = _make_kernel(level_dims, N, Hf, latent_size)
    H0, W0, C0 = level_dims[0][0], level_dims[0][1], level_dims[0][2]

    def fwd(x_nchw, operands):
        # NCHW -> rows=(n,h), cols=(w,c)  (only per-call XLA glue left)
        x_rows = jnp.transpose(x_nchw.astype(jnp.float32), (0, 2, 3, 1))
        x_rows = x_rows.reshape(N * H0, W0 * C0)
        all_ops = [x_rows] + list(operands)
        in_specs = [pl.BlockSpec(op.shape, _zeros_map(op.ndim))
                    for op in all_ops]
        return pl.pallas_call(
            kernel,
            out_shape=jax.ShapeDtypeStruct((N, latent_size), jnp.float32),
            grid=(1,),
            in_specs=in_specs,
            out_specs=pl.BlockSpec((N, latent_size), lambda i: (0, 0)),
            compiler_params=pltpu.CompilerParams(
                dimension_semantics=("arbitrary",),
                vmem_limit_bytes=32 * 1024 * 1024),
        )(*all_ops)

    return jax.jit(fwd)


# --------------------------------------------------------------------------
# Pure-JAX reference (mirrors the PyTorch module, training-mode BN)
# --------------------------------------------------------------------------

def reference_forward(x, params, downsamplings, latent_size):
    dims = ("NCHW", "OIHW", "NCHW")
    y = lax.conv_general_dilated(x, params["start_w"], (1, 1),
                                 [(0, 0), (0, 0)], dimension_numbers=dims,
                                 precision=lax.Precision.HIGHEST)
    for i in range(downsamplings):
        y = lax.conv_general_dilated(y, params["down_w"][i], (2, 2),
                                     [(1, 1), (1, 1)], dimension_numbers=dims,
                                     precision=lax.Precision.HIGHEST)
        mean = y.mean(axis=(0, 2, 3), keepdims=True)
        var = jnp.mean((y - mean) ** 2, axis=(0, 2, 3), keepdims=True)
        y = jnp.maximum((y - mean) * lax.rsqrt(var + 1e-5), 0.0)
    y = lax.conv_general_dilated(y, params["end_w"], (1, 1),
                                 [(0, 0), (0, 0)], dimension_numbers=dims,
                                 precision=lax.Precision.HIGHEST)
    y = y.reshape(y.shape[0], -1)                 # PyTorch flatten(start_dim=1)
    return y @ params["fc_w"].T + params["fc_b"]


# --------------------------------------------------------------------------
# main
# --------------------------------------------------------------------------

if __name__ == "__main__":
    key = jax.random.PRNGKey(0)
    kx, kp = jax.random.split(key)

    B, H, W = 2, 32, 32
    DOWNSAMPLINGS, START_CHANNELS, LATENT = 5, 8, 32

    x = jax.random.normal(kx, (B, 3, H, W), jnp.float32)       # NCHW, PyTorch
    params = init_params(kp, H, W, DOWNSAMPLINGS, START_CHANNELS, LATENT)

    level_dims, (Hf, Wf, Cf), operands = prepare_encoder(
        params, B, H, W, DOWNSAMPLINGS, START_CHANNELS, LATENT)
    encoder = make_encoder_fn(level_dims, B, LATENT, Hf)

    out = jax.block_until_ready(encoder(x, operands))
    assert out.shape == (B, LATENT), out.shape

    ref = reference_forward(x, params, DOWNSAMPLINGS, LATENT)
    assert bool(jnp.all(jnp.isfinite(out)))
    max_err = float(jnp.max(jnp.abs(out - ref)))
    assert bool(jnp.allclose(out, ref, atol=2e-2, rtol=2e-2)), max_err

    print("KERNEL_OK")
</pallas_src>

<mosaic_0001>
module attributes {stable_mosaic.version = 11 : i64} {
  func.func @kernel(%arg0: i32, %arg1: memref<64x96xf32, #tpu.memory_space<vmem>>, %arg2: memref<3x32x64xf32, #tpu.memory_space<vmem>>, %arg3: memref<3x16x32xf32, #tpu.memory_space<vmem>>, %arg4: memref<3x8x16xf32, #tpu.memory_space<vmem>>, %arg5: memref<3x4x8xf32, #tpu.memory_space<vmem>>, %arg6: memref<3x2x4xf32, #tpu.memory_space<vmem>>, %arg7: memref<3x96x256xf32, #tpu.memory_space<vmem>>, %arg8: memref<3x256x256xf32, #tpu.memory_space<vmem>>, %arg9: memref<3x256x256xf32, #tpu.memory_space<vmem>>, %arg10: memref<3x256x256xf32, #tpu.memory_space<vmem>>, %arg11: memref<3x256x256xf32, #tpu.memory_space<vmem>>, %arg12: memref<256x16xf32, #tpu.memory_space<vmem>>, %arg13: memref<256x32xf32, #tpu.memory_space<vmem>>, %arg14: memref<256x64xf32, #tpu.memory_space<vmem>>, %arg15: memref<256x128xf32, #tpu.memory_space<vmem>>, %arg16: memref<256x256xf32, #tpu.memory_space<vmem>>, %arg17: memref<1x2x2xf32, #tpu.memory_space<vmem>>, %arg18: memref<1x256x32xf32, #tpu.memory_space<vmem>>, %arg19: memref<1x32xf32, #tpu.memory_space<vmem>>, %arg20: memref<2x32xf32, #tpu.memory_space<vmem>>) attributes {dimension_semantics = [#tpu.dimension_semantics<arbitrary>], iteration_bounds = array<i64: 1>, scalar_prefetch = 0 : i64, scratch_operands = 0 : i64, tpu.core_type = #tpu.core_type<tc>, window_params = [{pipeline_mode = #tpu.pipeline_mode<synchronous>, transform_indices = @transform_0, window_bounds = array<i64: 64, 96>}, {pipeline_mode = #tpu.pipeline_mode<synchronous>, transform_indices = @transform_1, window_bounds = array<i64: 3, 32, 64>}, {pipeline_mode = #tpu.pipeline_mode<synchronous>, transform_indices = @transform_2, window_bounds = array<i64: 3, 16, 32>}, {pipeline_mode = #tpu.pipeline_mode<synchronous>, transform_indices = @transform_3, window_bounds = array<i64: 3, 8, 16>}, {pipeline_mode = #tpu.pipeline_mode<synchronous>, transform_indices = @transform_4, window_bounds = array<i64: 3, 4, 8>}, {pipeline_mode = #tpu.pipeline_mode<synchronous>, transform_indices = @transform_5, window_bounds = array<i64: 3, 2, 4>}, {pipeline_mode = #tpu.pipeline_mode<synchronous>, transform_indices = @transform_6, window_bounds = array<i64: 3, 96, 256>}, {pipeline_mode = #tpu.pipeline_mode<synchronous>, transform_indices = @transform_7, window_bounds = array<i64: 3, 256, 256>}, {pipeline_mode = #tpu.pipeline_mode<synchronous>, transform_indices = @transform_8, window_bounds = array<i64: 3, 256, 256>}, {pipeline_mode = #tpu.pipeline_mode<synchronous>, transform_indices = @transform_9, window_bounds = array<i64: 3, 256, 256>}, {pipeline_mode = #tpu.pipeline_mode<synchronous>, transform_indices = @transform_10, window_bounds = array<i64: 3, 256, 256>}, {pipeline_mode = #tpu.pipeline_mode<synchronous>, transform_indices = @transform_11, window_bounds = array<i64: 256, 16>}, {pipeline_mode = #tpu.pipeline_mode<synchronous>, transform_indices = @transform_12, window_bounds = array<i64: 256, 32>}, {pipeline_mode = #tpu.pipeline_mode<synchronous>, transform_indices = @transform_13, window_bounds = array<i64: 256, 64>}, {pipeline_mode = #tpu.pipeline_mode<synchronous>, transform_indices = @transform_14, window_bounds = array<i64: 256, 128>}, {pipeline_mode = #tpu.pipeline_mode<synchronous>, transform_indices = @transform_15, window_bounds = array<i64: 256, 256>}, {pipeline_mode = #tpu.pipeline_mode<synchronous>, transform_indices = @transform_16, window_bounds = array<i64: 1, 2, 2>}, {pipeline_mode = #tpu.pipeline_mode<synchronous>, transform_indices = @transform_17, window_bounds = array<i64: 1, 256, 32>}, {pipeline_mode = #tpu.pipeline_mode<synchronous>, transform_indices = @transform_18, window_bounds = array<i64: 1, 32>}, {pipeline_mode = #tpu.pipeline_mode<synchronous>, transform_indices = @transform_19, window_bounds = array<i64: 2, 32>}]} {
    %c0 = arith.constant 0 : index
    %c0_0 = arith.constant 0 : index
    %0 = vector.load %arg1[%c0, %c0_0] : memref<64x96xf32, #tpu.memory_space<vmem>>, vector<64x96xf32>
    %c0_1 = arith.constant 0 : index
    %c0_2 = arith.constant 0 : index
    %c0_3 = arith.constant 0 : index
    %1 = vector.load %arg2[%c0_1, %c0_2, %c0_3] : memref<3x32x64xf32, #tpu.memory_space<vmem>>, vector<1x32x64xf32>
    %2 = vector.shape_cast %1 : vector<1x32x64xf32> to vector<32x64xf32>
    %cst = arith.constant dense<0.000000e+00> : vector<32x96xf32>
    %3 = tpu.matmul %2, %0, %cst {dimension_numbers = #tpu.dot_dimension_numbers<[1], [0], [0], [1], [0, 0, 1, 1], [], []>} : vector<32x64xf32>, vector<64x96xf32>, vector<32x96xf32> -> vector<32x96xf32>
    %c0_4 = arith.constant 0 : index
    %c0_5 = arith.constant 0 : index
    %c0_6 = arith.constant 0 : index
    %4 = vector.load %arg7[%c0_4, %c0_5, %c0_6] : memref<3x96x256xf32, #tpu.memory_space<vmem>>, vector<1x96x256xf32>
    %5 = vector.shape_cast %4 : vector<1x96x256xf32> to vector<96x256xf32>
    %cst_7 = arith.constant dense<0.000000e+00> : vector<32x256xf32>
    %6 = tpu.matmul %3, %5, %cst_7 {dimension_numbers = #tpu.dot_dimension_numbers<[1], [0], [0], [1], [0, 0, 1, 1], [], []>} : vector<32x96xf32>, vector<96x256xf32>, vector<32x256xf32> -> vector<32x256xf32>
    %c1 = arith.constant 1 : index
    %c0_8 = arith.constant 0 : index
    %c0_9 = arith.constant 0 : index
    %7 = vector.load %arg2[%c1, %c0_8, %c0_9] : memref<3x32x64xf32, #tpu.memory_space<vmem>>, vector<1x32x64xf32>
    %8 = vector.shape_cast %7 : vector<1x32x64xf32> to vector<32x64xf32>
    %cst_10 = arith.constant dense<0.000000e+00> : vector<32x96xf32>
    %9 = tpu.matmul %8, %0, %cst_10 {dimension_numbers = #tpu.dot_dimension_numbers<[1], [0], [0], [1], [0, 0, 1, 1], [], []>} : vector<32x64xf32>, vector<64x96xf32>, vector<32x96xf32> -> vector<32x96xf32>
    %c1_11 = arith.constant 1 : index
    %c0_12 = arith.constant 0 : index
    %c0_13 = arith.constant 0 : index
    %10 = vector.load %arg7[%c1_11, %c0_12, %c0_13] : memref<3x96x256xf32, #tpu.memory_space<vmem>>, vector<1x96x256xf32>
    %11 = vector.shape_cast %10 : vector<1x96x256xf32> to vector<96x256xf32>
    %cst_14 = arith.constant dense<0.000000e+00> : vector<32x256xf32>
    %12 = tpu.matmul %9, %11, %cst_14 {dimension_numbers = #tpu.dot_dimension_numbers<[1], [0], [0], [1], [0, 0, 1, 1], [], []>} : vector<32x96xf32>, vector<96x256xf32>, vector<32x256xf32> -> vector<32x256xf32>
    %13 = arith.addf %6, %12 : vector<32x256xf32>
    %c2 = arith.constant 2 : index
    %c0_15 = arith.constant 0 : index
    %c0_16 = arith.constant 0 : index
    %14 = vector.load %arg2[%c2, %c0_15, %c0_16] : memref<3x32x64xf32, #tpu.memory_space<vmem>>, vector<1x32x64xf32>
    %15 = vector.shape_cast %14 : vector<1x32x64xf32> to vector<32x64xf32>
    %cst_17 = arith.constant dense<0.000000e+00> : vector<32x96xf32>
    %16 = tpu.matmul %15, %0, %cst_17 {dimension_numbers = #tpu.dot_dimension_numbers<[1], [0], [0], [1], [0, 0, 1, 1], [], []>} : vector<32x64xf32>, vector<64x96xf32>, vector<32x96xf32> -> vector<32x96xf32>
    %c2_18 = arith.constant 2 : index
    %c0_19 = arith.constant 0 : index
    %c0_20 = arith.constant 0 : index
    %17 = vector.load %arg7[%c2_18, %c0_19, %c0_20] : memref<3x96x256xf32, #tpu.memory_space<vmem>>, vector<1x96x256xf32>
    %18 = vector.shape_cast %17 : vector<1x96x256xf32> to vector<96x256xf32>
    %cst_21 = arith.constant dense<0.000000e+00> : vector<32x256xf32>
    %19 = tpu.matmul %16, %18, %cst_21 {dimension_numbers = #tpu.dot_dimension_numbers<[1], [0], [0], [1], [0, 0, 1, 1], [], []>} : vector<32x96xf32>, vector<96x256xf32>, vector<32x256xf32> -> vector<32x256xf32>
    %20 = arith.addf %13, %19 : vector<32x256xf32>
    %c0_22 = arith.constant 0 : index
    %c0_23 = arith.constant 0 : index
    %21 = vector.load %arg12[%c0_22, %c0_23] : memref<256x16xf32, #tpu.memory_space<vmem>>, vector<256x16xf32>
    %22 = tpu.transpose %21, [1, 0] : vector<256x16xf32> -> vector<16x256xf32>
    %cst_24 = arith.constant dense<0.000000e+00> : vector<256xf32>
    %23 = vector.multi_reduction <add>, %20, %cst_24 [0] : vector<32x256xf32> to vector<256xf32>
    %24 = vector.shape_cast %23 : vector<256xf32> to vector<1x256xf32>
    %cst_25 = arith.constant dense<0.000000e+00> : vector<1x16xf32>
    %25 = tpu.matmul %24, %21, %cst_25 {dimension_numbers = #tpu.dot_dimension_numbers<[1], [0], [0], [1], [0, 0, 1, 1], [], []>} : vector<1x256xf32>, vector<256x16xf32>, vector<1x16xf32> -> vector<1x16xf32>
    %cst_26 = arith.constant 5.120000e+02 : f32
    %26 = vector.broadcast %cst_26 : f32 to vector<1x16xf32>
    %27 = arith.divf %25, %26 : vector<1x16xf32>
    %cst_27 = arith.constant dense<0.000000e+00> : vector<1x256xf32>
    %28 = tpu.matmul %27, %22, %cst_27 {dimension_numbers = #tpu.dot_dimension_numbers<[1], [0], [0], [1], [0, 0, 1, 1], [], []>} : vector<1x16xf32>, vector<16x256xf32>, vector<1x256xf32> -> vector<1x256xf32>
    %29 = vector.broadcast %28 : vector<1x256xf32> to vector<32x256xf32>
    %30 = arith.subf %20, %29 : vector<32x256xf32>
    %31 = arith.mulf %30, %30 : vector<32x256xf32>
    %cst_28 = arith.constant dense<0.000000e+00> : vector<256xf32>
    %32 = vector.multi_reduction <add>, %31, %cst_28 [0] : vector<32x256xf32> to vector<256xf32>
    %33 = vector.shape_cast %32 : vector<256xf32> to vector<1x256xf32>
    %cst_29 = arith.constant dense<0.000000e+00> : vector<1x16xf32>
    %34 = tpu.matmul %33, %21, %cst_29 {dimension_numbers = #tpu.dot_dimension_numbers<[1], [0], [0], [1], [0, 0, 1, 1], [], []>} : vector<1x256xf32>, vector<256x16xf32>, vector<1x16xf32> -> vector<1x16xf32>
    %cst_30 = arith.constant 5.120000e+02 : f32
    %35 = vector.broadcast %cst_30 : f32 to vector<1x16xf32>
    %36 = arith.divf %34, %35 : vector<1x16xf32>
    %cst_31 = arith.constant 9.99999974E-6 : f32
    %37 = vector.broadcast %cst_31 : f32 to vector<1x16xf32>
    %38 = arith.addf %36, %37 : vector<1x16xf32>
    %39 = math.rsqrt %38 : vector<1x16xf32>
    %cst_32 = arith.constant dense<0.000000e+00> : vector<1x256xf32>
    %40 = tpu.matmul %39, %22, %cst_32 {dimension_numbers = #tpu.dot_dimension_numbers<[1], [0], [0], [1], [0, 0, 1, 1], [], []>} : vector<1x16xf32>, vector<16x256xf32>, vector<1x256xf32> -> vector<1x256xf32>
    %41 = vector.broadcast %40 : vector<1x256xf32> to vector<32x256xf32>
    %42 = arith.mulf %30, %41 : vector<32x256xf32>
    %cst_33 = arith.constant 0.000000e+00 : f32
    %43 = vector.broadcast %cst_33 : f32 to vector<32x256xf32>
    %44 = arith.maximumf %42, %43 : vector<32x256xf32>
    %c0_34 = arith.constant 0 : index
    %c0_35 = arith.constant 0 : index
    %c0_36 = arith.constant 0 : index
    %45 = vector.load %arg3[%c0_34, %c0_35, %c0_36] : memref<3x16x32xf32, #tpu.memory_space<vmem>>, vector<1x16x32xf32>
    %46 = vector.shape_cast %45 : vector<1x16x32xf32> to vector<16x32xf32>
    %cst_37 = arith.constant dense<0.000000e+00> : vector<16x256xf32>
    %47 = tpu.matmul %46, %44, %cst_37 {dimension_numbers = #tpu.dot_dimension_numbers<[1], [0], [0], [1], [0, 0, 1, 1], [], []>} : vector<16x32xf32>, vector<32x256xf32>, vector<16x256xf32> -> vector<16x256xf32>
    %c0_38 = arith.constant 0 : index
    %c0_39 = arith.constant 0 : index
    %c0_40 = arith.constant 0 : index
    %48 = vector.load %arg8[%c0_38, %c0_39, %c0_40] : memref<3x256x256xf32, #tpu.memory_space<vmem>>, vector<1x256x256xf32>
    %49 = vector.shape_cast %48 : vector<1x256x256xf32> to vector<256x256xf32>
    %cst_41 = arith.constant dense<0.000000e+00> : vector<16x256xf32>
    %50 = tpu.matmul %47, %49, %cst_41 {dimension_numbers = #tpu.dot_dimension_numbers<[1], [0], [0], [1], [0, 0, 1, 1], [], []>} : vector<16x256xf32>, vector<256x256xf32>, vector<16x256xf32> -> vector<16x256xf32>
    %c1_42 = arith.constant 1 : index
    %c0_43 = arith.constant 0 : index
    %c0_44 = arith.constant 0 : index
    %51 = vector.load %arg3[%c1_42, %c0_43, %c0_44] : memref<3x16x32xf32, #tpu.memory_space<vmem>>, vector<1x16x32xf32>
    %52 = vector.shape_cast %51 : vector<1x16x32xf32> to vector<16x32xf32>
    %cst_45 = arith.constant dense<0.000000e+00> : vector<16x256xf32>
    %53 = tpu.matmul %52, %44, %cst_45 {dimension_numbers = #tpu.dot_dimension_numbers<[1], [0], [0], [1], [0, 0, 1, 1], [], []>} : vector<16x32xf32>, vector<32x256xf32>, vector<16x256xf32> -> vector<16x256xf32>
    %c1_46 = arith.constant 1 : index
    %c0_47 = arith.constant 0 : index
    %c0_48 = arith.constant 0 : index
    %54 = vector.load %arg8[%c1_46, %c0_47, %c0_48] : memref<3x256x256xf32, #tpu.memory_space<vmem>>, vector<1x256x256xf32>
    %55 = vector.shape_cast %54 : vector<1x256x256xf32> to vector<256x256xf32>
    %cst_49 = arith.constant dense<0.000000e+00> : vector<16x256xf32>
    %56 = tpu.matmul %53, %55, %cst_49 {dimension_numbers = #tpu.dot_dimension_numbers<[1], [0], [0], [1], [0, 0, 1, 1], [], []>} : vector<16x256xf32>, vector<256x256xf32>, vector<16x256xf32> -> vector<16x256xf32>
    %57 = arith.addf %50, %56 : vector<16x256xf32>
    %c2_50 = arith.constant 2 : index
    %c0_51 = arith.constant 0 : index
    %c0_52 = arith.constant 0 : index
    %58 = vector.load %arg3[%c2_50, %c0_51, %c0_52] : memref<3x16x32xf32, #tpu.memory_space<vmem>>, vector<1x16x32xf32>
    %59 = vector.shape_cast %58 : vector<1x16x32xf32> to vector<16x32xf32>
    %cst_53 = arith.constant dense<0.000000e+00> : vector<16x256xf32>
    %60 = tpu.matmul %59, %44, %cst_53 {dimension_numbers = #tpu.dot_dimension_numbers<[1], [0], [0], [1], [0, 0, 1, 1], [], []>} : vector<16x32xf32>, vector<32x256xf32>, vector<16x256xf32> -> vector<16x256xf32>
    %c2_54 = arith.constant 2 : index
    %c0_55 = arith.constant 0 : index
    %c0_56 = arith.constant 0 : index
    %61 = vector.load %arg8[%c2_54, %c0_55, %c0_56] : memref<3x256x256xf32, #tpu.memory_space<vmem>>, vector<1x256x256xf32>
    %62 = vector.shape_cast %61 : vector<1x256x256xf32> to vector<256x256xf32>
    %cst_57 = arith.constant dense<0.000000e+00> : vector<16x256xf32>
    %63 = tpu.matmul %60, %62, %cst_57 {dimension_numbers = #tpu.dot_dimension_numbers<[1], [0], [0], [1], [0, 0, 1, 1], [], []>} : vector<16x256xf32>, vector<256x256xf32>, vector<16x256xf32> -> vector<16x256xf32>
    %64 = arith.addf %57, %63 : vector<16x256xf32>
    %c0_58 = arith.constant 0 : index
    %c0_59 = arith.constant 0 : index
    %65 = vector.load %arg13[%c0_58, %c0_59] : memref<256x32xf32, #tpu.memory_space<vmem>>, vector<256x32xf32>
    %66 = tpu.transpose %65, [1, 0] : vector<256x32xf32> -> vector<32x256xf32>
    %cst_60 = arith.constant dense<0.000000e+00> : vector<256xf32>
    %67 = vector.multi_reduction <add>, %64, %cst_60 [0] : vector<16x256xf32> to vector<256xf32>
    %68 = vector.shape_cast %67 : vector<256xf32> to vector<1x256xf32>
    %cst_61 = arith.constant dense<0.000000e+00> : vector<1x32xf32>
    %69 = tpu.matmul %68, %65, %cst_61 {dimension_numbers = #tpu.dot_dimension_numbers<[1], [0], [0], [1], [0, 0, 1, 1], [], []>} : vector<1x256xf32>, vector<256x32xf32>, vector<1x32xf32> -> vector<1x32xf32>
    %cst_62 = arith.constant 1.280000e+02 : f32
    %70 = vector.broadcast %cst_62 : f32 to vector<1x32xf32>
    %71 = arith.divf %69, %70 : vector<1x32xf32>
    %cst_63 = arith.constant dense<0.000000e+00> : vector<1x256xf32>
    %72 = tpu.matmul %71, %66, %cst_63 {dimension_numbers = #tpu.dot_dimension_numbers<[1], [0], [0], [1], [0, 0, 1, 1], [], []>} : vector<1x32xf32>, vector<32x256xf32>, vector<1x256xf32> -> vector<1x256xf32>
    %73 = vector.broadcast %72 : vector<1x256xf32> to vector<16x256xf32>
    %74 = arith.subf %64, %73 : vector<16x256xf32>
    %75 = arith.mulf %74, %74 : vector<16x256xf32>
    %cst_64 = arith.constant dense<0.000000e+00> : vector<256xf32>
    %76 = vector.multi_reduction <add>, %75, %cst_64 [0] : vector<16x256xf32> to vector<256xf32>
    %77 = vector.shape_cast %76 : vector<256xf32> to vector<1x256xf32>
    %cst_65 = arith.constant dense<0.000000e+00> : vector<1x32xf32>
    %78 = tpu.matmul %77, %65, %cst_65 {dimension_numbers = #tpu.dot_dimension_numbers<[1], [0], [0], [1], [0, 0, 1, 1], [], []>} : vector<1x256xf32>, vector<256x32xf32>, vector<1x32xf32> -> vector<1x32xf32>
    %cst_66 = arith.constant 1.280000e+02 : f32
    %79 = vector.broadcast %cst_66 : f32 to vector<1x32xf32>
    %80 = arith.divf %78, %79 : vector<1x32xf32>
    %cst_67 = arith.constant 9.99999974E-6 : f32
    %81 = vector.broadcast %cst_67 : f32 to vector<1x32xf32>
    %82 = arith.addf %80, %81 : vector<1x32xf32>
    %83 = math.rsqrt %82 : vector<1x32xf32>
    %cst_68 = arith.constant dense<0.000000e+00> : vector<1x256xf32>
    %84 = tpu.matmul %83, %66, %cst_68 {dimension_numbers = #tpu.dot_dimension_numbers<[1], [0], [0], [1], [0, 0, 1, 1], [], []>} : vector<1x32xf32>, vector<32x256xf32>, vector<1x256xf32> -> vector<1x256xf32>
    %85 = vector.broadcast %84 : vector<1x256xf32> to vector<16x256xf32>
    %86 = arith.mulf %74, %85 : vector<16x256xf32>
    %cst_69 = arith.constant 0.000000e+00 : f32
    %87 = vector.broadcast %cst_69 : f32 to vector<16x256xf32>
    %88 = arith.maximumf %86, %87 : vector<16x256xf32>
    %c0_70 = arith.constant 0 : index
    %c0_71 = arith.constant 0 : index
    %c0_72 = arith.constant 0 : index
    %89 = vector.load %arg4[%c0_70, %c0_71, %c0_72] : memref<3x8x16xf32, #tpu.memory_space<vmem>>, vector<1x8x16xf32>
    %90 = vector.shape_cast %89 : vector<1x8x16xf32> to vector<8x16xf32>
    %cst_73 = arith.constant dense<0.000000e+00> : vector<8x256xf32>
    %91 = tpu.matmul %90, %88, %cst_73 {dimension_numbers = #tpu.dot_dimension_numbers<[1], [0], [0], [1], [0, 0, 1, 1], [], []>} : vector<8x16xf32>, vector<16x256xf32>, vector<8x256xf32> -> vector<8x256xf32>
    %c0_74 = arith.constant 0 : index
    %c0_75 = arith.constant 0 : index
    %c0_76 = arith.constant 0 : index
    %92 = vector.load %arg9[%c0_74, %c0_75, %c0_76] : memref<3x256x256xf32, #tpu.memory_space<vmem>>, vector<1x256x256xf32>
    %93 = vector.shape_cast %92 : vector<1x256x256xf32> to vector<256x256xf32>
    %cst_77 = arith.constant dense<0.000000e+00> : vector<8x256xf32>
    %94 = tpu.matmul %91, %93, %cst_77 {dimension_numbers = #tpu.dot_dimension_numbers<[1], [0], [0], [1], [0, 0, 1, 1], [], []>} : vector<8x256xf32>, vector<256x256xf32>, vector<8x256xf32> -> vector<8x256xf32>
    %c1_78 = arith.constant 1 : index
    %c0_79 = arith.constant 0 : index
    %c0_80 = arith.constant 0 : index
    %95 = vector.load %arg4[%c1_78, %c0_79, %c0_80] : memref<3x8x16xf32, #tpu.memory_space<vmem>>, vector<1x8x16xf32>
    %96 = vector.shape_cast %95 : vector<1x8x16xf32> to vector<8x16xf32>
    %cst_81 = arith.constant dense<0.000000e+00> : vector<8x256xf32>
    %97 = tpu.matmul %96, %88, %cst_81 {dimension_numbers = #tpu.dot_dimension_numbers<[1], [0], [0], [1], [0, 0, 1, 1], [], []>} : vector<8x16xf32>, vector<16x256xf32>, vector<8x256xf32> -> vector<8x256xf32>
    %c1_82 = arith.constant 1 : index
    %c0_83 = arith.constant 0 : index
    %c0_84 = arith.constant 0 : index
    %98 = vector.load %arg9[%c1_82, %c0_83, %c0_84] : memref<3x256x256xf32, #tpu.memory_space<vmem>>, vector<1x256x256xf32>
    %99 = vector.shape_cast %98 : vector<1x256x256xf32> to vector<256x256xf32>
    %cst_85 = arith.constant dense<0.000000e+00> : vector<8x256xf32>
    %100 = tpu.matmul %97, %99, %cst_85 {dimension_numbers = #tpu.dot_dimension_numbers<[1], [0], [0], [1], [0, 0, 1, 1], [], []>} : vector<8x256xf32>, vector<256x256xf32>, vector<8x256xf32> -> vector<8x256xf32>
    %101 = arith.addf %94, %100 : vector<8x256xf32>
    %c2_86 = arith.constant 2 : index
    %c0_87 = arith.constant 0 : index
    %c0_88 = arith.constant 0 : index
    %102 = vector.load %arg4[%c2_86, %c0_87, %c0_88] : memref<3x8x16xf32, #tpu.memory_space<vmem>>, vector<1x8x16xf32>
    %103 = vector.shape_cast %102 : vector<1x8x16xf32> to vector<8x16xf32>
    %cst_89 = arith.constant dense<0.000000e+00> : vector<8x256xf32>
    %104 = tpu.matmul %103, %88, %cst_89 {dimension_numbers = #tpu.dot_dimension_numbers<[1], [0], [0], [1], [0, 0, 1, 1], [], []>} : vector<8x16xf32>, vector<16x256xf32>, vector<8x256xf32> -> vector<8x256xf32>
    %c2_90 = arith.constant 2 : index
    %c0_91 = arith.constant 0 : index
    %c0_92 = arith.constant 0 : index
    %105 = vector.load %arg9[%c2_90, %c0_91, %c0_92] : memref<3x256x256xf32, #tpu.memory_space<vmem>>, vector<1x256x256xf32>
    %106 = vector.shape_cast %105 : vector<1x256x256xf32> to vector<256x256xf32>
    %cst_93 = arith.constant dense<0.000000e+00> : vector<8x256xf32>
    %107 = tpu.matmul %104, %106, %cst_93 {dimension_numbers = #tpu.dot_dimension_numbers<[1], [0], [0], [1], [0, 0, 1, 1], [], []>} : vector<8x256xf32>, vector<256x256xf32>, vector<8x256xf32> -> vector<8x256xf32>
    %108 = arith.addf %101, %107 : vector<8x256xf32>
    %c0_94 = arith.constant 0 : index
    %c0_95 = arith.constant 0 : index
    %109 = vector.load %arg14[%c0_94, %c0_95] : memref<256x64xf32, #tpu.memory_space<vmem>>, vector<256x64xf32>
    %110 = tpu.transpose %109, [1, 0] : vector<256x64xf32> -> vector<64x256xf32>
    %cst_96 = arith.constant dense<0.000000e+00> : vector<256xf32>
    %111 = vector.multi_reduction <add>, %108, %cst_96 [0] : vector<8x256xf32> to vector<256xf32>
    %112 = vector.shape_cast %111 : vector<256xf32> to vector<1x256xf32>
    %cst_97 = arith.constant dense<0.000000e+00> : vector<1x64xf32>
    %113 = tpu.matmul %112, %109, %cst_97 {dimension_numbers = #tpu.dot_dimension_numbers<[1], [0], [0], [1], [0, 0, 1, 1], [], []>} : vector<1x256xf32>, vector<256x64xf32>, vector<1x64xf32> -> vector<1x64xf32>
    %cst_98 = arith.constant 3.200000e+01 : f32
    %114 = vector.broadcast %cst_98 : f32 to vector<1x64xf32>
    %115 = arith.divf %113, %114 : vector<1x64xf32>
    %cst_99 = arith.constant dense<0.000000e+00> : vector<1x256xf32>
    %116 = tpu.matmul %115, %110, %cst_99 {dimension_numbers = #tpu.dot_dimension_numbers<[1], [0], [0], [1], [0, 0, 1, 1], [], []>} : vector<1x64xf32>, vector<64x256xf32>, vector<1x256xf32> -> vector<1x256xf32>
    %117 = vector.broadcast %116 : vector<1x256xf32> to vector<8x256xf32>
    %118 = arith.subf %108, %117 : vector<8x256xf32>
    %119 = arith.mulf %118, %118 : vector<8x256xf32>
    %cst_100 = arith.constant dense<0.000000e+00> : vector<256xf32>
    %120 = vector.multi_reduction <add>, %119, %cst_100 [0] : vector<8x256xf32> to vector<256xf32>
    %121 = vector.shape_cast %120 : vector<256xf32> to vector<1x256xf32>
    %cst_101 = arith.constant dense<0.000000e+00> : vector<1x64xf32>
    %122 = tpu.matmul %121, %109, %cst_101 {dimension_numbers = #tpu.dot_dimension_numbers<[1], [0], [0], [1], [0, 0, 1, 1], [], []>} : vector<1x256xf32>, vector<256x64xf32>, vector<1x64xf32> -> vector<1x64xf32>
    %cst_102 = arith.constant 3.200000e+01 : f32
    %123 = vector.broadcast %cst_102 : f32 to vector<1x64xf32>
    %124 = arith.divf %122, %123 : vector<1x64xf32>
    %cst_103 = arith.constant 9.99999974E-6 : f32
    %125 = vector.broadcast %cst_103 : f32 to vector<1x64xf32>
    %126 = arith.addf %124, %125 : vector<1x64xf32>
    %127 = math.rsqrt %126 : vector<1x64xf32>
    %cst_104 = arith.constant dense<0.000000e+00> : vector<1x256xf32>
    %128 = tpu.matmul %127, %110, %cst_104 {dimension_numbers = #tpu.dot_dimension_numbers<[1], [0], [0], [1], [0, 0, 1, 1], [], []>} : vector<1x64xf32>, vector<64x256xf32>, vector<1x256xf32> -> vector<1x256xf32>
    %129 = vector.broadcast %128 : vector<1x256xf32> to vector<8x256xf32>
    %130 = arith.mulf %118, %129 : vector<8x256xf32>
    %cst_105 = arith.constant 0.000000e+00 : f32
    %131 = vector.broadcast %cst_105 : f32 to vector<8x256xf32>
    %132 = arith.maximumf %130, %131 : vector<8x256xf32>
    %c0_106 = arith.constant 0 : index
    %c0_107 = arith.constant 0 : index
    %c0_108 = arith.constant 0 : index
    %133 = vector.load %arg5[%c0_106, %c0_107, %c0_108] : memref<3x4x8xf32, #tpu.memory_space<vmem>>, vector<1x4x8xf32>
    %134 = vector.shape_cast %133 : vector<1x4x8xf32> to vector<4x8xf32>
    %cst_109 = arith.constant dense<0.000000e+00> : vector<4x256xf32>
    %135 = tpu.matmul %134, %132, %cst_109 {dimension_numbers = #tpu.dot_dimension_numbers<[1], [0], [0], [1], [0, 0, 1, 1], [], []>} : vector<4x8xf32>, vector<8x256xf32>, vector<4x256xf32> -> vector<4x256xf32>
    %c0_110 = arith.constant 0 : index
    %c0_111 = arith.constant 0 : index
    %c0_112 = arith.constant 0 : index
    %136 = vector.load %arg10[%c0_110, %c0_111, %c0_112] : memref<3x256x256xf32, #tpu.memory_space<vmem>>, vector<1x256x256xf32>
    %137 = vector.shape_cast %136 : vector<1x256x256xf32> to vector<256x256xf32>
    %cst_113 = arith.constant dense<0.000000e+00> : vector<4x256xf32>
    %138 = tpu.matmul %135, %137, %cst_113 {dimension_numbers = #tpu.dot_dimension_numbers<[1], [0], [0], [1], [0, 0, 1, 1], [], []>} : vector<4x256xf32>, vector<256x256xf32>, vector<4x256xf32> -> vector<4x256xf32>
    %c1_114 = arith.constant 1 : index
    %c0_115 = arith.constant 0 : index
    %c0_116 = arith.constant 0 : index
    %139 = vector.load %arg5[%c1_114, %c0_115, %c0_116] : memref<3x4x8xf32, #tpu.memory_space<vmem>>, vector<1x4x8xf32>
    %140 = vector.shape_cast %139 : vector<1x4x8xf32> to vector<4x8xf32>
    %cst_117 = arith.constant dense<0.000000e+00> : vector<4x256xf32>
    %141 = tpu.matmul %140, %132, %cst_117 {dimension_numbers = #tpu.dot_dimension_numbers<[1], [0], [0], [1], [0, 0, 1, 1], [], []>} : vector<4x8xf32>, vector<8x256xf32>, vector<4x256xf32> -> vector<4x256xf32>
    %c1_118 = arith.constant 1 : index
    %c0_119 = arith.constant 0 : index
    %c0_120 = arith.constant 0 : index
    %142 = vector.load %arg10[%c1_118, %c0_119, %c0_120] : memref<3x256x256xf32, #tpu.memory_space<vmem>>, vector<1x256x256xf32>
    %143 = vector.shape_cast %142 : vector<1x256x256xf32> to vector<256x256xf32>
    %cst_121 = arith.constant dense<0.000000e+00> : vector<4x256xf32>
    %144 = tpu.matmul %141, %143, %cst_121 {dimension_numbers = #tpu.dot_dimension_numbers<[1], [0], [0], [1], [0, 0, 1, 1], [], []>} : vector<4x256xf32>, vector<256x256xf32>, vector<4x256xf32> -> vector<4x256xf32>
    %145 = arith.addf %138, %144 : vector<4x256xf32>
    %c2_122 = arith.constant 2 : index
    %c0_123 = arith.constant 0 : index
    %c0_124 = arith.constant 0 : index
    %146 = vector.load %arg5[%c2_122, %c0_123, %c0_124] : memref<3x4x8xf32, #tpu.memory_space<vmem>>, vector<1x4x8xf32>
    %147 = vector.shape_cast %146 : vector<1x4x8xf32> to vector<4x8xf32>
    %cst_125 = arith.constant dense<0.000000e+00> : vector<4x256xf32>
    %148 = tpu.matmul %147, %132, %cst_125 {dimension_numbers = #tpu.dot_dimension_numbers<[1], [0], [0], [1], [0, 0, 1, 1], [], []>} : vector<4x8xf32>, vector<8x256xf32>, vector<4x256xf32> -> vector<4x256xf32>
    %c2_126 = arith.constant 2 : index
    %c0_127 = arith.constant 0 : index
    %c0_128 = arith.constant 0 : index
    %149 = vector.load %arg10[%c2_126, %c0_127, %c0_128] : memref<3x256x256xf32, #tpu.memory_space<vmem>>, vector<1x256x256xf32>
    %150 = vector.shape_cast %149 : vector<1x256x256xf32> to vector<256x256xf32>
    %cst_129 = arith.constant dense<0.000000e+00> : vector<4x256xf32>
    %151 = tpu.matmul %148, %150, %cst_129 {dimension_numbers = #tpu.dot_dimension_numbers<[1], [0], [0], [1], [0, 0, 1, 1], [], []>} : vector<4x256xf32>, vector<256x256xf32>, vector<4x256xf32> -> vector<4x256xf32>
    %152 = arith.addf %145, %151 : vector<4x256xf32>
    %c0_130 = arith.constant 0 : index
    %c0_131 = arith.constant 0 : index
    %153 = vector.load %arg15[%c0_130, %c0_131] : memref<256x128xf32, #tpu.memory_space<vmem>>, vector<256x128xf32>
    %154 = tpu.transpose %153, [1, 0] : vector<256x128xf32> -> vector<128x256xf32>
    %cst_132 = arith.constant dense<0.000000e+00> : vector<256xf32>
    %155 = vector.multi_reduction <add>, %152, %cst_132 [0] : vector<4x256xf32> to vector<256xf32>
    %156 = vector.shape_cast %155 : vector<256xf32> to vector<1x256xf32>
    %cst_133 = arith.constant dense<0.000000e+00> : vector<1x128xf32>
    %157 = tpu.matmul %156, %153, %cst_133 {dimension_numbers = #tpu.dot_dimension_numbers<[1], [0], [0], [1], [0, 0, 1, 1], [], []>} : vector<1x256xf32>, vector<256x128xf32>, vector<1x128xf32> -> vector<1x128xf32>
    %cst_134 = arith.constant 8.000000e+00 : f32
    %158 = vector.broadcast %cst_134 : f32 to vector<1x128xf32>
    %159 = arith.divf %157, %158 : vector<1x128xf32>
    %cst_135 = arith.constant dense<0.000000e+00> : vector<1x256xf32>
    %160 = tpu.matmul %159, %154, %cst_135 {dimension_numbers = #tpu.dot_dimension_numbers<[1], [0], [0], [1], [0, 0, 1, 1], [], []>} : vector<1x128xf32>, vector<128x256xf32>, vector<1x256xf32> -> vector<1x256xf32>
    %161 = vector.broadcast %160 : vector<1x256xf32> to vector<4x256xf32>
    %162 = arith.subf %152, %161 : vector<4x256xf32>
    %163 = arith.mulf %162, %162 : vector<4x256xf32>
    %cst_136 = arith.constant dense<0.000000e+00> : vector<256xf32>
    %164 = vector.multi_reduction <add>, %163, %cst_136 [0] : vector<4x256xf32> to vector<256xf32>
    %165 = vector.shape_cast %164 : vector<256xf32> to vector<1x256xf32>
    %cst_137 = arith.constant dense<0.000000e+00> : vector<1x128xf32>
    %166 = tpu.matmul %165, %153, %cst_137 {dimension_numbers = #tpu.dot_dimension_numbers<[1], [0], [0], [1], [0, 0, 1, 1], [], []>} : vector<1x256xf32>, vector<256x128xf32>, vector<1x128xf32> -> vector<1x128xf32>
    %cst_138 = arith.constant 8.000000e+00 : f32
    %167 = vector.broadcast %cst_138 : f32 to vector<1x128xf32>
    %168 = arith.divf %166, %167 : vector<1x128xf32>
    %cst_139 = arith.constant 9.99999974E-6 : f32
    %169 = vector.broadcast %cst_139 : f32 to vector<1x128xf32>
    %170 = arith.addf %168, %169 : vector<1x128xf32>
    %171 = math.rsqrt %170 : vector<1x128xf32>
    %cst_140 = arith.constant dense<0.000000e+00> : vector<1x256xf32>
    %172 = tpu.matmul %171, %154, %cst_140 {dimension_numbers = #tpu.dot_dimension_numbers<[1], [0], [0], [1], [0, 0, 1, 1], [], []>} : vector<1x128xf32>, vector<128x256xf32>, vector<1x256xf32> -> vector<1x256xf32>
    %173 = vector.broadcast %172 : vector<1x256xf32> to vector<4x256xf32>
    %174 = arith.mulf %162, %173 : vector<4x256xf32>
    %cst_141 = arith.constant 0.000000e+00 : f32
    %175 = vector.broadcast %cst_141 : f32 to vector<4x256xf32>
    %176 = arith.maximumf %174, %175 : vector<4x256xf32>
    %c0_142 = arith.constant 0 : index
    %c0_143 = arith.constant 0 : index
    %c0_144 = arith.constant 0 : index
    %177 = vector.load %arg6[%c0_142, %c0_143, %c0_144] : memref<3x2x4xf32, #tpu.memory_space<vmem>>, vector<1x2x4xf32>
    %178 = vector.shape_cast %177 : vector<1x2x4xf32> to vector<2x4xf32>
    %cst_145 = arith.constant dense<0.000000e+00> : vector<2x256xf32>
    %179 = tpu.matmul %178, %176, %cst_145 {dimension_numbers = #tpu.dot_dimension_numbers<[1], [0], [0], [1], [0, 0, 1, 1], [], []>} : vector<2x4xf32>, vector<4x256xf32>, vector<2x256xf32> -> vector<2x256xf32>
    %c0_146 = arith.constant 0 : index
    %c0_147 = arith.constant 0 : index
    %c0_148 = arith.constant 0 : index
    %180 = vector.load %arg11[%c0_146, %c0_147, %c0_148] : memref<3x256x256xf32, #tpu.memory_space<vmem>>, vector<1x256x256xf32>
    %181 = vector.shape_cast %180 : vector<1x256x256xf32> to vector<256x256xf32>
    %cst_149 = arith.constant dense<0.000000e+00> : vector<2x256xf32>
    %182 = tpu.matmul %179, %181, %cst_149 {dimension_numbers = #tpu.dot_dimension_numbers<[1], [0], [0], [1], [0, 0, 1, 1], [], []>} : vector<2x256xf32>, vector<256x256xf32>, vector<2x256xf32> -> vector<2x256xf32>
    %c1_150 = arith.constant 1 : index
    %c0_151 = arith.constant 0 : index
    %c0_152 = arith.constant 0 : index
    %183 = vector.load %arg6[%c1_150, %c0_151, %c0_152] : memref<3x2x4xf32, #tpu.memory_space<vmem>>, vector<1x2x4xf32>
    %184 = vector.shape_cast %183 : vector<1x2x4xf32> to vector<2x4xf32>
    %cst_153 = arith.constant dense<0.000000e+00> : vector<2x256xf32>
    %185 = tpu.matmul %184, %176, %cst_153 {dimension_numbers = #tpu.dot_dimension_numbers<[1], [0], [0], [1], [0, 0, 1, 1], [], []>} : vector<2x4xf32>, vector<4x256xf32>, vector<2x256xf32> -> vector<2x256xf32>
    %c1_154 = arith.constant 1 : index
    %c0_155 = arith.constant 0 : index
    %c0_156 = arith.constant 0 : index
    %186 = vector.load %arg11[%c1_154, %c0_155, %c0_156] : memref<3x256x256xf32, #tpu.memory_space<vmem>>, vector<1x256x256xf32>
    %187 = vector.shape_cast %186 : vector<1x256x256xf32> to vector<256x256xf32>
    %cst_157 = arith.constant dense<0.000000e+00> : vector<2x256xf32>
    %188 = tpu.matmul %185, %187, %cst_157 {dimension_numbers = #tpu.dot_dimension_numbers<[1], [0], [0], [1], [0, 0, 1, 1], [], []>} : vector<2x256xf32>, vector<256x256xf32>, vector<2x256xf32> -> vector<2x256xf32>
    %189 = arith.addf %182, %188 : vector<2x256xf32>
    %c2_158 = arith.constant 2 : index
    %c0_159 = arith.constant 0 : index
    %c0_160 = arith.constant 0 : index
    %190 = vector.load %arg6[%c2_158, %c0_159, %c0_160] : memref<3x2x4xf32, #tpu.memory_space<vmem>>, vector<1x2x4xf32>
    %191 = vector.shape_cast %190 : vector<1x2x4xf32> to vector<2x4xf32>
    %cst_161 = arith.constant dense<0.000000e+00> : vector<2x256xf32>
    %192 = tpu.matmul %191, %176, %cst_161 {dimension_numbers = #tpu.dot_dimension_numbers<[1], [0], [0], [1], [0, 0, 1, 1], [], []>} : vector<2x4xf32>, vector<4x256xf32>, vector<2x256xf32> -> vector<2x256xf32>
    %c2_162 = arith.constant 2 : index
    %c0_163 = arith.constant 0 : index
    %c0_164 = arith.constant 0 : index
    %193 = vector.load %arg11[%c2_162, %c0_163, %c0_164] : memref<3x256x256xf32, #tpu.memory_space<vmem>>, vector<1x256x256xf32>
    %194 = vector.shape_cast %193 : vector<1x256x256xf32> to vector<256x256xf32>
    %cst_165 = arith.constant dense<0.000000e+00> : vector<2x256xf32>
    %195 = tpu.matmul %192, %194, %cst_165 {dimension_numbers = #tpu.dot_dimension_numbers<[1], [0], [0], [1], [0, 0, 1, 1], [], []>} : vector<2x256xf32>, vector<256x256xf32>, vector<2x256xf32> -> vector<2x256xf32>
    %196 = arith.addf %189, %195 : vector<2x256xf32>
    %c0_166 = arith.constant 0 : index
    %c0_167 = arith.constant 0 : index
    %197 = vector.load %arg16[%c0_166, %c0_167] : memref<256x256xf32, #tpu.memory_space<vmem>>, vector<256x256xf32>
    %198 = tpu.transpose %197, [1, 0] : vector<256x256xf32> -> vector<256x256xf32>
    %cst_168 = arith.constant dense<0.000000e+00> : vector<256xf32>
    %199 = vector.multi_reduction <add>, %196, %cst_168 [0] : vector<2x256xf32> to vector<256xf32>
    %200 = vector.shape_cast %199 : vector<256xf32> to vector<1x256xf32>
    %cst_169 = arith.constant dense<0.000000e+00> : vector<1x256xf32>
    %201 = tpu.matmul %200, %197, %cst_169 {dimension_numbers = #tpu.dot_dimension_numbers<[1], [0], [0], [1], [0, 0, 1, 1], [], []>} : vector<1x256xf32>, vector<256x256xf32>, vector<1x256xf32> -> vector<1x256xf32>
    %cst_170 = arith.constant 2.000000e+00 : f32
    %202 = vector.broadcast %cst_170 : f32 to vector<1x256xf32>
    %203 = arith.divf %201, %202 : vector<1x256xf32>
    %cst_171 = arith.constant dense<0.000000e+00> : vector<1x256xf32>
    %204 = tpu.matmul %203, %198, %cst_171 {dimension_numbers = #tpu.dot_dimension_numbers<[1], [0], [0], [1], [0, 0, 1, 1], [], []>} : vector<1x256xf32>, vector<256x256xf32>, vector<1x256xf32> -> vector<1x256xf32>
    %205 = vector.broadcast %204 : vector<1x256xf32> to vector<2x256xf32>
    %206 = arith.subf %196, %205 : vector<2x256xf32>
    %207 = arith.mulf %206, %206 : vector<2x256xf32>
    %cst_172 = arith.constant dense<0.000000e+00> : vector<256xf32>
    %208 = vector.multi_reduction <add>, %207, %cst_172 [0] : vector<2x256xf32> to vector<256xf32>
    %209 = vector.shape_cast %208 : vector<256xf32> to vector<1x256xf32>
    %cst_173 = arith.constant dense<0.000000e+00> : vector<1x256xf32>
    %210 = tpu.matmul %209, %197, %cst_173 {dimension_numbers = #tpu.dot_dimension_numbers<[1], [0], [0], [1], [0, 0, 1, 1], [], []>} : vector<1x256xf32>, vector<256x256xf32>, vector<1x256xf32> -> vector<1x256xf32>
    %cst_174 = arith.constant 2.000000e+00 : f32
    %211 = vector.broadcast %cst_174 : f32 to vector<1x256xf32>
    %212 = arith.divf %210, %211 : vector<1x256xf32>
    %cst_175 = arith.constant 9.99999974E-6 : f32
    %213 = vector.broadcast %cst_175 : f32 to vector<1x256xf32>
    %214 = arith.addf %212, %213 : vector<1x256xf32>
    %215 = math.rsqrt %214 : vector<1x256xf32>
    %cst_176 = arith.constant dense<0.000000e+00> : vector<1x256xf32>
    %216 = tpu.matmul %215, %198, %cst_176 {dimension_numbers = #tpu.dot_dimension_numbers<[1], [0], [0], [1], [0, 0, 1, 1], [], []>} : vector<1x256xf32>, vector<256x256xf32>, vector<1x256xf32> -> vector<1x256xf32>
    %217 = vector.broadcast %216 : vector<1x256xf32> to vector<2x256xf32>
    %218 = arith.mulf %206, %217 : vector<2x256xf32>
    %cst_177 = arith.constant 0.000000e+00 : f32
    %219 = vector.broadcast %cst_177 : f32 to vector<2x256xf32>
    %220 = arith.maximumf %218, %219 : vector<2x256xf32>
    %c0_178 = arith.constant 0 : index
    %c0_179 = arith.constant 0 : index
    %c0_180 = arith.constant 0 : index
    %221 = vector.load %arg17[%c0_178, %c0_179, %c0_180] : memref<1x2x2xf32, #tpu.memory_space<vmem>>, vector<1x2x2xf32>
    %222 = vector.shape_cast %221 : vector<1x2x2xf32> to vector<2x2xf32>
    %cst_181 = arith.constant dense<0.000000e+00> : vector<2x256xf32>
    %223 = tpu.matmul %222, %220, %cst_181 {dimension_numbers = #tpu.dot_dimension_numbers<[1], [0], [0], [1], [0, 0, 1, 1], [], []>} : vector<2x2xf32>, vector<2x256xf32>, vector<2x256xf32> -> vector<2x256xf32>
    %c0_182 = arith.constant 0 : index
    %c0_183 = arith.constant 0 : index
    %c0_184 = arith.constant 0 : index
    %224 = vector.load %arg18[%c0_182, %c0_183, %c0_184] : memref<1x256x32xf32, #tpu.memory_space<vmem>>, vector<1x256x32xf32>
    %225 = vector.shape_cast %224 : vector<1x256x32xf32> to vector<256x32xf32>
    %cst_185 = arith.constant dense<0.000000e+00> : vector<2x32xf32>
    %226 = tpu.matmul %223, %225, %cst_185 {dimension_numbers = #tpu.dot_dimension_numbers<[1], [0], [0], [1], [0, 0, 1, 1], [], []>} : vector<2x256xf32>, vector<256x32xf32>, vector<2x32xf32> -> vector<2x32xf32>
    %c0_186 = arith.constant 0 : index
    %c0_187 = arith.constant 0 : index
    %227 = vector.load %arg19[%c0_186, %c0_187] : memref<1x32xf32, #tpu.memory_space<vmem>>, vector<1x32xf32>
    %228 = vector.broadcast %227 : vector<1x32xf32> to vector<2x32xf32>
    %229 = arith.addf %226, %228 : vector<2x32xf32>
    %c0_188 = arith.constant 0 : index
    %c0_189 = arith.constant 0 : index
    %230 = vector.load %arg20[%c0_188, %c0_189] : memref<2x32xf32, #tpu.memory_space<vmem>>, vector<2x32xf32>
    tpu.vector_store %arg20[%c0_188, %c0_189], %229 {strides = array<i32>} : memref<2x32xf32, #tpu.memory_space<vmem>>, vector<2x32xf32>,
    return
  }
  func.func @transform_0(%arg0: i32) -> (i32, i32) {
    %c0_i32 = arith.constant 0 : i32
    %c0_i32_0 = arith.constant 0 : i32
    %c0_i32_1 = arith.constant 0 : i32
    return %c0_i32, %c0_i32_0 : i32, i32
  }
  func.func @transform_1(%arg0: i32) -> (i32, i32, i32) {
    %c0_i32 = arith.constant 0 : i32
    %c0_i32_0 = arith.constant 0 : i32
    %c0_i32_1 = arith.constant 0 : i32
    %c0_i32_2 = arith.constant 0 : i32
    return %c0_i32, %c0_i32_0, %c0_i32_1 : i32, i32, i32
  }
  func.func @transform_2(%arg0: i32) -> (i32, i32, i32) {
    %c0_i32 = arith.constant 0 : i32
    %c0_i32_0 = arith.constant 0 : i32
    %c0_i32_1 = arith.constant 0 : i32
    %c0_i32_2 = arith.constant 0 : i32
    return %c0_i32, %c0_i32_0, %c0_i32_1 : i32, i32, i32
  }
  func.func @transform_3(%arg0: i32) -> (i32, i32, i32) {
    %c0_i32 = arith.constant 0 : i32
    %c0_i32_0 = arith.constant 0 : i32
    %c0_i32_1 = arith.constant 0 : i32
    %c0_i32_2 = arith.constant 0 : i32
    return %c0_i32, %c0_i32_0, %c0_i32_1 : i32, i32, i32
  }
  func.func @transform_4(%arg0: i32) -> (i32, i32, i32) {
    %c0_i32 = arith.constant 0 : i32
    %c0_i32_0 = arith.constant 0 : i32
    %c0_i32_1 = arith.constant 0 : i32
    %c0_i32_2 = arith.constant 0 : i32
    return %c0_i32, %c0_i32_0, %c0_i32_1 : i32, i32, i32
  }
  func.func @transform_5(%arg0: i32) -> (i32, i32, i32) {
    %c0_i32 = arith.constant 0 : i32
    %c0_i32_0 = arith.constant 0 : i32
    %c0_i32_1 = arith.constant 0 : i32
    %c0_i32_2 = arith.constant 0 : i32
    return %c0_i32, %c0_i32_0, %c0_i32_1 : i32, i32, i32
  }
  func.func @transform_6(%arg0: i32) -> (i32, i32, i32) {
    %c0_i32 = arith.constant 0 : i32
    %c0_i32_0 = arith.constant 0 : i32
    %c0_i32_1 = arith.constant 0 : i32
    %c0_i32_2 = arith.constant 0 : i32
    return %c0_i32, %c0_i32_0, %c0_i32_1 : i32, i32, i32
  }
  func.func @transform_7(%arg0: i32) -> (i32, i32, i32) {
    %c0_i32 = arith.constant 0 : i32
    %c0_i32_0 = arith.constant 0 : i32
    %c0_i32_1 = arith.constant 0 : i32
    %c0_i32_2 = arith.constant 0 : i32
    return %c0_i32, %c0_i32_0, %c0_i32_1 : i32, i32, i32
  }
  func.func @transform_8(%arg0: i32) -> (i32, i32, i32) {
    %c0_i32 = arith.constant 0 : i32
    %c0_i32_0 = arith.constant 0 : i32
    %c0_i32_1 = arith.constant 0 : i32
    %c0_i32_2 = arith.constant 0 : i32
    return %c0_i32, %c0_i32_0, %c0_i32_1 : i32, i32, i32
  }
  func.func @transform_9(%arg0: i32) -> (i32, i32, i32) {
    %c0_i32 = arith.constant 0 : i32
    %c0_i32_0 = arith.constant 0 : i32
    %c0_i32_1 = arith.constant 0 : i32
    %c0_i32_2 = arith.constant 0 : i32
    return %c0_i32, %c0_i32_0, %c0_i32_1 : i32, i32, i32
  }
  func.func @transform_10(%arg0: i32) -> (i32, i32, i32) {
    %c0_i32 = arith.constant 0 : i32
    %c0_i32_0 = arith.constant 0 : i32
    %c0_i32_1 = arith.constant 0 : i32
    %c0_i32_2 = arith.constant 0 : i32
    return %c0_i32, %c0_i32_0, %c0_i32_1 : i32, i32, i32
  }
  func.func @transform_11(%arg0: i32) -> (i32, i32) {
    %c0_i32 = arith.constant 0 : i32
    %c0_i32_0 = arith.constant 0 : i32
    %c0_i32_1 = arith.constant 0 : i32
    return %c0_i32, %c0_i32_0 : i32, i32
  }
  func.func @transform_12(%arg0: i32) -> (i32, i32) {
    %c0_i32 = arith.constant 0 : i32
    %c0_i32_0 = arith.constant 0 : i32
    %c0_i32_1 = arith.constant 0 : i32
    return %c0_i32, %c0_i32_0 : i32, i32
  }
  func.func @transform_13(%arg0: i32) -> (i32, i32) {
    %c0_i32 = arith.constant 0 : i32
    %c0_i32_0 = arith.constant 0 : i32
    %c0_i32_1 = arith.constant 0 : i32
    return %c0_i32, %c0_i32_0 : i32, i32
  }
  func.func @transform_14(%arg0: i32) -> (i32, i32) {
    %c0_i32 = arith.constant 0 : i32
    %c0_i32_0 = arith.constant 0 : i32
    %c0_i32_1 = arith.constant 0 : i32
    return %c0_i32, %c0_i32_0 : i32, i32
  }
  func.func @transform_15(%arg0: i32) -> (i32, i32) {
    %c0_i32 = arith.constant 0 : i32
    %c0_i32_0 = arith.constant 0 : i32
    %c0_i32_1 = arith.constant 0 : i32
    return %c0_i32, %c0_i32_0 : i32, i32
  }
  func.func @transform_16(%arg0: i32) -> (i32, i32, i32) {
    %c0_i32 = arith.constant 0 : i32
    %c0_i32_0 = arith.constant 0 : i32
    %c0_i32_1 = arith.constant 0 : i32
    %c0_i32_2 = arith.constant 0 : i32
    return %c0_i32, %c0_i32_0, %c0_i32_1 : i32, i32, i32
  }
  func.func @transform_17(%arg0: i32) -> (i32, i32, i32) {
    %c0_i32 = arith.constant 0 : i32
    %c0_i32_0 = arith.constant 0 : i32
    %c0_i32_1 = arith.constant 0 : i32
    %c0_i32_2 = arith.constant 0 : i32
    return %c0_i32, %c0_i32_0, %c0_i32_1 : i32, i32, i32
  }
  func.func @transform_18(%arg0: i32) -> (i32, i32) {
    %c0_i32 = arith.constant 0 : i32
    %c0_i32_0 = arith.constant 0 : i32
    %c0_i32_1 = arith.constant 0 : i32
    return %c0_i32, %c0_i32_0 : i32, i32
  }
  func.func @transform_19(%arg0: i32) -> (i32, i32) {
    %c0_i32 = arith.constant 0 : i32
    %c0_i32_0 = arith.constant 0 : i32
    %c0_i32_1 = arith.constant 0 : i32
    return %c0_i32, %c0_i32_0 : i32, i32
  }
}

</mosaic_0001>

<bundles_post_ra>
// kernel: fwd.1
= control target key start
LH: loop header
LB: loop body
LE: loop exit
PB: predicated region body
PF: predicated region fallthrough
CT: control target
= control target key end

     0   :  { %s8315_s0 = inlined_call_operand.vmem [shape: f32[64,96], index: 0, kind: input, shape index: {}]   ;;  %s8316_s1 = inlined_call_operand.vmem [shape: f32[3,32,64], index: 1, kind: input, shape index: {}]   ;;  %s8317_s2 = inlined_call_operand.vmem [shape: f32[3,16,32], index: 2, kind: input, shape index: {}]   ;;  %s8318_s3 = inlined_call_operand.vmem [shape: f32[3,8,16], index: 3, kind: input, shape index: {}]   ;;  %s8319_s4 = inlined_call_operand.vmem [shape: f32[3,4,8], index: 4, kind: input, shape index: {}]   ;;  %s8320_s5 = inlined_call_operand.vmem [shape: f32[3,2,4], index: 5, kind: input, shape index: {}]   ;;  %s8321_s6 = inlined_call_operand.vmem [shape: f32[3,96,256], index: 6, kind: input, shape index: {}]   ;;  %s8322_s7 = inlined_call_operand.hbm [shape: f32[3,256,256], index: 7, kind: input, shape index: {}]   ;;  %s8323_s8 = inlined_call_operand.hbm [shape: f32[3,256,256], index: 8, kind: input, shape index: {}]   ;;  %s8324_s9 = inlined_call_operand.hbm [shape: f32[3,256,256], index: 9, kind: input, shape index: {}]   ;;  %s8325_s10 = inlined_call_operand.hbm [shape: f32[3,256,256], index: 10, kind: input, shape index: {}]   ;;  %s8326_s11 = inlined_call_operand.vmem [shape: f32[256,16], index: 11, kind: input, shape index: {}]   ;;  %s8327_s12 = inlined_call_operand.vmem [shape: f32[256,32], index: 12, kind: input, shape index: {}]   ;;  %s8328_s13 = inlined_call_operand.vmem [shape: f32[256,64], index: 13, kind: input, shape index: {}]   ;;  %s8329_s14 = inlined_call_operand.vmem [shape: f32[256,128], index: 14, kind: input, shape index: {}]   ;;  %s8330_s15 = inlined_call_operand.vmem [shape: f32[256,256], index: 15, kind: input, shape index: {}]   ;;  %s8331_s16 = inlined_call_operand.vmem [shape: f32[1,2,2], index: 16, kind: input, shape index: {}]   ;;  %s8332_s17 = inlined_call_operand.vmem [shape: f32[1,256,32], index: 17, kind: input, shape index: {}]   ;;  %s8333_s18 = inlined_call_operand.vmem [shape: f32[1,32], index: 18, kind: input, shape index: {}]   ;;  %s8334_s19 = inlined_call_operand.hbm [shape: f32[2,32], index: 19, kind: output, shape index: {}]  }
   0x1   :  { %8376 = sst [smem:[#allocation35_spill]] %s8315_s0 }
   0x2   :  { %8377 = sst [smem:[#allocation36_spill]] %s8316_s1 }
   0x3   :  { %8378 = sst [smem:[#allocation37_spill]] %s8317_s2 }
   0x4   :  { %8379 = sst [smem:[#allocation38_spill]] %s8318_s3 }
   0x5   :  { %24 = vsyncpa [#allocation3], 0 }
   0x6   :  { %25 = vsyncpa [#allocation6], 0 }
   0x7   :  { %26 = vsyncpa [#allocation9], 0 }
   0x8   :  { %27 = vsyncpa [#allocation4], 0  ;;  %s59_s20 = sshll.u32 %s8323_s8, 4  ;;  %s5389_s21 = smov [#allocation5]   ;;  %s60_s20 = int_to_ptr.hbm [resolvable:$true] %s59_s20 }
   0x9   :  { %s61_s1 = sshll.u32 %s5389_s21, 4  ;;  %s46_s23 = sshll.u32 %s8322_s7, 4  ;;  %s62_s1 = int_to_ptr.vmem [resolvable:$true] %s61_s1  ;;  %s47_s23 = int_to_ptr.hbm [resolvable:$true] %s46_s23 }
   0xa   :  { %s5390_s24 = smov 256   ;;  %s5391_s25 = smov 16  }
   0xb   :  { %67 = dma.hbm_to_vmem [thread:$0]  %s60_s20, 24576, %s62_s1, [#allocation6], %s5390_s24, %s5390_s24, %s5391_s25  }
   0xc   :  { %s5392_s3 = smov [#allocation2]   ;;  %s72_s29 = sshll.u32 %s8324_s9, 4  ;;  %s73_s29 = int_to_ptr.hbm [resolvable:$true] %s72_s29 }
   0xd   :  { %s48_s26 = sshll.u32 %s5392_s3, 4  ;;  %s85_s30 = sshll.u32 %s8325_s10, 4  ;;  %s49_s26 = int_to_ptr.vmem [resolvable:$true] %s48_s26  ;;  %s86_s30 = int_to_ptr.hbm [resolvable:$true] %s85_s30 }
   0xe   :  { %54 = dma.hbm_to_vmem [thread:$0]  %s47_s23, 24576, %s49_s26, [#allocation3], %s5390_s24, %s5390_s24, %s5391_s25  }
   0xf   :  { %s5393_s21 = smov [#allocation7]   ;;  %s5394_s7 = smov [#allocation8]  }
  0x10   :  { %s74_s22 = sshll.u32 %s5393_s21, 4  ;;  %s87_s20 = sshll.u32 %s5394_s7, 4  ;;  %s75_s22 = int_to_ptr.vmem [resolvable:$true] %s74_s22  ;;  %s88_s20 = int_to_ptr.vmem [resolvable:$true] %s87_s20 }
  0x11   :  { %80 = dma.hbm_to_vmem [thread:$0]  %s73_s29, 24576, %s75_s22, [#allocation6], %s5390_s24, %s5390_s24, %s5391_s25  }
  0x12   :  { %93 = dma.hbm_to_vmem [thread:$0]  %s86_s30, 24576, %s88_s20, [#allocation9], %s5390_s24, %s5390_s24, %s5391_s25  }
  0x13   :  { %5381 = dma.done.wait [#allocation3], 24576  }
  0x14   :  { %5382 = vsyncadd [#allocation3], 4294942720 }
  0x15   :  { %5383 = dma.done.wait [#allocation6], 49152  }
  0x16   :  { %5384 = vsyncadd [#allocation6], 4294918144 }
  0x17   :  { %5385 = dma.done.wait [#allocation9], 24576  }
  0x18   :  { %5386 = vsyncadd [#allocation9], 4294942720  ;;  %s8380_s2 = sld [smem:[#allocation35_spill]]  ;;  %v4914_v6 = vld [vmem:[%s8321_s6 + $0x170] sm:$0xff]  ;;  %v4915_v7 = vld [vmem:[%s8321_s6 + $0x178] sm:$0xff]  ;;  %vm138_vm0 = vcmask 523264  }
  0x19   :  { %v4912_v8 = vld [vmem:[%s8321_s6 + $0x160] sm:$0xff]  ;;  %v4913_v9 = vld [vmem:[%s8321_s6 + $0x168] sm:$0xff]  ;;  %292 = vmatpush.msra.mxu2 %v4914_v6  ;;  %321 = vmatpush.msra.mxu3 %v4915_v7  ;;  %v4910_v11 = vld [vmem:[%s8321_s6 + $0x150] sm:$0xff]  ;;  %s8381_s0 = sld [smem:[#allocation36_spill]]  ;;  %vm275_vm1 = vcmask 785408   ;;  %vm663_vm2 = vcmask 130048  }
  0x1a   :  { %v4911_v12 = vld [vmem:[%s8321_s6 + $0x158] sm:$0xff]  ;;  %v4908_v16 = vld [vmem:[%s8321_s6 + $0x140] sm:$0xff]  ;;  %v4909_v17 = vld [vmem:[%s8321_s6 + $0x148] sm:$0xff]  ;;  %s8382_s25 = sld [smem:[#allocation37_spill]]  ;;  %vm954_vm7 = vcmask 261120   ;;  %s5400_s27 = smov [#allocation10]  }
  0x1b   :  { %293 = vmatpush.msra.mxu2 %v4912_v8  ;;  %322 = vmatpush.msra.mxu3 %v4913_v9  ;;  %v202_v18 = vld [vmem:[%s8321_s6 + $0xb0] sm:$0xff]  ;;  %v203_v19 = vld [vmem:[%s8321_s6 + $0xb8] sm:$0xff]  ;;  %v200_v22 = vld [vmem:[%s8321_s6 + $0xa0] sm:$0xff]  ;;  %s4866_s28 = sshll.u32 %s5400_s27, 4  ;;  %s4868_s30 = sshll.u32 %s8334_s19, 4  ;;  %s4867_s28 = int_to_ptr.vmem [resolvable:$true] %s4866_s28  ;;  %s4869_s30 = int_to_ptr.hbm [resolvable:$true] %s4868_s30 }
  0x1c   :  { %v4906_v20 = vld [vmem:[%s8321_s6 + $0x130] sm:$0xff]  ;;  %v4907_v21 = vld [vmem:[%s8321_s6 + $0x138] sm:$0xff]  ;;  %v201_v23 = vld [vmem:[%s8321_s6 + $0xa8] sm:$0xff] }
  0x1d   :  { %294 = vmatpush.msra.mxu2 %v4910_v11  ;;  %323 = vmatpush.msra.mxu3 %v4911_v12  ;;  %v4904_v24 = vld [vmem:[%s8321_s6 + $0x120] sm:$0xff]  ;;  %v4905_v25 = vld [vmem:[%s8321_s6 + $0x128] sm:$0xff]  ;;  %v198_v26 = vld [vmem:[%s8321_s6 + $0x90] sm:$0xff] }
  0x1e   :  { %v5516_v0 = vld [vmem:[%s8380_s2 + $0x38] sm:$0xff]  ;;  %v5521_v1 = vld [vmem:[%s8380_s2 + $0x30] sm:$0xff]  ;;  %v5528_v2 = vld [vmem:[%s8380_s2 + $0x28] sm:$0xff] }
  0x1f   :  { %229 = vmatpush.msra.mxu1 %v5516_v0  ;;  %159 = vmatpush.msra.mxu0 %v5516_v0  ;;  %v5535_v3 = vld [vmem:[%s8380_s2 + $0x20] sm:$0xff]  ;;  %v5542_v4 = vld [vmem:[%s8380_s2 + $0x18] sm:$0xff]  ;;  %v5549_v5 = vld [vmem:[%s8380_s2 + $0x10] sm:$0xff] }
  0x20   :  { %v5568_v10 = vld [vmem:[%s8380_s2 + $0x8] sm:$0xff]  ;;  %v5581_v13 = vld [vmem:[%s8380_s2] sm:$0xff]  ;;  %295 = vmatpush.msra.mxu2 %v4908_v16  ;;  %324 = vmatpush.msra.mxu3 %v4909_v17  ;;  %v199_v27 = vld [vmem:[%s8321_s6 + $0x98] sm:$0xff] }
  0x21   :  { %230 = vmatpush.msra.mxu1 %v5521_v1  ;;  %160 = vmatpush.msra.mxu0 %v5521_v1  ;;  %v4884_v14 = vld [vmem:[%s8381_s0 + $0x20] sm:$0xff]  ;;  %v4902_v28 = vld [vmem:[%s8321_s6 + $0x110] sm:$0xff]  ;;  %v4903_v29 = vld [vmem:[%s8321_s6 + $0x118] sm:$0xff] }
  0x22   :  { %v134_v15 = vld [vmem:[%s8381_s0] sm:$0xff]  ;;  %296 = vmatpush.msra.mxu2 %v4906_v20  ;;  %325 = vmatpush.msra.mxu3 %v4907_v21  ;;  %v4885_v30 = vld [vmem:[%s8381_s0 + $0x28] sm:$0xff]  ;;  %v194_v36 = vld [vmem:[%s8321_s6 + $0x70] sm:$0xff] }
  0x23   :  { %231 = vmatpush.msra.mxu1 %v5528_v2  ;;  %161 = vmatpush.msra.mxu0 %v5528_v2  ;;  %v135_v31 = vld [vmem:[%s8381_s0 + $0x8] sm:$0xff]  ;;  %v196_v32 = vld [vmem:[%s8321_s6 + $0x80] sm:$0xff]  ;;  %v195_v37 = vld [vmem:[%s8321_s6 + $0x78] sm:$0xff] }
  0x24   :  { %297 = vmatpush.msra.mxu2 %v4904_v24  ;;  %326 = vmatpush.msra.mxu3 %v4905_v25  ;;  %v197_v33 = vld [vmem:[%s8321_s6 + $0x88] sm:$0xff]  ;;  %v4900_v34 = vld [vmem:[%s8321_s6 + $0x100] sm:$0xff]  ;;  %v4898_v38 = vld [vmem:[%s8321_s6 + $0xf0] sm:$0xff] }
  0x25   :  { %232 = vmatpush.msra.mxu1 %v5535_v3  ;;  %162 = vmatpush.msra.mxu0 %v5535_v3  ;;  %v4901_v35 = vld [vmem:[%s8321_s6 + $0x108] sm:$0xff]  ;;  %v4899_v39 = vld [vmem:[%s8321_s6 + $0xf8] sm:$0xff]  ;;  %v192_v40 = vld [vmem:[%s8321_s6 + $0x60] sm:$0xff] }
  0x26   :  { %298 = vmatpush.msra.mxu2 %v4902_v28  ;;  %327 = vmatpush.msra.mxu3 %v4903_v29  ;;  %v193_v41 = vld [vmem:[%s8321_s6 + $0x68] sm:$0xff]  ;;  %v4896_v42 = vld [vmem:[%s8321_s6 + $0xe0] sm:$0xff]  ;;  %v190_v44 = vld [vmem:[%s8321_s6 + $0x50] sm:$0xff] }
  0x27   :  { %233 = vmatpush.msra.mxu1 %v5542_v4  ;;  %163 = vmatpush.msra.mxu0 %v5542_v4  ;;  %v4897_v43 = vld [vmem:[%s8321_s6 + $0xe8] sm:$0xff]  ;;  %v191_v45 = vld [vmem:[%s8321_s6 + $0x58] sm:$0xff]  ;;  %v4886_v46 = vld [vmem:[%s8381_s0 + $0x30] sm:$0xff] }
  0x28   :  { %299 = vmatpush.msra.mxu2 %v4900_v34  ;;  %328 = vmatpush.msra.mxu3 %v4901_v35  ;;  %v136_v47 = vld [vmem:[%s8381_s0 + $0x10] sm:$0xff]  ;;  %v4895_v49 = vld [vmem:[%s8321_s6 + $0xd8] sm:$0xff]  ;;  %v188_v50 = vld [vmem:[%s8321_s6 + $0x40] sm:$0xff] }
  0x29   :  { %234 = vmatpush.msra.mxu1 %v5549_v5  ;;  %164 = vmatpush.msra.mxu0 %v5549_v5  ;;  %v4894_v48 = vld [vmem:[%s8321_s6 + $0xd0] sm:$0xff]  ;;  %v189_v51 = vld [vmem:[%s8321_s6 + $0x48] sm:$0xff]  ;;  %v4887_v52 = vld [vmem:[%s8381_s0 + $0x38] sm:$0xff] }
  0x2a   :  { %300 = vmatpush.msra.mxu2 %v4898_v38  ;;  %329 = vmatpush.msra.mxu3 %v4899_v39  ;;  %v137_v53 = vld [vmem:[%s8381_s0 + $0x18] sm:$0xff]  ;;  %v4892_v54 = vld [vmem:[%s8321_s6 + $0xc0] sm:$0xff]  ;;  %v4893_v55 = vld [vmem:[%s8321_s6 + $0xc8] sm:$0xff] }
  0x2b   :  { %235 = vmatpush.msra.mxu1 %v5568_v10  ;;  %165 = vmatpush.msra.mxu0 %v5568_v10  ;;  %v186_v56 = vld [vmem:[%s8321_s6 + $0x30] sm:$0xff]  ;;  %v187_v57 = vld [vmem:[%s8321_s6 + $0x38] sm:$0xff]  ;;  %v184_v58 = vld [vmem:[%s8321_s6 + $0x20] sm:$0xff] }
  0x2c   :  { %301 = vmatpush.msra.mxu2 %v4896_v42  ;;  %330 = vmatpush.msra.mxu3 %v4897_v43  ;;  %v185_v59 = vld [vmem:[%s8321_s6 + $0x28] sm:$0xff]  ;;  %v182_v60 = vld [vmem:[%s8321_s6 + $0x10] sm:$0xff]  ;;  %v183_v61 = vld [vmem:[%s8321_s6 + $0x18] sm:$0xff] }
  0x2d   :  { %236 = vmatpush.msra.mxu1 %v5581_v13  ;;  %166 = vmatpush.msra.mxu0 %v5581_v13  ;;  %v180_v62 = vld [vmem:[%s8321_s6] sm:$0xff]  ;;  %v181_v63 = vld [vmem:[%s8321_s6 + $0x8] sm:$0xff]  ;;  %v4935_v11 = vld [vmem:[%s8381_s0 + $0x58] sm:$0xff] }
  0x2e   :  { %4888 = vmatmul.msk.f32.vlgmr.msra.gmra.mxu1 %vm138_vm0, %v4884_v14  ;;  %4880 = vmatmul.msk.f32.vlgmr.msra.gmra.mxu0 %vm138_vm0, %v134_v15  ;;  %v4932_v8 = vld [vmem:[%s8381_s0 + $0x40] sm:$0xff]  ;;  %v4933_v9 = vld [vmem:[%s8381_s0 + $0x48] sm:$0xff]  ;;  %v4962_v12 = vld [vmem:[%s8321_s6 + $0x230] sm:$0xff] }
  0x2f   :  { %362 = vmatpush.msrb.mxu0 %v202_v18  ;;  %391 = vmatpush.msrb.mxu1 %v203_v19  ;;  %v4960_v14 = vld [vmem:[%s8321_s6 + $0x220] sm:$0xff]  ;;  %v4961_v15 = vld [vmem:[%s8321_s6 + $0x228] sm:$0xff]  ;;  %v4958_v16 = vld [vmem:[%s8321_s6 + $0x210] sm:$0xff] }
  0x30   :  { %302 = vmatpush.msra.mxu2 %v4894_v48  ;;  %331 = vmatpush.msra.mxu3 %v4895_v49  ;;  %v4959_v17 = vld [vmem:[%s8321_s6 + $0x218] sm:$0xff]  ;;  %v4956_v18 = vld [vmem:[%s8321_s6 + $0x200] sm:$0xff]  ;;  %v4957_v19 = vld [vmem:[%s8321_s6 + $0x208] sm:$0xff] }
  0x31   :  { %363 = vmatpush.msrb.mxu0 %v200_v22  ;;  %392 = vmatpush.msrb.mxu1 %v201_v23  ;;  %v4954_v20 = vld [vmem:[%s8321_s6 + $0x1f0] sm:$0xff]  ;;  %v4955_v21 = vld [vmem:[%s8321_s6 + $0x1f8] sm:$0xff]  ;;  %v4952_v22 = vld [vmem:[%s8321_s6 + $0x1e0] sm:$0xff] }
  0x32   :  { %303 = vmatpush.msra.mxu2 %v4892_v54  ;;  %332 = vmatpush.msra.mxu3 %v4893_v55  ;;  %v4953_v23 = vld [vmem:[%s8321_s6 + $0x1e8] sm:$0xff]  ;;  %v4950_v24 = vld [vmem:[%s8321_s6 + $0x1d0] sm:$0xff]  ;;  %v4951_v25 = vld [vmem:[%s8321_s6 + $0x1d8] sm:$0xff] }
  0x33   :  { %364 = vmatpush.msrb.mxu0 %v198_v26  ;;  %393 = vmatpush.msrb.mxu1 %v199_v27  ;;  %v4948_v26 = vld [vmem:[%s8321_s6 + $0x1c0] sm:$0xff]  ;;  %v4949_v27 = vld [vmem:[%s8321_s6 + $0x1c8] sm:$0xff]  ;;  %v4946_v28 = vld [vmem:[%s8321_s6 + $0x1b0] sm:$0xff] }
  0x34   :  { %441 = vmatpush.msrb.mxu2 %v5516_v0  ;;  %503 = vmatpush.msrb.mxu3 %v4962_v12  ;;  %v4947_v29 = vld [vmem:[%s8321_s6 + $0x1b8] sm:$0xff]  ;;  %v4940_v34 = vld [vmem:[%s8321_s6 + $0x180] sm:$0xff]  ;;  %v4941_v35 = vld [vmem:[%s8321_s6 + $0x188] sm:$0xff] }
  0x35   :  { %365 = vmatpush.msrb.mxu0 %v196_v32  ;;  %394 = vmatpush.msrb.mxu1 %v197_v33  ;;  %v4942_v32 = vld [vmem:[%s8321_s6 + $0x190] sm:$0xff]  ;;  %v4943_v33 = vld [vmem:[%s8321_s6 + $0x198] sm:$0xff] }
  0x36   :  { %4889 = vmatmul.msk.f32.gmra.mxu1 %vm138_vm0, %v4885_v30  ;;  %4881 = vmatmul.msk.f32.gmra.mxu0 %vm138_vm0, %v135_v31  ;;  %v4944_v30 = vld [vmem:[%s8321_s6 + $0x1a0] sm:$0xff]  ;;  %v4945_v31 = vld [vmem:[%s8321_s6 + $0x1a8] sm:$0xff]  ;;  %v5890_v49 = vld [vmem:[%s8326_s11 + $0xf0] sm:$0xff] }
  0x37   :  { %366 = vmatpush.msrb.mxu0 %v194_v36  ;;  %395 = vmatpush.msrb.mxu1 %v195_v37  ;;  %v5916_v54 = vld [vmem:[%s8326_s11 + $0x70] sm:$0xff]  ;;  %v5921_v55 = vld [vmem:[%s8326_s11 + $0xd8] sm:$0xff] }
  0x38   :  { %442 = vmatpush.msrb.mxu2 %v5521_v1  ;;  %504 = vmatpush.msrb.mxu3 %v4960_v14  ;;  %v6018_v12 = vld [vmem:[%s8326_s11 + $0x30] sm:$0xff]  ;;  %v6030_v14 = vld [vmem:[%s8326_s11 + $0x28] sm:$0xff] }
  0x39   :  { %367 = vmatpush.msrb.mxu0 %v192_v40  ;;  %396 = vmatpush.msrb.mxu1 %v193_v41 }
  0x3a   :  { %443 = vmatpush.msrb.mxu2 %v5528_v2  ;;  %505 = vmatpush.msrb.mxu3 %v4958_v16  ;;  %v6042_v16 = vld [vmem:[%s8326_s11 + $0x20] sm:$0xff] }
  0x3b   :  { %368 = vmatpush.msrb.mxu0 %v190_v44  ;;  %397 = vmatpush.msrb.mxu1 %v191_v45 }
  0x3c   :  { %444 = vmatpush.msrb.mxu2 %v5535_v3  ;;  %506 = vmatpush.msrb.mxu3 %v4956_v18 }
  0x3d   :  { %369 = vmatpush.msrb.mxu0 %v188_v50  ;;  %398 = vmatpush.msrb.mxu1 %v189_v51  ;;  %v5896_v50 = vld [vmem:[%s8326_s11 + $0xe8] sm:$0xff] }
  0x3e   :  { %4890 = vmatmul.msk.f32.gmra.mxu1 %vm138_vm0, %v4886_v46  ;;  %4882 = vmatmul.msk.f32.gmra.mxu0 %vm138_vm0, %v136_v47  ;;  %v5882_v47 = vld [vmem:[%s8326_s11 + $0xf8] sm:$0xff] }
  0x3f   :  { %370 = vmatpush.msrb.mxu0 %v186_v56  ;;  %399 = vmatpush.msrb.mxu1 %v187_v57  ;;  %v5928_v56 = vld [vmem:[%s8326_s11 + $0x68] sm:$0xff]  ;;  %v5933_v57 = vld [vmem:[%s8326_s11 + $0xd0] sm:$0xff] }
  0x40   :  { %445 = vmatpush.msrb.mxu2 %v5542_v4  ;;  %507 = vmatpush.msrb.mxu3 %v4954_v20  ;;  %v6059_v20 = vld [vmem:[%s8326_s11 + $0x80] sm:$0xff] }
  0x41   :  { %371 = vmatpush.msrb.mxu0 %v184_v58  ;;  %400 = vmatpush.msrb.mxu1 %v185_v59  ;;  %v5942_v59 = vld [vmem:[%s8326_s11 + $0x60] sm:$0xff] }
  0x42   :  { %446 = vmatpush.msrb.mxu2 %v5549_v5  ;;  %508 = vmatpush.msrb.mxu3 %v4952_v22  ;;  %v6066_v22 = vld [vmem:[%s8326_s11 + $0x10] sm:$0xff] }
  0x43   :  { %372 = vmatpush.msrb.mxu0 %v182_v60  ;;  %401 = vmatpush.msrb.mxu1 %v183_v61  ;;  %v5947_v60 = vld [vmem:[%s8326_s11 + $0xc8] sm:$0xff] }
  0x44   :  { %447 = vmatpush.msrb.mxu2 %v5568_v10  ;;  %v4934_v10 = vld [vmem:[%s8381_s0 + $0x50] sm:$0xff]  ;;  %509 = vmatpush.msrb.mxu3 %v4950_v24  ;;  %s8383_s0 = sld [smem:[#allocation38_spill]] }
  0x45   :  { %373 = vmatpush.msrb.mxu0 %v180_v62  ;;  %402 = vmatpush.msrb.mxu1 %v181_v63  ;;  %v5956_v62 = vld [vmem:[%s8326_s11 + $0x58] sm:$0xff]  ;;  %v5961_v63 = vld [vmem:[%s8326_s11 + $0xc0] sm:$0xff] }
  0x46   :  { %4891 = vmatmul.msk.f32.gmra.mxu1 %vm138_vm0, %v4887_v52  ;;  %4883 = vmatmul.msk.f32.gmra.mxu0 %vm138_vm0, %v137_v53  ;;  %v5904_v52 = vld [vmem:[%s8326_s11 + $0x78] sm:$0xff]  ;;  %v5909_v53 = vld [vmem:[%s8326_s11 + $0xe0] sm:$0xff] }
  0x47   :  { %448 = vmatpush.msrb.mxu2 %v5581_v13  ;;  %v4963_v13 = vld [vmem:[%s8321_s6 + $0x238] sm:$0xff]  ;;  %510 = vmatpush.msrb.mxu3 %v4948_v26 }
  0x48   :  { %532 = vmatpush.msra.mxu0 %v4963_v13  ;;  %615 = vmatpush.msra.mxu1 %v5904_v52  ;;  %v6023_v13 = vld [vmem:[%s8326_s11 + $0x98] sm:$0xff] }
  0x49   :  { %511 = vmatpush.msrb.mxu3 %v4946_v28 }
  0x4a   :  { %533 = vmatpush.msra.mxu0 %v4961_v15  ;;  %616 = vmatpush.msra.mxu1 %v5916_v54  ;;  %v6035_v15 = vld [vmem:[%s8326_s11 + $0x90] sm:$0xff] }
  0x4b   :  { %512 = vmatpush.msrb.mxu3 %v4944_v30 }
  0x4c   :  { %534 = vmatpush.msra.mxu0 %v4959_v17  ;;  %617 = vmatpush.msra.mxu1 %v5928_v56  ;;  %v6047_v17 = vld [vmem:[%s8326_s11 + $0x88] sm:$0xff] }
  0x4d   :  { %513 = vmatpush.msrb.mxu3 %v4942_v32 }
  0x4e   :  { %535 = vmatpush.msra.mxu0 %v4957_v19  ;;  %618 = vmatpush.msra.mxu1 %v5942_v59  ;;  %v6054_v19 = vld [vmem:[%s8326_s11 + $0x18] sm:$0xff] }
  0x4f   :  { %514 = vmatpush.msrb.mxu3 %v4940_v34 }
  0x50   :  { %536 = vmatpush.msra.mxu0 %v4955_v21  ;;  %619 = vmatpush.msra.mxu1 %v5956_v62 }
  0x52   :  { %537 = vmatpush.msra.mxu0 %v4953_v23  ;;  %v6071_v23 = vld [vmem:[%s8326_s11 + $0x8] sm:$0xff] }
  0x54   :  { %538 = vmatpush.msra.mxu0 %v4951_v25  ;;  %v6078_v25 = vld [vmem:[%s8326_s11] sm:$0xff] }
  0x56   :  { %539 = vmatpush.msra.mxu0 %v4949_v27 }
  0x58   :  { %540 = vmatpush.msra.mxu0 %v4947_v29 }
  0x5a   :  { %541 = vmatpush.msra.mxu0 %v4945_v31 }
  0x5c   :  { %542 = vmatpush.msra.mxu0 %v4943_v33 }
  0x5e   :  { %543 = vmatpush.msra.mxu0 %v4941_v35 }
  0xab   :  { %v238_v0 = vpop.f32.mrf.mxu1  ;;  %v168_v6 = vpop.f32.mrf.mxu0 }
  0xac   :  { %4916 = vmatmul.msk.f32.vlgmr.msra.gmra.mxu2 %vm275_vm1, %v238_v0  ;;  %4920 = vmatmul.msk.f32.vlgmr.msra.gmra.mxu3 %vm275_vm1, %v238_v0 }
  0xad   :  { %4924 = vmatmul.msk.f32.vlgmr.msrb.gmra.mxu0 %vm275_vm1, %v168_v6  ;;  %4928 = vmatmul.msk.f32.vlgmr.msrb.gmra.mxu1 %vm275_vm1, %v168_v6  ;;  %v5970_v6 = vld [vmem:[%s8326_s11 + $0x50] sm:$0xff] }
  0xae   :  { %635 = vmatpush.msra.mxu2 %v5882_v47  ;;  %620 = vmatpush.msra.mxu1 %v5970_v6 }
  0xaf   :  { %4972 = vmatpush.xpose.msk.msra.mxu3 %vm663_vm2, %v5904_v52  ;;  %4989 = vmatpush.xpose.msk.msrb.mxu0 %vm663_vm2, %v5882_v47 }
  0xb0   :  { %636 = vmatpush.msra.mxu2 %v5890_v49 }
  0xb2   :  { %637 = vmatpush.msra.mxu2 %v5896_v50 }
  0xb3   :  { %v241_v1 = vpop.f32.mrf.mxu1  ;;  %v171_v2 = vpop.f32.mrf.mxu0  ;;  %4973 = vmatpush.xpose.msk.msra.mxu3 %vm663_vm2, %v5916_v54  ;;  %4990 = vmatpush.xpose.msk.msrb.mxu0 %vm663_vm2, %v5890_v49 }
  0xb4   :  { %4917 = vmatmul.msk.f32.gmra.mxu2 %vm275_vm1, %v241_v1  ;;  %4921 = vmatmul.msk.f32.gmra.mxu3 %vm275_vm1, %v241_v1  ;;  %v5975_v1 = vld [vmem:[%s8326_s11 + $0xb8] sm:$0xff] }
  0xb5   :  { %4925 = vmatmul.msk.f32.gmra.mxu0 %vm275_vm1, %v171_v2  ;;  %4929 = vmatmul.msk.f32.gmra.mxu1 %vm275_vm1, %v171_v2  ;;  %v5982_v2 = vld [vmem:[%s8326_s11 + $0x48] sm:$0xff] }
  0xb6   :  { %638 = vmatpush.msra.mxu2 %v5909_v53  ;;  %621 = vmatpush.msra.mxu1 %v5982_v2 }
  0xb7   :  { %4974 = vmatpush.xpose.msk.msra.mxu3 %vm663_vm2, %v5928_v56  ;;  %4991 = vmatpush.xpose.msk.msrb.mxu0 %vm663_vm2, %v5896_v50 }
  0xb8   :  { %639 = vmatpush.msra.mxu2 %v5921_v55 }
  0xba   :  { %640 = vmatpush.msra.mxu2 %v5933_v57 }
  0xbb   :  { %v244_v3 = vpop.f32.mrf.mxu1  ;;  %v174_v4 = vpop.f32.mrf.mxu0  ;;  %4975 = vmatpush.xpose.msk.msra.mxu3 %vm663_vm2, %v5942_v59  ;;  %4992 = vmatpush.xpose.msk.msrb.mxu0 %vm663_vm2, %v5909_v53 }
  0xbc   :  { %4918 = vmatmul.msk.f32.gmra.mxu2 %vm275_vm1, %v244_v3  ;;  %4922 = vmatmul.msk.f32.gmra.mxu3 %vm275_vm1, %v244_v3  ;;  %v5987_v3 = vld [vmem:[%s8326_s11 + $0xb0] sm:$0xff] }
  0xbd   :  { %4926 = vmatmul.msk.f32.gmra.mxu0 %vm275_vm1, %v174_v4  ;;  %4930 = vmatmul.msk.f32.gmra.mxu1 %vm275_vm1, %v174_v4  ;;  %v5994_v4 = vld [vmem:[%s8326_s11 + $0x40] sm:$0xff] }
  0xbe   :  { %641 = vmatpush.msra.mxu2 %v5947_v60  ;;  %622 = vmatpush.msra.mxu1 %v5994_v4 }
  0xbf   :  { %4976 = vmatpush.xpose.msk.msra.mxu3 %vm663_vm2, %v5956_v62  ;;  %4993 = vmatpush.xpose.msk.msrb.mxu0 %vm663_vm2, %v5921_v55 }
  0xc0   :  { %642 = vmatpush.msra.mxu2 %v5961_v63 }
  0xc2   :  { %643 = vmatpush.msra.mxu2 %v5975_v1 }
  0xc3   :  { %v247_v5 = vpop.f32.mrf.mxu1  ;;  %v177_v7 = vpop.f32.mrf.mxu0  ;;  %4977 = vmatpush.xpose.msk.msra.mxu3 %vm663_vm2, %v5970_v6  ;;  %4994 = vmatpush.xpose.msk.msrb.mxu0 %vm663_vm2, %v5933_v57 }
  0xc4   :  { %4919 = vmatmul.msk.f32.gmra.mxu2 %vm275_vm1, %v247_v5  ;;  %4923 = vmatmul.msk.f32.gmra.mxu3 %vm275_vm1, %v247_v5  ;;  %v5999_v5 = vld [vmem:[%s8326_s11 + $0xa8] sm:$0xff] }
  0xc5   :  { %4927 = vmatmul.msk.f32.gmra.mxu0 %vm275_vm1, %v177_v7  ;;  %4931 = vmatmul.msk.f32.gmra.mxu1 %vm275_vm1, %v177_v7 }
  0xc6   :  { %644 = vmatpush.msra.mxu2 %v5987_v3 }
  0xc7   :  { %4978 = vmatpush.xpose.msk.msra.mxu3 %vm663_vm2, %v5982_v2  ;;  %4995 = vmatpush.xpose.msk.msrb.mxu0 %vm663_vm2, %v5947_v60 }
  0xc8   :  { %645 = vmatpush.msra.mxu2 %v5999_v5 }
  0xcb   :  { %4979 = vmatpush.xpose.msk.msra.mxu3 %vm663_vm2, %v5994_v4  ;;  %4996 = vmatpush.xpose.msk.msrb.mxu0 %vm663_vm2, %v5961_v63 }
  0xcc   :  { %4936 = vmatmul.msk.f32.vlgmr.msrb.gmra.mxu2 %vm138_vm0, %v4932_v8  ;;  %v6006_v8 = vld [vmem:[%s8326_s11 + $0x38] sm:$0xff] }
  0xcd   :  { %623 = vmatpush.msra.mxu1 %v6006_v8 }
  0xcf   :  { %624 = vmatpush.msra.mxu1 %v6018_v12  ;;  %4980 = vmatpush.xpose.msk.msra.mxu3 %vm663_vm2, %v6006_v8 }
  0xd0   :  { %4997 = vmatpush.xpose.msk.msrb.mxu0 %vm663_vm2, %v5975_v1 }
  0xd1   :  { %625 = vmatpush.msra.mxu1 %v6030_v14 }
  0xd3   :  { %626 = vmatpush.msra.mxu1 %v6042_v16  ;;  %4981 = vmatpush.xpose.msk.msra.mxu3 %vm663_vm2, %v6018_v12 }
  0xd4   :  { %4937 = vmatmul.msk.f32.gmra.mxu2 %vm138_vm0, %v4933_v9  ;;  %v6011_v9 = vld [vmem:[%s8326_s11 + $0xa0] sm:$0xff]  ;;  %4998 = vmatpush.xpose.msk.msrb.mxu0 %vm663_vm2, %v5987_v3 }
  0xd5   :  { %646 = vmatpush.msra.mxu2 %v6011_v9  ;;  %627 = vmatpush.msra.mxu1 %v6054_v19 }
  0xd7   :  { %647 = vmatpush.msra.mxu2 %v6023_v13  ;;  %628 = vmatpush.msra.mxu1 %v6066_v22 }
  0xd8   :  { %4982 = vmatpush.xpose.msk.msra.mxu3 %vm663_vm2, %v6030_v14  ;;  %4999 = vmatpush.xpose.msk.msrb.mxu0 %vm663_vm2, %v5999_v5 }
  0xd9   :  { %648 = vmatpush.msra.mxu2 %v6035_v15  ;;  %629 = vmatpush.msra.mxu1 %v6071_v23 }
  0xdb   :  { %649 = vmatpush.msra.mxu2 %v6047_v17  ;;  %630 = vmatpush.msra.mxu1 %v6078_v25 }
  0xdc   :  { %4938 = vmatmul.msk.f32.gmra.mxu2 %vm138_vm0, %v4934_v10  ;;  %4983 = vmatpush.xpose.msk.msra.mxu3 %vm663_vm2, %v6042_v16 }
  0xdd   :  { %650 = vmatpush.msra.mxu2 %v6059_v20  ;;  %839 = vmatpush.msrb.mxu1 %v5904_v52 }
  0xde   :  { %5000 = vmatpush.xpose.msk.msrb.mxu0 %vm663_vm2, %v6011_v9 }
  0xdf   :  { %859 = vmatpush.msrb.mxu2 %v5882_v47  ;;  %840 = vmatpush.msrb.mxu1 %v5916_v54 }
  0xe0   :  { %4984 = vmatpush.xpose.msk.msra.mxu3 %vm663_vm2, %v6054_v19 }
  0xe1   :  { %860 = vmatpush.msrb.mxu2 %v5890_v49  ;;  %841 = vmatpush.msrb.mxu1 %v5928_v56 }
  0xe2   :  { %5001 = vmatpush.xpose.msk.msrb.mxu0 %vm663_vm2, %v6023_v13 }
  0xe3   :  { %861 = vmatpush.msrb.mxu2 %v5896_v50  ;;  %842 = vmatpush.msrb.mxu1 %v5942_v59 }
  0xe4   :  { %4939 = vmatmul.msk.f32.gmra.mxu2 %vm138_vm0, %v4935_v11  ;;  %4985 = vmatpush.xpose.msk.msra.mxu3 %vm663_vm2, %v6066_v22 }
  0xe5   :  { %862 = vmatpush.msrb.mxu2 %v5909_v53  ;;  %843 = vmatpush.msrb.mxu1 %v5956_v62 }
  0xe6   :  { %5002 = vmatpush.xpose.msk.msrb.mxu0 %vm663_vm2, %v6035_v15 }
  0xe7   :  { %863 = vmatpush.msrb.mxu2 %v5921_v55  ;;  %844 = vmatpush.msrb.mxu1 %v5970_v6 }
  0xe8   :  { %4986 = vmatpush.xpose.msk.msra.mxu3 %vm663_vm2, %v6071_v23 }
  0xe9   :  { %864 = vmatpush.msrb.mxu2 %v5933_v57  ;;  %845 = vmatpush.msrb.mxu1 %v5982_v2 }
  0xea   :  { %5003 = vmatpush.xpose.msk.msrb.mxu0 %vm663_vm2, %v6047_v17 }
  0xeb   :  { %865 = vmatpush.msrb.mxu2 %v5947_v60  ;;  %846 = vmatpush.msrb.mxu1 %v5994_v4 }
  0xec   :  { %4987 = vmatpush.xpose.msk.msra.mxu3 %vm663_vm2, %v6078_v25 }
  0xed   :  { %866 = vmatpush.msrb.mxu2 %v5961_v63  ;;  %847 = vmatpush.msrb.mxu1 %v6006_v8 }
  0xee   :  { %5004 = vmatpush.xpose.msk.msrb.mxu0 %vm663_vm2, %v6059_v20 }
  0xef   :  { %867 = vmatpush.msrb.mxu2 %v5975_v1  ;;  %848 = vmatpush.msrb.mxu1 %v6018_v12 }
  0xf1   :  { %868 = vmatpush.msrb.mxu2 %v5987_v3  ;;  %849 = vmatpush.msrb.mxu1 %v6030_v14 }
  0xf3   :  { %869 = vmatpush.msrb.mxu2 %v5999_v5  ;;  %850 = vmatpush.msrb.mxu1 %v6042_v16 }
  0xf5   :  { %870 = vmatpush.msrb.mxu2 %v6011_v9  ;;  %851 = vmatpush.msrb.mxu1 %v6054_v19 }
  0xf7   :  { %871 = vmatpush.msrb.mxu2 %v6023_v13  ;;  %852 = vmatpush.msrb.mxu1 %v6066_v22 }
  0xf9   :  { %872 = vmatpush.msrb.mxu2 %v6035_v15  ;;  %853 = vmatpush.msrb.mxu1 %v6071_v23 }
  0xfb   :  { %873 = vmatpush.msrb.mxu2 %v6047_v17  ;;  %854 = vmatpush.msrb.mxu1 %v6078_v25 }
  0xfd   :  { %874 = vmatpush.msrb.mxu2 %v6059_v20 }
 0x12a   :  { %v5873_v44 = vpop.f32.mrf.mxu0  ;;  %v5949_v61 = vpop.f32.mrf.mxu1 }
 0x12f   :  { %v5857_v36 = vpop.f32.mrf.mxu2  ;;  %v5875_v45 = vpop.f32.mrf.mxu3 }
 0x130   :  { %v405_v29 = vadd.f32 %v5949_v61, %v5875_v45 }
 0x132   :  { %v5877_v46 = vpop.f32.mrf.mxu0  ;;  %v407_v10 = vpop.f32.mrf.mxu1 }
 0x137   :  { %v5859_v37 = vpop.f32.mrf.mxu2  ;;  %v5884_v48 = vpop.f32.mrf.mxu3 }
 0x138   :  { %v408_v28 = vadd.f32 %v407_v10, %v5884_v48 }
 0x13a   :  { %v5898_v51 = vpop.f32.mrf.mxu0  ;;  %v410_v24 = vpop.f32.mrf.mxu1 }
 0x13f   :  { %v5861_v38 = vpop.f32.mrf.mxu2  ;;  %v5935_v58 = vpop.f32.mrf.mxu3 }
 0x140   :  { %v411_v30 = vadd.f32 %v410_v24, %v5935_v58  ;;  %v382_v45 = vadd.f32 %v5898_v51, %v5861_v38 }
 0x142   :  { %v5963_v0 = vpop.f32.mrf.mxu0  ;;  %v413_v32 = vpop.f32.mrf.mxu1 }
 0x147   :  { %v5863_v39 = vpop.f32.mrf.mxu2  ;;  %v343_v7 = vpop.f32.mrf.mxu3 }
 0x148   :  { %v385_v51 = vadd.f32 %v5963_v0, %v5863_v39 }
 0x14f   :  { %v450_v40 = vpop.f32.mrf.mxu2 }
 0x150   :  { %4964 = vmatmul.msk.f32.vlgmr.msrb.gmra.mxu3 %vm275_vm1, %v450_v40  ;;  %4968 = vmatmul.msk.f32.vlgmr.msra.gmra.mxu0 %vm275_vm1, %v450_v40  ;;  %v379_v40 = vadd.f32 %v5877_v46, %v5859_v37 }
 0x157   :  { %v453_v41 = vpop.f32.mrf.mxu2 }
 0x158   :  { %4965 = vmatmul.msk.f32.gmra.mxu3 %vm275_vm1, %v453_v41  ;;  %4969 = vmatmul.msk.f32.gmra.mxu0 %vm275_vm1, %v453_v41  ;;  %v414_v41 = vadd.f32 %v413_v32, %v343_v7 }
 0x15f   :  { %v456_v42 = vpop.f32.mrf.mxu2 }
 0x160   :  { %4966 = vmatmul.msk.f32.gmra.mxu3 %vm275_vm1, %v456_v42  ;;  %4970 = vmatmul.msk.f32.gmra.mxu0 %vm275_vm1, %v456_v42 }
 0x167   :  { %v459_v43 = vpop.f32.mrf.mxu2 }
 0x168   :  { %4967 = vmatmul.msk.f32.gmra.mxu3 %vm275_vm1, %v459_v43  ;;  %4971 = vmatmul.msk.f32.gmra.mxu0 %vm275_vm1, %v459_v43  ;;  %v376_v43 = vadd.f32 %v5873_v44, %v5857_v36  ;;  %vm3476_vm1 = vcmask 1043456  }
 0x1cd   :  { %v545_v11 = vpop.f32.mrf.mxu0 }
 0x1ce   :  { %v6104_v33 = vadd.f32 %v545_v11, %v405_v29 }
 0x1d3   :  { %v516_v18 = vpop.f32.mrf.mxu3 }
 0x1d4   :  { %v6131_v36 = vadd.f32 %v516_v18, %v376_v43 }
 0x1d5   :  { %v548_v21 = vpop.f32.mrf.mxu0 }
 0x1d6   :  { %v6096_v31 = vadd.f32 %v548_v21, %v408_v28 }
 0x1d8   :  { %v606_v42 = vadd.f32 %v6096_v31, %v6104_v33 }
 0x1db   :  { %v519_v26 = vpop.f32.mrf.mxu3 }
 0x1dc   :  { %v6124_v37 = vadd.f32 %v519_v26, %v379_v40 }
 0x1dd   :  { %v551_v27 = vpop.f32.mrf.mxu0 }
 0x1de   :  { %v6106_v34 = vadd.f32 %v551_v27, %v411_v30  ;;  %v597_v61 = vadd.f32 %v6124_v37, %v6131_v36 }
 0x1e0   :  { %v607_v46 = vadd.f32 %v606_v42, %v6106_v34 }
 0x1e3   :  { %v522_v35 = vpop.f32.mrf.mxu3 }
 0x1e4   :  { %v6133_v38 = vadd.f32 %v522_v35, %v382_v45 }
 0x1e5   :  { %v554_v48 = vpop.f32.mrf.mxu0 }
 0x1e6   :  { %v6127_v58 = vadd.f32 %v554_v48, %v414_v41  ;;  %v598_v11 = vadd.f32 %v597_v61, %v6133_v38 }
 0x1e8   :  { %v608_v44 = vadd.f32 %v607_v46, %v6127_v58 }
 0x1ea   :  { %v609_v7 = vrot.slane %v608_v44, 4 }
 0x1eb   :  { %v525_v10 = vpop.f32.mrf.mxu3 }
 0x1ec   :  { %v610_v18 = vadd.f32 %v609_v7, %v608_v44  ;;  %v6149_v21 = vadd.f32 %v525_v10, %v385_v51  ;;  %v1037_v10 = vld [vmem:[#allocation2 + $0xf0] sm:$0xff] }
 0x1ee   :  { %v611_v39 = vrot.slane %v610_v18, 2  ;;  %v599_v0 = vadd.f32 %v598_v11, %v6149_v21  ;;  %v1035_v11 = vld [vmem:[#allocation2 + $0xe0] sm:$0xff] }
 0x1f0   :  { %v612_v24 = vadd.f32 %v611_v39, %v610_v18  ;;  %v600_v26 = vrot.slane %v599_v0, 4  ;;  %v1033_v18 = vld [vmem:[#allocation2 + $0xd0] sm:$0xff] }
 0x1f1   :  { %v1029_v39 = vld [vmem:[#allocation2 + $0xb0] sm:$0xff] }
 0x1f2   :  { %v601_v27 = vadd.f32 %v600_v26, %v599_v0  ;;  %v613_v28 = vrot.slane %v612_v24, 1 }
 0x1f4   :  { %v602_v29 = vrot.slane %v601_v27, 2  ;;  %v614_v30 = vadd.f32 %v613_v28, %v612_v24 }
 0x1f6   :  { %v603_v32 = vadd.f32 %v602_v29, %v601_v27  ;;  %651 = vmatmul.f32.vlgmr.msra.gmra.mxu2 %v614_v30  ;;  %v1027_v27 = vld [vmem:[#allocation2 + $0xa0] sm:$0xff]  ;;  %v1025_v29 = vld [vmem:[#allocation2 + $0x90] sm:$0xff] }
 0x1f7   :  { %5023 = vmatpush.xpose.msk.msra.mxu2 %vm663_vm2, %v5882_v47  ;;  %v5395_v47 = vmov 512.0  }
 0x1f8   :  { %v604_v35 = vrot.slane %v603_v32, 1  ;;  %5239 = vrcp.f32 %v5395_v47  ;;  %v1017_v47 = vld [vmem:[#allocation2 + $0x50] sm:$0xff] }
 0x1fa   :  { %v605_v40 = vadd.f32 %v604_v35, %v603_v32  ;;  %v1023_v32 = vld [vmem:[#allocation2 + $0x80] sm:$0xff]  ;;  %v1021_v35 = vld [vmem:[#allocation2 + $0x70] sm:$0xff] }
 0x1fb   :  { %5024 = vmatpush.xpose.msk.msra.mxu2 %vm663_vm2, %v5890_v49 }
 0x1fc   :  { %631 = vmatmul.f32.vlgmr.msra.gmra.mxu1 %v605_v40  ;;  %v1019_v40 = vld [vmem:[#allocation2 + $0x60] sm:$0xff] }
 0x1fd   :  { %5006 = vmatpush.xpose.msk.msra.mxu1 %vm663_vm2, %v5904_v52 }
 0x1fe   :  { %v5240_v49 = vpop.eup %5239 }
 0x1ff   :  { %5025 = vmatpush.xpose.msk.msra.mxu2 %vm663_vm2, %v5896_v50  ;;  %v656_v50 = vmul.f32 512.0, %v5240_v49  ;;  %vm660_vm3 = vweird.f32 %v5240_v49 }
 0x201   :  { %5007 = vmatpush.xpose.msk.msra.mxu1 %vm663_vm2, %v5916_v54  ;;  %v657_v52 = vsub.f32 1.0, %v656_v50  ;;  %v1015_v50 = vld [vmem:[#allocation2 + $0x40] sm:$0xff] }
 0x203   :  { %5026 = vmatpush.xpose.msk.msra.mxu2 %vm663_vm2, %v5909_v53  ;;  %v658_v53 = vmul.f32 %v5240_v49, %v657_v52 }
 0x205   :  { %5008 = vmatpush.xpose.msk.msra.mxu1 %vm663_vm2, %v5928_v56  ;;  %v659_v54 = vadd.f32 %v5240_v49, %v658_v53 }
 0x207   :  { %5027 = vmatpush.xpose.msk.msra.mxu2 %vm663_vm2, %v5921_v55 }
 0x209   :  { %5009 = vmatpush.xpose.msk.msra.mxu1 %vm663_vm2, %v5942_v59 }
 0x20b   :  { %5028 = vmatpush.xpose.msk.msra.mxu2 %vm663_vm2, %v5933_v57  ;;  %v661_v57 = vsel %vm660_vm3, %v5240_v49, %v659_v54 }
 0x20d   :  { %5010 = vmatpush.xpose.msk.msra.mxu1 %vm663_vm2, %v5956_v62 }
 0x20f   :  { %5029 = vmatpush.xpose.msk.msra.mxu2 %vm663_vm2, %v5947_v60 }
 0x211   :  { %5011 = vmatpush.xpose.msk.msra.mxu1 %vm663_vm2, %v5970_v6 }
 0x213   :  { %5030 = vmatpush.xpose.msk.msra.mxu2 %vm663_vm2, %v5961_v63 }
 0x215   :  { %5012 = vmatpush.xpose.msk.msra.mxu1 %vm663_vm2, %v5982_v2 }
 0x217   :  { %5031 = vmatpush.xpose.msk.msra.mxu2 %vm663_vm2, %v5975_v1 }
 0x219   :  { %5013 = vmatpush.xpose.msk.msra.mxu1 %vm663_vm2, %v5994_v4 }
 0x21b   :  { %5032 = vmatpush.xpose.msk.msra.mxu2 %vm663_vm2, %v5987_v3 }
 0x21d   :  { %5014 = vmatpush.xpose.msk.msra.mxu1 %vm663_vm2, %v6006_v8 }
 0x21f   :  { %5033 = vmatpush.xpose.msk.msra.mxu2 %vm663_vm2, %v5999_v5 }
 0x221   :  { %5015 = vmatpush.xpose.msk.msra.mxu1 %vm663_vm2, %v6018_v12 }
 0x223   :  { %5034 = vmatpush.xpose.msk.msra.mxu2 %vm663_vm2, %v6011_v9 }
 0x225   :  { %5016 = vmatpush.xpose.msk.msra.mxu1 %vm663_vm2, %v6030_v14 }
 0x227   :  { %5035 = vmatpush.xpose.msk.msra.mxu2 %vm663_vm2, %v6023_v13 }
 0x229   :  { %5017 = vmatpush.xpose.msk.msra.mxu1 %vm663_vm2, %v6042_v16 }
 0x22b   :  { %5036 = vmatpush.xpose.msk.msra.mxu2 %vm663_vm2, %v6035_v15 }
 0x22d   :  { %5018 = vmatpush.xpose.msk.msra.mxu1 %vm663_vm2, %v6054_v19 }
 0x22f   :  { %5037 = vmatpush.xpose.msk.msra.mxu2 %vm663_vm2, %v6047_v17 }
 0x231   :  { %5019 = vmatpush.xpose.msk.msra.mxu1 %vm663_vm2, %v6066_v22 }
 0x233   :  { %5038 = vmatpush.xpose.msk.msra.mxu2 %vm663_vm2, %v6059_v20 }
 0x235   :  { %5020 = vmatpush.xpose.msk.msra.mxu1 %vm663_vm2, %v6071_v23 }
 0x239   :  { %5021 = vmatpush.xpose.msk.msra.mxu1 %vm663_vm2, %v6078_v25 }
 0x279   :  { %v632_v55 = vpop.f32.mrf.mxu1  ;;  %v652_v56 = vpop.f32.mrf.mxu2 }
 0x27a   :  { %v653_v59 = vadd.f32 %v652_v56, %v632_v55 }
 0x27c   :  { %v662_v60 = vmul.f32 %v661_v57, %v653_v59  ;;  %v1013_v59 = vld [vmem:[#allocation2 + $0x30] sm:$0xff] }
 0x27e   :  { %4988 = vmatmul.msk.f32.vlgmr.msra.gmra.mxu3 %vm663_vm2, %v662_v60  ;;  %5005 = vmatmul.msk.f32.vlgmr.msrb.gmra.mxu0 %vm663_vm2, %v662_v60  ;;  %v1011_v60 = vld [vmem:[#allocation2 + $0x20] sm:$0xff] }
 0x2fb   :  { %v800_v62 = vpop.f32.mrf.mxu0 }
 0x2fc   :  { %v804_v63 = vperm.slane %v800_v62, 0  ;;  %v1009_v62 = vld [vmem:[#allocation2 + $0x10] sm:$0xff] }
 0x2fe   :  { %v6280_v6 = vsub.f32 %v6104_v33, %v804_v63  ;;  %v6283_v1 = vsub.f32 %v6096_v31, %v804_v63  ;;  %v6286_v2 = vsub.f32 %v6106_v34, %v804_v63  ;;  %v6289_v3 = vsub.f32 %v6127_v58, %v804_v63  ;;  %v1007_v63 = vld [vmem:[#allocation2] sm:$0xff] }
 0x300   :  { %v814_v4 = vmul.f32 %v6280_v6, %v6280_v6  ;;  %v816_v5 = vmul.f32 %v6283_v1, %v6283_v1  ;;  %v818_v9 = vmul.f32 %v6286_v2, %v6286_v2  ;;  %v820_v14 = vmul.f32 %v6289_v3, %v6289_v3 }
 0x301   :  { %v780_v8 = vpop.f32.mrf.mxu3 }
 0x302   :  { %v830_v12 = vadd.f32 %v816_v5, %v814_v4  ;;  %v803_v13 = vperm.slane %v780_v8, 0 }
 0x304   :  { %v831_v15 = vadd.f32 %v830_v12, %v818_v9  ;;  %v6300_v16 = vsub.f32 %v6131_v36, %v803_v13  ;;  %v6303_v17 = vsub.f32 %v6124_v37, %v803_v13  ;;  %v6306_v19 = vsub.f32 %v6133_v38, %v803_v13 }
 0x305   :  { %v6309_v20 = vsub.f32 %v6149_v21, %v803_v13  ;;  %v1031_v21 = vld [vmem:[#allocation2 + $0xc0] sm:$0xff] }
 0x306   :  { %v813_v22 = vmul.f32 %v6300_v16, %v6300_v16  ;;  %v815_v23 = vmul.f32 %v6303_v17, %v6303_v17  ;;  %v832_v25 = vadd.f32 %v831_v15, %v820_v14  ;;  %v817_v31 = vmul.f32 %v6306_v19, %v6306_v19 }
 0x307   :  { %v819_v41 = vmul.f32 %v6309_v20, %v6309_v20 }
 0x308   :  { %v821_v33 = vadd.f32 %v815_v23, %v813_v22  ;;  %v833_v34 = vrot.slane %v832_v25, 4 }
 0x30a   :  { %v822_v42 = vadd.f32 %v821_v33, %v817_v31  ;;  %v834_v43 = vadd.f32 %v833_v34, %v832_v25  ;;  %v1157_v34 = vld [vmem:[#allocation2 + $0x2f0] sm:$0xff] }
 0x30c   :  { %v835_v45 = vrot.slane %v834_v43, 2  ;;  %v823_v48 = vadd.f32 %v822_v42, %v819_v41  ;;  %v952_v41 = vld [vmem:[%s8382_s25] sm:$0xff] }
 0x30d   :  { %v1155_v42 = vld [vmem:[#allocation2 + $0x2e0] sm:$0xff] }
 0x30e   :  { %v836_v37 = vadd.f32 %v835_v45, %v834_v43  ;;  %v824_v46 = vrot.slane %v823_v48, 4  ;;  %v1158_v43 = vld [vmem:[#allocation2 + $0x2f8] sm:$0xff] }
 0x310   :  { %v837_v58 = vrot.slane %v836_v37, 1  ;;  %v825_v36 = vadd.f32 %v824_v46, %v823_v48  ;;  %v1153_v48 = vld [vmem:[#allocation2 + $0x2d0] sm:$0xff]  ;;  %v1151_v46 = vld [vmem:[#allocation2 + $0x2c0] sm:$0xff] }
 0x312   :  { %v838_v38 = vadd.f32 %v837_v58, %v836_v37  ;;  %v826_v44 = vrot.slane %v825_v36, 2  ;;  %v1154_v37 = vld [vmem:[#allocation2 + $0x2d8] sm:$0xff] }
 0x313   :  { %v6356_v58 = vld [vmem:[%s8382_s25 + $0x18] sm:$0xff] }
 0x314   :  { %875 = vmatmul.f32.vlgmr.msrb.gmra.mxu2 %v838_v38  ;;  %v827_v51 = vadd.f32 %v826_v44, %v825_v36  ;;  %v1149_v36 = vld [vmem:[#allocation2 + $0x2b0] sm:$0xff]  ;;  %v1152_v38 = vld [vmem:[#allocation2 + $0x2c8] sm:$0xff] }
 0x315   :  { %1283 = vmatpush.msrb.mxu2 %v1037_v10  ;;  %v953_v44 = vld [vmem:[%s8382_s25 + $0x8] sm:$0xff]  ;;  %v1189_v10 = vld [vmem:[#allocation2 + $0x3f0] sm:$0xff] }
 0x316   :  { %v828_v61 = vrot.slane %v827_v51, 1 }
 0x317   :  { %1284 = vmatpush.msrb.mxu2 %v1035_v11  ;;  %v1148_v11 = vld [vmem:[#allocation2 + $0x2a8] sm:$0xff] }
 0x318   :  { %v829_v7 = vadd.f32 %v828_v61, %v827_v51  ;;  %v1147_v51 = vld [vmem:[#allocation2 + $0x2a0] sm:$0xff]  ;;  %v1150_v61 = vld [vmem:[#allocation2 + $0x2b8] sm:$0xff] }
 0x319   :  { %1285 = vmatpush.msrb.mxu2 %v1033_v18  ;;  %v1143_v18 = vld [vmem:[#allocation2 + $0x280] sm:$0xff] }
 0x31a   :  { %855 = vmatmul.f32.vlgmr.msrb.gmra.mxu1 %v829_v7  ;;  %v1145_v7 = vld [vmem:[#allocation2 + $0x290] sm:$0xff] }
 0x31b   :  { %1286 = vmatpush.msrb.mxu2 %v1031_v21  ;;  %v1187_v21 = vld [vmem:[#allocation2 + $0x3e0] sm:$0xff] }
 0x31d   :  { %1287 = vmatpush.msrb.mxu2 %v1029_v39  ;;  %v1146_v39 = vld [vmem:[#allocation2 + $0x298] sm:$0xff] }
 0x31f   :  { %1288 = vmatpush.msrb.mxu2 %v1027_v27  ;;  %v1139_v27 = vld [vmem:[#allocation2 + $0x260] sm:$0xff] }
 0x321   :  { %1289 = vmatpush.msrb.mxu2 %v1025_v29  ;;  %v1142_v29 = vld [vmem:[#allocation2 + $0x278] sm:$0xff] }
 0x323   :  { %1290 = vmatpush.msrb.mxu2 %v1023_v32  ;;  %v1181_v32 = vld [vmem:[#allocation2 + $0x3b0] sm:$0xff] }
 0x325   :  { %1291 = vmatpush.msrb.mxu2 %v1021_v35  ;;  %v1140_v35 = vld [vmem:[#allocation2 + $0x268] sm:$0xff] }
 0x327   :  { %1292 = vmatpush.msrb.mxu2 %v1019_v40  ;;  %v1135_v40 = vld [vmem:[#allocation2 + $0x240] sm:$0xff] }
 0x329   :  { %1293 = vmatpush.msrb.mxu2 %v1017_v47  ;;  %v1179_v47 = vld [vmem:[#allocation2 + $0x3a0] sm:$0xff] }
 0x32b   :  { %1294 = vmatpush.msrb.mxu2 %v1015_v50  ;;  %v1133_v50 = vld [vmem:[#allocation2 + $0x230] sm:$0xff] }
 0x32d   :  { %1295 = vmatpush.msrb.mxu2 %v1013_v59  ;;  %v1173_v59 = vld [vmem:[#allocation2 + $0x370] sm:$0xff] }
 0x32f   :  { %1296 = vmatpush.msrb.mxu2 %v1011_v60  ;;  %v1132_v60 = vld [vmem:[#allocation2 + $0x228] sm:$0xff] }
 0x331   :  { %1297 = vmatpush.msrb.mxu2 %v1009_v62  ;;  %v1127_v62 = vld [vmem:[#allocation2 + $0x200] sm:$0xff] }
 0x333   :  { %1298 = vmatpush.msrb.mxu2 %v1007_v63  ;;  %v1190_v63 = vld [vmem:[#allocation2 + $0x3f8] sm:$0xff] }
 0x397   :  { %v856_v0 = vpop.f32.mrf.mxu1  ;;  %v876_v24 = vpop.f32.mrf.mxu2 }
 0x398   :  { %v877_v26 = vadd.f32 %v876_v24, %v856_v0  ;;  %v1141_v0 = vld [vmem:[#allocation2 + $0x270] sm:$0xff] }
 0x399   :  { %v1185_v24 = vld [vmem:[#allocation2 + $0x3d0] sm:$0xff] }
 0x39a   :  { %v879_v28 = vmul.f32 %v877_v26, %v661_v57  ;;  %v1144_v26 = vld [vmem:[#allocation2 + $0x288] sm:$0xff] }
 0x39c   :  { %v880_v30 = vadd.f32 1e-05, %v879_v28  ;;  %v1183_v28 = vld [vmem:[#allocation2 + $0x3c0] sm:$0xff] }
 0x39e   :  { %5241 = vrsqrt.f32 %v880_v30  ;;  %vm887_vm5 = vweird.f32 %v880_v30 }
 0x3a4   :  { %v5242_v49 = vpop.eup %5241 }
 0x3a5   :  { %v882_v52 = vmul.f32 %v5242_v49, %v880_v30  ;;  %vm888_vm4 = vweird.f32 %v5242_v49  ;;  %v1137_v30 = vld [vmem:[#allocation2 + $0x250] sm:$0xff] }
 0x3a6   :  { %vm889_vm6 = vmor %vm887_vm5, %vm888_vm4 }
 0x3a7   :  { %v883_v53 = vmul.f32 %v5242_v49, %v882_v52  ;;  %v1177_v52 = vld [vmem:[#allocation2 + $0x390] sm:$0xff] }
 0x3a9   :  { %v884_v54 = vmul.f32 0.5, %v883_v53  ;;  %v1136_v53 = vld [vmem:[#allocation2 + $0x248] sm:$0xff] }
 0x3ab   :  { %v885_v55 = vsub.f32 1.5, %v884_v54  ;;  %v1131_v54 = vld [vmem:[#allocation2 + $0x220] sm:$0xff] }
 0x3ad   :  { %v886_v56 = vmul.f32 %v5242_v49, %v885_v55  ;;  %v1175_v55 = vld [vmem:[#allocation2 + $0x380] sm:$0xff] }
 0x3af   :  { %v890_v57 = vsel %vm889_vm6, %v5242_v49, %v886_v56  ;;  %v1138_v49 = vld [vmem:[#allocation2 + $0x258] sm:$0xff]  ;;  %vm3698_vm6 = vcmask 31744  }
 0x3b0   :  { %5022 = vmatmul.msk.f32.vlgmr.msra.gmra.mxu1 %vm663_vm2, %v890_v57  ;;  %5039 = vmatmul.msk.f32.vlgmr.msra.gmra.mxu2 %vm663_vm2, %v890_v57  ;;  %v1134_v56 = vld [vmem:[#allocation2 + $0x238] sm:$0xff]  ;;  %v1129_v57 = vld [vmem:[#allocation2 + $0x210] sm:$0xff] }
 0x42d   :  { %v911_v4 = vpop.f32.mrf.mxu1 }
 0x42e   :  { %v934_v5 = vperm.slane %v911_v4, 0  ;;  %v1171_v4 = vld [vmem:[#allocation2 + $0x360] sm:$0xff] }
 0x430   :  { %v942_v8 = vmul.f32 %v934_v5, %v6309_v20  ;;  %v940_v9 = vmul.f32 %v934_v5, %v6306_v19  ;;  %v938_v13 = vmul.f32 %v934_v5, %v6303_v17  ;;  %v936_v23 = vmul.f32 %v934_v5, %v6300_v16  ;;  %v6333_v16 = vld [vmem:[%s8382_s25 + $0x10] sm:$0xff]  ;;  %v1130_v5 = vld [vmem:[#allocation2 + $0x218] sm:$0xff] }
 0x432   :  { %v950_v12 = vmax.f32 %v942_v8, 0.0  ;;  %v948_v22 = vmax.f32 %v940_v9, 0.0  ;;  %v946_v25 = vmax.f32 %v938_v13, 0.0  ;;  %v944_v19 = vmax.f32 %v936_v23, 0.0  ;;  %v1188_v8 = vld [vmem:[#allocation2 + $0x3e8] sm:$0xff]  ;;  %v1169_v9 = vld [vmem:[#allocation2 + $0x350] sm:$0xff] }
 0x433   :  { %v931_v14 = vpop.f32.mrf.mxu2  ;;  %v1186_v13 = vld [vmem:[#allocation2 + $0x3d8] sm:$0xff]  ;;  %v1165_v23 = vld [vmem:[#allocation2 + $0x330] sm:$0xff] }
 0x434   :  { %v935_v15 = vperm.slane %v931_v14, 0  ;;  %973 = vmatpush.msrb.mxu1 %v950_v12  ;;  %1092 = vmatpush.msra.mxu0 %v950_v12  ;;  %v1167_v14 = vld [vmem:[#allocation2 + $0x340] sm:$0xff] }
 0x435   :  { %1396 = vmatpush.msra.mxu2 %v950_v12  ;;  %v1128_v12 = vld [vmem:[#allocation2 + $0x208] sm:$0xff] }
 0x436   :  { %974 = vmatpush.msrb.mxu1 %v948_v22  ;;  %1093 = vmatpush.msra.mxu0 %v948_v22  ;;  %v943_v31 = vmul.f32 %v935_v15, %v6289_v3  ;;  %v941_v20 = vmul.f32 %v935_v15, %v6286_v2  ;;  %v939_v33 = vmul.f32 %v935_v15, %v6283_v1 }
 0x437   :  { %1397 = vmatpush.msra.mxu2 %v948_v22  ;;  %v937_v2 = vmul.f32 %v935_v15, %v6280_v6  ;;  %v1156_v6 = vld [vmem:[#allocation2 + $0x2e8] sm:$0xff]  ;;  %v1038_v15 = vld [vmem:[#allocation2 + $0xf8] sm:$0xff] }
 0x438   :  { %975 = vmatpush.msrb.mxu1 %v946_v25  ;;  %1094 = vmatpush.msra.mxu0 %v946_v25  ;;  %v6327_v17 = vmax.f32 %v943_v31, 0.0  ;;  %v6336_v3 = vmax.f32 %v941_v20, 0.0  ;;  %v6340_v1 = vmax.f32 %v939_v33, 0.0  ;;  %v1184_v22 = vld [vmem:[#allocation2 + $0x3c8] sm:$0xff]  ;;  %v1182_v31 = vld [vmem:[#allocation2 + $0x3b8] sm:$0xff]  ;;  %v1163_v20 = vld [vmem:[#allocation2 + $0x320] sm:$0xff] }
 0x439   :  { %1398 = vmatpush.msra.mxu2 %v946_v25  ;;  %v6349_v45 = vmax.f32 %v937_v2, 0.0  ;;  %v1036_v25 = vld [vmem:[#allocation2 + $0xe8] sm:$0xff] }
 0x43a   :  { %976 = vmatpush.msrb.mxu1 %v944_v19  ;;  %996 = vmatpush.msrb.mxu3 %v6327_v17  ;;  %v1180_v33 = vld [vmem:[#allocation2 + $0x3a8] sm:$0xff] }
 0x43b   :  { %1095 = vmatpush.msra.mxu0 %v944_v19  ;;  %1399 = vmatpush.msra.mxu2 %v944_v19  ;;  %v1034_v19 = vld [vmem:[#allocation2 + $0xd8] sm:$0xff]  ;;  %v1032_v2 = vld [vmem:[#allocation2 + $0xc8] sm:$0xff] }
 0x43c   :  { %997 = vmatpush.msrb.mxu3 %v6336_v3  ;;  %5046 = vmatmul.msk.f32.vlgmr.msra.gmra.mxu0 %vm954_vm7, %v6333_v16 }
 0x43d   :  { %5040 = vmatmul.msk.f32.vlgmr.msrb.gmra.mxu1 %vm954_vm7, %v952_v41  ;;  %1191 = vmatpush.msrb.mxu0 %v1157_v34  ;;  %v1178_v34 = vld [vmem:[#allocation2 + $0x398] sm:$0xff] }
 0x43e   :  { %998 = vmatpush.msrb.mxu3 %v6340_v1  ;;  %1237 = vmatpush.msra.mxu1 %v1158_v43  ;;  %v1030_v43 = vld [vmem:[#allocation2 + $0xb8] sm:$0xff] }
 0x43f   :  { %1192 = vmatpush.msrb.mxu0 %v1155_v42  ;;  %v1069_v42 = vld [vmem:[#allocation2 + $0x1f0] sm:$0xff] }
 0x440   :  { %999 = vmatpush.msrb.mxu3 %v6349_v45  ;;  %1238 = vmatpush.msra.mxu1 %v1156_v6  ;;  %v1176_v6 = vld [vmem:[#allocation2 + $0x388] sm:$0xff] }
 0x441   :  { %5042 = vmatmul.msk.f32.vlgmr.msrb.gmra.mxu3 %vm954_vm7, %v952_v41  ;;  %1193 = vmatpush.msrb.mxu0 %v1153_v48  ;;  %v1159_v41 = vld [vmem:[#allocation2 + $0x300] sm:$0xff] }
 0x442   :  { %1115 = vmatpush.msra.mxu3 %v6327_v17  ;;  %1239 = vmatpush.msra.mxu1 %v1154_v37  ;;  %v1067_v48 = vld [vmem:[#allocation2 + $0x1e0] sm:$0xff]  ;;  %v1028_v37 = vld [vmem:[#allocation2 + $0xa8] sm:$0xff] }
 0x443   :  { %1194 = vmatpush.msrb.mxu0 %v1151_v46  ;;  %v1174_v46 = vld [vmem:[#allocation2 + $0x378] sm:$0xff] }
 0x444   :  { %1116 = vmatpush.msra.mxu3 %v6336_v3  ;;  %5047 = vmatmul.msk.f32.gmra.mxu0 %vm954_vm7, %v6356_v58 }
 0x445   :  { %5041 = vmatmul.msk.f32.gmra.mxu1 %vm954_vm7, %v953_v44  ;;  %1195 = vmatpush.msrb.mxu0 %v1149_v36  ;;  %v1172_v36 = vld [vmem:[#allocation2 + $0x368] sm:$0xff] }
 0x446   :  { %1117 = vmatpush.msra.mxu3 %v6340_v1  ;;  %1240 = vmatpush.msra.mxu1 %v1152_v38  ;;  %v1063_v38 = vld [vmem:[#allocation2 + $0x1c0] sm:$0xff] }
 0x447   :  { %1196 = vmatpush.msrb.mxu0 %v1147_v51  ;;  %v1061_v51 = vld [vmem:[#allocation2 + $0x1b0] sm:$0xff] }
 0x448   :  { %1118 = vmatpush.msra.mxu3 %v6349_v45  ;;  %1241 = vmatpush.msra.mxu1 %v1150_v61  ;;  %v1168_v61 = vld [vmem:[#allocation2 + $0x348] sm:$0xff] }
 0x449   :  { %5043 = vmatmul.msk.f32.gmra.mxu3 %vm954_vm7, %v953_v44  ;;  %1197 = vmatpush.msrb.mxu0 %v1145_v7  ;;  %v1170_v44 = vld [vmem:[#allocation2 + $0x358] sm:$0xff]  ;;  %v1059_v7 = vld [vmem:[#allocation2 + $0x1a0] sm:$0xff] }
 0x44a   :  { %1214 = vmatpush.msrb.mxu3 %v1189_v10  ;;  %1242 = vmatpush.msra.mxu1 %v1148_v11  ;;  %v1166_v10 = vld [vmem:[#allocation2 + $0x338] sm:$0xff]  ;;  %v1057_v11 = vld [vmem:[#allocation2 + $0x190] sm:$0xff] }
 0x44b   :  { %1198 = vmatpush.msrb.mxu0 %v1143_v18  ;;  %v1164_v18 = vld [vmem:[#allocation2 + $0x328] sm:$0xff] }
 0x44c   :  { %1215 = vmatpush.msrb.mxu3 %v1187_v21  ;;  %1243 = vmatpush.msra.mxu1 %v1146_v39  ;;  %v1162_v21 = vld [vmem:[#allocation2 + $0x318] sm:$0xff]  ;;  %v1055_v39 = vld [vmem:[#allocation2 + $0x180] sm:$0xff] }
 0x44d   :  { %1199 = vmatpush.msrb.mxu0 %v1141_v0  ;;  %v1026_v0 = vld [vmem:[#allocation2 + $0x98] sm:$0xff] }
 0x44e   :  { %1216 = vmatpush.msrb.mxu3 %v1185_v24  ;;  %1244 = vmatpush.msra.mxu1 %v1144_v26  ;;  %v1160_v24 = vld [vmem:[#allocation2 + $0x308] sm:$0xff]  ;;  %v1053_v26 = vld [vmem:[#allocation2 + $0x170] sm:$0xff] }
 0x44f   :  { %1200 = vmatpush.msrb.mxu0 %v1139_v27  ;;  %v1024_v27 = vld [vmem:[#allocation2 + $0x88] sm:$0xff] }
 0x450   :  { %1217 = vmatpush.msrb.mxu3 %v1183_v28  ;;  %1245 = vmatpush.msra.mxu1 %v1142_v29  ;;  %v1051_v28 = vld [vmem:[#allocation2 + $0x160] sm:$0xff]  ;;  %v1022_v29 = vld [vmem:[#allocation2 + $0x78] sm:$0xff] }
 0x451   :  { %5048 = vmatmul.msk.f32.vlgmr.msra.gmra.mxu3 %vm954_vm7, %v6333_v16  ;;  %1201 = vmatpush.msrb.mxu0 %v1137_v30  ;;  %v1161_v16 = vld [vmem:[#allocation2 + $0x310] sm:$0xff] }
 0x452   :  { %1218 = vmatpush.msrb.mxu3 %v1181_v32  ;;  %1246 = vmatpush.msra.mxu1 %v1140_v35  ;;  %v1049_v30 = vld [vmem:[#allocation2 + $0x150] sm:$0xff]  ;;  %v1020_v32 = vld [vmem:[#allocation2 + $0x68] sm:$0xff]  ;;  %v1047_v35 = vld [vmem:[#allocation2 + $0x140] sm:$0xff] }
 0x453   :  { %1202 = vmatpush.msrb.mxu0 %v1135_v40  ;;  %v1018_v40 = vld [vmem:[#allocation2 + $0x58] sm:$0xff] }
 0x454   :  { %1219 = vmatpush.msrb.mxu3 %v1179_v47  ;;  %1247 = vmatpush.msra.mxu1 %v1138_v49  ;;  %v1045_v47 = vld [vmem:[#allocation2 + $0x130] sm:$0xff]  ;;  %v1016_v49 = vld [vmem:[#allocation2 + $0x48] sm:$0xff] }
 0x455   :  { %1203 = vmatpush.msrb.mxu0 %v1133_v50  ;;  %v1043_v50 = vld [vmem:[#allocation2 + $0x120] sm:$0xff] }
 0x456   :  { %1220 = vmatpush.msrb.mxu3 %v1177_v52  ;;  %1248 = vmatpush.msra.mxu1 %v1136_v53  ;;  %v1014_v52 = vld [vmem:[#allocation2 + $0x38] sm:$0xff]  ;;  %v1041_v53 = vld [vmem:[#allocation2 + $0x110] sm:$0xff] }
 0x457   :  { %1204 = vmatpush.msrb.mxu0 %v1131_v54  ;;  %v1012_v54 = vld [vmem:[#allocation2 + $0x28] sm:$0xff] }
 0x458   :  { %1221 = vmatpush.msrb.mxu3 %v1175_v55  ;;  %1249 = vmatpush.msra.mxu1 %v1134_v56  ;;  %v1039_v55 = vld [vmem:[#allocation2 + $0x100] sm:$0xff]  ;;  %v1010_v56 = vld [vmem:[#allocation2 + $0x18] sm:$0xff] }
 0x459   :  { %5049 = vmatmul.msk.f32.gmra.mxu3 %vm954_vm7, %v6356_v58  ;;  %1205 = vmatpush.msrb.mxu0 %v1129_v57  ;;  %v1065_v58 = vld [vmem:[#allocation2 + $0x1d0] sm:$0xff]  ;;  %v1008_v57 = vld [vmem:[#allocation2 + $0x8] sm:$0xff] }
 0x45a   :  { %1222 = vmatpush.msrb.mxu3 %v1173_v59  ;;  %1250 = vmatpush.msra.mxu1 %v1132_v60  ;;  %v1070_v59 = vld [vmem:[#allocation2 + $0x1f8] sm:$0xff] }
 0x45b   :  { %1206 = vmatpush.msrb.mxu0 %v1127_v62  ;;  %v1068_v62 = vld [vmem:[#allocation2 + $0x1e8] sm:$0xff] }
 0x45c   :  { %1223 = vmatpush.msrb.mxu3 %v1171_v4  ;;  %1251 = vmatpush.msra.mxu1 %v1130_v5  ;;  %v1066_v4 = vld [vmem:[#allocation2 + $0x1d8] sm:$0xff]  ;;  %v1064_v5 = vld [vmem:[#allocation2 + $0x1c8] sm:$0xff] }
 0x45d   :  { %1260 = vmatpush.msra.mxu0 %v1190_v63 }
 0x45e   :  { %1224 = vmatpush.msrb.mxu3 %v1169_v9  ;;  %1252 = vmatpush.msra.mxu1 %v1128_v12  ;;  %v1060_v12 = vld [vmem:[#allocation2 + $0x1a8] sm:$0xff] }
 0x45f   :  { %1261 = vmatpush.msra.mxu0 %v1188_v8  ;;  %v1062_v8 = vld [vmem:[#allocation2 + $0x1b8] sm:$0xff] }
 0x460   :  { %1225 = vmatpush.msrb.mxu3 %v1167_v14  ;;  %1329 = vmatpush.msrb.mxu1 %v1038_v15  ;;  %v1058_v15 = vld [vmem:[#allocation2 + $0x198] sm:$0xff] }
 0x461   :  { %1262 = vmatpush.msra.mxu0 %v1186_v13 }
 0x462   :  { %1226 = vmatpush.msrb.mxu3 %v1165_v23  ;;  %1330 = vmatpush.msrb.mxu1 %v1036_v25  ;;  %v1054_v23 = vld [vmem:[#allocation2 + $0x178] sm:$0xff]  ;;  %v1052_v25 = vld [vmem:[#allocation2 + $0x168] sm:$0xff] }
 0x463   :  { %1263 = vmatpush.msra.mxu0 %v1184_v22  ;;  %v1056_v22 = vld [vmem:[#allocation2 + $0x188] sm:$0xff] }
 0x464   :  { %1227 = vmatpush.msrb.mxu3 %v1163_v20  ;;  %1331 = vmatpush.msrb.mxu1 %v1034_v19  ;;  %v1050_v20 = vld [vmem:[#allocation2 + $0x158] sm:$0xff]  ;;  %v5050_v19 = vld [vmem:[%s8382_s25 + $0x20] sm:$0xff] }
 0x465   :  { %1264 = vmatpush.msra.mxu0 %v1182_v31 }
 0x466   :  { %1228 = vmatpush.msrb.mxu3 %v1161_v16  ;;  %1332 = vmatpush.msrb.mxu1 %v1032_v2  ;;  %v1046_v16 = vld [vmem:[#allocation2 + $0x138] sm:$0xff]  ;;  %v1044_v2 = vld [vmem:[#allocation2 + $0x128] sm:$0xff] }
 0x467   :  { %1265 = vmatpush.msra.mxu0 %v1180_v33  ;;  %v1048_v33 = vld [vmem:[#allocation2 + $0x148] sm:$0xff] }
 0x468   :  { %1229 = vmatpush.msrb.mxu3 %v1159_v41  ;;  %1333 = vmatpush.msrb.mxu1 %v1030_v43  ;;  %v1042_v41 = vld [vmem:[#allocation2 + $0x118] sm:$0xff]  ;;  %v1040_v43 = vld [vmem:[#allocation2 + $0x108] sm:$0xff] }
 0x469   :  { %1266 = vmatpush.msra.mxu0 %v1178_v34 }
 0x46a   :  { %1306 = vmatpush.msra.mxu3 %v1069_v42  ;;  %1334 = vmatpush.msrb.mxu1 %v1028_v37  ;;  %v5051_v42 = vld [vmem:[%s8382_s25 + $0x28] sm:$0xff]  ;;  %v1458_v37 = vld [vmem:[#allocation2 + $0x4d8] sm:$0xff] }
 0x46b   :  { %1267 = vmatpush.msra.mxu0 %v1176_v6 }
 0x46c   :  { %1307 = vmatpush.msra.mxu3 %v1067_v48  ;;  %1335 = vmatpush.msrb.mxu1 %v1026_v0  ;;  %v1462_v48 = vld [vmem:[#allocation2 + $0x4f8] sm:$0xff]  ;;  %v1449_v0 = vld [vmem:[#allocation2 + $0x490] sm:$0xff] }
 0x46d   :  { %1268 = vmatpush.msra.mxu0 %v1174_v46  ;;  %v1455_v46 = vld [vmem:[#allocation2 + $0x4c0] sm:$0xff] }
 0x46e   :  { %1308 = vmatpush.msra.mxu3 %v1065_v58  ;;  %1336 = vmatpush.msrb.mxu1 %v1024_v27  ;;  %v1493_v58 = vld [vmem:[#allocation2 + $0x5f0] sm:$0xff]  ;;  %v1488_v27 = vld [vmem:[#allocation2 + $0x5c8] sm:$0xff] }
 0x46f   :  { %1269 = vmatpush.msra.mxu0 %v1172_v36  ;;  %v1456_v36 = vld [vmem:[#allocation2 + $0x4c8] sm:$0xff] }
 0x470   :  { %1309 = vmatpush.msra.mxu3 %v1063_v38  ;;  %1337 = vmatpush.msrb.mxu1 %v1022_v29  ;;  %v1494_v38 = vld [vmem:[#allocation2 + $0x5f8] sm:$0xff]  ;;  %v1485_v29 = vld [vmem:[#allocation2 + $0x5b0] sm:$0xff] }
 0x471   :  { %1270 = vmatpush.msra.mxu0 %v1170_v44  ;;  %v1453_v44 = vld [vmem:[#allocation2 + $0x4b0] sm:$0xff] }
 0x472   :  { %1310 = vmatpush.msra.mxu3 %v1061_v51  ;;  %1338 = vmatpush.msrb.mxu1 %v1020_v32  ;;  %v1491_v51 = vld [vmem:[#allocation2 + $0x5e0] sm:$0xff]  ;;  %v1486_v32 = vld [vmem:[#allocation2 + $0x5b8] sm:$0xff] }
 0x473   :  { %1271 = vmatpush.msra.mxu0 %v1168_v61  ;;  %v1454_v61 = vld [vmem:[#allocation2 + $0x4b8] sm:$0xff] }
 0x474   :  { %1311 = vmatpush.msra.mxu3 %v1059_v7  ;;  %1339 = vmatpush.msrb.mxu1 %v1018_v40  ;;  %v1492_v7 = vld [vmem:[#allocation2 + $0x5e8] sm:$0xff]  ;;  %v1483_v40 = vld [vmem:[#allocation2 + $0x5a0] sm:$0xff] }
 0x475   :  { %1272 = vmatpush.msra.mxu0 %v1166_v10  ;;  %v1451_v10 = vld [vmem:[#allocation2 + $0x4a0] sm:$0xff] }
 0x476   :  { %1312 = vmatpush.msra.mxu3 %v1057_v11  ;;  %1340 = vmatpush.msrb.mxu1 %v1016_v49  ;;  %v1489_v11 = vld [vmem:[#allocation2 + $0x5d0] sm:$0xff]  ;;  %v1484_v49 = vld [vmem:[#allocation2 + $0x5a8] sm:$0xff] }
 0x477   :  { %1273 = vmatpush.msra.mxu0 %v1164_v18  ;;  %v1452_v18 = vld [vmem:[#allocation2 + $0x4a8] sm:$0xff] }
 0x478   :  { %1313 = vmatpush.msra.mxu3 %v1055_v39  ;;  %1341 = vmatpush.msrb.mxu1 %v1014_v52  ;;  %v1481_v52 = vld [vmem:[#allocation2 + $0x590] sm:$0xff] }
 0x479   :  { %1274 = vmatpush.msra.mxu0 %v1162_v21  ;;  %v1490_v21 = vld [vmem:[#allocation2 + $0x5d8] sm:$0xff] }
 0x47a   :  { %1314 = vmatpush.msra.mxu3 %v1053_v26  ;;  %1342 = vmatpush.msrb.mxu1 %v1012_v54  ;;  %v1450_v26 = vld [vmem:[#allocation2 + $0x498] sm:$0xff] }
 0x47b   :  { %1275 = vmatpush.msra.mxu0 %v1160_v24  ;;  %v1487_v24 = vld [vmem:[#allocation2 + $0x5c0] sm:$0xff]  ;;  %v1482_v54 = vld [vmem:[#allocation2 + $0x598] sm:$0xff] }
 0x47c   :  { %1315 = vmatpush.msra.mxu3 %v1051_v28  ;;  %1343 = vmatpush.msrb.mxu1 %v1010_v56  ;;  %v1447_v28 = vld [vmem:[#allocation2 + $0x480] sm:$0xff] }
 0x47d   :  { %v1479_v56 = vld [vmem:[#allocation2 + $0x580] sm:$0xff] }
 0x47e   :  { %1316 = vmatpush.msra.mxu3 %v1049_v30  ;;  %1344 = vmatpush.msrb.mxu1 %v1008_v57  ;;  %v1448_v30 = vld [vmem:[#allocation2 + $0x488] sm:$0xff]  ;;  %v1442_v57 = vld [vmem:[#allocation2 + $0x458] sm:$0xff] }
 0x480   :  { %1317 = vmatpush.msra.mxu3 %v1047_v35  ;;  %v1445_v35 = vld [vmem:[#allocation2 + $0x470] sm:$0xff] }
 0x482   :  { %1318 = vmatpush.msra.mxu3 %v1045_v47  ;;  %v1446_v47 = vld [vmem:[#allocation2 + $0x478] sm:$0xff] }
 0x484   :  { %1319 = vmatpush.msra.mxu3 %v1043_v50  ;;  %v1443_v50 = vld [vmem:[#allocation2 + $0x460] sm:$0xff] }
 0x486   :  { %1320 = vmatpush.msra.mxu3 %v1041_v53  ;;  %v1444_v53 = vld [vmem:[#allocation2 + $0x468] sm:$0xff] }
 0x488   :  { %1321 = vmatpush.msra.mxu3 %v1039_v55  ;;  %v1441_v55 = vld [vmem:[#allocation2 + $0x450] sm:$0xff] }
 0x4b9   :  { %v1097_v60 = vpop.f32.mrf.mxu0 }
 0x4ba   :  { %1207 = vmatmul.f32.vlgmr.msrb.gmra.mxu0 %v1097_v60  ;;  %1253 = vmatmul.f32.vlgmr.msra.gmra.mxu1 %v1097_v60  ;;  %v978_v63 = vpop.f32.mrf.mxu1  ;;  %v1480_v60 = vld [vmem:[#allocation2 + $0x588] sm:$0xff] }
 0x4bb   :  { %1352 = vmatpush.msrb.mxu0 %v1070_v59  ;;  %1299 = vmatmul.f32.vlgmr.msrb.gmra.mxu2 %v978_v63 }
 0x4bc   :  { %1518 = vmatpush.msra.mxu1 %v1493_v58  ;;  %v6403_v58 = vld [vmem:[%s8327_s12 + $0xf8] sm:$0xff] }
 0x4bd   :  { %1353 = vmatpush.msrb.mxu0 %v1068_v62  ;;  %v1439_v62 = vld [vmem:[#allocation2 + $0x440] sm:$0xff] }
 0x4be   :  { %1519 = vmatpush.msra.mxu1 %v1491_v51 }
 0x4bf   :  { %1354 = vmatpush.msrb.mxu0 %v1066_v4  ;;  %v1440_v4 = vld [vmem:[#allocation2 + $0x448] sm:$0xff] }
 0x4c0   :  { %1520 = vmatpush.msra.mxu1 %v1489_v11 }
 0x4c1   :  { %v1100_v9 = vpop.f32.mrf.mxu0  ;;  %1355 = vmatpush.msrb.mxu0 %v1064_v5  ;;  %v1478_v5 = vld [vmem:[#allocation2 + $0x578] sm:$0xff] }
 0x4c2   :  { %1210 = vmatmul.f32.gmra.mxu0 %v1100_v9  ;;  %1256 = vmatmul.f32.gmra.mxu1 %v1100_v9  ;;  %v981_v13 = vpop.f32.mrf.mxu1  ;;  %v1475_v9 = vld [vmem:[#allocation2 + $0x560] sm:$0xff] }
 0x4c3   :  { %1356 = vmatpush.msrb.mxu0 %v1062_v8  ;;  %1302 = vmatmul.f32.gmra.mxu2 %v981_v13  ;;  %v1437_v8 = vld [vmem:[#allocation2 + $0x430] sm:$0xff] }
 0x4c4   :  { %v1001_v14 = vpop.f32.mrf.mxu3  ;;  %1521 = vmatpush.msra.mxu1 %v1487_v24  ;;  %v6447_v24 = vld [vmem:[%s8327_s12 + $0xe8] sm:$0xff] }
 0x4c5   :  { %1357 = vmatpush.msrb.mxu0 %v1060_v12  ;;  %v1438_v12 = vld [vmem:[#allocation2 + $0x438] sm:$0xff] }
 0x4c6   :  { %1522 = vmatpush.msra.mxu1 %v1485_v29  ;;  %v6475_v29 = vld [vmem:[%s8327_s12 + $0xd8] sm:$0xff] }
 0x4c7   :  { %1358 = vmatpush.msrb.mxu0 %v1058_v15  ;;  %v1473_v15 = vld [vmem:[#allocation2 + $0x550] sm:$0xff] }
 0x4c8   :  { %1523 = vmatpush.msra.mxu1 %v1483_v40  ;;  %v6489_v40 = vld [vmem:[%s8327_s12 + $0xd0] sm:$0xff] }
 0x4c9   :  { %1359 = vmatpush.msrb.mxu0 %v1056_v22  ;;  %v1436_v22 = vld [vmem:[#allocation2 + $0x428] sm:$0xff] }
 0x4ca   :  { %1345 = vmatmul.f32.vlgmr.msrb.gmra.mxu1 %v978_v63  ;;  %v1477_v63 = vld [vmem:[#allocation2 + $0x570] sm:$0xff] }
 0x4cb   :  { %1360 = vmatpush.msrb.mxu0 %v1054_v23  ;;  %5052 = vmatmul.msk.f32.vlgmr.msra.gmra.mxu2 %vm954_vm7, %v5050_v19  ;;  %v1474_v23 = vld [vmem:[#allocation2 + $0x558] sm:$0xff] }
 0x4cc   :  { %v1004_v31 = vpop.f32.mrf.mxu3  ;;  %1524 = vmatpush.msra.mxu1 %v1481_v52  ;;  %v6519_v52 = vld [vmem:[%s8327_s12 + $0xc0] sm:$0xff] }
 0x4cd   :  { %1361 = vmatpush.msrb.mxu0 %v1052_v25  ;;  %v1433_v25 = vld [vmem:[#allocation2 + $0x410] sm:$0xff] }
 0x4ce   :  { %1525 = vmatpush.msra.mxu1 %v1479_v56 }
 0x4cf   :  { %1362 = vmatpush.msrb.mxu0 %v1050_v20  ;;  %v1434_v20 = vld [vmem:[#allocation2 + $0x418] sm:$0xff] }
 0x4d0   :  { %1526 = vmatpush.msra.mxu1 %v1477_v63  ;;  %v6565_v63 = vld [vmem:[%s8327_s12 + $0xa8] sm:$0xff] }
 0x4d1   :  { %1363 = vmatpush.msrb.mxu0 %v1048_v33 }
 0x4d2   :  { %1348 = vmatmul.f32.gmra.mxu1 %v981_v13  ;;  %v1476_v13 = vld [vmem:[#allocation2 + $0x568] sm:$0xff] }
 0x4d3   :  { %1364 = vmatpush.msrb.mxu0 %v1046_v16  ;;  %5053 = vmatmul.msk.f32.gmra.mxu2 %vm954_vm7, %v5051_v42  ;;  %v1431_v16 = vld [vmem:[#allocation2 + $0x400] sm:$0xff] }
 0x4d4   :  { %v1120_v34 = vpop.f32.mrf.mxu3  ;;  %1527 = vmatpush.msra.mxu1 %v1475_v9  ;;  %v6593_v9 = vld [vmem:[%s8327_s12 + $0x98] sm:$0xff] }
 0x4d5   :  { %1230 = vmatmul.f32.vlgmr.msrb.gmra.mxu3 %v1120_v34  ;;  %1276 = vmatmul.f32.vlgmr.msra.gmra.mxu0 %v1120_v34  ;;  %v1432_v34 = vld [vmem:[#allocation2 + $0x408] sm:$0xff] }
 0x4d6   :  { %1419 = vmatpush.msrb.mxu3 %v6327_v17  ;;  %1365 = vmatpush.msrb.mxu0 %v1044_v2  ;;  %v1461_v17 = vld [vmem:[#allocation2 + $0x4f0] sm:$0xff] }
 0x4d7   :  { %1495 = vmatpush.msrb.mxu2 %v1461_v17  ;;  %1528 = vmatpush.msra.mxu1 %v1473_v15  ;;  %v1469_v2 = vld [vmem:[#allocation2 + $0x530] sm:$0xff]  ;;  %v1466_v17 = vld [vmem:[#allocation2 + $0x518] sm:$0xff]  ;;  %v6615_v15 = vld [vmem:[%s8327_s12 + $0x88] sm:$0xff] }
 0x4d8   :  { %1420 = vmatpush.msrb.mxu3 %v6336_v3  ;;  %1366 = vmatpush.msrb.mxu0 %v1042_v41  ;;  %v1459_v3 = vld [vmem:[#allocation2 + $0x4e0] sm:$0xff]  ;;  %v1470_v41 = vld [vmem:[#allocation2 + $0x538] sm:$0xff] }
 0x4d9   :  { %1496 = vmatpush.msrb.mxu2 %v1459_v3  ;;  %v1463_v3 = vld [vmem:[#allocation2 + $0x500] sm:$0xff] }
 0x4da   :  { %1421 = vmatpush.msrb.mxu3 %v6340_v1  ;;  %1367 = vmatpush.msrb.mxu0 %v1040_v43  ;;  %v1460_v1 = vld [vmem:[#allocation2 + $0x4e8] sm:$0xff] }
 0x4db   :  { %v1468_v43 = vld [vmem:[#allocation2 + $0x528] sm:$0xff] }
 0x4dc   :  { %1422 = vmatpush.msrb.mxu3 %v6349_v45  ;;  %v1123_v6 = vpop.f32.mrf.mxu3  ;;  %v1457_v45 = vld [vmem:[#allocation2 + $0x4d0] sm:$0xff]  ;;  %1564 = vmatpush.msra.mxu0 %v1494_v38 }
 0x4dd   :  { %1233 = vmatmul.f32.gmra.mxu3 %v1123_v6  ;;  %1279 = vmatmul.f32.gmra.mxu0 %v1123_v6  ;;  %v1465_v6 = vld [vmem:[#allocation2 + $0x510] sm:$0xff] }
 0x4de   :  { %1497 = vmatpush.msrb.mxu2 %v1457_v45  ;;  %1565 = vmatpush.msra.mxu0 %v1492_v7  ;;  %v6415_v38 = vld [vmem:[%s8327_s12 + $0xf0] sm:$0xff] }
 0x4e0   :  { %1498 = vmatpush.msrb.mxu2 %v1455_v46  ;;  %1566 = vmatpush.msra.mxu0 %v1490_v21  ;;  %v6398_v46 = vld [vmem:[%s8327_s12 + $0x78] sm:$0xff] }
 0x4e2   :  { %1499 = vmatpush.msrb.mxu2 %v1453_v44  ;;  %1567 = vmatpush.msra.mxu0 %v1488_v27  ;;  %v6459_v27 = vld [vmem:[%s8327_s12 + $0xe0] sm:$0xff] }
 0x4e4   :  { %1500 = vmatpush.msrb.mxu2 %v1451_v10  ;;  %1568 = vmatpush.msra.mxu0 %v1486_v32 }
 0x4e5   :  { %1322 = vmatmul.f32.vlgmr.msra.gmra.mxu3 %v1001_v14  ;;  %1368 = vmatmul.f32.vlgmr.msrb.gmra.mxu0 %v1001_v14  ;;  %v1435_v14 = vld [vmem:[#allocation2 + $0x420] sm:$0xff] }
 0x4e6   :  { %1541 = vmatpush.msra.mxu3 %v1462_v48  ;;  %1501 = vmatpush.msrb.mxu2 %v1449_v0  ;;  %v6442_v0 = vld [vmem:[%s8327_s12 + $0x68] sm:$0xff] }
 0x4e7   :  { %1569 = vmatpush.msra.mxu0 %v1484_v49  ;;  %v6507_v49 = vld [vmem:[%s8327_s12 + $0xc8] sm:$0xff] }
 0x4e8   :  { %1542 = vmatpush.msra.mxu3 %v1460_v1  ;;  %1502 = vmatpush.msrb.mxu2 %v1447_v28  ;;  %v1464_v1 = vld [vmem:[#allocation2 + $0x508] sm:$0xff]  ;;  %v6470_v28 = vld [vmem:[%s8327_s12 + $0x58] sm:$0xff] }
 0x4e9   :  { %1570 = vmatpush.msra.mxu0 %v1482_v54  ;;  %v6535_v54 = vld [vmem:[%s8327_s12 + $0xb8] sm:$0xff] }
 0x4ea   :  { %1543 = vmatpush.msra.mxu3 %v1458_v37  ;;  %1503 = vmatpush.msrb.mxu2 %v1445_v35  ;;  %v6484_v35 = vld [vmem:[%s8327_s12 + $0x50] sm:$0xff] }
 0x4eb   :  { %1571 = vmatpush.msra.mxu0 %v1480_v60  ;;  %v6549_v60 = vld [vmem:[%s8327_s12 + $0xb0] sm:$0xff] }
 0x4ec   :  { %1544 = vmatpush.msra.mxu3 %v1456_v36  ;;  %1504 = vmatpush.msrb.mxu2 %v1443_v50  ;;  %v6408_v36 = vld [vmem:[%s8327_s12 + $0x70] sm:$0xff]  ;;  %v6514_v50 = vld [vmem:[%s8327_s12 + $0x40] sm:$0xff] }
 0x4ed   :  { %1325 = vmatmul.f32.gmra.mxu3 %v1004_v31  ;;  %1371 = vmatmul.f32.gmra.mxu0 %v1004_v31  ;;  %v1471_v31 = vld [vmem:[#allocation2 + $0x540] sm:$0xff] }
 0x4ee   :  { %1545 = vmatpush.msra.mxu3 %v1454_v61  ;;  %1505 = vmatpush.msrb.mxu2 %v1441_v55 }
 0x4ef   :  { %1572 = vmatpush.msra.mxu0 %v1478_v5  ;;  %1529 = vmatpush.msra.mxu1 %v1471_v31  ;;  %v6577_v5 = vld [vmem:[%s8327_s12 + $0xa0] sm:$0xff] }
 0x4f0   :  { %1546 = vmatpush.msra.mxu3 %v1452_v18  ;;  %1506 = vmatpush.msrb.mxu2 %v1439_v62  ;;  %v6560_v62 = vld [vmem:[%s8327_s12 + $0x28] sm:$0xff]  ;;  %v6631_v31 = vld [vmem:[%s8327_s12 + $0x80] sm:$0xff] }
 0x4f1   :  { %1573 = vmatpush.msra.mxu0 %v1476_v13  ;;  %1530 = vmatpush.msra.mxu1 %v1469_v2  ;;  %v6605_v13 = vld [vmem:[%s8327_s12 + $0x90] sm:$0xff] }
 0x4f2   :  { %1547 = vmatpush.msra.mxu3 %v1450_v26  ;;  %1507 = vmatpush.msrb.mxu2 %v1437_v8  ;;  %v6454_v26 = vld [vmem:[%s8327_s12 + $0x60] sm:$0xff]  ;;  %v6588_v8 = vld [vmem:[%s8327_s12 + $0x18] sm:$0xff] }
 0x4f3   :  { %1574 = vmatpush.msra.mxu0 %v1474_v23 }
 0x4f4   :  { %1548 = vmatpush.msra.mxu3 %v1448_v30  ;;  %1508 = vmatpush.msrb.mxu2 %v1435_v14  ;;  %v6610_v14 = vld [vmem:[%s8327_s12 + $0x8] sm:$0xff] }
 0x4f5   :  { %5054 = vmatmul.msk.f32.vlgmr.msrb.gmra.mxu3 %vm954_vm7, %v5050_v19  ;;  %v1472_v19 = vld [vmem:[#allocation2 + $0x548] sm:$0xff] }
 0x4f6   :  { %1549 = vmatpush.msra.mxu3 %v1446_v47  ;;  %1509 = vmatpush.msrb.mxu2 %v1433_v25  ;;  %v6502_v47 = vld [vmem:[%s8327_s12 + $0x48] sm:$0xff]  ;;  %v6626_v25 = vld [vmem:[%s8327_s12] sm:$0xff] }
 0x4f7   :  { %1575 = vmatpush.msra.mxu0 %v1472_v19 }
 0x4f8   :  { %1550 = vmatpush.msra.mxu3 %v1444_v53  ;;  %1510 = vmatpush.msrb.mxu2 %v1431_v16  ;;  %v6530_v53 = vld [vmem:[%s8327_s12 + $0x38] sm:$0xff] }
 0x4f9   :  { %1576 = vmatpush.msra.mxu0 %v1470_v41 }
 0x4fa   :  { %1551 = vmatpush.msra.mxu3 %v1442_v57  ;;  %1637 = vmatpush.msra.mxu2 %v6398_v46  ;;  %v6544_v57 = vld [vmem:[%s8327_s12 + $0x30] sm:$0xff] }
 0x4fb   :  { %1577 = vmatpush.msra.mxu0 %v1468_v43 }
 0x4fc   :  { %1552 = vmatpush.msra.mxu3 %v1440_v4  ;;  %1638 = vmatpush.msra.mxu2 %v6408_v36  ;;  %v6572_v4 = vld [vmem:[%s8327_s12 + $0x20] sm:$0xff] }
 0x4fd   :  { %5055 = vmatmul.msk.f32.gmra.mxu3 %vm954_vm7, %v5051_v42  ;;  %v1467_v42 = vld [vmem:[#allocation2 + $0x520] sm:$0xff]  ;;  %1578 = vmatpush.msra.mxu0 %v1466_v17 }
 0x4fe   :  { %1553 = vmatpush.msra.mxu3 %v1438_v12  ;;  %1531 = vmatpush.msra.mxu1 %v1467_v42  ;;  %v6600_v12 = vld [vmem:[%s8327_s12 + $0x10] sm:$0xff] }
 0x4ff   :  { %1579 = vmatpush.msra.mxu0 %v1464_v1  ;;  %1639 = vmatpush.msra.mxu2 %v6442_v0 }
 0x500   :  { %1554 = vmatpush.msra.mxu3 %v1436_v22  ;;  %1532 = vmatpush.msra.mxu1 %v1465_v6 }
 0x501   :  { %5073 = vmatpush.xpose.msk.msrb.mxu0 %vm954_vm7, %v6403_v58  ;;  %1640 = vmatpush.msra.mxu2 %v6454_v26 }
 0x502   :  { %1555 = vmatpush.msra.mxu3 %v1434_v20  ;;  %1533 = vmatpush.msra.mxu1 %v1463_v3 }
 0x503   :  { %1641 = vmatpush.msra.mxu2 %v6470_v28 }
 0x504   :  { %1556 = vmatpush.msra.mxu3 %v1432_v34  ;;  %1657 = vmatpush.msrb.mxu1 %v6403_v58 }
 0x505   :  { %5074 = vmatpush.xpose.msk.msrb.mxu0 %vm954_vm7, %v6415_v38  ;;  %1642 = vmatpush.msra.mxu2 %v6484_v35 }
 0x506   :  { %5056 = vmatpush.xpose.msk.msrb.mxu3 %vm954_vm7, %v6398_v46  ;;  %1658 = vmatpush.msrb.mxu1 %v6415_v38 }
 0x507   :  { %1643 = vmatpush.msra.mxu2 %v6502_v47 }
 0x508   :  { %1659 = vmatpush.msrb.mxu1 %v6447_v24 }
 0x509   :  { %5075 = vmatpush.xpose.msk.msrb.mxu0 %vm954_vm7, %v6447_v24  ;;  %1644 = vmatpush.msra.mxu2 %v6514_v50 }
 0x50a   :  { %5057 = vmatpush.xpose.msk.msrb.mxu3 %vm954_vm7, %v6408_v36  ;;  %1660 = vmatpush.msrb.mxu1 %v6459_v27 }
 0x50b   :  { %1645 = vmatpush.msra.mxu2 %v6530_v53 }
 0x50c   :  { %1661 = vmatpush.msrb.mxu1 %v6475_v29 }
 0x50d   :  { %5076 = vmatpush.xpose.msk.msrb.mxu0 %vm954_vm7, %v6459_v27  ;;  %1646 = vmatpush.msra.mxu2 %v6544_v57 }
 0x50e   :  { %5058 = vmatpush.xpose.msk.msrb.mxu3 %vm954_vm7, %v6442_v0  ;;  %1662 = vmatpush.msrb.mxu1 %v6489_v40 }
 0x50f   :  { %1647 = vmatpush.msra.mxu2 %v6560_v62 }
 0x510   :  { %1663 = vmatpush.msrb.mxu1 %v6507_v49 }
 0x511   :  { %5077 = vmatpush.xpose.msk.msrb.mxu0 %vm954_vm7, %v6475_v29  ;;  %1648 = vmatpush.msra.mxu2 %v6572_v4 }
 0x512   :  { %5059 = vmatpush.xpose.msk.msrb.mxu3 %vm954_vm7, %v6454_v26  ;;  %1664 = vmatpush.msrb.mxu1 %v6519_v52 }
 0x513   :  { %1649 = vmatpush.msra.mxu2 %v6588_v8 }
 0x514   :  { %1665 = vmatpush.msrb.mxu1 %v6535_v54 }
 0x515   :  { %5078 = vmatpush.xpose.msk.msrb.mxu0 %vm954_vm7, %v6489_v40  ;;  %1650 = vmatpush.msra.mxu2 %v6600_v12 }
 0x516   :  { %5060 = vmatpush.xpose.msk.msrb.mxu3 %vm954_vm7, %v6470_v28  ;;  %1666 = vmatpush.msrb.mxu1 %v6549_v60 }
 0x517   :  { %1651 = vmatpush.msra.mxu2 %v6610_v14 }
 0x518   :  { %1667 = vmatpush.msrb.mxu1 %v6565_v63 }
 0x519   :  { %5079 = vmatpush.xpose.msk.msrb.mxu0 %vm954_vm7, %v6507_v49  ;;  %1652 = vmatpush.msra.mxu2 %v6626_v25 }
 0x51a   :  { %5061 = vmatpush.xpose.msk.msrb.mxu3 %vm954_vm7, %v6484_v35  ;;  %1668 = vmatpush.msrb.mxu1 %v6577_v5 }
 0x51c   :  { %1669 = vmatpush.msrb.mxu1 %v6593_v9 }
 0x51d   :  { %5080 = vmatpush.xpose.msk.msrb.mxu0 %vm954_vm7, %v6519_v52 }
 0x51e   :  { %5062 = vmatpush.xpose.msk.msrb.mxu3 %vm954_vm7, %v6502_v47  ;;  %1670 = vmatpush.msrb.mxu1 %v6605_v13 }
 0x520   :  { %1671 = vmatpush.msrb.mxu1 %v6615_v15 }
 0x521   :  { %5081 = vmatpush.xpose.msk.msrb.mxu0 %vm954_vm7, %v6535_v54 }
 0x522   :  { %5063 = vmatpush.xpose.msk.msrb.mxu3 %vm954_vm7, %v6514_v50  ;;  %1672 = vmatpush.msrb.mxu1 %v6631_v31 }
 0x525   :  { %5082 = vmatpush.xpose.msk.msrb.mxu0 %vm954_vm7, %v6549_v60 }
 0x526   :  { %5064 = vmatpush.xpose.msk.msrb.mxu3 %vm954_vm7, %v6530_v53 }
 0x529   :  { %5083 = vmatpush.xpose.msk.msrb.mxu0 %vm954_vm7, %v6565_v63 }
 0x52a   :  { %5065 = vmatpush.xpose.msk.msrb.mxu3 %vm954_vm7, %v6544_v57 }
 0x52d   :  { %5084 = vmatpush.xpose.msk.msrb.mxu0 %vm954_vm7, %v6577_v5 }
 0x52e   :  { %5066 = vmatpush.xpose.msk.msrb.mxu3 %vm954_vm7, %v6560_v62 }
 0x531   :  { %5085 = vmatpush.xpose.msk.msrb.mxu0 %vm954_vm7, %v6593_v9 }
 0x532   :  { %5067 = vmatpush.xpose.msk.msrb.mxu3 %vm954_vm7, %v6572_v4 }
 0x535   :  { %5086 = vmatpush.xpose.msk.msrb.mxu0 %vm954_vm7, %v6605_v13 }
 0x536   :  { %5068 = vmatpush.xpose.msk.msrb.mxu3 %vm954_vm7, %v6588_v8 }
 0x537   :  { %v6431_v10 = vpop.f32.mrf.mxu0  ;;  %v6435_v18 = vpop.f32.mrf.mxu1 }
 0x539   :  { %5087 = vmatpush.xpose.msk.msrb.mxu0 %vm954_vm7, %v6615_v15 }
 0x53a   :  { %5069 = vmatpush.xpose.msk.msrb.mxu3 %vm954_vm7, %v6600_v12 }
 0x53d   :  { %5088 = vmatpush.xpose.msk.msrb.mxu0 %vm954_vm7, %v6631_v31 }
 0x53e   :  { %v6387_v39 = vpop.f32.mrf.mxu2  ;;  %5070 = vmatpush.xpose.msk.msrb.mxu3 %vm954_vm7, %v6610_v14 }
 0x53f   :  { %v6433_v11 = vpop.f32.mrf.mxu0  ;;  %v6477_v30 = vpop.f32.mrf.mxu1 }
 0x542   :  { %5071 = vmatpush.xpose.msk.msrb.mxu3 %vm954_vm7, %v6626_v25 }
 0x546   :  { %v6389_v59 = vpop.f32.mrf.mxu2 }
 0x547   :  { %v1346_v55 = vpop.f32.mrf.mxu1 }
 0x54e   :  { %v1401_v33 = vpop.f32.mrf.mxu2 }
 0x54f   :  { %1511 = vmatmul.f32.vlgmr.msrb.gmra.mxu2 %v1401_v33  ;;  %1557 = vmatmul.f32.vlgmr.msra.gmra.mxu3 %v1401_v33  ;;  %v1349_v22 = vpop.f32.mrf.mxu1 }
 0x550   :  { %1848 = vmatpush.msrb.mxu2 %v6398_v46 }
 0x552   :  { %v6437_v21 = vpop.f32.mrf.mxu0  ;;  %1849 = vmatpush.msrb.mxu2 %v6408_v36 }
 0x553   :  { %v1278_v2 = vadd.f32 %v6437_v21, %v6435_v18 }
 0x554   :  { %1850 = vmatpush.msrb.mxu2 %v6442_v0 }
 0x555   :  { %v1347_v43 = vadd.f32 %v1346_v55, %v1278_v2 }
 0x556   :  { %v1404_v45 = vpop.f32.mrf.mxu2  ;;  %1851 = vmatpush.msrb.mxu2 %v6454_v26 }
 0x557   :  { %1514 = vmatmul.f32.gmra.mxu2 %v1404_v45  ;;  %1560 = vmatmul.f32.gmra.mxu3 %v1404_v45 }
 0x558   :  { %v6391_v48 = vpop.f32.mrf.mxu3  ;;  %1852 = vmatpush.msrb.mxu2 %v6470_v28 }
 0x559   :  { %v1232_v34 = vadd.f32 %v6391_v48, %v6431_v10 }
 0x55a   :  { %v6479_v32 = vpop.f32.mrf.mxu0  ;;  %1853 = vmatpush.msrb.mxu2 %v6484_v35 }
 0x55b   :  { %v1281_v41 = vadd.f32 %v6479_v32, %v6477_v30  ;;  %v1301_v6 = vadd.f32 %v6387_v39, %v1232_v34 }
 0x55c   :  { %1854 = vmatpush.msrb.mxu2 %v6502_v47 }
 0x55d   :  { %v1350_v17 = vadd.f32 %v1349_v22, %v1281_v41 }
 0x55e   :  { %1855 = vmatpush.msrb.mxu2 %v6514_v50 }
 0x560   :  { %v6393_v37 = vpop.f32.mrf.mxu3  ;;  %1856 = vmatpush.msrb.mxu2 %v6530_v53 }
 0x561   :  { %v1235_v42 = vadd.f32 %v6393_v37, %v6433_v11 }
 0x562   :  { %v6539_v56 = vpop.f32.mrf.mxu0  ;;  %1857 = vmatpush.msrb.mxu2 %v6544_v57 }
 0x563   :  { %v1304_v45 = vadd.f32 %v6389_v59, %v1235_v42 }
 0x564   :  { %1858 = vmatpush.msrb.mxu2 %v6560_v62 }
 0x566   :  { %1859 = vmatpush.msrb.mxu2 %v6572_v4 }
 0x568   :  { %v6427_v44 = vpop.f32.mrf.mxu3  ;;  %1860 = vmatpush.msrb.mxu2 %v6588_v8 }
 0x569   :  { %v1324_v39 = vadd.f32 %v6427_v44, %v1301_v6 }
 0x56a   :  { %v1372_v23 = vpop.f32.mrf.mxu0  ;;  %1861 = vmatpush.msrb.mxu2 %v6600_v12 }
 0x56c   :  { %1862 = vmatpush.msrb.mxu2 %v6610_v14 }
 0x56e   :  { %1863 = vmatpush.msrb.mxu2 %v6626_v25 }
 0x570   :  { %v6429_v51 = vpop.f32.mrf.mxu3 }
 0x571   :  { %v1327_v18 = vadd.f32 %v6429_v51, %v1304_v45 }
 0x578   :  { %v1424_v61 = vpop.f32.mrf.mxu3 }
 0x579   :  { %1534 = vmatmul.f32.vlgmr.msra.gmra.mxu1 %v1424_v61  ;;  %1580 = vmatmul.f32.vlgmr.msra.gmra.mxu0 %v1424_v61  ;;  %v1370_v61 = vadd.f32 %v6539_v56, %v1347_v43 }
 0x57a   :  { %1868 = vmatpush.msra.mxu1 %v6403_v58 }
 0x57c   :  { %1869 = vmatpush.msra.mxu1 %v6415_v38 }
 0x57e   :  { %1870 = vmatpush.msra.mxu1 %v6447_v24 }
 0x580   :  { %v1427_v7 = vpop.f32.mrf.mxu3  ;;  %1871 = vmatpush.msra.mxu1 %v6459_v27 }
 0x581   :  { %1537 = vmatmul.f32.gmra.mxu1 %v1427_v7  ;;  %1583 = vmatmul.f32.gmra.mxu0 %v1427_v7  ;;  %v1373_v7 = vadd.f32 %v1372_v23, %v1350_v17 }
 0x582   :  { %1872 = vmatpush.msra.mxu1 %v6475_v29 }
 0x584   :  { %1873 = vmatpush.msra.mxu1 %v6489_v40 }
 0x586   :  { %1874 = vmatpush.msra.mxu1 %v6507_v49 }
 0x588   :  { %1875 = vmatpush.msra.mxu1 %v6519_v52 }
 0x58a   :  { %1876 = vmatpush.msra.mxu1 %v6535_v54 }
 0x58c   :  { %1877 = vmatpush.msra.mxu1 %v6549_v60 }
 0x58e   :  { %1878 = vmatpush.msra.mxu1 %v6565_v63 }
 0x590   :  { %1879 = vmatpush.msra.mxu1 %v6577_v5 }
 0x592   :  { %1880 = vmatpush.msra.mxu1 %v6593_v9 }
 0x594   :  { %1881 = vmatpush.msra.mxu1 %v6605_v13 }
 0x596   :  { %1882 = vmatpush.msra.mxu1 %v6615_v15 }
 0x598   :  { %1883 = vmatpush.msra.mxu1 %v6631_v31 }
 0x5d2   :  { %v1512_v20 = vpop.f32.mrf.mxu2  ;;  %v1558_v19 = vpop.f32.mrf.mxu3 }
 0x5da   :  { %v1515_v3 = vpop.f32.mrf.mxu2  ;;  %v1561_v1 = vpop.f32.mrf.mxu3 }
 0x5f6   :  { %v1535_v33 = vpop.f32.mrf.mxu1  ;;  %v1581_v16 = vpop.f32.mrf.mxu0 }
 0x5f7   :  { %v1536_v48 = vadd.f32 %v1535_v33, %v1512_v20  ;;  %v1582_v37 = vadd.f32 %v1581_v16, %v1558_v19 }
 0x5f9   :  { %v6680_v59 = vadd.f32 %v1536_v48, %v1324_v39  ;;  %v6686_v44 = vadd.f32 %v1582_v37, %v1370_v61  ;;  %v2059_v37 = vld [vmem:[#allocation5 + $0x1f0] sm:$0xff]  ;;  %v2057_v61 = vld [vmem:[#allocation5 + $0x1e0] sm:$0xff] }
 0x5fa   :  { %v2055_v39 = vld [vmem:[#allocation5 + $0x1d0] sm:$0xff] }
 0x5fe   :  { %v1538_v10 = vpop.f32.mrf.mxu1  ;;  %v1584_v11 = vpop.f32.mrf.mxu0 }
 0x5ff   :  { %v1539_v21 = vadd.f32 %v1538_v10, %v1515_v3  ;;  %v1585_v30 = vadd.f32 %v1584_v11, %v1561_v1  ;;  %v2051_v10 = vld [vmem:[#allocation5 + $0x1b0] sm:$0xff] }
 0x601   :  { %v6688_v32 = vadd.f32 %v1539_v21, %v1327_v18  ;;  %v6690_v55 = vadd.f32 %v1585_v30, %v1373_v7  ;;  %v2053_v7 = vld [vmem:[#allocation5 + $0x1c0] sm:$0xff] }
 0x602   :  { %v2049_v30 = vld [vmem:[#allocation5 + $0x1a0] sm:$0xff] }
 0x603   :  { %v1623_v51 = vadd.f32 %v6688_v32, %v6680_v59  ;;  %v1630_v56 = vadd.f32 %v6690_v55, %v6686_v44 }
 0x605   :  { %v1624_v22 = vrot.slane %v1623_v51, 4  ;;  %v1631_v23 = vrot.slane %v1630_v56, 4 }
 0x607   :  { %v1625_v20 = vadd.f32 %v1624_v22, %v1623_v51  ;;  %v1632_v19 = vadd.f32 %v1631_v23, %v1630_v56  ;;  %v2043_v51 = vld [vmem:[#allocation5 + $0x170] sm:$0xff]  ;;  %v2041_v56 = vld [vmem:[#allocation5 + $0x160] sm:$0xff] }
 0x608   :  { %v2039_v22 = vld [vmem:[#allocation5 + $0x150] sm:$0xff] }
 0x609   :  { %v1626_v33 = vrot.slane %v1625_v20, 2  ;;  %v1633_v16 = vrot.slane %v1632_v19, 2 }
 0x60b   :  { %v1627_v2 = vadd.f32 %v1626_v33, %v1625_v20  ;;  %v1634_v34 = vadd.f32 %v1633_v16, %v1632_v19  ;;  %v2037_v20 = vld [vmem:[#allocation5 + $0x140] sm:$0xff] }
 0x60d   :  { %v1628_v41 = vrot.slane %v1627_v2, 1  ;;  %v1635_v42 = vrot.slane %v1634_v34, 1 }
 0x60f   :  { %v1629_v43 = vadd.f32 %v1628_v41, %v1627_v2  ;;  %v1636_v6 = vadd.f32 %v1635_v42, %v1634_v34  ;;  %v2035_v42 = vld [vmem:[#allocation5 + $0x130] sm:$0xff] }
 0x611   :  { %1653 = vmatmul.f32.vlgmr.msra.gmra.mxu2 %v1629_v43  ;;  %1673 = vmatmul.f32.vlgmr.msrb.gmra.mxu1 %v1636_v6  ;;  %v2033_v43 = vld [vmem:[#allocation5 + $0x120] sm:$0xff]  ;;  %v2031_v6 = vld [vmem:[#allocation5 + $0x110] sm:$0xff] }
 0x612   :  { %5090 = vmatpush.xpose.msk.msra.mxu2 %vm954_vm7, %v6398_v46  ;;  %5107 = vmatpush.xpose.msk.msrb.mxu1 %vm954_vm7, %v6403_v58  ;;  %v5396_v46 = vmov 128.0  }
 0x613   :  { %5243 = vrcp.f32 %v5396_v46  ;;  %v2029_v46 = vld [vmem:[#allocation5 + $0x100] sm:$0xff] }
 0x616   :  { %5091 = vmatpush.xpose.msk.msra.mxu2 %vm954_vm7, %v6408_v36  ;;  %5108 = vmatpush.xpose.msk.msrb.mxu1 %vm954_vm7, %v6415_v38 }
 0x619   :  { %v5244_v58 = vpop.eup %5243 }
 0x61a   :  { %5092 = vmatpush.xpose.msk.msra.mxu2 %vm954_vm7, %v6442_v0  ;;  %5109 = vmatpush.xpose.msk.msrb.mxu1 %vm954_vm7, %v6447_v24  ;;  %v1678_v36 = vmul.f32 128.0, %v5244_v58  ;;  %vm1682_vm8 = vweird.f32 %v5244_v58 }
 0x61c   :  { %v1679_v38 = vsub.f32 1.0, %v1678_v36 }
 0x61e   :  { %5093 = vmatpush.xpose.msk.msra.mxu2 %vm954_vm7, %v6454_v26  ;;  %5110 = vmatpush.xpose.msk.msrb.mxu1 %vm954_vm7, %v6459_v27  ;;  %v1680_v0 = vmul.f32 %v5244_v58, %v1679_v38 }
 0x620   :  { %v1681_v24 = vadd.f32 %v5244_v58, %v1680_v0 }
 0x622   :  { %5094 = vmatpush.xpose.msk.msra.mxu2 %vm954_vm7, %v6470_v28  ;;  %5111 = vmatpush.xpose.msk.msrb.mxu1 %vm954_vm7, %v6475_v29  ;;  %v1683_v28 = vsel %vm1682_vm8, %v5244_v58, %v1681_v24 }
 0x626   :  { %5095 = vmatpush.xpose.msk.msra.mxu2 %vm954_vm7, %v6484_v35  ;;  %5112 = vmatpush.xpose.msk.msrb.mxu1 %vm954_vm7, %v6489_v40 }
 0x62a   :  { %5096 = vmatpush.xpose.msk.msra.mxu2 %vm954_vm7, %v6502_v47  ;;  %5113 = vmatpush.xpose.msk.msrb.mxu1 %vm954_vm7, %v6507_v49 }
 0x62e   :  { %5097 = vmatpush.xpose.msk.msra.mxu2 %vm954_vm7, %v6514_v50  ;;  %5114 = vmatpush.xpose.msk.msrb.mxu1 %vm954_vm7, %v6519_v52 }
 0x632   :  { %5098 = vmatpush.xpose.msk.msra.mxu2 %vm954_vm7, %v6530_v53  ;;  %5115 = vmatpush.xpose.msk.msrb.mxu1 %vm954_vm7, %v6535_v54 }
 0x636   :  { %5099 = vmatpush.xpose.msk.msra.mxu2 %vm954_vm7, %v6544_v57  ;;  %5116 = vmatpush.xpose.msk.msrb.mxu1 %vm954_vm7, %v6549_v60 }
 0x63a   :  { %5100 = vmatpush.xpose.msk.msra.mxu2 %vm954_vm7, %v6560_v62  ;;  %5117 = vmatpush.xpose.msk.msrb.mxu1 %vm954_vm7, %v6565_v63 }
 0x63e   :  { %5101 = vmatpush.xpose.msk.msra.mxu2 %vm954_vm7, %v6572_v4  ;;  %5118 = vmatpush.xpose.msk.msrb.mxu1 %vm954_vm7, %v6577_v5 }
 0x642   :  { %5102 = vmatpush.xpose.msk.msra.mxu2 %vm954_vm7, %v6588_v8  ;;  %5119 = vmatpush.xpose.msk.msrb.mxu1 %vm954_vm7, %v6593_v9 }
 0x646   :  { %5103 = vmatpush.xpose.msk.msra.mxu2 %vm954_vm7, %v6600_v12  ;;  %5120 = vmatpush.xpose.msk.msrb.mxu1 %vm954_vm7, %v6605_v13 }
 0x64a   :  { %5104 = vmatpush.xpose.msk.msra.mxu2 %vm954_vm7, %v6610_v14  ;;  %5121 = vmatpush.xpose.msk.msrb.mxu1 %vm954_vm7, %v6615_v15 }
 0x64e   :  { %5105 = vmatpush.xpose.msk.msra.mxu2 %vm954_vm7, %v6626_v25  ;;  %5122 = vmatpush.xpose.msk.msrb.mxu1 %vm954_vm7, %v6631_v31 }
 0x68e   :  { %v1674_v26 = vpop.f32.mrf.mxu1 }
 0x694   :  { %v1654_v27 = vpop.f32.mrf.mxu2 }
 0x695   :  { %v1675_v29 = vadd.f32 %v1674_v26, %v1654_v27 }
 0x697   :  { %v1684_v35 = vmul.f32 %v1683_v28, %v1675_v29  ;;  %v1953_v29 = vld [vmem:[%s8383_s0] sm:$0xff] }
 0x699   :  { %5072 = vmatmul.msk.f32.vlgmr.msrb.gmra.mxu3 %vm954_vm7, %v1684_v35  ;;  %5089 = vmatmul.msk.f32.vlgmr.msrb.gmra.mxu0 %vm954_vm7, %v1684_v35 }
 0x716   :  { %v1821_v40 = vpop.f32.mrf.mxu0 }
 0x717   :  { %v1825_v47 = vperm.slane %v1821_v40, 0 }
 0x719   :  { %v6793_v49 = vsub.f32 %v6686_v44, %v1825_v47  ;;  %v6796_v50 = vsub.f32 %v6690_v55, %v1825_v47  ;;  %v2047_v44 = vld [vmem:[#allocation5 + $0x190] sm:$0xff]  ;;  %v2045_v55 = vld [vmem:[#allocation5 + $0x180] sm:$0xff] }
 0x71b   :  { %v1831_v52 = vmul.f32 %v6793_v49, %v6793_v49  ;;  %v1833_v53 = vmul.f32 %v6796_v50, %v6796_v50 }
 0x71c   :  { %v1801_v54 = vpop.f32.mrf.mxu3 }
 0x71d   :  { %v1841_v57 = vadd.f32 %v1833_v53, %v1831_v52  ;;  %v1824_v60 = vperm.slane %v1801_v54, 0  ;;  %v2167_v52 = vld [vmem:[#allocation5 + $0x3e0] sm:$0xff]  ;;  %v5126_v53 = vld [vmem:[%s8383_s0 + $0x8] sm:$0xff]  ;;  %v2165_v54 = vld [vmem:[#allocation5 + $0x3d0] sm:$0xff] }
 0x71f   :  { %v1842_v62 = vrot.slane %v1841_v57, 4  ;;  %v6803_v63 = vsub.f32 %v6680_v59, %v1824_v60  ;;  %v6806_v4 = vsub.f32 %v6688_v32, %v1824_v60  ;;  %v2163_v60 = vld [vmem:[#allocation5 + $0x3c0] sm:$0xff] }
 0x721   :  { %v1843_v5 = vadd.f32 %v1842_v62, %v1841_v57  ;;  %v1830_v8 = vmul.f32 %v6803_v63, %v6803_v63  ;;  %v1832_v9 = vmul.f32 %v6806_v4, %v6806_v4  ;;  %v2137_v57 = vld [vmem:[#allocation5 + $0x2f0] sm:$0xff]  ;;  %v2135_v62 = vld [vmem:[#allocation5 + $0x2e0] sm:$0xff] }
 0x723   :  { %v1834_v12 = vadd.f32 %v1832_v9, %v1830_v8  ;;  %v1844_v13 = vrot.slane %v1843_v5, 2  ;;  %v2157_v8 = vld [vmem:[#allocation5 + $0x390] sm:$0xff]  ;;  %v2131_v9 = vld [vmem:[#allocation5 + $0x2c0] sm:$0xff] }
 0x725   :  { %v1835_v14 = vrot.slane %v1834_v12, 4  ;;  %v1845_v15 = vadd.f32 %v1844_v13, %v1843_v5  ;;  %v2133_v5 = vld [vmem:[#allocation5 + $0x2d0] sm:$0xff] }
 0x726   :  { %v2129_v13 = vld [vmem:[#allocation5 + $0x2b0] sm:$0xff] }
 0x727   :  { %v1836_v25 = vadd.f32 %v1835_v14, %v1834_v12  ;;  %v1846_v31 = vrot.slane %v1845_v15, 1  ;;  %v2155_v12 = vld [vmem:[#allocation5 + $0x380] sm:$0xff]  ;;  %v2153_v14 = vld [vmem:[#allocation5 + $0x370] sm:$0xff] }
 0x729   :  { %v1847_v17 = vadd.f32 %v1846_v31, %v1845_v15  ;;  %v1837_v48 = vrot.slane %v1836_v25, 2  ;;  %v2127_v15 = vld [vmem:[#allocation5 + $0x2a0] sm:$0xff] }
 0x72a   :  { %v2151_v31 = vld [vmem:[#allocation5 + $0x360] sm:$0xff] }
 0x72b   :  { %1884 = vmatmul.f32.vlgmr.msra.gmra.mxu1 %v1847_v17  ;;  %v1838_v3 = vadd.f32 %v1837_v48, %v1836_v25  ;;  %v2027_v25 = vld [vmem:[#allocation5 + $0xf0] sm:$0xff]  ;;  %v2025_v48 = vld [vmem:[#allocation5 + $0xe0] sm:$0xff] }
 0x72c   :  { %2271 = vmatpush.msra.mxu1 %v2059_v37  ;;  %v2125_v17 = vld [vmem:[#allocation5 + $0x290] sm:$0xff]  ;;  %v2147_v37 = vld [vmem:[#allocation5 + $0x340] sm:$0xff] }
 0x72d   :  { %v1839_v1 = vrot.slane %v1838_v3, 1 }
 0x72e   :  { %2272 = vmatpush.msra.mxu1 %v2057_v61  ;;  %v2121_v61 = vld [vmem:[#allocation5 + $0x270] sm:$0xff] }
 0x72f   :  { %v1840_v45 = vadd.f32 %v1839_v1, %v1838_v3  ;;  %v2149_v3 = vld [vmem:[#allocation5 + $0x350] sm:$0xff]  ;;  %v2123_v1 = vld [vmem:[#allocation5 + $0x280] sm:$0xff] }
 0x730   :  { %2273 = vmatpush.msra.mxu1 %v2055_v39  ;;  %v2021_v39 = vld [vmem:[#allocation5 + $0xc0] sm:$0xff] }
 0x731   :  { %1864 = vmatmul.f32.vlgmr.msrb.gmra.mxu2 %v1840_v45  ;;  %v2023_v45 = vld [vmem:[#allocation5 + $0xd0] sm:$0xff] }
 0x732   :  { %2274 = vmatpush.msra.mxu1 %v2053_v7  ;;  %2251 = vmatpush.msrb.mxu2 %v2027_v25  ;;  %v2145_v7 = vld [vmem:[#allocation5 + $0x330] sm:$0xff]  ;;  %v2108_v25 = vld [vmem:[#allocation5 + $0x208] sm:$0xff] }
 0x734   :  { %2275 = vmatpush.msra.mxu1 %v2051_v10  ;;  %2252 = vmatpush.msrb.mxu2 %v2025_v48  ;;  %v2119_v10 = vld [vmem:[#allocation5 + $0x260] sm:$0xff] }
 0x736   :  { %2276 = vmatpush.msra.mxu1 %v2049_v30  ;;  %2253 = vmatpush.msrb.mxu2 %v2023_v45  ;;  %v2115_v30 = vld [vmem:[#allocation5 + $0x240] sm:$0xff]  ;;  %v2058_v45 = vld [vmem:[#allocation5 + $0x1e8] sm:$0xff] }
 0x738   :  { %2277 = vmatpush.msra.mxu1 %v2047_v44  ;;  %2254 = vmatpush.msrb.mxu2 %v2021_v39  ;;  %v2113_v44 = vld [vmem:[#allocation5 + $0x230] sm:$0xff]  ;;  %v2054_v39 = vld [vmem:[#allocation5 + $0x1c8] sm:$0xff] }
 0x73a   :  { %2278 = vmatpush.msra.mxu1 %v2045_v55  ;;  %v2111_v55 = vld [vmem:[#allocation5 + $0x220] sm:$0xff] }
 0x73c   :  { %2279 = vmatpush.msra.mxu1 %v2043_v51  ;;  %v2168_v51 = vld [vmem:[#allocation5 + $0x3e8] sm:$0xff] }
 0x73e   :  { %2280 = vmatpush.msra.mxu1 %v2041_v56  ;;  %v2109_v56 = vld [vmem:[#allocation5 + $0x210] sm:$0xff] }
 0x740   :  { %2281 = vmatpush.msra.mxu1 %v2039_v22  ;;  %v2166_v22 = vld [vmem:[#allocation5 + $0x3d8] sm:$0xff] }
 0x742   :  { %2282 = vmatpush.msra.mxu1 %v2037_v20  ;;  %v2164_v20 = vld [vmem:[#allocation5 + $0x3c8] sm:$0xff] }
 0x744   :  { %2283 = vmatpush.msra.mxu1 %v2035_v42  ;;  %v2132_v42 = vld [vmem:[#allocation5 + $0x2c8] sm:$0xff] }
 0x746   :  { %2284 = vmatpush.msra.mxu1 %v2033_v43  ;;  %v2156_v43 = vld [vmem:[#allocation5 + $0x388] sm:$0xff] }
 0x748   :  { %2285 = vmatpush.msra.mxu1 %v2031_v6  ;;  %v2130_v6 = vld [vmem:[#allocation5 + $0x2b8] sm:$0xff] }
 0x74a   :  { %2286 = vmatpush.msra.mxu1 %v2029_v46  ;;  %v2154_v46 = vld [vmem:[#allocation5 + $0x378] sm:$0xff] }
 0x7a8   :  { %v1885_v11 = vpop.f32.mrf.mxu1 }
 0x7b4   :  { %v1865_v18 = vpop.f32.mrf.mxu2 }
 0x7b5   :  { %v1886_v21 = vadd.f32 %v1885_v11, %v1865_v18  ;;  %v2143_v11 = vld [vmem:[#allocation5 + $0x320] sm:$0xff]  ;;  %v2117_v18 = vld [vmem:[#allocation5 + $0x250] sm:$0xff] }
 0x7b7   :  { %v1888_v59 = vmul.f32 %v1886_v21, %v1683_v28  ;;  %v2141_v21 = vld [vmem:[#allocation5 + $0x310] sm:$0xff] }
 0x7b9   :  { %v1889_v32 = vadd.f32 1e-05, %v1888_v59  ;;  %v2139_v59 = vld [vmem:[#allocation5 + $0x300] sm:$0xff] }
 0x7bb   :  { %5245 = vrsqrt.f32 %v1889_v32  ;;  %vm1896_vm10 = vweird.f32 %v1889_v32 }
 0x7c1   :  { %v5246_v23 = vpop.eup %5245 }
 0x7c2   :  { %v1891_v19 = vmul.f32 %v5246_v23, %v1889_v32  ;;  %vm1897_vm9 = vweird.f32 %v5246_v23  ;;  %v2170_v32 = vld [vmem:[#allocation5 + $0x3f8] sm:$0xff] }
 0x7c3   :  { %vm1898_vm11 = vmor %vm1896_vm10, %vm1897_vm9 }
 0x7c4   :  { %v1892_v33 = vmul.f32 %v5246_v23, %v1891_v19  ;;  %v2138_v19 = vld [vmem:[#allocation5 + $0x2f8] sm:$0xff] }
 0x7c6   :  { %v1893_v16 = vmul.f32 0.5, %v1892_v33  ;;  %v2162_v33 = vld [vmem:[#allocation5 + $0x3b8] sm:$0xff] }
 0x7c8   :  { %v1894_v2 = vsub.f32 1.5, %v1893_v16  ;;  %v2136_v16 = vld [vmem:[#allocation5 + $0x2e8] sm:$0xff] }
 0x7ca   :  { %v1895_v34 = vmul.f32 %v5246_v23, %v1894_v2  ;;  %v2160_v2 = vld [vmem:[#allocation5 + $0x3a8] sm:$0xff] }
 0x7cc   :  { %v1899_v41 = vsel %vm1898_vm11, %v5246_v23, %v1895_v34  ;;  %v2107_v23 = vld [vmem:[#allocation5 + $0x200] sm:$0xff]  ;;  %v2134_v34 = vld [vmem:[#allocation5 + $0x2d8] sm:$0xff] }
 0x7cd   :  { %5106 = vmatmul.msk.f32.vlgmr.msra.gmra.mxu2 %vm954_vm7, %v1899_v41  ;;  %5123 = vmatmul.msk.f32.vlgmr.msrb.gmra.mxu1 %vm954_vm7, %v1899_v41  ;;  %v2158_v41 = vld [vmem:[#allocation5 + $0x398] sm:$0xff]  ;;  %vm4338_vm7 = vcmask 1041408  }
 0x84a   :  { %v1940_v58 = vpop.f32.mrf.mxu1 }
 0x84b   :  { %v1944_v36 = vperm.slane %v1940_v58, 0  ;;  %v2152_v58 = vld [vmem:[#allocation5 + $0x368] sm:$0xff] }
 0x84d   :  { %v1946_v38 = vmul.f32 %v1944_v36, %v6793_v49  ;;  %v1948_v0 = vmul.f32 %v1944_v36, %v6796_v50  ;;  %v2169_v49 = vld [vmem:[#allocation5 + $0x3f0] sm:$0xff]  ;;  %v2150_v36 = vld [vmem:[#allocation5 + $0x358] sm:$0xff] }
 0x84f   :  { %v1952_v24 = vmax.f32 %v1948_v0, 0.0  ;;  %v1950_v27 = vmax.f32 %v1946_v38, 0.0  ;;  %v2128_v38 = vld [vmem:[#allocation5 + $0x2a8] sm:$0xff] }
 0x850   :  { %v1920_v26 = vpop.f32.mrf.mxu2  ;;  %v2148_v0 = vld [vmem:[#allocation5 + $0x348] sm:$0xff] }
 0x851   :  { %v1943_v28 = vperm.slane %v1920_v26, 0  ;;  %1991 = vmatpush.msra.mxu0 %v1952_v24  ;;  %2370 = vmatpush.msrb.mxu1 %v1952_v24  ;;  %v2126_v26 = vld [vmem:[#allocation5 + $0x298] sm:$0xff] }
 0x853   :  { %v1945_v35 = vmul.f32 %v1943_v28, %v6803_v63  ;;  %v1947_v40 = vmul.f32 %v1943_v28, %v6806_v4  ;;  %1992 = vmatpush.msra.mxu0 %v1950_v27  ;;  %2371 = vmatpush.msrb.mxu1 %v1950_v27  ;;  %v2161_v63 = vld [vmem:[#allocation5 + $0x3b0] sm:$0xff]  ;;  %v2159_v4 = vld [vmem:[#allocation5 + $0x3a0] sm:$0xff] }
 0x854   :  { %5125 = vmatmul.msk.f32.vlgmr.msra.gmra.mxu0 %vm663_vm2, %v1953_v29  ;;  %v2017_v28 = vld [vmem:[#allocation5 + $0xa0] sm:$0xff] }
 0x855   :  { %v6822_v47 = vmax.f32 %v1947_v40, 0.0  ;;  %2100 = vmatpush.msrb.mxu0 %v1952_v24  ;;  %v6824_v50 = vmax.f32 %v1945_v35, 0.0  ;;  %v2019_v24 = vld [vmem:[#allocation5 + $0xb0] sm:$0xff]  ;;  %v2144_v35 = vld [vmem:[#allocation5 + $0x328] sm:$0xff] }
 0x856   :  { %2255 = vmatpush.msrb.mxu2 %v2019_v24  ;;  %v2015_v40 = vld [vmem:[#allocation5 + $0x90] sm:$0xff]  ;;  %v1998_v24 = vld [vmem:[#allocation5 + $0x8] sm:$0xff] }
 0x857   :  { %2101 = vmatpush.msrb.mxu0 %v1950_v27  ;;  %1971 = vmatpush.msra.mxu3 %v6822_v47  ;;  %v2146_v27 = vld [vmem:[#allocation5 + $0x338] sm:$0xff] }
 0x858   :  { %2256 = vmatpush.msrb.mxu2 %v2017_v28  ;;  %v2405_v28 = vld [vmem:[#allocation5 + $0x4e0] sm:$0xff] }
 0x859   :  { %2191 = vmatpush.msra.mxu0 %v2169_v49  ;;  %1972 = vmatpush.msra.mxu3 %v6824_v50  ;;  %v2122_v49 = vld [vmem:[#allocation5 + $0x278] sm:$0xff] }
 0x85a   :  { %5124 = vmatmul.msk.f32.vlgmr.msra.gmra.mxu3 %vm663_vm2, %v1953_v29  ;;  %v2124_v29 = vld [vmem:[#allocation5 + $0x288] sm:$0xff]  ;;  %2257 = vmatpush.msrb.mxu2 %v2015_v40  ;;  %v2440_v40 = vld [vmem:[#allocation5 + $0x5f8] sm:$0xff] }
 0x85b   :  { %2192 = vmatpush.msra.mxu0 %v2167_v52  ;;  %2080 = vmatpush.msrb.mxu3 %v6822_v47  ;;  %v2142_v52 = vld [vmem:[#allocation5 + $0x318] sm:$0xff] }
 0x85c   :  { %5128 = vmatmul.msk.f32.vlgmr.msrb.gmra.mxu0 %vm663_vm2, %v5126_v53 }
 0x85d   :  { %2081 = vmatpush.msrb.mxu3 %v6824_v50  ;;  %2193 = vmatpush.msra.mxu0 %v2165_v54  ;;  %v2120_v54 = vld [vmem:[#allocation5 + $0x268] sm:$0xff] }
 0x85f   :  { %2171 = vmatpush.msra.mxu3 %v2137_v57  ;;  %2194 = vmatpush.msra.mxu0 %v2163_v60  ;;  %v2140_v57 = vld [vmem:[#allocation5 + $0x308] sm:$0xff]  ;;  %v2011_v60 = vld [vmem:[#allocation5 + $0x70] sm:$0xff] }
 0x861   :  { %2172 = vmatpush.msra.mxu3 %v2135_v62  ;;  %2195 = vmatpush.msra.mxu0 %v2161_v63  ;;  %v2118_v62 = vld [vmem:[#allocation5 + $0x258] sm:$0xff]  ;;  %v2009_v63 = vld [vmem:[#allocation5 + $0x60] sm:$0xff] }
 0x862   :  { %5127 = vmatmul.msk.f32.vlgmr.msrb.gmra.mxu3 %vm663_vm2, %v5126_v53  ;;  %v2013_v53 = vld [vmem:[#allocation5 + $0x80] sm:$0xff] }
 0x863   :  { %2196 = vmatpush.msra.mxu0 %v2159_v4  ;;  %2173 = vmatpush.msra.mxu3 %v2133_v5  ;;  %v2116_v4 = vld [vmem:[#allocation5 + $0x248] sm:$0xff]  ;;  %v2007_v5 = vld [vmem:[#allocation5 + $0x50] sm:$0xff] }
 0x864   :  { %2258 = vmatpush.msrb.mxu2 %v2013_v53  ;;  %v2402_v53 = vld [vmem:[#allocation5 + $0x4c8] sm:$0xff] }
 0x865   :  { %2197 = vmatpush.msra.mxu0 %v2157_v8  ;;  %2174 = vmatpush.msra.mxu3 %v2131_v9  ;;  %v2114_v8 = vld [vmem:[#allocation5 + $0x238] sm:$0xff]  ;;  %v2005_v9 = vld [vmem:[#allocation5 + $0x40] sm:$0xff] }
 0x866   :  { %2259 = vmatpush.msrb.mxu2 %v2011_v60  ;;  %v2400_v60 = vld [vmem:[#allocation5 + $0x4b8] sm:$0xff] }
 0x867   :  { %2198 = vmatpush.msra.mxu0 %v2155_v12  ;;  %2175 = vmatpush.msra.mxu3 %v2129_v13  ;;  %v2112_v12 = vld [vmem:[#allocation5 + $0x228] sm:$0xff]  ;;  %v2003_v13 = vld [vmem:[#allocation5 + $0x30] sm:$0xff] }
 0x868   :  { %2260 = vmatpush.msrb.mxu2 %v2009_v63  ;;  %v2435_v63 = vld [vmem:[#allocation5 + $0x5d0] sm:$0xff] }
 0x869   :  { %2199 = vmatpush.msra.mxu0 %v2153_v14  ;;  %2176 = vmatpush.msra.mxu3 %v2127_v15  ;;  %v2110_v14 = vld [vmem:[#allocation5 + $0x218] sm:$0xff]  ;;  %v2001_v15 = vld [vmem:[#allocation5 + $0x20] sm:$0xff] }
 0x86a   :  { %2261 = vmatpush.msrb.mxu2 %v2007_v5  ;;  %v2436_v5 = vld [vmem:[#allocation5 + $0x5d8] sm:$0xff] }
 0x86b   :  { %2200 = vmatpush.msra.mxu0 %v2151_v31  ;;  %2177 = vmatpush.msra.mxu3 %v2125_v17  ;;  %v1999_v31 = vld [vmem:[#allocation5 + $0x10] sm:$0xff]  ;;  %v1997_v17 = vld [vmem:[#allocation5] sm:$0xff] }
 0x86c   :  { %2262 = vmatpush.msrb.mxu2 %v2005_v9  ;;  %v2433_v9 = vld [vmem:[#allocation5 + $0x5c0] sm:$0xff] }
 0x86d   :  { %2201 = vmatpush.msra.mxu0 %v2149_v3  ;;  %2178 = vmatpush.msra.mxu3 %v2123_v1  ;;  %v2060_v3 = vld [vmem:[#allocation5 + $0x1f8] sm:$0xff] }
 0x86e   :  { %2263 = vmatpush.msrb.mxu2 %v2003_v13  ;;  %v2434_v13 = vld [vmem:[#allocation5 + $0x5c8] sm:$0xff] }
 0x86f   :  { %2202 = vmatpush.msra.mxu0 %v2147_v37  ;;  %2179 = vmatpush.msra.mxu3 %v2121_v61  ;;  %v2056_v37 = vld [vmem:[#allocation5 + $0x1d8] sm:$0xff] }
 0x870   :  { %2264 = vmatpush.msrb.mxu2 %v2001_v15  ;;  %v2431_v15 = vld [vmem:[#allocation5 + $0x5b0] sm:$0xff] }
 0x871   :  { %2203 = vmatpush.msra.mxu0 %v2145_v7  ;;  %2180 = vmatpush.msra.mxu3 %v2119_v10  ;;  %v2052_v7 = vld [vmem:[#allocation5 + $0x1b8] sm:$0xff]  ;;  %v5129_v10 = vld [vmem:[%s8383_s0 + $0x10] sm:$0xff] }
 0x872   :  { %2265 = vmatpush.msrb.mxu2 %v1999_v31  ;;  %v2432_v31 = vld [vmem:[#allocation5 + $0x5b8] sm:$0xff] }
 0x873   :  { %2204 = vmatpush.msra.mxu0 %v2143_v11  ;;  %2181 = vmatpush.msra.mxu3 %v2117_v18  ;;  %v2050_v11 = vld [vmem:[#allocation5 + $0x1a8] sm:$0xff]  ;;  %v2028_v18 = vld [vmem:[#allocation5 + $0xf8] sm:$0xff] }
 0x874   :  { %2266 = vmatpush.msrb.mxu2 %v1997_v17  ;;  %v2391_v17 = vld [vmem:[#allocation5 + $0x470] sm:$0xff] }
 0x875   :  { %2205 = vmatpush.msra.mxu0 %v2141_v21  ;;  %2182 = vmatpush.msra.mxu3 %v2115_v30  ;;  %v2048_v21 = vld [vmem:[#allocation5 + $0x198] sm:$0xff] }
 0x877   :  { %2206 = vmatpush.msra.mxu0 %v2139_v59  ;;  %2183 = vmatpush.msra.mxu3 %v2113_v44  ;;  %v2026_v59 = vld [vmem:[#allocation5 + $0xe8] sm:$0xff] }
 0x878   :  { %v2046_v44 = vld [vmem:[#allocation5 + $0x188] sm:$0xff] }
 0x879   :  { %2231 = vmatpush.msrb.mxu0 %v2170_v32  ;;  %2184 = vmatpush.msra.mxu3 %v2111_v55  ;;  %v2024_v32 = vld [vmem:[#allocation5 + $0xd8] sm:$0xff] }
 0x87a   :  { %v2044_v55 = vld [vmem:[#allocation5 + $0x178] sm:$0xff] }
 0x87b   :  { %2232 = vmatpush.msrb.mxu0 %v2168_v51  ;;  %2185 = vmatpush.msra.mxu3 %v2109_v56  ;;  %v2022_v51 = vld [vmem:[#allocation5 + $0xc8] sm:$0xff] }
 0x87c   :  { %v2042_v56 = vld [vmem:[#allocation5 + $0x168] sm:$0xff] }
 0x87d   :  { %2233 = vmatpush.msrb.mxu0 %v2166_v22  ;;  %2186 = vmatpush.msra.mxu3 %v2107_v23  ;;  %v2020_v22 = vld [vmem:[#allocation5 + $0xb8] sm:$0xff] }
 0x87e   :  { %v2040_v23 = vld [vmem:[#allocation5 + $0x158] sm:$0xff] }
 0x87f   :  { %2234 = vmatpush.msrb.mxu0 %v2164_v20  ;;  %2211 = vmatpush.msrb.mxu3 %v2138_v19  ;;  %v2018_v20 = vld [vmem:[#allocation5 + $0xa8] sm:$0xff] }
 0x880   :  { %v2038_v19 = vld [vmem:[#allocation5 + $0x148] sm:$0xff] }
 0x881   :  { %2235 = vmatpush.msrb.mxu0 %v2162_v33  ;;  %2212 = vmatpush.msrb.mxu3 %v2136_v16  ;;  %v2016_v33 = vld [vmem:[#allocation5 + $0x98] sm:$0xff] }
 0x882   :  { %v2036_v16 = vld [vmem:[#allocation5 + $0x138] sm:$0xff] }
 0x883   :  { %2236 = vmatpush.msrb.mxu0 %v2160_v2  ;;  %2213 = vmatpush.msrb.mxu3 %v2134_v34  ;;  %v2014_v2 = vld [vmem:[#allocation5 + $0x88] sm:$0xff] }
 0x884   :  { %v2034_v34 = vld [vmem:[#allocation5 + $0x128] sm:$0xff] }
 0x885   :  { %2237 = vmatpush.msrb.mxu0 %v2158_v41  ;;  %2214 = vmatpush.msrb.mxu3 %v2132_v42  ;;  %v2012_v41 = vld [vmem:[#allocation5 + $0x78] sm:$0xff] }
 0x886   :  { %v2032_v42 = vld [vmem:[#allocation5 + $0x118] sm:$0xff] }
 0x887   :  { %2238 = vmatpush.msrb.mxu0 %v2156_v43  ;;  %2215 = vmatpush.msrb.mxu3 %v2130_v6  ;;  %v2010_v43 = vld [vmem:[#allocation5 + $0x68] sm:$0xff] }
 0x888   :  { %v2030_v6 = vld [vmem:[#allocation5 + $0x108] sm:$0xff] }
 0x889   :  { %2239 = vmatpush.msrb.mxu0 %v2154_v46  ;;  %2216 = vmatpush.msrb.mxu3 %v2128_v38  ;;  %v2008_v46 = vld [vmem:[#allocation5 + $0x58] sm:$0xff]  ;;  %v2002_v38 = vld [vmem:[#allocation5 + $0x28] sm:$0xff] }
 0x88b   :  { %2240 = vmatpush.msrb.mxu0 %v2152_v58  ;;  %2217 = vmatpush.msrb.mxu3 %v2126_v26  ;;  %v2006_v58 = vld [vmem:[#allocation5 + $0x48] sm:$0xff]  ;;  %v2407_v26 = vld [vmem:[#allocation5 + $0x4f0] sm:$0xff] }
 0x88c   :  { %2441 = vmatpush.msra.mxu2 %v2407_v26 }
 0x88d   :  { %2241 = vmatpush.msrb.mxu0 %v2150_v36  ;;  %2218 = vmatpush.msrb.mxu3 %v2124_v29  ;;  %v2004_v36 = vld [vmem:[#allocation5 + $0x38] sm:$0xff]  ;;  %v2403_v29 = vld [vmem:[#allocation5 + $0x4d0] sm:$0xff] }
 0x88e   :  { %2442 = vmatpush.msra.mxu2 %v2405_v28 }
 0x88f   :  { %2242 = vmatpush.msrb.mxu0 %v2148_v0  ;;  %2219 = vmatpush.msrb.mxu3 %v2122_v49  ;;  %v2000_v0 = vld [vmem:[#allocation5 + $0x18] sm:$0xff]  ;;  %v2437_v49 = vld [vmem:[#allocation5 + $0x5e0] sm:$0xff] }
 0x890   :  { %2443 = vmatpush.msra.mxu2 %v2403_v29 }
 0x891   :  { %2243 = vmatpush.msrb.mxu0 %v2146_v27  ;;  %2220 = vmatpush.msrb.mxu3 %v2120_v54  ;;  %v2408_v27 = vld [vmem:[#allocation5 + $0x4f8] sm:$0xff]  ;;  %v2438_v54 = vld [vmem:[#allocation5 + $0x5e8] sm:$0xff] }
 0x893   :  { %2244 = vmatpush.msrb.mxu0 %v2144_v35  ;;  %2221 = vmatpush.msrb.mxu3 %v2118_v62  ;;  %v2439_v35 = vld [vmem:[#allocation5 + $0x5f0] sm:$0xff]  ;;  %v2397_v62 = vld [vmem:[#allocation5 + $0x4a0] sm:$0xff] }
 0x895   :  { %2245 = vmatpush.msrb.mxu0 %v2142_v52  ;;  %2222 = vmatpush.msrb.mxu3 %v2116_v4  ;;  %v2401_v52 = vld [vmem:[#allocation5 + $0x4c0] sm:$0xff]  ;;  %v2398_v4 = vld [vmem:[#allocation5 + $0x4a8] sm:$0xff] }
 0x896   :  { %2444 = vmatpush.msra.mxu2 %v2401_v52  ;;  %v6864_v52 = vld [vmem:[%s8328_s13 + $0x70] sm:$0xff] }
 0x897   :  { %2246 = vmatpush.msrb.mxu0 %v2140_v57  ;;  %2223 = vmatpush.msrb.mxu3 %v2114_v8  ;;  %v2399_v57 = vld [vmem:[#allocation5 + $0x4b0] sm:$0xff] }
 0x898   :  { %2445 = vmatpush.msra.mxu2 %v2399_v57  ;;  %v2395_v8 = vld [vmem:[#allocation5 + $0x490] sm:$0xff]  ;;  %v6878_v57 = vld [vmem:[%s8328_s13 + $0x68] sm:$0xff] }
 0x899   :  { %2224 = vmatpush.msrb.mxu3 %v2112_v12  ;;  %v2396_v12 = vld [vmem:[#allocation5 + $0x498] sm:$0xff] }
 0x89a   :  { %2446 = vmatpush.msra.mxu2 %v2397_v62 }
 0x89b   :  { %2225 = vmatpush.msrb.mxu3 %v2110_v14  ;;  %v2393_v14 = vld [vmem:[#allocation5 + $0x480] sm:$0xff] }
 0x89c   :  { %2447 = vmatpush.msra.mxu2 %v2395_v8  ;;  %v6911_v8 = vld [vmem:[%s8328_s13 + $0xd8] sm:$0xff] }
 0x89d   :  { %2226 = vmatpush.msrb.mxu3 %v2108_v25  ;;  %v2394_v25 = vld [vmem:[#allocation5 + $0x488] sm:$0xff] }
 0x89e   :  { %2448 = vmatpush.msra.mxu2 %v2393_v14  ;;  %v6939_v14 = vld [vmem:[%s8328_s13 + $0xc8] sm:$0xff] }
 0x8a0   :  { %2449 = vmatpush.msra.mxu2 %v2391_v17 }
 0x8d1   :  { %v6836_v48 = vpop.f32.mrf.mxu0 }
 0x8d2   :  { %2287 = vmatmul.f32.vlgmr.msra.gmra.mxu1 %v6836_v48 }
 0x8d3   :  { %2461 = vmatpush.msra.mxu1 %v2439_v35 }
 0x8d5   :  { %2462 = vmatpush.msra.mxu1 %v2437_v49  ;;  %v6859_v49 = vld [vmem:[%s8328_s13 + $0xf8] sm:$0xff] }
 0x8d7   :  { %2463 = vmatpush.msra.mxu1 %v2435_v63  ;;  %v6894_v63 = vld [vmem:[%s8328_s13 + $0x60] sm:$0xff] }
 0x8d9   :  { %v2103_v1 = vpop.f32.mrf.mxu0  ;;  %2464 = vmatpush.msra.mxu1 %v2433_v9  ;;  %v6922_v9 = vld [vmem:[%s8328_s13 + $0x50] sm:$0xff] }
 0x8da   :  { %2207 = vmatmul.f32.vlgmr.msra.gmra.mxu0 %v2103_v1  ;;  %5131 = vmatmul.msk.f32.vlgmr.msrb.gmra.mxu1 %vm663_vm2, %v5129_v10 }
 0x8db   :  { %2311 = vmatpush.msra.mxu0 %v2060_v3  ;;  %2465 = vmatpush.msra.mxu1 %v2431_v15  ;;  %v2392_v3 = vld [vmem:[#allocation5 + $0x478] sm:$0xff] }
 0x8dd   :  { %2312 = vmatpush.msra.mxu0 %v2058_v45  ;;  %v6839_v61 = vpop.f32.mrf.mxu3  ;;  %v2389_v45 = vld [vmem:[#allocation5 + $0x460] sm:$0xff] }
 0x8de   :  { %2267 = vmatmul.f32.vlgmr.msrb.gmra.mxu2 %v6839_v61 }
 0x8df   :  { %2313 = vmatpush.msra.mxu0 %v2056_v37  ;;  %v2427_v37 = vld [vmem:[#allocation5 + $0x590] sm:$0xff]  ;;  %2450 = vmatpush.msra.mxu2 %v2389_v45  ;;  %v6970_v45 = vld [vmem:[%s8328_s13 + $0x40] sm:$0xff] }
 0x8e1   :  { %2314 = vmatpush.msra.mxu0 %v2054_v39  ;;  %v2428_v39 = vld [vmem:[#allocation5 + $0x598] sm:$0xff] }
 0x8e2   :  { %2247 = vmatmul.f32.vlgmr.msrb.gmra.mxu0 %v2103_v1  ;;  %v2430_v1 = vld [vmem:[#allocation5 + $0x5a8] sm:$0xff] }
 0x8e3   :  { %2315 = vmatpush.msra.mxu0 %v2052_v7  ;;  %v2387_v7 = vld [vmem:[#allocation5 + $0x450] sm:$0xff] }
 0x8e4   :  { %2451 = vmatpush.msra.mxu2 %v2387_v7  ;;  %v6998_v7 = vld [vmem:[%s8328_s13 + $0x30] sm:$0xff] }
 0x8e5   :  { %2316 = vmatpush.msra.mxu0 %v2050_v11  ;;  %v2083_v30 = vpop.f32.mrf.mxu3  ;;  %v2388_v11 = vld [vmem:[#allocation5 + $0x458] sm:$0xff] }
 0x8e6   :  { %2187 = vmatmul.f32.vlgmr.msra.gmra.mxu3 %v2083_v30 }
 0x8e7   :  { %2291 = vmatpush.msra.mxu3 %v2028_v18  ;;  %2317 = vmatpush.msra.mxu0 %v2048_v21  ;;  %v2426_v18 = vld [vmem:[#allocation5 + $0x588] sm:$0xff]  ;;  %v2385_v21 = vld [vmem:[#allocation5 + $0x440] sm:$0xff] }
 0x8e8   :  { %2452 = vmatpush.msra.mxu2 %v2385_v21  ;;  %v7026_v21 = vld [vmem:[%s8328_s13 + $0x20] sm:$0xff] }
 0x8e9   :  { %2292 = vmatpush.msra.mxu3 %v2026_v59  ;;  %2318 = vmatpush.msra.mxu0 %v2046_v44  ;;  %v2386_v59 = vld [vmem:[#allocation5 + $0x448] sm:$0xff]  ;;  %v2424_v44 = vld [vmem:[#allocation5 + $0x578] sm:$0xff] }
 0x8eb   :  { %2293 = vmatpush.msra.mxu3 %v2024_v32  ;;  %2319 = vmatpush.msra.mxu0 %v2044_v55  ;;  %v2383_v32 = vld [vmem:[#allocation5 + $0x430] sm:$0xff]  ;;  %v2421_v55 = vld [vmem:[#allocation5 + $0x560] sm:$0xff] }
 0x8ec   :  { %2453 = vmatpush.msra.mxu2 %v2383_v32  ;;  %v7054_v32 = vld [vmem:[%s8328_s13 + $0x10] sm:$0xff] }
 0x8ed   :  { %2294 = vmatpush.msra.mxu3 %v2022_v51  ;;  %2320 = vmatpush.msra.mxu0 %v2042_v56  ;;  %v2384_v51 = vld [vmem:[#allocation5 + $0x438] sm:$0xff]  ;;  %v2422_v56 = vld [vmem:[#allocation5 + $0x568] sm:$0xff] }
 0x8ee   :  { %2227 = vmatmul.f32.vlgmr.msrb.gmra.mxu3 %v2083_v30  ;;  %v2423_v30 = vld [vmem:[#allocation5 + $0x570] sm:$0xff] }
 0x8ef   :  { %2295 = vmatpush.msra.mxu3 %v2020_v22  ;;  %2321 = vmatpush.msra.mxu0 %v2040_v23  ;;  %v2381_v22 = vld [vmem:[#allocation5 + $0x420] sm:$0xff]  ;;  %v2419_v23 = vld [vmem:[#allocation5 + $0x550] sm:$0xff] }
 0x8f0   :  { %2454 = vmatpush.msra.mxu2 %v2381_v22  ;;  %v7082_v22 = vld [vmem:[%s8328_s13] sm:$0xff] }
 0x8f1   :  { %2296 = vmatpush.msra.mxu3 %v2018_v20  ;;  %2322 = vmatpush.msra.mxu0 %v2038_v19  ;;  %v2382_v20 = vld [vmem:[#allocation5 + $0x428] sm:$0xff]  ;;  %v2420_v19 = vld [vmem:[#allocation5 + $0x558] sm:$0xff] }
 0x8f3   :  { %2297 = vmatpush.msra.mxu3 %v2016_v33  ;;  %2323 = vmatpush.msra.mxu0 %v2036_v16  ;;  %v2379_v33 = vld [vmem:[#allocation5 + $0x410] sm:$0xff]  ;;  %v2417_v16 = vld [vmem:[#allocation5 + $0x540] sm:$0xff] }
 0x8f4   :  { %2455 = vmatpush.msra.mxu2 %v2379_v33 }
 0x8f5   :  { %2298 = vmatpush.msra.mxu3 %v2014_v2  ;;  %2324 = vmatpush.msra.mxu0 %v2034_v34  ;;  %v2380_v34 = vld [vmem:[#allocation5 + $0x418] sm:$0xff] }
 0x8f7   :  { %2299 = vmatpush.msra.mxu3 %v2012_v41  ;;  %2325 = vmatpush.msra.mxu0 %v2032_v42  ;;  %v2418_v41 = vld [vmem:[#allocation5 + $0x548] sm:$0xff]  ;;  %v2377_v42 = vld [vmem:[#allocation5 + $0x400] sm:$0xff] }
 0x8f8   :  { %2456 = vmatpush.msra.mxu2 %v2377_v42 }
 0x8f9   :  { %2300 = vmatpush.msra.mxu3 %v2010_v43  ;;  %2326 = vmatpush.msra.mxu0 %v2030_v6  ;;  %v2415_v43 = vld [vmem:[#allocation5 + $0x530] sm:$0xff]  ;;  %v2378_v6 = vld [vmem:[#allocation5 + $0x408] sm:$0xff] }
 0x8fa   :  { %2327 = vmatmul.f32.vlgmr.msra.gmra.mxu0 %v6836_v48  ;;  %v2429_v48 = vld [vmem:[#allocation5 + $0x5a0] sm:$0xff] }
 0x8fb   :  { %2350 = vmatpush.msrb.mxu0 %v6822_v47  ;;  %2301 = vmatpush.msra.mxu3 %v2008_v46  ;;  %v2406_v47 = vld [vmem:[#allocation5 + $0x4e8] sm:$0xff]  ;;  %v2416_v46 = vld [vmem:[#allocation5 + $0x538] sm:$0xff] }
 0x8fc   :  { %2466 = vmatpush.msra.mxu1 %v2429_v48 }
 0x8fd   :  { %2351 = vmatpush.msrb.mxu0 %v6824_v50  ;;  %2302 = vmatpush.msra.mxu3 %v2006_v58  ;;  %v2404_v50 = vld [vmem:[#allocation5 + $0x4d8] sm:$0xff]  ;;  %v2413_v58 = vld [vmem:[#allocation5 + $0x520] sm:$0xff] }
 0x8fe   :  { %2467 = vmatpush.msra.mxu1 %v2427_v37  ;;  %v6975_v37 = vld [vmem:[%s8328_s13 + $0xc0] sm:$0xff] }
 0x8ff   :  { %2303 = vmatpush.msra.mxu3 %v2004_v36  ;;  %2501 = vmatpush.msra.mxu0 %v2440_v40  ;;  %v2414_v36 = vld [vmem:[#allocation5 + $0x528] sm:$0xff]  ;;  %v6854_v40 = vld [vmem:[%s8328_s13 + $0x78] sm:$0xff] }
 0x900   :  { %2567 = vmatpush.msrb.mxu2 %v6854_v40 }
 0x901   :  { %2304 = vmatpush.msra.mxu3 %v2002_v38  ;;  %2502 = vmatpush.msra.mxu0 %v2438_v54  ;;  %v2411_v38 = vld [vmem:[#allocation5 + $0x510] sm:$0xff] }
 0x902   :  { %5130 = vmatmul.msk.f32.vlgmr.msrb.gmra.mxu0 %vm663_vm2, %v5129_v10  ;;  %v2425_v10 = vld [vmem:[#allocation5 + $0x580] sm:$0xff]  ;;  %2568 = vmatpush.msrb.mxu2 %v6864_v52 }
 0x903   :  { %2305 = vmatpush.msra.mxu3 %v2000_v0  ;;  %2503 = vmatpush.msra.mxu0 %v2436_v5  ;;  %v2412_v0 = vld [vmem:[#allocation5 + $0x518] sm:$0xff] }
 0x904   :  { %2468 = vmatpush.msra.mxu1 %v2425_v10  ;;  %2569 = vmatpush.msrb.mxu2 %v6878_v57  ;;  %v6906_v5 = vld [vmem:[%s8328_s13 + $0x58] sm:$0xff]  ;;  %v7003_v10 = vld [vmem:[%s8328_s13 + $0xb0] sm:$0xff] }
 0x905   :  { %2306 = vmatpush.msra.mxu3 %v1998_v24  ;;  %2504 = vmatpush.msra.mxu0 %v2434_v13  ;;  %v2409_v24 = vld [vmem:[#allocation5 + $0x500] sm:$0xff]  ;;  %v6934_v13 = vld [vmem:[%s8328_s13 + $0x48] sm:$0xff] }
 0x906   :  { %2307 = vmatmul.f32.vlgmr.msra.gmra.mxu3 %v6839_v61  ;;  %v2390_v61 = vld [vmem:[#allocation5 + $0x468] sm:$0xff]  ;;  %2469 = vmatpush.msra.mxu1 %v2423_v30  ;;  %v7031_v30 = vld [vmem:[%s8328_s13 + $0xa0] sm:$0xff] }
 0x907   :  { %2481 = vmatpush.msrb.mxu3 %v2408_v27  ;;  %2505 = vmatpush.msra.mxu0 %v2432_v31  ;;  %v2410_v27 = vld [vmem:[#allocation5 + $0x508] sm:$0xff] }
 0x908   :  { %2470 = vmatpush.msra.mxu1 %v2421_v55  ;;  %2570 = vmatpush.msrb.mxu2 %v6894_v63  ;;  %v7059_v55 = vld [vmem:[%s8328_s13 + $0x90] sm:$0xff] }
 0x909   :  { %2482 = vmatpush.msrb.mxu3 %v2406_v47  ;;  %2506 = vmatpush.msra.mxu0 %v2430_v1 }
 0x90a   :  { %2471 = vmatpush.msra.mxu1 %v2419_v23  ;;  %2571 = vmatpush.msrb.mxu2 %v6906_v5  ;;  %v7087_v23 = vld [vmem:[%s8328_s13 + $0x80] sm:$0xff] }
 0x90b   :  { %2483 = vmatpush.msrb.mxu3 %v2404_v50  ;;  %2507 = vmatpush.msra.mxu0 %v2428_v39  ;;  %v6987_v39 = vld [vmem:[%s8328_s13 + $0xb8] sm:$0xff] }
 0x90c   :  { %2472 = vmatpush.msra.mxu1 %v2417_v16  ;;  %2572 = vmatpush.msrb.mxu2 %v6922_v9 }
 0x90d   :  { %2484 = vmatpush.msrb.mxu3 %v2402_v53  ;;  %2508 = vmatpush.msra.mxu0 %v2426_v18  ;;  %v6871_v53 = vld [vmem:[%s8328_s13 + $0xf0] sm:$0xff]  ;;  %v7015_v18 = vld [vmem:[%s8328_s13 + $0xa8] sm:$0xff] }
 0x90e   :  { %2473 = vmatpush.msra.mxu1 %v2415_v43  ;;  %2573 = vmatpush.msrb.mxu2 %v6934_v13 }
 0x90f   :  { %2485 = vmatpush.msrb.mxu3 %v2400_v60  ;;  %2509 = vmatpush.msra.mxu0 %v2424_v44  ;;  %v6883_v60 = vld [vmem:[%s8328_s13 + $0xe8] sm:$0xff]  ;;  %v7043_v44 = vld [vmem:[%s8328_s13 + $0x98] sm:$0xff] }
 0x910   :  { %2474 = vmatpush.msra.mxu1 %v2413_v58  ;;  %2574 = vmatpush.msrb.mxu2 %v6970_v45 }
 0x911   :  { %2486 = vmatpush.msrb.mxu3 %v2398_v4  ;;  %2510 = vmatpush.msra.mxu0 %v2422_v56  ;;  %v6899_v4 = vld [vmem:[%s8328_s13 + $0xe0] sm:$0xff]  ;;  %v7071_v56 = vld [vmem:[%s8328_s13 + $0x88] sm:$0xff] }
 0x912   :  { %2475 = vmatpush.msra.mxu1 %v2411_v38 }
 0x913   :  { %2487 = vmatpush.msrb.mxu3 %v2396_v12  ;;  %2511 = vmatpush.msra.mxu0 %v2420_v19  ;;  %v6927_v12 = vld [vmem:[%s8328_s13 + $0xd0] sm:$0xff] }
 0x914   :  { %2476 = vmatpush.msra.mxu1 %v2409_v24 }
 0x915   :  { %2488 = vmatpush.msrb.mxu3 %v2394_v25  ;;  %2512 = vmatpush.msra.mxu0 %v2418_v41 }
 0x916   :  { %2587 = vmatpush.msrb.mxu1 %v6859_v49 }
 0x917   :  { %2489 = vmatpush.msrb.mxu3 %v2392_v3  ;;  %2513 = vmatpush.msra.mxu0 %v2416_v46 }
 0x918   :  { %2588 = vmatpush.msrb.mxu1 %v6871_v53 }
 0x919   :  { %2490 = vmatpush.msrb.mxu3 %v2390_v61  ;;  %2514 = vmatpush.msra.mxu0 %v2414_v36  ;;  %v6982_v61 = vld [vmem:[%s8328_s13 + $0x38] sm:$0xff] }
 0x91a   :  { %2589 = vmatpush.msrb.mxu1 %v6883_v60  ;;  %2575 = vmatpush.msrb.mxu2 %v6982_v61 }
 0x91b   :  { %2491 = vmatpush.msrb.mxu3 %v2388_v11  ;;  %2515 = vmatpush.msra.mxu0 %v2412_v0  ;;  %v7010_v11 = vld [vmem:[%s8328_s13 + $0x28] sm:$0xff] }
 0x91c   :  { %2590 = vmatpush.msrb.mxu1 %v6899_v4  ;;  %2576 = vmatpush.msrb.mxu2 %v6998_v7 }
 0x91d   :  { %2492 = vmatpush.msrb.mxu3 %v2386_v59  ;;  %2516 = vmatpush.msra.mxu0 %v2410_v27  ;;  %v7038_v59 = vld [vmem:[%s8328_s13 + $0x18] sm:$0xff] }
 0x91e   :  { %2591 = vmatpush.msrb.mxu1 %v6911_v8  ;;  %2577 = vmatpush.msrb.mxu2 %v7010_v11 }
 0x91f   :  { %2493 = vmatpush.msrb.mxu3 %v2384_v51  ;;  %5149 = vmatpush.xpose.msk.msrb.mxu0 %vm138_vm0, %v6859_v49  ;;  %v7066_v51 = vld [vmem:[%s8328_s13 + $0x8] sm:$0xff] }
 0x920   :  { %2592 = vmatpush.msrb.mxu1 %v6927_v12  ;;  %2578 = vmatpush.msrb.mxu2 %v7026_v21 }
 0x921   :  { %2494 = vmatpush.msrb.mxu3 %v2382_v20 }
 0x922   :  { %2593 = vmatpush.msrb.mxu1 %v6939_v14  ;;  %2579 = vmatpush.msrb.mxu2 %v7038_v59 }
 0x923   :  { %2495 = vmatpush.msrb.mxu3 %v2380_v34  ;;  %5150 = vmatpush.xpose.msk.msrb.mxu0 %vm138_vm0, %v6871_v53 }
 0x924   :  { %2594 = vmatpush.msrb.mxu1 %v6975_v37  ;;  %2580 = vmatpush.msrb.mxu2 %v7054_v32 }
 0x925   :  { %2496 = vmatpush.msrb.mxu3 %v2378_v6 }
 0x926   :  { %2595 = vmatpush.msrb.mxu1 %v6987_v39  ;;  %2581 = vmatpush.msrb.mxu2 %v7066_v51 }
 0x927   :  { %5132 = vmatpush.xpose.msk.msra.mxu3 %vm138_vm0, %v6854_v40  ;;  %5151 = vmatpush.xpose.msk.msrb.mxu0 %vm138_vm0, %v6883_v60 }
 0x928   :  { %2596 = vmatpush.msrb.mxu1 %v7003_v10  ;;  %2582 = vmatpush.msrb.mxu2 %v7082_v22 }
 0x92a   :  { %2597 = vmatpush.msrb.mxu1 %v7015_v18 }
 0x92b   :  { %5133 = vmatpush.xpose.msk.msra.mxu3 %vm138_vm0, %v6864_v52  ;;  %5152 = vmatpush.xpose.msk.msrb.mxu0 %vm138_vm0, %v6899_v4 }
 0x92c   :  { %2598 = vmatpush.msrb.mxu1 %v7031_v30 }
 0x92e   :  { %2599 = vmatpush.msrb.mxu1 %v7043_v44 }
 0x92f   :  { %5134 = vmatpush.xpose.msk.msra.mxu3 %vm138_vm0, %v6878_v57  ;;  %5153 = vmatpush.xpose.msk.msrb.mxu0 %vm138_vm0, %v6911_v8 }
 0x930   :  { %2600 = vmatpush.msrb.mxu1 %v7059_v55 }
 0x932   :  { %2601 = vmatpush.msrb.mxu1 %v7071_v56 }
 0x933   :  { %5135 = vmatpush.xpose.msk.msra.mxu3 %vm138_vm0, %v6894_v63  ;;  %5154 = vmatpush.xpose.msk.msrb.mxu0 %vm138_vm0, %v6927_v12 }
 0x934   :  { %2602 = vmatpush.msrb.mxu1 %v7087_v23 }
 0x937   :  { %5136 = vmatpush.xpose.msk.msra.mxu3 %vm138_vm0, %v6906_v5  ;;  %5155 = vmatpush.xpose.msk.msrb.mxu0 %vm138_vm0, %v6939_v14 }
 0x93b   :  { %5137 = vmatpush.xpose.msk.msra.mxu3 %vm138_vm0, %v6922_v9  ;;  %5156 = vmatpush.xpose.msk.msrb.mxu0 %vm138_vm0, %v6975_v37 }
 0x93f   :  { %5138 = vmatpush.xpose.msk.msra.mxu3 %vm138_vm0, %v6934_v13  ;;  %5157 = vmatpush.xpose.msk.msrb.mxu0 %vm138_vm0, %v6987_v39 }
 0x943   :  { %5139 = vmatpush.xpose.msk.msra.mxu3 %vm138_vm0, %v6970_v45  ;;  %5158 = vmatpush.xpose.msk.msrb.mxu0 %vm138_vm0, %v7003_v10 }
 0x947   :  { %5140 = vmatpush.xpose.msk.msra.mxu3 %vm138_vm0, %v6982_v61  ;;  %5159 = vmatpush.xpose.msk.msrb.mxu0 %vm138_vm0, %v7015_v18 }
 0x94b   :  { %5141 = vmatpush.xpose.msk.msra.mxu3 %vm138_vm0, %v6998_v7  ;;  %5160 = vmatpush.xpose.msk.msrb.mxu0 %vm138_vm0, %v7031_v30 }
 0x94f   :  { %v2288_v2 = vpop.f32.mrf.mxu1  ;;  %5142 = vmatpush.xpose.msk.msra.mxu3 %vm138_vm0, %v7010_v11  ;;  %5161 = vmatpush.xpose.msk.msrb.mxu0 %vm138_vm0, %v7043_v44 }
 0x953   :  { %5143 = vmatpush.xpose.msk.msra.mxu3 %vm138_vm0, %v7026_v21  ;;  %5162 = vmatpush.xpose.msk.msrb.mxu0 %vm138_vm0, %v7059_v55 }
 0x957   :  { %v2373_v26 = vpop.f32.mrf.mxu1  ;;  %v2208_v28 = vpop.f32.mrf.mxu0  ;;  %5144 = vmatpush.xpose.msk.msra.mxu3 %vm138_vm0, %v7038_v59  ;;  %5163 = vmatpush.xpose.msk.msrb.mxu0 %vm138_vm0, %v7071_v56 }
 0x958   :  { %2477 = vmatmul.f32.vlgmr.msra.gmra.mxu1 %v2373_v26  ;;  %2517 = vmatmul.f32.vlgmr.msra.gmra.mxu0 %v2373_v26 }
 0x959   :  { %2792 = vmatpush.msra.mxu1 %v6859_v49 }
 0x95b   :  { %2793 = vmatpush.msra.mxu1 %v6871_v53  ;;  %5145 = vmatpush.xpose.msk.msra.mxu3 %vm138_vm0, %v7054_v32 }
 0x95c   :  { %5164 = vmatpush.xpose.msk.msrb.mxu0 %vm138_vm0, %v7087_v23 }
 0x95d   :  { %2794 = vmatpush.msra.mxu1 %v6883_v60 }
 0x95f   :  { %v2248_v62 = vpop.f32.mrf.mxu0  ;;  %2795 = vmatpush.msra.mxu1 %v6899_v4  ;;  %5146 = vmatpush.xpose.msk.msra.mxu3 %vm138_vm0, %v7066_v51 }
 0x961   :  { %v2268_v29 = vpop.f32.mrf.mxu2  ;;  %2796 = vmatpush.msra.mxu1 %v6911_v8 }
 0x963   :  { %2797 = vmatpush.msra.mxu1 %v6927_v12  ;;  %5147 = vmatpush.xpose.msk.msra.mxu3 %vm138_vm0, %v7082_v22 }
 0x965   :  { %2798 = vmatpush.msra.mxu1 %v6939_v14 }
 0x967   :  { %2799 = vmatpush.msra.mxu1 %v6975_v37 }
 0x969   :  { %v2188_v47 = vpop.f32.mrf.mxu3  ;;  %2800 = vmatpush.msra.mxu1 %v6987_v39 }
 0x96a   :  { %v2209_v50 = vadd.f32 %v2208_v28, %v2188_v47 }
 0x96b   :  { %2801 = vmatpush.msra.mxu1 %v7003_v10 }
 0x96c   :  { %v2269_v35 = vadd.f32 %v2268_v29, %v2209_v50  ;;  %v5397_v29 = vmov 32.0  }
 0x96d   :  { %2802 = vmatpush.msra.mxu1 %v7015_v18  ;;  %5247 = vrcp.f32 %v5397_v29  ;;  %v3055_v29 = vld [vmem:[#allocation7 + $0x2d8] sm:$0xff] }
 0x96e   :  { %v6873_v54 = vadd.f32 %v2288_v2, %v2269_v35 }
 0x96f   :  { %2803 = vmatpush.msra.mxu1 %v7031_v30 }
 0x971   :  { %v2228_v31 = vpop.f32.mrf.mxu3  ;;  %2804 = vmatpush.msra.mxu1 %v7043_v44 }
 0x972   :  { %v2249_v17 = vadd.f32 %v2248_v62, %v2228_v31 }
 0x973   :  { %2805 = vmatpush.msra.mxu1 %v7059_v55  ;;  %v5248_v50 = vpop.eup %5247 }
 0x974   :  { %v2608_v35 = vmul.f32 32.0, %v5248_v50  ;;  %vm2612_vm12 = vweird.f32 %v5248_v50 }
 0x975   :  { %2806 = vmatpush.msra.mxu1 %v7071_v56 }
 0x977   :  { %v2328_v15 = vpop.f32.mrf.mxu0  ;;  %2807 = vmatpush.msra.mxu1 %v7087_v23 }
 0x97f   :  { %v2353_v25 = vpop.f32.mrf.mxu0 }
 0x980   :  { %2457 = vmatmul.f32.vlgmr.msra.gmra.mxu2 %v2353_v25  ;;  %2497 = vmatmul.f32.vlgmr.msrb.gmra.mxu3 %v2353_v25 }
 0x981   :  { %2772 = vmatpush.msra.mxu2 %v6854_v40 }
 0x983   :  { %2773 = vmatpush.msra.mxu2 %v6864_v52 }
 0x985   :  { %2774 = vmatpush.msra.mxu2 %v6878_v57 }
 0x987   :  { %2775 = vmatpush.msra.mxu2 %v6894_v63 }
 0x989   :  { %v2308_v48 = vpop.f32.mrf.mxu3  ;;  %2776 = vmatpush.msra.mxu2 %v6906_v5 }
 0x98a   :  { %v2309_v3 = vadd.f32 %v2308_v48, %v2249_v17 }
 0x98b   :  { %2777 = vmatpush.msra.mxu2 %v6922_v9 }
 0x98c   :  { %v6965_v1 = vadd.f32 %v2328_v15, %v2309_v3 }
 0x98d   :  { %2778 = vmatpush.msra.mxu2 %v6934_v13 }
 0x98f   :  { %2779 = vmatpush.msra.mxu2 %v6970_v45 }
 0x991   :  { %2780 = vmatpush.msra.mxu2 %v6982_v61 }
 0x993   :  { %2781 = vmatpush.msra.mxu2 %v6998_v7 }
 0x995   :  { %2782 = vmatpush.msra.mxu2 %v7010_v11 }
 0x997   :  { %2783 = vmatpush.msra.mxu2 %v7026_v21 }
 0x999   :  { %2784 = vmatpush.msra.mxu2 %v7038_v59 }
 0x99b   :  { %2785 = vmatpush.msra.mxu2 %v7054_v32 }
 0x99d   :  { %2786 = vmatpush.msra.mxu2 %v7066_v51 }
 0x99f   :  { %2787 = vmatpush.msra.mxu2 %v7082_v22 }
 0x9d5   :  { %v2478_v20 = vpop.f32.mrf.mxu1  ;;  %v2518_v19 = vpop.f32.mrf.mxu0 }
 0xa03   :  { %v2458_v33 = vpop.f32.mrf.mxu2  ;;  %v2498_v16 = vpop.f32.mrf.mxu3 }
 0xa04   :  { %v2479_v2 = vadd.f32 %v2478_v20, %v2458_v33  ;;  %v2519_v34 = vadd.f32 %v2518_v19, %v2498_v16  ;;  %v2964_v20 = vld [vmem:[#allocation7 + $0x170] sm:$0xff]  ;;  %v2962_v19 = vld [vmem:[#allocation7 + $0x160] sm:$0xff] }
 0xa05   :  { %v2960_v33 = vld [vmem:[#allocation7 + $0x150] sm:$0xff] }
 0xa06   :  { %v7128_v41 = vadd.f32 %v2479_v2, %v6873_v54  ;;  %v7131_v42 = vadd.f32 %v2519_v34, %v6965_v1  ;;  %v2958_v2 = vld [vmem:[#allocation7 + $0x140] sm:$0xff] }
 0xa08   :  { %v2555_v43 = vrot.slane %v7128_v41, 4  ;;  %v2561_v6 = vrot.slane %v7131_v42, 4 }
 0xa0a   :  { %v2556_v46 = vadd.f32 %v2555_v43, %v7128_v41  ;;  %v2562_v58 = vadd.f32 %v2561_v6, %v7131_v42 }
 0xa0c   :  { %v2557_v36 = vrot.slane %v2556_v46, 2  ;;  %v2563_v38 = vrot.slane %v2562_v58, 2 }
 0xa0e   :  { %v2558_v0 = vadd.f32 %v2557_v36, %v2556_v46  ;;  %v2564_v24 = vadd.f32 %v2563_v38, %v2562_v58  ;;  %v2956_v58 = vld [vmem:[#allocation7 + $0x130] sm:$0xff]  ;;  %v2954_v36 = vld [vmem:[#allocation7 + $0x120] sm:$0xff] }
 0xa0f   :  { %v2952_v38 = vld [vmem:[#allocation7 + $0x110] sm:$0xff] }
 0xa10   :  { %v2565_v26 = vrot.slane %v2564_v24, 1  ;;  %v2559_v27 = vrot.slane %v2558_v0, 1 }
 0xa12   :  { %v2566_v28 = vadd.f32 %v2565_v26, %v2564_v24  ;;  %v2560_v47 = vadd.f32 %v2559_v27, %v2558_v0  ;;  %v2950_v0 = vld [vmem:[#allocation7 + $0x100] sm:$0xff]  ;;  %v3059_v24 = vld [vmem:[#allocation7 + $0x2f8] sm:$0xff] }
 0xa14   :  { %2583 = vmatmul.f32.vlgmr.msrb.gmra.mxu2 %v2560_v47  ;;  %2603 = vmatmul.f32.vlgmr.msrb.gmra.mxu1 %v2566_v28  ;;  %v3057_v28 = vld [vmem:[#allocation7 + $0x2e8] sm:$0xff] }
 0xa15   :  { %5166 = vmatpush.xpose.msk.msrb.mxu2 %vm138_vm0, %v6854_v40  ;;  %5183 = vmatpush.xpose.msk.msrb.mxu1 %vm138_vm0, %v6859_v49  ;;  %v2609_v40 = vsub.f32 1.0, %v2608_v35  ;;  %v2873_v35 = vld [vmem:[%s8319_s4] sm:$0xf] }
 0xa17   :  { %v2610_v49 = vmul.f32 %v5248_v50, %v2609_v40  ;;  %v3053_v40 = vld [vmem:[#allocation7 + $0x2c8] sm:$0xff] }
 0xa19   :  { %5167 = vmatpush.xpose.msk.msrb.mxu2 %vm138_vm0, %v6864_v52  ;;  %5184 = vmatpush.xpose.msk.msrb.mxu1 %vm138_vm0, %v6871_v53  ;;  %v2611_v52 = vadd.f32 %v5248_v50, %v2610_v49 }
 0xa1d   :  { %5168 = vmatpush.xpose.msk.msrb.mxu2 %vm138_vm0, %v6878_v57  ;;  %5185 = vmatpush.xpose.msk.msrb.mxu1 %vm138_vm0, %v6883_v60  ;;  %v2613_v57 = vsel %vm2612_vm12, %v5248_v50, %v2611_v52 }
 0xa21   :  { %5169 = vmatpush.xpose.msk.msrb.mxu2 %vm138_vm0, %v6894_v63  ;;  %5186 = vmatpush.xpose.msk.msrb.mxu1 %vm138_vm0, %v6899_v4 }
 0xa25   :  { %5170 = vmatpush.xpose.msk.msrb.mxu2 %vm138_vm0, %v6906_v5  ;;  %5187 = vmatpush.xpose.msk.msrb.mxu1 %vm138_vm0, %v6911_v8 }
 0xa29   :  { %5171 = vmatpush.xpose.msk.msrb.mxu2 %vm138_vm0, %v6922_v9  ;;  %5188 = vmatpush.xpose.msk.msrb.mxu1 %vm138_vm0, %v6927_v12 }
 0xa2d   :  { %5172 = vmatpush.xpose.msk.msrb.mxu2 %vm138_vm0, %v6934_v13  ;;  %5189 = vmatpush.xpose.msk.msrb.mxu1 %vm138_vm0, %v6939_v14 }
 0xa31   :  { %5173 = vmatpush.xpose.msk.msrb.mxu2 %vm138_vm0, %v6970_v45  ;;  %5190 = vmatpush.xpose.msk.msrb.mxu1 %vm138_vm0, %v6975_v37 }
 0xa35   :  { %5174 = vmatpush.xpose.msk.msrb.mxu2 %vm138_vm0, %v6982_v61  ;;  %5191 = vmatpush.xpose.msk.msrb.mxu1 %vm138_vm0, %v6987_v39 }
 0xa39   :  { %5175 = vmatpush.xpose.msk.msrb.mxu2 %vm138_vm0, %v6998_v7  ;;  %5192 = vmatpush.xpose.msk.msrb.mxu1 %vm138_vm0, %v7003_v10  ;;  %v2980_v10 = vld [vmem:[#allocation7 + $0x1f0] sm:$0xff] }
 0xa3d   :  { %5176 = vmatpush.xpose.msk.msrb.mxu2 %vm138_vm0, %v7010_v11  ;;  %5193 = vmatpush.xpose.msk.msrb.mxu1 %vm138_vm0, %v7015_v18  ;;  %v2978_v11 = vld [vmem:[#allocation7 + $0x1e0] sm:$0xff]  ;;  %v2976_v18 = vld [vmem:[#allocation7 + $0x1d0] sm:$0xff] }
 0xa41   :  { %5177 = vmatpush.xpose.msk.msrb.mxu2 %vm138_vm0, %v7026_v21  ;;  %5194 = vmatpush.xpose.msk.msrb.mxu1 %vm138_vm0, %v7031_v30  ;;  %v2974_v21 = vld [vmem:[#allocation7 + $0x1c0] sm:$0xff]  ;;  %v2972_v30 = vld [vmem:[#allocation7 + $0x1b0] sm:$0xff] }
 0xa45   :  { %5178 = vmatpush.xpose.msk.msrb.mxu2 %vm138_vm0, %v7038_v59  ;;  %5195 = vmatpush.xpose.msk.msrb.mxu1 %vm138_vm0, %v7043_v44 }
 0xa49   :  { %5179 = vmatpush.xpose.msk.msrb.mxu2 %vm138_vm0, %v7054_v32  ;;  %5196 = vmatpush.xpose.msk.msrb.mxu1 %vm138_vm0, %v7059_v55  ;;  %v2970_v55 = vld [vmem:[#allocation7 + $0x1a0] sm:$0xff] }
 0xa4d   :  { %5180 = vmatpush.xpose.msk.msrb.mxu2 %vm138_vm0, %v7066_v51  ;;  %5197 = vmatpush.xpose.msk.msrb.mxu1 %vm138_vm0, %v7071_v56  ;;  %v2968_v56 = vld [vmem:[#allocation7 + $0x190] sm:$0xff] }
 0xa51   :  { %5181 = vmatpush.xpose.msk.msrb.mxu2 %vm138_vm0, %v7082_v22  ;;  %5198 = vmatpush.xpose.msk.msrb.mxu1 %vm138_vm0, %v7087_v23  ;;  %v2966_v23 = vld [vmem:[#allocation7 + $0x180] sm:$0xff] }
 0xa91   :  { %v2604_v53 = vpop.f32.mrf.mxu1 }
 0xa97   :  { %v2584_v54 = vpop.f32.mrf.mxu2 }
 0xa98   :  { %v2605_v60 = vadd.f32 %v2604_v53, %v2584_v54  ;;  %v3090_v53 = vld [vmem:[#allocation7 + $0x3f0] sm:$0xff]  ;;  %v3051_v54 = vld [vmem:[#allocation7 + $0x2b8] sm:$0xff] }
 0xa9a   :  { %v2614_v62 = vmul.f32 %v2613_v57, %v2605_v60  ;;  %v3088_v60 = vld [vmem:[#allocation7 + $0x3e0] sm:$0xff] }
 0xa9c   :  { %5148 = vmatmul.msk.f32.vlgmr.msra.gmra.mxu3 %vm138_vm0, %v2614_v62  ;;  %5165 = vmatmul.msk.f32.vlgmr.msrb.gmra.mxu0 %vm138_vm0, %v2614_v62  ;;  %v3049_v62 = vld [vmem:[#allocation7 + $0x2a8] sm:$0xff] }
 0xb19   :  { %v2751_v63 = vpop.f32.mrf.mxu0 }
 0xb1a   :  { %v2755_v4 = vperm.slane %v2751_v63, 0  ;;  %v3047_v63 = vld [vmem:[#allocation7 + $0x298] sm:$0xff] }
 0xb1c   :  { %v7220_v5 = vsub.f32 %v7131_v42, %v2755_v4 }
 0xb1e   :  { %v2759_v8 = vmul.f32 %v7220_v5, %v7220_v5 }
 0xb1f   :  { %v2731_v9 = vpop.f32.mrf.mxu3 }
 0xb20   :  { %v2766_v12 = vrot.slane %v2759_v8, 4  ;;  %v2754_v13 = vperm.slane %v2731_v9, 0  ;;  %v5202_v9 = vld [vmem:[%s8319_s4 + $0x4] sm:$0xf] }
 0xb22   :  { %v2767_v14 = vadd.f32 %v2766_v12, %v2759_v8  ;;  %v7225_v15 = vsub.f32 %v7128_v41, %v2754_v13  ;;  %v3045_v8 = vld [vmem:[#allocation7 + $0x288] sm:$0xff]  ;;  %v3058_v12 = vld [vmem:[#allocation7 + $0x2f0] sm:$0xff]  ;;  %v3084_v13 = vld [vmem:[#allocation7 + $0x3c0] sm:$0xff] }
 0xb24   :  { %v2768_v25 = vrot.slane %v2767_v14, 2  ;;  %v2758_v31 = vmul.f32 %v7225_v15, %v7225_v15 }
 0xb26   :  { %v2769_v17 = vadd.f32 %v2768_v25, %v2767_v14  ;;  %v2760_v48 = vrot.slane %v2758_v31, 4  ;;  %v3043_v14 = vld [vmem:[#allocation7 + $0x278] sm:$0xff]  ;;  %v3082_v25 = vld [vmem:[#allocation7 + $0x3b0] sm:$0xff] }
 0xb28   :  { %v2770_v3 = vrot.slane %v2769_v17, 1  ;;  %v2761_v1 = vadd.f32 %v2760_v48, %v2758_v31  ;;  %v3041_v31 = vld [vmem:[#allocation7 + $0x268] sm:$0xff]  ;;  %v3080_v48 = vld [vmem:[#allocation7 + $0x3a0] sm:$0xff] }
 0xb2a   :  { %v2771_v45 = vadd.f32 %v2770_v3, %v2769_v17  ;;  %v2762_v37 = vrot.slane %v2761_v1, 2  ;;  %v3054_v17 = vld [vmem:[#allocation7 + $0x2d0] sm:$0xff]  ;;  %v3039_v3 = vld [vmem:[#allocation7 + $0x258] sm:$0xff] }
 0xb2c   :  { %v2763_v61 = vadd.f32 %v2762_v37, %v2761_v1  ;;  %2808 = vmatmul.f32.vlgmr.msra.gmra.mxu1 %v2771_v45  ;;  %v3078_v1 = vld [vmem:[#allocation7 + $0x390] sm:$0xff]  ;;  %v3052_v45 = vld [vmem:[#allocation7 + $0x2c0] sm:$0xff]  ;;  %v3037_v37 = vld [vmem:[#allocation7 + $0x248] sm:$0xff] }
 0xb2d   :  { %3192 = vmatpush.msra.mxu1 %v2980_v10  ;;  %v3074_v10 = vld [vmem:[#allocation7 + $0x370] sm:$0xff] }
 0xb2e   :  { %v2764_v39 = vrot.slane %v2763_v61, 1 }
 0xb2f   :  { %3193 = vmatpush.msra.mxu1 %v2978_v11  ;;  %v3048_v11 = vld [vmem:[#allocation7 + $0x2a0] sm:$0xff] }
 0xb30   :  { %v2765_v7 = vadd.f32 %v2764_v39, %v2763_v61  ;;  %v3076_v61 = vld [vmem:[#allocation7 + $0x380] sm:$0xff]  ;;  %v3050_v39 = vld [vmem:[#allocation7 + $0x2b0] sm:$0xff] }
 0xb31   :  { %3194 = vmatpush.msra.mxu1 %v2976_v18  ;;  %v3033_v18 = vld [vmem:[#allocation7 + $0x228] sm:$0xff] }
 0xb32   :  { %2788 = vmatmul.f32.vlgmr.msra.gmra.mxu2 %v2765_v7  ;;  %v3035_v7 = vld [vmem:[#allocation7 + $0x238] sm:$0xff] }
 0xb33   :  { %3195 = vmatpush.msra.mxu1 %v2974_v21  ;;  %3132 = vmatpush.msra.mxu2 %v3059_v24  ;;  %v3072_v21 = vld [vmem:[#allocation7 + $0x360] sm:$0xff]  ;;  %v2940_v24 = vld [vmem:[#allocation7 + $0xb0] sm:$0xff] }
 0xb35   :  { %3196 = vmatpush.msra.mxu1 %v2972_v30  ;;  %3133 = vmatpush.msra.mxu2 %v3057_v28  ;;  %v3046_v30 = vld [vmem:[#allocation7 + $0x290] sm:$0xff]  ;;  %v3087_v28 = vld [vmem:[#allocation7 + $0x3d8] sm:$0xff] }
 0xb37   :  { %3197 = vmatpush.msra.mxu1 %v2970_v55  ;;  %3134 = vmatpush.msra.mxu2 %v3055_v29  ;;  %v3029_v55 = vld [vmem:[#allocation7 + $0x208] sm:$0xff] }
 0xb38   :  { %v3085_v29 = vld [vmem:[#allocation7 + $0x3c8] sm:$0xff] }
 0xb39   :  { %3198 = vmatpush.msra.mxu1 %v2968_v56  ;;  %3135 = vmatpush.msra.mxu2 %v3053_v40  ;;  %v3042_v56 = vld [vmem:[#allocation7 + $0x270] sm:$0xff] }
 0xb3a   :  { %v2932_v40 = vld [vmem:[#allocation7 + $0x70] sm:$0xff] }
 0xb3b   :  { %3199 = vmatpush.msra.mxu1 %v2966_v23  ;;  %3136 = vmatpush.msra.mxu2 %v3051_v54  ;;  %v3066_v23 = vld [vmem:[#allocation7 + $0x330] sm:$0xff]  ;;  %v2926_v54 = vld [vmem:[#allocation7 + $0x40] sm:$0xff] }
 0xb3d   :  { %3200 = vmatpush.msra.mxu1 %v2964_v20  ;;  %3137 = vmatpush.msra.mxu2 %v3049_v62  ;;  %v3040_v20 = vld [vmem:[#allocation7 + $0x260] sm:$0xff]  ;;  %v2924_v62 = vld [vmem:[#allocation7 + $0x30] sm:$0xff] }
 0xb3f   :  { %3201 = vmatpush.msra.mxu1 %v2962_v19  ;;  %3138 = vmatpush.msra.mxu2 %v3047_v63  ;;  %v3064_v19 = vld [vmem:[#allocation7 + $0x320] sm:$0xff]  ;;  %v2945_v63 = vld [vmem:[#allocation7 + $0xd8] sm:$0xff] }
 0xb41   :  { %3202 = vmatpush.msra.mxu1 %v2960_v33  ;;  %3139 = vmatpush.msra.mxu2 %v3045_v8  ;;  %v3038_v33 = vld [vmem:[#allocation7 + $0x250] sm:$0xff]  ;;  %v2922_v8 = vld [vmem:[#allocation7 + $0x20] sm:$0xff] }
 0xb43   :  { %3203 = vmatpush.msra.mxu1 %v2958_v2  ;;  %3140 = vmatpush.msra.mxu2 %v3043_v14  ;;  %v3036_v2 = vld [vmem:[#allocation7 + $0x240] sm:$0xff]  ;;  %v2941_v14 = vld [vmem:[#allocation7 + $0xb8] sm:$0xff] }
 0xb45   :  { %3204 = vmatpush.msra.mxu1 %v2956_v58  ;;  %3141 = vmatpush.msra.mxu2 %v3041_v31  ;;  %v2944_v58 = vld [vmem:[#allocation7 + $0xd0] sm:$0xff]  ;;  %v2939_v31 = vld [vmem:[#allocation7 + $0xa8] sm:$0xff] }
 0xb47   :  { %3205 = vmatpush.msra.mxu1 %v2954_v36  ;;  %3142 = vmatpush.msra.mxu2 %v3039_v3  ;;  %v3028_v36 = vld [vmem:[#allocation7 + $0x200] sm:$0xff]  ;;  %v3069_v3 = vld [vmem:[#allocation7 + $0x348] sm:$0xff] }
 0xb49   :  { %3206 = vmatpush.msra.mxu1 %v2952_v38  ;;  %3143 = vmatpush.msra.mxu2 %v3037_v37  ;;  %v2942_v38 = vld [vmem:[#allocation7 + $0xc0] sm:$0xff]  ;;  %v2933_v37 = vld [vmem:[#allocation7 + $0x78] sm:$0xff] }
 0xb4b   :  { %3207 = vmatpush.msra.mxu1 %v2950_v0  ;;  %3144 = vmatpush.msra.mxu2 %v3035_v7  ;;  %v3091_v0 = vld [vmem:[#allocation7 + $0x3f8] sm:$0xff] }
 0xb4c   :  { %v3063_v7 = vld [vmem:[#allocation7 + $0x318] sm:$0xff] }
 0xb4d   :  { %3145 = vmatpush.msra.mxu2 %v3033_v18  ;;  %v2927_v18 = vld [vmem:[#allocation7 + $0x48] sm:$0xff] }
 0xba9   :  { %v2809_v59 = vpop.f32.mrf.mxu1 }
 0xbb5   :  { %v2789_v44 = vpop.f32.mrf.mxu2 }
 0xbb6   :  { %v2810_v32 = vadd.f32 %v2809_v59, %v2789_v44  ;;  %v3031_v59 = vld [vmem:[#allocation7 + $0x218] sm:$0xff]  ;;  %v3070_v44 = vld [vmem:[#allocation7 + $0x350] sm:$0xff] }
 0xbb7   :  { %3146 = vmatpush.msra.mxu2 %v3031_v59  ;;  %v2921_v59 = vld [vmem:[#allocation7 + $0x18] sm:$0xff] }
 0xbb8   :  { %v2812_v51 = vmul.f32 %v2810_v32, %v2613_v57  ;;  %v3044_v32 = vld [vmem:[#allocation7 + $0x280] sm:$0xff] }
 0xbb9   :  { %3147 = vmatpush.msra.mxu2 %v3029_v55  ;;  %v5205_v55 = vld [vmem:[%s8319_s4 + $0x8] sm:$0xf] }
 0xbba   :  { %v2813_v22 = vadd.f32 1e-05, %v2812_v51  ;;  %v3068_v51 = vld [vmem:[#allocation7 + $0x340] sm:$0xff] }
 0xbbc   :  { %5249 = vrsqrt.f32 %v2813_v22  ;;  %vm2820_vm14 = vweird.f32 %v2813_v22 }
 0xbc2   :  { %v5250_v16 = vpop.eup %5249 }
 0xbc3   :  { %v2815_v34 = vmul.f32 %v5250_v16, %v2813_v22  ;;  %vm2821_vm13 = vweird.f32 %v5250_v16  ;;  %v2949_v22 = vld [vmem:[#allocation7 + $0xf8] sm:$0xff] }
 0xbc4   :  { %vm2822_vm15 = vmor %vm2820_vm14, %vm2821_vm13 }
 0xbc5   :  { %v2816_v41 = vmul.f32 %v5250_v16, %v2815_v34  ;;  %v3060_v34 = vld [vmem:[#allocation7 + $0x300] sm:$0xff] }
 0xbc7   :  { %v2817_v42 = vmul.f32 0.5, %v2816_v41  ;;  %v3034_v41 = vld [vmem:[#allocation7 + $0x230] sm:$0xff] }
 0xbc9   :  { %v2818_v43 = vsub.f32 1.5, %v2817_v42  ;;  %v2948_v42 = vld [vmem:[#allocation7 + $0xf0] sm:$0xff] }
 0xbcb   :  { %v2819_v6 = vmul.f32 %v5250_v16, %v2818_v43  ;;  %v3032_v43 = vld [vmem:[#allocation7 + $0x220] sm:$0xff] }
 0xbcd   :  { %v2823_v46 = vsel %vm2822_vm15, %v5250_v16, %v2819_v6  ;;  %v3062_v16 = vld [vmem:[#allocation7 + $0x310] sm:$0xff]  ;;  %v2946_v6 = vld [vmem:[#allocation7 + $0xe0] sm:$0xff]  ;;  %vm4733_vm15 = vcmask 15360  }
 0xbce   :  { %5182 = vmatmul.msk.f32.vlgmr.msrb.gmra.mxu2 %vm138_vm0, %v2823_v46  ;;  %5199 = vmatmul.msk.f32.vlgmr.msrb.gmra.mxu1 %vm138_vm0, %v2823_v46  ;;  %vm2874_vm0 = vcmask 64512   ;;  %v3030_v46 = vld [vmem:[#allocation7 + $0x210] sm:$0xff] }
 0xbcf   :  { %3212 = vmatpush.msrb.mxu2 %v2949_v22  ;;  %v2981_v22 = vld [vmem:[#allocation7 + $0x1f8] sm:$0xff] }
 0xc4b   :  { %v2864_v26 = vpop.f32.mrf.mxu1 }
 0xc4c   :  { %v2868_v27 = vperm.slane %v2864_v26, 0  ;;  %v3089_v26 = vld [vmem:[#allocation7 + $0x3e8] sm:$0xff] }
 0xc4e   :  { %v2870_v47 = vmul.f32 %v2868_v27, %v7220_v5  ;;  %v3086_v5 = vld [vmem:[#allocation7 + $0x3d0] sm:$0xff]  ;;  %v2938_v27 = vld [vmem:[#allocation7 + $0xa0] sm:$0xff] }
 0xc50   :  { %v2872_v50 = vmax.f32 %v2870_v47, 0.0  ;;  %v2936_v47 = vld [vmem:[#allocation7 + $0x90] sm:$0xff] }
 0xc51   :  { %v2844_v49 = vpop.f32.mrf.mxu2 }
 0xc52   :  { %v2867_v52 = vperm.slane %v2844_v49, 0  ;;  %2913 = vmatpush.msra.mxu0 %v2872_v50  ;;  %3292 = vmatpush.msrb.mxu1 %v2872_v50  ;;  %v2930_v49 = vld [vmem:[#allocation7 + $0x60] sm:$0xff] }
 0xc53   :  { %5201 = vmatmul.msk.f32.vlgmr.msra.gmra.mxu0 %vm2874_vm0, %v2873_v35 }
 0xc54   :  { %v2869_v57 = vmul.f32 %v2867_v52, %v7225_v15  ;;  %3022 = vmatpush.msrb.mxu0 %v2872_v50  ;;  %v3056_v15 = vld [vmem:[#allocation7 + $0x2e0] sm:$0xff]  ;;  %v2928_v52 = vld [vmem:[#allocation7 + $0x50] sm:$0xff] }
 0xc55   :  { %v2934_v50 = vld [vmem:[#allocation7 + $0x80] sm:$0xff] }
 0xc56   :  { %3112 = vmatpush.msra.mxu0 %v3090_v53  ;;  %v7237_v4 = vmax.f32 %v2869_v57, 0.0  ;;  %v3081_v53 = vld [vmem:[#allocation7 + $0x3a8] sm:$0xff] }
 0xc57   :  { %v2947_v57 = vld [vmem:[#allocation7 + $0xe8] sm:$0xff] }
 0xc58   :  { %3113 = vmatpush.msra.mxu0 %v3088_v60  ;;  %2893 = vmatpush.msrb.mxu3 %v7237_v4  ;;  %v3079_v60 = vld [vmem:[#allocation7 + $0x398] sm:$0xff] }
 0xc59   :  { %5200 = vmatmul.msk.f32.vlgmr.msrb.gmra.mxu3 %vm2874_vm0, %v2873_v35  ;;  %v3083_v35 = vld [vmem:[#allocation7 + $0x3b8] sm:$0xff]  ;;  %3213 = vmatpush.msrb.mxu2 %v2947_v57  ;;  %v3323_v57 = vld [vmem:[#allocation7 + $0x4c8] sm:$0xff] }
 0xc5a   :  { %3114 = vmatpush.msra.mxu0 %v3086_v5  ;;  %3002 = vmatpush.msra.mxu3 %v7237_v4  ;;  %v3077_v5 = vld [vmem:[#allocation7 + $0x388] sm:$0xff] }
 0xc5b   :  { %5204 = vmatmul.msk.f32.vlgmr.msrb.gmra.mxu0 %vm2874_vm0, %v5202_v9  ;;  %3214 = vmatpush.msrb.mxu2 %v2945_v63  ;;  %v3352_v63 = vld [vmem:[#allocation7 + $0x5b0] sm:$0xff] }
 0xc5c   :  { %3092 = vmatpush.msrb.mxu3 %v3058_v12  ;;  %3115 = vmatpush.msra.mxu0 %v3084_v13  ;;  %v3075_v12 = vld [vmem:[#allocation7 + $0x378] sm:$0xff]  ;;  %v2920_v13 = vld [vmem:[#allocation7 + $0x10] sm:$0xff] }
 0xc5e   :  { %3093 = vmatpush.msrb.mxu3 %v3056_v15  ;;  %3116 = vmatpush.msra.mxu0 %v3082_v25  ;;  %v3073_v15 = vld [vmem:[#allocation7 + $0x368] sm:$0xff]  ;;  %v2918_v25 = vld [vmem:[#allocation7] sm:$0xff] }
 0xc60   :  { %3094 = vmatpush.msrb.mxu3 %v3054_v17  ;;  %3117 = vmatpush.msra.mxu0 %v3080_v48  ;;  %v3071_v17 = vld [vmem:[#allocation7 + $0x358] sm:$0xff] }
 0xc61   :  { %5203 = vmatmul.msk.f32.vlgmr.msra.gmra.mxu3 %vm2874_vm0, %v5202_v9  ;;  %v2943_v9 = vld [vmem:[#allocation7 + $0xc8] sm:$0xff]  ;;  %v2937_v48 = vld [vmem:[#allocation7 + $0x98] sm:$0xff] }
 0xc62   :  { %3118 = vmatpush.msra.mxu0 %v3078_v1  ;;  %3095 = vmatpush.msrb.mxu3 %v3052_v45  ;;  %v2935_v1 = vld [vmem:[#allocation7 + $0x88] sm:$0xff]  ;;  %v3067_v45 = vld [vmem:[#allocation7 + $0x338] sm:$0xff] }
 0xc63   :  { %3215 = vmatpush.msrb.mxu2 %v2943_v9  ;;  %v3318_v9 = vld [vmem:[#allocation7 + $0x4a0] sm:$0xff] }
 0xc64   :  { %3119 = vmatpush.msra.mxu0 %v3076_v61  ;;  %3096 = vmatpush.msrb.mxu3 %v3050_v39  ;;  %v3065_v61 = vld [vmem:[#allocation7 + $0x328] sm:$0xff] }
 0xc65   :  { %3216 = vmatpush.msrb.mxu2 %v2941_v14  ;;  %v2931_v39 = vld [vmem:[#allocation7 + $0x68] sm:$0xff] }
 0xc66   :  { %3120 = vmatpush.msra.mxu0 %v3074_v10  ;;  %3097 = vmatpush.msrb.mxu3 %v3048_v11  ;;  %v2929_v10 = vld [vmem:[#allocation7 + $0x58] sm:$0xff]  ;;  %v3061_v11 = vld [vmem:[#allocation7 + $0x308] sm:$0xff] }
 0xc67   :  { %3217 = vmatpush.msrb.mxu2 %v2939_v31  ;;  %v3351_v14 = vld [vmem:[#allocation7 + $0x5a8] sm:$0xff]  ;;  %v3317_v31 = vld [vmem:[#allocation7 + $0x498] sm:$0xff] }
 0xc68   :  { %3121 = vmatpush.msra.mxu0 %v3072_v21  ;;  %3098 = vmatpush.msrb.mxu3 %v3046_v30  ;;  %v2925_v21 = vld [vmem:[#allocation7 + $0x38] sm:$0xff]  ;;  %v2923_v30 = vld [vmem:[#allocation7 + $0x28] sm:$0xff] }
 0xc69   :  { %3218 = vmatpush.msrb.mxu2 %v2937_v48  ;;  %v3314_v48 = vld [vmem:[#allocation7 + $0x480] sm:$0xff] }
 0xc6a   :  { %3122 = vmatpush.msra.mxu0 %v3070_v44  ;;  %3099 = vmatpush.msrb.mxu3 %v3044_v32  ;;  %v2919_v44 = vld [vmem:[#allocation7 + $0x8] sm:$0xff] }
 0xc6b   :  { %3219 = vmatpush.msrb.mxu2 %v2935_v1  ;;  %v3315_v1 = vld [vmem:[#allocation7 + $0x488] sm:$0xff] }
 0xc6c   :  { %3123 = vmatpush.msra.mxu0 %v3068_v51  ;;  %3100 = vmatpush.msrb.mxu3 %v3042_v56 }
 0xc6d   :  { %3220 = vmatpush.msrb.mxu2 %v2933_v37  ;;  %v3312_v37 = vld [vmem:[#allocation7 + $0x470] sm:$0xff] }
 0xc6e   :  { %3124 = vmatpush.msra.mxu0 %v3066_v23  ;;  %3101 = vmatpush.msrb.mxu3 %v3040_v20  ;;  %v2979_v20 = vld [vmem:[#allocation7 + $0x1e8] sm:$0xff] }
 0xc6f   :  { %3221 = vmatpush.msrb.mxu2 %v2931_v39  ;;  %v3313_v39 = vld [vmem:[#allocation7 + $0x478] sm:$0xff] }
 0xc70   :  { %3125 = vmatpush.msra.mxu0 %v3064_v19  ;;  %3102 = vmatpush.msrb.mxu3 %v3038_v33  ;;  %v3328_v19 = vld [vmem:[#allocation7 + $0x4f0] sm:$0xff] }
 0xc71   :  { %3222 = vmatpush.msrb.mxu2 %v2929_v10  ;;  %v3360_v33 = vld [vmem:[#allocation7 + $0x5f0] sm:$0xff]  ;;  %v3310_v10 = vld [vmem:[#allocation7 + $0x460] sm:$0xff] }
 0xc72   :  { %3126 = vmatpush.msra.mxu0 %v3062_v16  ;;  %3103 = vmatpush.msrb.mxu3 %v3036_v2  ;;  %v3329_v16 = vld [vmem:[#allocation7 + $0x4f8] sm:$0xff]  ;;  %v3326_v2 = vld [vmem:[#allocation7 + $0x4e0] sm:$0xff] }
 0xc73   :  { %3223 = vmatpush.msrb.mxu2 %v2927_v18  ;;  %v3311_v18 = vld [vmem:[#allocation7 + $0x468] sm:$0xff] }
 0xc74   :  { %3127 = vmatpush.msra.mxu0 %v3060_v34  ;;  %3104 = vmatpush.msrb.mxu3 %v3034_v41  ;;  %v3358_v34 = vld [vmem:[#allocation7 + $0x5e0] sm:$0xff]  ;;  %v2977_v41 = vld [vmem:[#allocation7 + $0x1d8] sm:$0xff] }
 0xc75   :  { %3224 = vmatpush.msrb.mxu2 %v2925_v21  ;;  %v3343_v21 = vld [vmem:[#allocation7 + $0x568] sm:$0xff] }
 0xc76   :  { %3172 = vmatpush.msrb.mxu0 %v2948_v42  ;;  %3105 = vmatpush.msrb.mxu3 %v3032_v43  ;;  %v3327_v42 = vld [vmem:[#allocation7 + $0x4e8] sm:$0xff]  ;;  %v3356_v43 = vld [vmem:[#allocation7 + $0x5d0] sm:$0xff] }
 0xc77   :  { %3225 = vmatpush.msrb.mxu2 %v2923_v30  ;;  %v3308_v30 = vld [vmem:[#allocation7 + $0x450] sm:$0xff] }
 0xc78   :  { %3173 = vmatpush.msrb.mxu0 %v2946_v6  ;;  %3106 = vmatpush.msrb.mxu3 %v3030_v46  ;;  %v2975_v6 = vld [vmem:[#allocation7 + $0x1c8] sm:$0xff]  ;;  %v3325_v46 = vld [vmem:[#allocation7 + $0x4d8] sm:$0xff] }
 0xc79   :  { %3226 = vmatpush.msrb.mxu2 %v2921_v59  ;;  %v3340_v59 = vld [vmem:[#allocation7 + $0x550] sm:$0xff] }
 0xc7a   :  { %3174 = vmatpush.msrb.mxu0 %v2944_v58  ;;  %3107 = vmatpush.msrb.mxu3 %v3028_v36  ;;  %v2973_v58 = vld [vmem:[#allocation7 + $0x1b8] sm:$0xff]  ;;  %v2971_v36 = vld [vmem:[#allocation7 + $0x1a8] sm:$0xff] }
 0xc7b   :  { %3227 = vmatpush.msrb.mxu2 %v2919_v44  ;;  %v3309_v44 = vld [vmem:[#allocation7 + $0x458] sm:$0xff] }
 0xc7c   :  { %3175 = vmatpush.msrb.mxu0 %v2942_v38  ;;  %3152 = vmatpush.msra.mxu3 %v3091_v0  ;;  %v2969_v38 = vld [vmem:[#allocation7 + $0x198] sm:$0xff]  ;;  %v2967_v0 = vld [vmem:[#allocation7 + $0x188] sm:$0xff] }
 0xc7e   :  { %3176 = vmatpush.msrb.mxu0 %v2940_v24  ;;  %3153 = vmatpush.msra.mxu3 %v3089_v26  ;;  %v2965_v24 = vld [vmem:[#allocation7 + $0x178] sm:$0xff]  ;;  %v2963_v26 = vld [vmem:[#allocation7 + $0x168] sm:$0xff] }
 0xc80   :  { %3177 = vmatpush.msrb.mxu0 %v2938_v27  ;;  %3154 = vmatpush.msra.mxu3 %v3087_v28  ;;  %v2961_v27 = vld [vmem:[#allocation7 + $0x158] sm:$0xff]  ;;  %v2959_v28 = vld [vmem:[#allocation7 + $0x148] sm:$0xff] }
 0xc82   :  { %3178 = vmatpush.msrb.mxu0 %v2936_v47  ;;  %3155 = vmatpush.msra.mxu3 %v3085_v29  ;;  %v2957_v47 = vld [vmem:[#allocation7 + $0x138] sm:$0xff]  ;;  %v2955_v29 = vld [vmem:[#allocation7 + $0x128] sm:$0xff] }
 0xc84   :  { %3179 = vmatpush.msrb.mxu0 %v2934_v50  ;;  %3156 = vmatpush.msra.mxu3 %v3083_v35  ;;  %v2953_v50 = vld [vmem:[#allocation7 + $0x118] sm:$0xff]  ;;  %v2951_v35 = vld [vmem:[#allocation7 + $0x108] sm:$0xff] }
 0xc86   :  { %3180 = vmatpush.msrb.mxu0 %v2932_v40  ;;  %3157 = vmatpush.msra.mxu3 %v3081_v53  ;;  %v3361_v40 = vld [vmem:[#allocation7 + $0x5f8] sm:$0xff]  ;;  %v3322_v53 = vld [vmem:[#allocation7 + $0x4c0] sm:$0xff] }
 0xc88   :  { %3181 = vmatpush.msrb.mxu0 %v2930_v49  ;;  %3158 = vmatpush.msra.mxu3 %v3079_v60  ;;  %v3359_v49 = vld [vmem:[#allocation7 + $0x5e8] sm:$0xff] }
 0xc89   :  { %v3355_v60 = vld [vmem:[#allocation7 + $0x5c8] sm:$0xff] }
 0xc8a   :  { %3182 = vmatpush.msrb.mxu0 %v2928_v52  ;;  %3159 = vmatpush.msra.mxu3 %v3077_v5  ;;  %v3357_v52 = vld [vmem:[#allocation7 + $0x5d8] sm:$0xff] }
 0xc8b   :  { %v3321_v5 = vld [vmem:[#allocation7 + $0x4b8] sm:$0xff] }
 0xc8c   :  { %3183 = vmatpush.msrb.mxu0 %v2926_v54  ;;  %3160 = vmatpush.msra.mxu3 %v3075_v12  ;;  %v3354_v54 = vld [vmem:[#allocation7 + $0x5c0] sm:$0xff] }
 0xc8d   :  { %v3350_v12 = vld [vmem:[#allocation7 + $0x5a0] sm:$0xff] }
 0xc8e   :  { %3184 = vmatpush.msrb.mxu0 %v2924_v62  ;;  %3161 = vmatpush.msra.mxu3 %v3073_v15  ;;  %v3320_v62 = vld [vmem:[#allocation7 + $0x4b0] sm:$0xff] }
 0xc8f   :  { %v3316_v15 = vld [vmem:[#allocation7 + $0x490] sm:$0xff] }
 0xc90   :  { %3185 = vmatpush.msrb.mxu0 %v2922_v8  ;;  %3162 = vmatpush.msra.mxu3 %v3071_v17  ;;  %v3353_v8 = vld [vmem:[#allocation7 + $0x5b8] sm:$0xff] }
 0xc91   :  { %v3349_v17 = vld [vmem:[#allocation7 + $0x598] sm:$0xff] }
 0xc92   :  { %3186 = vmatpush.msrb.mxu0 %v2920_v13  ;;  %3163 = vmatpush.msra.mxu3 %v3069_v3  ;;  %v3319_v13 = vld [vmem:[#allocation7 + $0x4a8] sm:$0xff]  ;;  %v3346_v3 = vld [vmem:[#allocation7 + $0x580] sm:$0xff] }
 0xc94   :  { %3187 = vmatpush.msrb.mxu0 %v2918_v25  ;;  %3164 = vmatpush.msra.mxu3 %v3067_v45  ;;  %v3348_v25 = vld [vmem:[#allocation7 + $0x590] sm:$0xff]  ;;  %v3347_v45 = vld [vmem:[#allocation7 + $0x588] sm:$0xff] }
 0xc96   :  { %3165 = vmatpush.msra.mxu3 %v3065_v61  ;;  %v3344_v61 = vld [vmem:[#allocation7 + $0x570] sm:$0xff] }
 0xc98   :  { %3166 = vmatpush.msra.mxu3 %v3063_v7  ;;  %v3345_v7 = vld [vmem:[#allocation7 + $0x578] sm:$0xff] }
 0xc9a   :  { %3167 = vmatpush.msra.mxu3 %v3061_v11  ;;  %v3342_v11 = vld [vmem:[#allocation7 + $0x560] sm:$0xff] }
 0xcd0   :  { %v7247_v32 = vpop.f32.mrf.mxu0 }
 0xcd1   :  { %3208 = vmatmul.f32.vlgmr.msra.gmra.mxu1 %v7247_v32 }
 0xcd2   :  { %3382 = vmatpush.msra.mxu1 %v3360_v33  ;;  %v3337_v33 = vld [vmem:[#allocation7 + $0x538] sm:$0xff] }
 0xcd4   :  { %3383 = vmatpush.msra.mxu1 %v3358_v34  ;;  %v3303_v34 = vld [vmem:[#allocation7 + $0x428] sm:$0xff] }
 0xcd6   :  { %3384 = vmatpush.msra.mxu1 %v3356_v43  ;;  %v3301_v43 = vld [vmem:[#allocation7 + $0x418] sm:$0xff] }
 0xcd8   :  { %v3024_v51 = vpop.f32.mrf.mxu0  ;;  %3385 = vmatpush.msra.mxu1 %v3354_v54  ;;  %v7290_v54 = vld [vmem:[%s8329_s14 + $0xe8] sm:$0xff] }
 0xcd9   :  { %3128 = vmatmul.f32.vlgmr.msra.gmra.mxu0 %v3024_v51  ;;  %5207 = vmatmul.msk.f32.vlgmr.msrb.gmra.mxu1 %vm2874_vm0, %v5205_v55 }
 0xcda   :  { %3272 = vmatpush.msra.mxu0 %v7237_v4  ;;  %v3324_v4 = vld [vmem:[#allocation7 + $0x4d0] sm:$0xff]  ;;  %3386 = vmatpush.msra.mxu1 %v3352_v63  ;;  %v7310_v63 = vld [vmem:[%s8329_s14 + $0x58] sm:$0xff] }
 0xcdc   :  { %v2895_v56 = vpop.f32.mrf.mxu3  ;;  %3387 = vmatpush.msra.mxu1 %v3350_v12  ;;  %v7344_v12 = vld [vmem:[%s8329_s14 + $0xd8] sm:$0xff] }
 0xcde   :  { %3388 = vmatpush.msra.mxu1 %v3348_v25  ;;  %v7370_v25 = vld [vmem:[%s8329_s14 + $0xc8] sm:$0xff] }
 0xce0   :  { %3389 = vmatpush.msra.mxu1 %v3346_v3  ;;  %v7396_v3 = vld [vmem:[%s8329_s14 + $0xb8] sm:$0xff] }
 0xce1   :  { %3188 = vmatmul.f32.vlgmr.msrb.gmra.mxu0 %v2895_v56 }
 0xce2   :  { %3362 = vmatpush.msrb.mxu0 %v3328_v19  ;;  %3390 = vmatpush.msra.mxu1 %v3344_v61  ;;  %v3305_v19 = vld [vmem:[#allocation7 + $0x438] sm:$0xff]  ;;  %v7422_v61 = vld [vmem:[%s8329_s14 + $0xa8] sm:$0xff] }
 0xce4   :  { %v3004_v23 = vpop.f32.mrf.mxu3  ;;  %3363 = vmatpush.msrb.mxu0 %v3326_v2  ;;  %3391 = vmatpush.msra.mxu1 %v3342_v11  ;;  %v3334_v2 = vld [vmem:[#allocation7 + $0x520] sm:$0xff]  ;;  %v7448_v11 = vld [vmem:[%s8329_s14 + $0x98] sm:$0xff] }
 0xce5   :  { %3108 = vmatmul.f32.vlgmr.msrb.gmra.mxu3 %v3004_v23  ;;  %3148 = vmatmul.f32.vlgmr.msra.gmra.mxu2 %v3004_v23  ;;  %v3304_v23 = vld [vmem:[#allocation7 + $0x430] sm:$0xff] }
 0xce6   :  { %3232 = vmatpush.msrb.mxu3 %v2981_v22  ;;  %3402 = vmatpush.msra.mxu2 %v3329_v16  ;;  %v3339_v22 = vld [vmem:[#allocation7 + $0x548] sm:$0xff]  ;;  %v3302_v16 = vld [vmem:[#allocation7 + $0x420] sm:$0xff] }
 0xce7   :  { %3364 = vmatpush.msrb.mxu0 %v3324_v4  ;;  %3392 = vmatpush.msra.mxu1 %v3340_v59  ;;  %v3332_v4 = vld [vmem:[#allocation7 + $0x510] sm:$0xff]  ;;  %v7464_v59 = vld [vmem:[%s8329_s14 + $0x88] sm:$0xff] }
 0xce8   :  { %3233 = vmatpush.msrb.mxu3 %v2979_v20  ;;  %3403 = vmatpush.msra.mxu2 %v3327_v42  ;;  %v3336_v20 = vld [vmem:[#allocation7 + $0x530] sm:$0xff] }
 0xce9   :  { %5206 = vmatmul.msk.f32.vlgmr.msra.gmra.mxu0 %vm2874_vm0, %v5205_v55  ;;  %v3306_v55 = vld [vmem:[#allocation7 + $0x440] sm:$0xff]  ;;  %v3300_v42 = vld [vmem:[#allocation7 + $0x410] sm:$0xff]  ;;  %vm4859_vm0 = vcmask 254976  }
 0xcea   :  { %3234 = vmatpush.msrb.mxu3 %v2977_v41  ;;  %3404 = vmatpush.msra.mxu2 %v3325_v46  ;;  %v3335_v41 = vld [vmem:[#allocation7 + $0x528] sm:$0xff]  ;;  %v3298_v46 = vld [vmem:[#allocation7 + $0x400] sm:$0xff] }
 0xceb   :  { %3365 = vmatpush.msrb.mxu0 %v3322_v53  ;;  %v7283_v53 = vld [vmem:[%s8329_s14 + $0xf0] sm:$0xff] }
 0xcec   :  { %3235 = vmatpush.msrb.mxu3 %v2975_v6  ;;  %3405 = vmatpush.msra.mxu2 %v3323_v57  ;;  %v3333_v6 = vld [vmem:[#allocation7 + $0x518] sm:$0xff]  ;;  %v7295_v57 = vld [vmem:[%s8329_s14 + $0x60] sm:$0xff] }
 0xced   :  { %3168 = vmatmul.f32.vlgmr.msra.gmra.mxu3 %v3024_v51  ;;  %3228 = vmatmul.f32.vlgmr.msrb.gmra.mxu2 %v2895_v56  ;;  %v3338_v51 = vld [vmem:[#allocation7 + $0x540] sm:$0xff]  ;;  %v3307_v56 = vld [vmem:[#allocation7 + $0x448] sm:$0xff] }
 0xcee   :  { %3236 = vmatpush.msrb.mxu3 %v2973_v58  ;;  %3366 = vmatpush.msrb.mxu0 %v3320_v62  ;;  %v3330_v58 = vld [vmem:[#allocation7 + $0x500] sm:$0xff] }
 0xcef   :  { %3406 = vmatpush.msra.mxu2 %v3321_v5  ;;  %3393 = vmatpush.msra.mxu1 %v3338_v51  ;;  %v7304_v62 = vld [vmem:[%s8329_s14 + $0xe0] sm:$0xff]  ;;  %v7318_v5 = vld [vmem:[%s8329_s14 + $0x50] sm:$0xff] }
 0xcf0   :  { %3237 = vmatpush.msrb.mxu3 %v2971_v36  ;;  %3367 = vmatpush.msrb.mxu0 %v3318_v9  ;;  %v3299_v36 = vld [vmem:[#allocation7 + $0x408] sm:$0xff]  ;;  %v7339_v9 = vld [vmem:[%s8329_s14 + $0x40] sm:$0xff] }
 0xcf1   :  { %3407 = vmatpush.msra.mxu2 %v3319_v13  ;;  %3394 = vmatpush.msra.mxu1 %v3336_v20  ;;  %v7351_v13 = vld [vmem:[%s8329_s14 + $0x38] sm:$0xff] }
 0xcf2   :  { %3238 = vmatpush.msrb.mxu3 %v2969_v38  ;;  %3368 = vmatpush.msrb.mxu0 %v3316_v15  ;;  %v3331_v38 = vld [vmem:[#allocation7 + $0x508] sm:$0xff]  ;;  %v7365_v15 = vld [vmem:[%s8329_s14 + $0x30] sm:$0xff] }
 0xcf3   :  { %3408 = vmatpush.msra.mxu2 %v3317_v31  ;;  %3395 = vmatpush.msra.mxu1 %v3334_v2  ;;  %v7377_v31 = vld [vmem:[%s8329_s14 + $0x28] sm:$0xff] }
 0xcf4   :  { %3239 = vmatpush.msrb.mxu3 %v2967_v0  ;;  %3369 = vmatpush.msrb.mxu0 %v3314_v48  ;;  %v7391_v48 = vld [vmem:[%s8329_s14 + $0x20] sm:$0xff] }
 0xcf5   :  { %3409 = vmatpush.msra.mxu2 %v3315_v1  ;;  %3396 = vmatpush.msra.mxu1 %v3332_v4  ;;  %v7403_v1 = vld [vmem:[%s8329_s14 + $0x18] sm:$0xff] }
 0xcf6   :  { %3240 = vmatpush.msrb.mxu3 %v2965_v24  ;;  %3370 = vmatpush.msrb.mxu0 %v3312_v37  ;;  %v7417_v37 = vld [vmem:[%s8329_s14 + $0x10] sm:$0xff] }
 0xcf7   :  { %3410 = vmatpush.msra.mxu2 %v3313_v39  ;;  %3397 = vmatpush.msra.mxu1 %v3330_v58  ;;  %v7429_v39 = vld [vmem:[%s8329_s14 + $0x8] sm:$0xff] }
 0xcf8   :  { %3241 = vmatpush.msrb.mxu3 %v2963_v26  ;;  %3371 = vmatpush.msrb.mxu0 %v3310_v10  ;;  %v7443_v10 = vld [vmem:[%s8329_s14] sm:$0xff] }
 0xcf9   :  { %3411 = vmatpush.msra.mxu2 %v3311_v18  ;;  %v7455_v18 = vld [vmem:[%s8329_s14 + $0x90] sm:$0xff] }
 0xcfa   :  { %3242 = vmatpush.msrb.mxu3 %v2961_v27  ;;  %3372 = vmatpush.msrb.mxu0 %v3308_v30 }
 0xcfb   :  { %3412 = vmatpush.msra.mxu2 %v3309_v44  ;;  %v7470_v44 = vld [vmem:[%s8329_s14 + $0x80] sm:$0xff] }
 0xcfc   :  { %3243 = vmatpush.msrb.mxu3 %v2959_v28  ;;  %3373 = vmatpush.msrb.mxu0 %v3306_v55 }
 0xcfd   :  { %3413 = vmatpush.msra.mxu2 %v3307_v56 }
 0xcfe   :  { %3244 = vmatpush.msrb.mxu3 %v2957_v47  ;;  %3374 = vmatpush.msrb.mxu0 %v3304_v23 }
 0xcff   :  { %3414 = vmatpush.msra.mxu2 %v3305_v19 }
 0xd00   :  { %3245 = vmatpush.msrb.mxu3 %v2955_v29  ;;  %3375 = vmatpush.msrb.mxu0 %v3302_v16 }
 0xd01   :  { %3415 = vmatpush.msra.mxu2 %v3303_v34 }
 0xd02   :  { %3246 = vmatpush.msrb.mxu3 %v2953_v50  ;;  %3376 = vmatpush.msrb.mxu0 %v3300_v42  ;;  %v7260_v50 = vld [vmem:[%s8329_s14 + $0x78] sm:$0xff] }
 0xd03   :  { %3416 = vmatpush.msra.mxu2 %v3301_v43 }
 0xd04   :  { %3247 = vmatpush.msrb.mxu3 %v2951_v35  ;;  %3377 = vmatpush.msrb.mxu0 %v3298_v46  ;;  %v7265_v35 = vld [vmem:[%s8329_s14 + $0x70] sm:$0xff] }
 0xd05   :  { %3248 = vmatmul.f32.vlgmr.msrb.gmra.mxu3 %v7247_v32  ;;  %v3341_v32 = vld [vmem:[#allocation7 + $0x558] sm:$0xff]  ;;  %3417 = vmatpush.msra.mxu2 %v3299_v36 }
 0xd06   :  { %3422 = vmatpush.msra.mxu3 %v3361_v40  ;;  %3491 = vmatpush.msra.mxu0 %v7260_v50  ;;  %v7271_v40 = vld [vmem:[%s8329_s14 + $0xf8] sm:$0xff] }
 0xd07   :  { %3539 = vmatpush.xpose.msrb.mxu2 %v7260_v50  ;;  %3511 = vmatpush.msrb.mxu1 %v7271_v40 }
 0xd08   :  { %3423 = vmatpush.msra.mxu3 %v3359_v49  ;;  %3492 = vmatpush.msra.mxu0 %v7265_v35 }
 0xd09   :  { %3512 = vmatpush.msrb.mxu1 %v7283_v53 }
 0xd0a   :  { %3424 = vmatpush.msra.mxu3 %v3357_v52  ;;  %v7277_v52 = vld [vmem:[%s8329_s14 + $0x68] sm:$0xff] }
 0xd0b   :  { %3493 = vmatpush.msra.mxu0 %v7277_v52  ;;  %3540 = vmatpush.xpose.msrb.mxu2 %v7265_v35 }
 0xd0c   :  { %3425 = vmatpush.msra.mxu3 %v3355_v60  ;;  %3513 = vmatpush.msrb.mxu1 %v7290_v54 }
 0xd0d   :  { %3494 = vmatpush.msra.mxu0 %v7295_v57 }
 0xd0e   :  { %3426 = vmatpush.msra.mxu3 %v3353_v8  ;;  %3514 = vmatpush.msrb.mxu1 %v7304_v62  ;;  %v7326_v8 = vld [vmem:[%s8329_s14 + $0x48] sm:$0xff] }
 0xd0f   :  { %3495 = vmatpush.msra.mxu0 %v7310_v63  ;;  %3541 = vmatpush.xpose.msrb.mxu2 %v7277_v52 }
 0xd10   :  { %3427 = vmatpush.msra.mxu3 %v3351_v14  ;;  %3515 = vmatpush.msrb.mxu1 %v7344_v12  ;;  %v7356_v14 = vld [vmem:[%s8329_s14 + $0xd0] sm:$0xff] }
 0xd11   :  { %3496 = vmatpush.msra.mxu0 %v7318_v5 }
 0xd12   :  { %3428 = vmatpush.msra.mxu3 %v3349_v17  ;;  %3516 = vmatpush.msrb.mxu1 %v7356_v14  ;;  %v7382_v17 = vld [vmem:[%s8329_s14 + $0xc0] sm:$0xff] }
 0xd13   :  { %3497 = vmatpush.msra.mxu0 %v7326_v8  ;;  %3542 = vmatpush.xpose.msrb.mxu2 %v7295_v57 }
 0xd14   :  { %3429 = vmatpush.msra.mxu3 %v3347_v45  ;;  %3517 = vmatpush.msrb.mxu1 %v7370_v25  ;;  %v7408_v45 = vld [vmem:[%s8329_s14 + $0xb0] sm:$0xff] }
 0xd15   :  { %3498 = vmatpush.msra.mxu0 %v7339_v9 }
 0xd16   :  { %3430 = vmatpush.msra.mxu3 %v3345_v7  ;;  %3518 = vmatpush.msrb.mxu1 %v7382_v17  ;;  %v7434_v7 = vld [vmem:[%s8329_s14 + $0xa0] sm:$0xff] }
 0xd17   :  { %3543 = vmatpush.xpose.msrb.mxu2 %v7310_v63  ;;  %3499 = vmatpush.msra.mxu0 %v7351_v13 }
 0xd18   :  { %3431 = vmatpush.msra.mxu3 %v3343_v21  ;;  %3519 = vmatpush.msrb.mxu1 %v7396_v3 }
 0xd19   :  { %3500 = vmatpush.msra.mxu0 %v7365_v15 }
 0xd1a   :  { %3432 = vmatpush.msra.mxu3 %v3341_v32  ;;  %3520 = vmatpush.msrb.mxu1 %v7408_v45 }
 0xd1b   :  { %3544 = vmatpush.xpose.msrb.mxu2 %v7318_v5  ;;  %3501 = vmatpush.msra.mxu0 %v7377_v31 }
 0xd1c   :  { %3433 = vmatpush.msra.mxu3 %v3339_v22  ;;  %3521 = vmatpush.msrb.mxu1 %v7422_v61 }
 0xd1d   :  { %3502 = vmatpush.msra.mxu0 %v7391_v48 }
 0xd1e   :  { %3434 = vmatpush.msra.mxu3 %v3337_v33  ;;  %3522 = vmatpush.msrb.mxu1 %v7434_v7 }
 0xd1f   :  { %3545 = vmatpush.xpose.msrb.mxu2 %v7326_v8  ;;  %3503 = vmatpush.msra.mxu0 %v7403_v1 }
 0xd20   :  { %3435 = vmatpush.msra.mxu3 %v3335_v41  ;;  %3523 = vmatpush.msrb.mxu1 %v7448_v11 }
 0xd21   :  { %3504 = vmatpush.msra.mxu0 %v7417_v37 }
 0xd22   :  { %3436 = vmatpush.msra.mxu3 %v3333_v6  ;;  %3524 = vmatpush.msrb.mxu1 %v7455_v18 }
 0xd23   :  { %3546 = vmatpush.xpose.msrb.mxu2 %v7339_v9  ;;  %3505 = vmatpush.msra.mxu0 %v7429_v39 }
 0xd24   :  { %3437 = vmatpush.msra.mxu3 %v3331_v38  ;;  %3525 = vmatpush.msrb.mxu1 %v7464_v59 }
 0xd25   :  { %3506 = vmatpush.msra.mxu0 %v7443_v10 }
 0xd26   :  { %3559 = vmatpush.xpose.msrb.mxu3 %v7271_v40  ;;  %3526 = vmatpush.msrb.mxu1 %v7470_v44 }
 0xd27   :  { %3547 = vmatpush.xpose.msrb.mxu2 %v7351_v13 }
 0xd2a   :  { %3560 = vmatpush.xpose.msrb.mxu3 %v7283_v53 }
 0xd2b   :  { %3548 = vmatpush.xpose.msrb.mxu2 %v7365_v15 }
 0xd2e   :  { %3561 = vmatpush.xpose.msrb.mxu3 %v7290_v54 }
 0xd2f   :  { %3549 = vmatpush.xpose.msrb.mxu2 %v7377_v31 }
 0xd32   :  { %3562 = vmatpush.xpose.msrb.mxu3 %v7304_v62 }
 0xd33   :  { %3550 = vmatpush.xpose.msrb.mxu2 %v7391_v48 }
 0xd36   :  { %3563 = vmatpush.xpose.msrb.mxu3 %v7344_v12 }
 0xd37   :  { %3551 = vmatpush.xpose.msrb.mxu2 %v7403_v1 }
 0xd3a   :  { %3564 = vmatpush.xpose.msrb.mxu3 %v7356_v14 }
 0xd3b   :  { %3552 = vmatpush.xpose.msrb.mxu2 %v7417_v37 }
 0xd3e   :  { %3565 = vmatpush.xpose.msrb.mxu3 %v7370_v25 }
 0xd3f   :  { %3553 = vmatpush.xpose.msrb.mxu2 %v7429_v39 }
 0xd42   :  { %3566 = vmatpush.xpose.msrb.mxu3 %v7382_v17 }
 0xd43   :  { %3554 = vmatpush.xpose.msrb.mxu2 %v7443_v10 }
 0xd46   :  { %3567 = vmatpush.xpose.msrb.mxu3 %v7396_v3 }
 0xd4a   :  { %3568 = vmatpush.xpose.msrb.mxu3 %v7408_v45 }
 0xd4e   :  { %v3209_v0 = vpop.f32.mrf.mxu1  ;;  %3569 = vmatpush.xpose.msrb.mxu3 %v7422_v61 }
 0xd52   :  { %3570 = vmatpush.xpose.msrb.mxu3 %v7434_v7 }
 0xd56   :  { %v3129_v24 = vpop.f32.mrf.mxu0  ;;  %v3294_v26 = vpop.f32.mrf.mxu1  ;;  %3571 = vmatpush.xpose.msrb.mxu3 %v7448_v11 }
 0xd57   :  { %3398 = vmatmul.f32.vlgmr.msra.gmra.mxu1 %v3294_v26  ;;  %3438 = vmatmul.f32.vlgmr.msra.gmra.mxu3 %v3294_v26 }
 0xd58   :  { %3619 = vmatpush.msra.mxu1 %v7271_v40 }
 0xd5a   :  { %3620 = vmatpush.msra.mxu1 %v7283_v53  ;;  %3572 = vmatpush.xpose.msrb.mxu3 %v7455_v18 }
 0xd5c   :  { %3621 = vmatpush.msra.mxu1 %v7290_v54 }
 0xd5e   :  { %v3189_v27 = vpop.f32.mrf.mxu0  ;;  %3622 = vmatpush.msra.mxu1 %v7304_v62  ;;  %3573 = vmatpush.xpose.msrb.mxu3 %v7464_v59 }
 0xd60   :  { %3623 = vmatpush.msra.mxu1 %v7344_v12 }
 0xd62   :  { %3624 = vmatpush.msra.mxu1 %v7356_v14  ;;  %3574 = vmatpush.xpose.msrb.mxu3 %v7470_v44 }
 0xd64   :  { %3625 = vmatpush.msra.mxu1 %v7370_v25 }
 0xd66   :  { %v3274_v28 = vpop.f32.mrf.mxu0  ;;  %3626 = vmatpush.msra.mxu1 %v7382_v17 }
 0xd67   :  { %3378 = vmatmul.f32.vlgmr.msrb.gmra.mxu0 %v3274_v28  ;;  %3418 = vmatmul.f32.vlgmr.msra.gmra.mxu2 %v3274_v28 }
 0xd68   :  { %v3109_v47 = vpop.f32.mrf.mxu3  ;;  %v3149_v21 = vpop.f32.mrf.mxu2  ;;  %3599 = vmatpush.msrb.mxu0 %v7260_v50  ;;  %3627 = vmatpush.msra.mxu1 %v7396_v3 }
 0xd69   :  { %v3130_v29 = vadd.f32 %v3129_v24, %v3109_v47 }
 0xd6a   :  { %3600 = vmatpush.msrb.mxu0 %v7265_v35  ;;  %3628 = vmatpush.msra.mxu1 %v7408_v45 }
 0xd6b   :  { %v3190_v49 = vadd.f32 %v3189_v27, %v3130_v29  ;;  %v5398_v29 = vmov 8.0  }
 0xd6c   :  { %3601 = vmatpush.msrb.mxu0 %v7277_v52  ;;  %3629 = vmatpush.msra.mxu1 %v7422_v61  ;;  %5251 = vrcp.f32 %v5398_v29  ;;  %v3907_v29 = vld [vmem:[#allocation8 + $0x388] sm:$0xff] }
 0xd6d   :  { %v7298_v60 = vadd.f32 %v3209_v0, %v3190_v49 }
 0xd6e   :  { %3602 = vmatpush.msrb.mxu0 %v7295_v57  ;;  %3630 = vmatpush.msra.mxu1 %v7434_v7 }
 0xd70   :  { %v3169_v30 = vpop.f32.mrf.mxu3  ;;  %3603 = vmatpush.msrb.mxu0 %v7310_v63  ;;  %v3229_v55 = vpop.f32.mrf.mxu2  ;;  %3631 = vmatpush.msra.mxu1 %v7448_v11 }
 0xd71   :  { %v3170_v22 = vadd.f32 %v3169_v30, %v3149_v21 }
 0xd72   :  { %3604 = vmatpush.msrb.mxu0 %v7318_v5  ;;  %3632 = vmatpush.msra.mxu1 %v7455_v18 }
 0xd73   :  { %v3230_v33 = vadd.f32 %v3229_v55, %v3170_v22 }
 0xd74   :  { %3605 = vmatpush.msrb.mxu0 %v7326_v8  ;;  %3633 = vmatpush.msra.mxu1 %v7464_v59 }
 0xd76   :  { %3606 = vmatpush.msrb.mxu0 %v7339_v9  ;;  %3634 = vmatpush.msra.mxu1 %v7470_v44 }
 0xd78   :  { %3607 = vmatpush.msrb.mxu0 %v7351_v13 }
 0xd7a   :  { %3608 = vmatpush.msrb.mxu0 %v7365_v15 }
 0xd7c   :  { %3609 = vmatpush.msrb.mxu0 %v7377_v31 }
 0xd7e   :  { %3610 = vmatpush.msrb.mxu0 %v7391_v48 }
 0xd80   :  { %3611 = vmatpush.msrb.mxu0 %v7403_v1 }
 0xd82   :  { %3612 = vmatpush.msrb.mxu0 %v7417_v37 }
 0xd84   :  { %3613 = vmatpush.msrb.mxu0 %v7429_v39 }
 0xd86   :  { %3614 = vmatpush.msrb.mxu0 %v7443_v10 }
 0xd88   :  { %v3249_v32 = vpop.f32.mrf.mxu3 }
 0xd89   :  { %v3250_v41 = vadd.f32 %v3249_v32, %v3230_v33  ;;  %v3889_v33 = vld [vmem:[#allocation8 + $0x2f8] sm:$0xff] }
 0xdd4   :  { %v3399_v51 = vpop.f32.mrf.mxu1 }
 0xdda   :  { %v3439_v19 = vpop.f32.mrf.mxu3 }
 0xde4   :  { %v3379_v56 = vpop.f32.mrf.mxu0 }
 0xde5   :  { %v3400_v23 = vadd.f32 %v3399_v51, %v3379_v56 }
 0xde7   :  { %v7492_v20 = vadd.f32 %v3400_v23, %v7298_v60 }
 0xde9   :  { %v3477_v16 = vsel %vm3476_vm1, %v7492_v20, 0.0 }
 0xdea   :  { %v3478_v2 = vrot.slane %v3477_v16, 4  ;;  %v3419_v34 = vpop.f32.mrf.mxu2 }
 0xdeb   :  { %v3440_v42 = vadd.f32 %v3439_v19, %v3419_v34  ;;  %v3919_v34 = vld [vmem:[#allocation8 + $0x3e8] sm:$0xff] }
 0xdec   :  { %v3479_v4 = vadd.f32 %v3478_v2, %v3477_v16  ;;  %v3921_v16 = vld [vmem:[#allocation8 + $0x3f8] sm:$0xff]  ;;  %v3887_v2 = vld [vmem:[#allocation8 + $0x2e8] sm:$0xff] }
 0xded   :  { %v7505_v43 = vadd.f32 %v3440_v42, %v3250_v41  ;;  %v3885_v41 = vld [vmem:[#allocation8 + $0x2d8] sm:$0xff] }
 0xdee   :  { %v3480_v6 = vrot.slane %v3479_v4, 2  ;;  %v3917_v42 = vld [vmem:[#allocation8 + $0x3d8] sm:$0xff] }
 0xdef   :  { %v3484_v46 = vsel %vm3476_vm1, %v7505_v43, 0.0 }
 0xdf0   :  { %v3481_v58 = vadd.f32 %v3480_v6, %v3479_v4  ;;  %v3485_v36 = vrot.slane %v3484_v46, 4  ;;  %v3883_v4 = vld [vmem:[#allocation8 + $0x2c8] sm:$0xff]  ;;  %v3881_v6 = vld [vmem:[#allocation8 + $0x2b8] sm:$0xff] }
 0xdf2   :  { %v3482_v38 = vrot.slane %v3481_v58, 1  ;;  %v3486_v0 = vadd.f32 %v3485_v36, %v3484_v46  ;;  %v3913_v46 = vld [vmem:[#allocation8 + $0x3b8] sm:$0xff]  ;;  %v3911_v36 = vld [vmem:[#allocation8 + $0x3a8] sm:$0xff] }
 0xdf4   :  { %v3483_v24 = vadd.f32 %v3482_v38, %v3481_v58  ;;  %v3487_v26 = vrot.slane %v3486_v0, 2  ;;  %v3879_v58 = vld [vmem:[#allocation8 + $0x2a8] sm:$0xff]  ;;  %v3877_v38 = vld [vmem:[#allocation8 + $0x298] sm:$0xff] }
 0xdf6   :  { %v3488_v27 = vadd.f32 %v3487_v26, %v3486_v0  ;;  %3507 = vmatmul.f32.vlgmr.msra.gmra.mxu0 %v3483_v24  ;;  %v3909_v0 = vld [vmem:[#allocation8 + $0x398] sm:$0xff] }
 0xdf7   :  { %3651 = vmatpush.xpose.msra.mxu0 %v7260_v50  ;;  %v5252_v50 = vpop.eup %5251 }
 0xdf8   :  { %v3489_v28 = vrot.slane %v3488_v27, 1  ;;  %vm3536_vm2 = vweird.f32 %v5252_v50 }
 0xdfa   :  { %v3490_v47 = vadd.f32 %v3489_v28, %v3488_v27 }
 0xdfb   :  { %3652 = vmatpush.xpose.msra.mxu0 %v7265_v35  ;;  %v3532_v35 = vmul.f32 8.0, %v5252_v50 }
 0xdfc   :  { %3527 = vmatmul.f32.vlgmr.msrb.gmra.mxu1 %v3490_v47  ;;  %v3875_v47 = vld [vmem:[#allocation8 + $0x288] sm:$0xff] }
 0xdfd   :  { %3671 = vmatpush.xpose.msrb.mxu1 %v7271_v40  ;;  %v3533_v40 = vsub.f32 1.0, %v3532_v35 }
 0xdff   :  { %3653 = vmatpush.xpose.msra.mxu0 %v7277_v52  ;;  %v3534_v49 = vmul.f32 %v5252_v50, %v3533_v40  ;;  %v3873_v40 = vld [vmem:[#allocation8 + $0x278] sm:$0xff] }
 0xe01   :  { %3672 = vmatpush.xpose.msrb.mxu1 %v7283_v53  ;;  %v3535_v52 = vadd.f32 %v5252_v50, %v3534_v49  ;;  %v3905_v49 = vld [vmem:[#allocation8 + $0x378] sm:$0xff] }
 0xe03   :  { %3654 = vmatpush.xpose.msra.mxu0 %v7295_v57  ;;  %v3537_v57 = vsel %vm3536_vm2, %v5252_v50, %v3535_v52  ;;  %v3697_v52 = vld [vmem:[%s8320_s5] sm:$0x3] }
 0xe05   :  { %3673 = vmatpush.xpose.msrb.mxu1 %v7290_v54 }
 0xe07   :  { %3655 = vmatpush.xpose.msra.mxu0 %v7310_v63 }
 0xe09   :  { %3674 = vmatpush.xpose.msrb.mxu1 %v7304_v62 }
 0xe0b   :  { %3656 = vmatpush.xpose.msra.mxu0 %v7318_v5 }
 0xe0d   :  { %3675 = vmatpush.xpose.msrb.mxu1 %v7344_v12 }
 0xe0f   :  { %3657 = vmatpush.xpose.msra.mxu0 %v7326_v8 }
 0xe11   :  { %3676 = vmatpush.xpose.msrb.mxu1 %v7356_v14 }
 0xe13   :  { %3658 = vmatpush.xpose.msra.mxu0 %v7339_v9 }
 0xe15   :  { %3677 = vmatpush.xpose.msrb.mxu1 %v7370_v25 }
 0xe17   :  { %3659 = vmatpush.xpose.msra.mxu0 %v7351_v13 }
 0xe19   :  { %3678 = vmatpush.xpose.msrb.mxu1 %v7382_v17 }
 0xe1b   :  { %3660 = vmatpush.xpose.msra.mxu0 %v7365_v15 }
 0xe1d   :  { %3679 = vmatpush.xpose.msrb.mxu1 %v7396_v3 }
 0xe1f   :  { %3661 = vmatpush.xpose.msra.mxu0 %v7377_v31 }
 0xe21   :  { %3680 = vmatpush.xpose.msrb.mxu1 %v7408_v45 }
 0xe23   :  { %3662 = vmatpush.xpose.msra.mxu0 %v7391_v48 }
 0xe25   :  { %3681 = vmatpush.xpose.msrb.mxu1 %v7422_v61 }
 0xe27   :  { %3663 = vmatpush.xpose.msra.mxu0 %v7403_v1 }
 0xe29   :  { %3682 = vmatpush.xpose.msrb.mxu1 %v7434_v7 }
 0xe2b   :  { %3664 = vmatpush.xpose.msra.mxu0 %v7417_v37 }
 0xe2d   :  { %3683 = vmatpush.xpose.msrb.mxu1 %v7448_v11 }
 0xe2f   :  { %3665 = vmatpush.xpose.msra.mxu0 %v7429_v39 }
 0xe31   :  { %3684 = vmatpush.xpose.msrb.mxu1 %v7455_v18 }
 0xe33   :  { %3666 = vmatpush.xpose.msra.mxu0 %v7443_v10 }
 0xe35   :  { %3685 = vmatpush.xpose.msrb.mxu1 %v7464_v59 }
 0xe39   :  { %3686 = vmatpush.xpose.msrb.mxu1 %v7470_v44 }
 0xe73   :  { %v3508_v53 = vpop.f32.mrf.mxu0 }
 0xe79   :  { %v3528_v54 = vpop.f32.mrf.mxu1 }
 0xe7a   :  { %v3529_v60 = vadd.f32 %v3528_v54, %v3508_v53 }
 0xe7c   :  { %v3538_v62 = vmul.f32 %v3537_v57, %v3529_v60  ;;  %v3903_v60 = vld [vmem:[#allocation8 + $0x368] sm:$0xff] }
 0xe7e   :  { %3555 = vmatmul.f32.vlgmr.msrb.gmra.mxu2 %v3538_v62  ;;  %3575 = vmatmul.f32.vlgmr.msrb.gmra.mxu3 %v3538_v62  ;;  %v3888_v62 = vld [vmem:[#allocation8 + $0x2f0] sm:$0xff] }
 0xf01   :  { %v3556_v63 = vpop.f32.mrf.mxu2  ;;  %v3576_v5 = vpop.f32.mrf.mxu3 }
 0xf02   :  { %v3579_v8 = vperm.slane %v3556_v63, 0  ;;  %v3580_v9 = vperm.slane %v3576_v5, 0  ;;  %v3920_v63 = vld [vmem:[#allocation8 + $0x3f0] sm:$0xff]  ;;  %v3869_v5 = vld [vmem:[#allocation8 + $0x258] sm:$0xff] }
 0xf04   :  { %v7557_v12 = vsub.f32 %v7492_v20, %v3579_v8  ;;  %v7560_v13 = vsub.f32 %v7505_v43, %v3580_v9  ;;  %v3915_v43 = vld [vmem:[#allocation8 + $0x3c8] sm:$0xff]  ;;  %v3901_v8 = vld [vmem:[#allocation8 + $0x358] sm:$0xff]  ;;  %v3886_v9 = vld [vmem:[#allocation8 + $0x2e0] sm:$0xff] }
 0xf06   :  { %v3583_v14 = vmul.f32 %v7557_v12, %v7557_v12  ;;  %v3584_v15 = vmul.f32 %v7560_v13, %v7560_v13 }
 0xf08   :  { %v3585_v25 = vsel %vm3476_vm1, %v3583_v14, 0.0  ;;  %v3592_v31 = vsel %vm3476_vm1, %v3584_v15, 0.0  ;;  %v3899_v14 = vld [vmem:[#allocation8 + $0x348] sm:$0xff]  ;;  %v3884_v15 = vld [vmem:[#allocation8 + $0x2d0] sm:$0xff] }
 0xf09   :  { %v3586_v17 = vrot.slane %v3585_v25, 4  ;;  %v3593_v48 = vrot.slane %v3592_v31, 4 }
 0xf0b   :  { %v3587_v3 = vadd.f32 %v3586_v17, %v3585_v25  ;;  %v3594_v1 = vadd.f32 %v3593_v48, %v3592_v31  ;;  %v3916_v25 = vld [vmem:[#allocation8 + $0x3d0] sm:$0xff]  ;;  %v3865_v31 = vld [vmem:[#allocation8 + $0x238] sm:$0xff]  ;;  %v5212_v48 = vld [vmem:[%s8320_s5 + $0x2] sm:$0x3] }
 0xf0c   :  { %v3897_v17 = vld [vmem:[#allocation8 + $0x338] sm:$0xff] }
 0xf0d   :  { %v3588_v45 = vrot.slane %v3587_v3, 2  ;;  %v3595_v37 = vrot.slane %v3594_v1, 2 }
 0xf0f   :  { %v3589_v61 = vadd.f32 %v3588_v45, %v3587_v3  ;;  %v3596_v39 = vadd.f32 %v3595_v37, %v3594_v1  ;;  %v3882_v3 = vld [vmem:[#allocation8 + $0x2c0] sm:$0xff]  ;;  %v3863_v45 = vld [vmem:[#allocation8 + $0x228] sm:$0xff] }
 0xf10   :  { %v3914_v1 = vld [vmem:[#allocation8 + $0x3c0] sm:$0xff]  ;;  %v3895_v37 = vld [vmem:[#allocation8 + $0x328] sm:$0xff] }
 0xf11   :  { %v3590_v7 = vrot.slane %v3589_v61, 1  ;;  %v3597_v10 = vrot.slane %v3596_v39, 1 }
 0xf13   :  { %v3591_v11 = vadd.f32 %v3590_v7, %v3589_v61  ;;  %v3598_v18 = vadd.f32 %v3597_v10, %v3596_v39  ;;  %v3880_v61 = vld [vmem:[#allocation8 + $0x2b0] sm:$0xff]  ;;  %v3861_v7 = vld [vmem:[#allocation8 + $0x218] sm:$0xff] }
 0xf14   :  { %v3912_v39 = vld [vmem:[#allocation8 + $0x3b0] sm:$0xff]  ;;  %v3893_v10 = vld [vmem:[#allocation8 + $0x318] sm:$0xff] }
 0xf15   :  { %3615 = vmatmul.f32.vlgmr.msrb.gmra.mxu0 %v3591_v11  ;;  %3635 = vmatmul.f32.vlgmr.msra.gmra.mxu1 %v3598_v18  ;;  %v3878_v11 = vld [vmem:[#allocation8 + $0x2a0] sm:$0xff] }
 0xf16   :  { %3962 = vmatpush.msrb.mxu0 %v3889_v33  ;;  %3982 = vmatpush.msra.mxu1 %v3921_v16  ;;  %v3910_v18 = vld [vmem:[#allocation8 + $0x3a0] sm:$0xff]  ;;  %v3775_v33 = vld [vmem:[#allocation8 + $0xd8] sm:$0xff] }
 0xf17   :  { %v3807_v16 = vld [vmem:[#allocation8 + $0x1d8] sm:$0xff] }
 0xf18   :  { %3963 = vmatpush.msrb.mxu0 %v3887_v2  ;;  %3983 = vmatpush.msra.mxu1 %v3919_v34  ;;  %v3870_v2 = vld [vmem:[#allocation8 + $0x260] sm:$0xff] }
 0xf19   :  { %v3902_v34 = vld [vmem:[#allocation8 + $0x360] sm:$0xff] }
 0xf1a   :  { %3964 = vmatpush.msrb.mxu0 %v3885_v41  ;;  %3984 = vmatpush.msra.mxu1 %v3917_v42  ;;  %v3773_v41 = vld [vmem:[#allocation8 + $0xc8] sm:$0xff] }
 0xf1b   :  { %v3805_v42 = vld [vmem:[#allocation8 + $0x1c8] sm:$0xff] }
 0xf1c   :  { %3965 = vmatpush.msrb.mxu0 %v3883_v4  ;;  %3985 = vmatpush.msra.mxu1 %v3915_v43  ;;  %v3868_v4 = vld [vmem:[#allocation8 + $0x250] sm:$0xff] }
 0xf1d   :  { %v3900_v43 = vld [vmem:[#allocation8 + $0x350] sm:$0xff] }
 0xf1e   :  { %3966 = vmatpush.msrb.mxu0 %v3881_v6  ;;  %3986 = vmatpush.msra.mxu1 %v3913_v46  ;;  %v3771_v6 = vld [vmem:[#allocation8 + $0xb8] sm:$0xff] }
 0xf1f   :  { %v3803_v46 = vld [vmem:[#allocation8 + $0x1b8] sm:$0xff] }
 0xf20   :  { %3967 = vmatpush.msrb.mxu0 %v3879_v58  ;;  %3987 = vmatpush.msra.mxu1 %v3911_v36  ;;  %v3866_v58 = vld [vmem:[#allocation8 + $0x240] sm:$0xff] }
 0xf21   :  { %v3898_v36 = vld [vmem:[#allocation8 + $0x340] sm:$0xff] }
 0xf22   :  { %3968 = vmatpush.msrb.mxu0 %v3877_v38  ;;  %3988 = vmatpush.msra.mxu1 %v3909_v0  ;;  %v3769_v38 = vld [vmem:[#allocation8 + $0xa8] sm:$0xff] }
 0xf23   :  { %v3801_v0 = vld [vmem:[#allocation8 + $0x1a8] sm:$0xff] }
 0xf24   :  { %3969 = vmatpush.msrb.mxu0 %v3875_v47  ;;  %3989 = vmatpush.msra.mxu1 %v3907_v29  ;;  %v3862_v47 = vld [vmem:[#allocation8 + $0x220] sm:$0xff] }
 0xf25   :  { %v3894_v29 = vld [vmem:[#allocation8 + $0x320] sm:$0xff] }
 0xf26   :  { %3970 = vmatpush.msrb.mxu0 %v3873_v40  ;;  %3990 = vmatpush.msra.mxu1 %v3905_v49  ;;  %v3858_v40 = vld [vmem:[#allocation8 + $0x200] sm:$0xff] }
 0xf27   :  { %v3890_v49 = vld [vmem:[#allocation8 + $0x300] sm:$0xff] }
 0xf28   :  { %3991 = vmatpush.msra.mxu1 %v3903_v60  ;;  %v3776_v60 = vld [vmem:[#allocation8 + $0xe0] sm:$0xff] }
 0xf2a   :  { %3992 = vmatpush.msra.mxu1 %v3901_v8  ;;  %v3772_v8 = vld [vmem:[#allocation8 + $0xc0] sm:$0xff] }
 0xf2c   :  { %3993 = vmatpush.msra.mxu1 %v3899_v14  ;;  %v3768_v14 = vld [vmem:[#allocation8 + $0xa0] sm:$0xff] }
 0xf2e   :  { %3994 = vmatpush.msra.mxu1 %v3897_v17  ;;  %v3764_v17 = vld [vmem:[#allocation8 + $0x80] sm:$0xff] }
 0xf30   :  { %3995 = vmatpush.msra.mxu1 %v3895_v37  ;;  %v3792_v37 = vld [vmem:[#allocation8 + $0x160] sm:$0xff] }
 0xf32   :  { %3996 = vmatpush.msra.mxu1 %v3893_v10  ;;  %v3788_v10 = vld [vmem:[#allocation8 + $0x140] sm:$0xff] }
 0xf92   :  { %v3616_v21 = vpop.f32.mrf.mxu0  ;;  %v3636_v30 = vpop.f32.mrf.mxu1 }
 0xf93   :  { %v3637_v59 = vadd.f32 %v3636_v30, %v3616_v21  ;;  %v3859_v21 = vld [vmem:[#allocation8 + $0x208] sm:$0xff] }
 0xf94   :  { %v3891_v30 = vld [vmem:[#allocation8 + $0x308] sm:$0xff] }
 0xf95   :  { %v3639_v44 = vmul.f32 %v3637_v59, %v3537_v57  ;;  %v3871_v57 = vld [vmem:[#allocation8 + $0x268] sm:$0xff]  ;;  %v3876_v59 = vld [vmem:[#allocation8 + $0x290] sm:$0xff]  ;;  %3997 = vmatpush.msra.mxu1 %v3891_v30 }
 0xf96   :  { %3971 = vmatpush.msrb.mxu0 %v3871_v57  ;;  %v3810_v57 = vld [vmem:[#allocation8 + $0x1f0] sm:$0xff] }
 0xf97   :  { %v3640_v32 = vadd.f32 1e-05, %v3639_v44  ;;  %v3908_v44 = vld [vmem:[#allocation8 + $0x390] sm:$0xff] }
 0xf98   :  { %3972 = vmatpush.msrb.mxu0 %v3869_v5  ;;  %v3806_v5 = vld [vmem:[#allocation8 + $0x1d0] sm:$0xff] }
 0xf99   :  { %5253 = vrsqrt.f32 %v3640_v32  ;;  %vm3647_vm4 = vweird.f32 %v3640_v32  ;;  %v3786_v30 = vld [vmem:[#allocation8 + $0x130] sm:$0xff] }
 0xf9f   :  { %v5254_v55 = vpop.eup %5253 }
 0xfa0   :  { %v3642_v51 = vmul.f32 %v5254_v55, %v3640_v32  ;;  %vm3648_vm3 = vweird.f32 %v5254_v55  ;;  %v3779_v32 = vld [vmem:[#allocation8 + $0xf8] sm:$0xff] }
 0xfa1   :  { %vm3649_vm5 = vmor %vm3647_vm4, %vm3648_vm3 }
 0xfa2   :  { %v3643_v56 = vmul.f32 %v5254_v55, %v3642_v51  ;;  %v3874_v51 = vld [vmem:[#allocation8 + $0x280] sm:$0xff] }
 0xfa4   :  { %v3644_v22 = vmul.f32 0.5, %v3643_v56  ;;  %v3906_v56 = vld [vmem:[#allocation8 + $0x380] sm:$0xff] }
 0xfa6   :  { %v3645_v23 = vsub.f32 1.5, %v3644_v22  ;;  %v3777_v22 = vld [vmem:[#allocation8 + $0xe8] sm:$0xff] }
 0xfa8   :  { %v3646_v20 = vmul.f32 %v5254_v55, %v3645_v23  ;;  %v3809_v23 = vld [vmem:[#allocation8 + $0x1e8] sm:$0xff] }
 0xfaa   :  { %v3650_v19 = vsel %vm3649_vm5, %v5254_v55, %v3646_v20  ;;  %v3811_v55 = vld [vmem:[#allocation8 + $0x1f8] sm:$0xff]  ;;  %v3872_v20 = vld [vmem:[#allocation8 + $0x270] sm:$0xff] }
 0xfab   :  { %3667 = vmatmul.f32.vlgmr.msra.gmra.mxu0 %v3650_v19  ;;  %3687 = vmatmul.f32.vlgmr.msrb.gmra.mxu1 %v3650_v19  ;;  %v3904_v19 = vld [vmem:[#allocation8 + $0x370] sm:$0xff] }
 0xfac   :  { %4062 = vmatpush.msrb.mxu1 %v3811_v55  ;;  %v3784_v55 = vld [vmem:[#allocation8 + $0x120] sm:$0xff] }
 0xfae   :  { %4063 = vmatpush.msrb.mxu1 %v3809_v23  ;;  %v3782_v23 = vld [vmem:[#allocation8 + $0x110] sm:$0xff] }
 0xfb0   :  { %4064 = vmatpush.msrb.mxu1 %v3807_v16  ;;  %v3780_v16 = vld [vmem:[#allocation8 + $0x100] sm:$0xff] }
 0xfb2   :  { %4065 = vmatpush.msrb.mxu1 %v3805_v42  ;;  %v3787_v42 = vld [vmem:[#allocation8 + $0x138] sm:$0xff] }
 0xfb4   :  { %4066 = vmatpush.msrb.mxu1 %v3803_v46  ;;  %v3783_v46 = vld [vmem:[#allocation8 + $0x118] sm:$0xff] }
 0xfb6   :  { %4067 = vmatpush.msrb.mxu1 %v3801_v0 }
0x1028   :  { %v3668_v24 = vpop.f32.mrf.mxu0  ;;  %v3688_v26 = vpop.f32.mrf.mxu1 }
0x1029   :  { %v3691_v27 = vperm.slane %v3668_v24, 0  ;;  %v3692_v28 = vperm.slane %v3688_v26, 0  ;;  %v3864_v24 = vld [vmem:[#allocation8 + $0x230] sm:$0xff] }
0x102a   :  { %v3896_v26 = vld [vmem:[#allocation8 + $0x330] sm:$0xff] }
0x102b   :  { %v3693_v50 = vmul.f32 %v3691_v27, %v7557_v12  ;;  %v3694_v35 = vmul.f32 %v3692_v28, %v7560_v13  ;;  %v3918_v12 = vld [vmem:[#allocation8 + $0x3e0] sm:$0xff]  ;;  %v3867_v13 = vld [vmem:[#allocation8 + $0x248] sm:$0xff]  ;;  %v3767_v27 = vld [vmem:[#allocation8 + $0x98] sm:$0xff] }
0x102c   :  { %3973 = vmatpush.msrb.mxu0 %v3867_v13  ;;  %v3799_v28 = vld [vmem:[#allocation8 + $0x198] sm:$0xff]  ;;  %v3802_v13 = vld [vmem:[#allocation8 + $0x1b0] sm:$0xff] }
0x102d   :  { %v7573_v53 = vmax.f32 %v3693_v50, 0.0  ;;  %v7575_v54 = vmax.f32 %v3694_v35, 0.0  ;;  %v3860_v50 = vld [vmem:[#allocation8 + $0x210] sm:$0xff]  ;;  %4068 = vmatpush.msrb.mxu1 %v3799_v28  ;;  %v4191_v28 = vld [vmem:[#allocation8 + $0x5f8] sm:$0xff] }
0x102e   :  { %3974 = vmatpush.msrb.mxu0 %v3865_v31  ;;  %v3892_v35 = vld [vmem:[#allocation8 + $0x310] sm:$0xff] }
0x102f   :  { %5208 = vmatpush.msk.msra.mxu2 %vm3476_vm1, %v7573_v53  ;;  %5210 = vmatpush.msk.msra.mxu3 %vm3476_vm1, %v7575_v54  ;;  %v3798_v31 = vld [vmem:[#allocation8 + $0x190] sm:$0xff] }
0x1030   :  { %5209 = vmatmul.msk.f32.vlgmr.msra.gmra.mxu2 %vm3698_vm6, %v3697_v52  ;;  %5211 = vmatmul.msk.f32.vlgmr.msra.gmra.mxu3 %vm3698_vm6, %v3697_v52  ;;  %v3778_v52 = vld [vmem:[#allocation8 + $0xf0] sm:$0xff] }
0x1031   :  { %5213 = vmatpush.msk.msrb.mxu2 %vm3476_vm1, %v7573_v53  ;;  %5215 = vmatpush.msk.msrb.mxu3 %vm3476_vm1, %v7575_v54 }
0x1032   :  { %3975 = vmatpush.msrb.mxu0 %v3863_v45  ;;  %v3760_v45 = vld [vmem:[#allocation8 + $0x60] sm:$0xff] }
0x1033   :  { %3922 = vmatpush.msra.mxu2 %v3888_v62  ;;  %3942 = vmatpush.msra.mxu3 %v3920_v63  ;;  %v3808_v62 = vld [vmem:[#allocation8 + $0x1e0] sm:$0xff]  ;;  %v3774_v63 = vld [vmem:[#allocation8 + $0xd0] sm:$0xff] }
0x1034   :  { %3976 = vmatpush.msrb.mxu0 %v3861_v7  ;;  %v3756_v7 = vld [vmem:[#allocation8 + $0x40] sm:$0xff] }
0x1035   :  { %3923 = vmatpush.msra.mxu2 %v3886_v9  ;;  %3943 = vmatpush.msra.mxu3 %v3918_v12  ;;  %v3804_v9 = vld [vmem:[#allocation8 + $0x1c0] sm:$0xff]  ;;  %v3770_v12 = vld [vmem:[#allocation8 + $0xb0] sm:$0xff] }
0x1036   :  { %3977 = vmatpush.msrb.mxu0 %v3859_v21  ;;  %v3754_v21 = vld [vmem:[#allocation8 + $0x30] sm:$0xff] }
0x1037   :  { %3924 = vmatpush.msra.mxu2 %v3884_v15  ;;  %3944 = vmatpush.msra.mxu3 %v3916_v25  ;;  %v3800_v15 = vld [vmem:[#allocation8 + $0x1a0] sm:$0xff]  ;;  %v3766_v25 = vld [vmem:[#allocation8 + $0x90] sm:$0xff] }
0x1038   :  { %5214 = vmatmul.msk.f32.vlgmr.msrb.gmra.mxu2 %vm3698_vm6, %v5212_v48  ;;  %5216 = vmatmul.msk.f32.vlgmr.msrb.gmra.mxu3 %vm3698_vm6, %v5212_v48  ;;  %v3796_v48 = vld [vmem:[#allocation8 + $0x180] sm:$0xff] }
0x1039   :  { %3925 = vmatpush.msra.mxu2 %v3882_v3  ;;  %3945 = vmatpush.msra.mxu3 %v3914_v1  ;;  %v3762_v3 = vld [vmem:[#allocation8 + $0x70] sm:$0xff] }
0x103a   :  { %4042 = vmatpush.msra.mxu0 %v3779_v32  ;;  %v3794_v1 = vld [vmem:[#allocation8 + $0x170] sm:$0xff]  ;;  %v3752_v32 = vld [vmem:[#allocation8 + $0x20] sm:$0xff] }
0x103b   :  { %3926 = vmatpush.msra.mxu2 %v3880_v61  ;;  %3946 = vmatpush.msra.mxu3 %v3912_v39  ;;  %v3758_v61 = vld [vmem:[#allocation8 + $0x50] sm:$0xff] }
0x103c   :  { %4043 = vmatpush.msra.mxu0 %v3777_v22  ;;  %v3790_v39 = vld [vmem:[#allocation8 + $0x150] sm:$0xff] }
0x103d   :  { %3927 = vmatpush.msra.mxu2 %v3878_v11  ;;  %3947 = vmatpush.msra.mxu3 %v3910_v18  ;;  %v3765_v11 = vld [vmem:[#allocation8 + $0x88] sm:$0xff]  ;;  %v3750_v22 = vld [vmem:[#allocation8 + $0x10] sm:$0xff] }
0x103e   :  { %4044 = vmatpush.msra.mxu0 %v3775_v33  ;;  %v3797_v18 = vld [vmem:[#allocation8 + $0x188] sm:$0xff]  ;;  %v3748_v33 = vld [vmem:[#allocation8] sm:$0xff] }
0x103f   :  { %3928 = vmatpush.msra.mxu2 %v3876_v59  ;;  %3948 = vmatpush.msra.mxu3 %v3908_v44  ;;  %v3763_v59 = vld [vmem:[#allocation8 + $0x78] sm:$0xff] }
0x1040   :  { %4045 = vmatpush.msra.mxu0 %v3773_v41  ;;  %4069 = vmatpush.msrb.mxu1 %v3797_v18  ;;  %v3795_v44 = vld [vmem:[#allocation8 + $0x178] sm:$0xff] }
0x1041   :  { %3929 = vmatpush.msra.mxu2 %v3874_v51  ;;  %3949 = vmatpush.msra.mxu3 %v3906_v56  ;;  %v3761_v51 = vld [vmem:[#allocation8 + $0x68] sm:$0xff]  ;;  %v3755_v41 = vld [vmem:[#allocation8 + $0x38] sm:$0xff] }
0x1042   :  { %4046 = vmatpush.msra.mxu0 %v3771_v6  ;;  %v3793_v56 = vld [vmem:[#allocation8 + $0x168] sm:$0xff]  ;;  %4070 = vmatpush.msrb.mxu1 %v3795_v44  ;;  %v3751_v6 = vld [vmem:[#allocation8 + $0x18] sm:$0xff] }
0x1043   :  { %3930 = vmatpush.msra.mxu2 %v3872_v20  ;;  %3950 = vmatpush.msra.mxu3 %v3904_v19  ;;  %v3759_v20 = vld [vmem:[#allocation8 + $0x58] sm:$0xff]  ;;  %v4141_v44 = vld [vmem:[#allocation8 + $0x468] sm:$0xff] }
0x1044   :  { %4047 = vmatpush.msra.mxu0 %v3769_v38  ;;  %v3791_v19 = vld [vmem:[#allocation8 + $0x158] sm:$0xff]  ;;  %4071 = vmatpush.msrb.mxu1 %v3793_v56 }
0x1045   :  { %3931 = vmatpush.msra.mxu2 %v3870_v2  ;;  %3951 = vmatpush.msra.mxu3 %v3902_v34  ;;  %v3757_v2 = vld [vmem:[#allocation8 + $0x48] sm:$0xff]  ;;  %v4143_v18 = vld [vmem:[#allocation8 + $0x478] sm:$0xff] }
0x1046   :  { %4048 = vmatpush.msra.mxu0 %v3767_v27  ;;  %4072 = vmatpush.msrb.mxu1 %v3791_v19  ;;  %v3789_v34 = vld [vmem:[#allocation8 + $0x148] sm:$0xff]  ;;  %v4159_v27 = vld [vmem:[#allocation8 + $0x4f8] sm:$0xff] }
0x1047   :  { %3932 = vmatpush.msra.mxu2 %v3868_v4  ;;  %3952 = vmatpush.msra.mxu3 %v3900_v43  ;;  %v3753_v4 = vld [vmem:[#allocation8 + $0x28] sm:$0xff]  ;;  %v4139_v56 = vld [vmem:[#allocation8 + $0x458] sm:$0xff] }
0x1048   :  { %4049 = vmatpush.msra.mxu0 %v3765_v11  ;;  %4073 = vmatpush.msrb.mxu1 %v3789_v34  ;;  %v3785_v43 = vld [vmem:[#allocation8 + $0x128] sm:$0xff]  ;;  %v4174_v11 = vld [vmem:[#allocation8 + $0x570] sm:$0xff]  ;;  %v4135_v34 = vld [vmem:[#allocation8 + $0x438] sm:$0xff] }
0x1049   :  { %3933 = vmatpush.msra.mxu2 %v3866_v58  ;;  %3953 = vmatpush.msra.mxu3 %v3898_v36  ;;  %v3749_v58 = vld [vmem:[#allocation8 + $0x8] sm:$0xff] }
0x104a   :  { %4050 = vmatpush.msra.mxu0 %v3763_v59  ;;  %4074 = vmatpush.msrb.mxu1 %v3787_v42  ;;  %v3781_v36 = vld [vmem:[#allocation8 + $0x108] sm:$0xff]  ;;  %v4172_v59 = vld [vmem:[#allocation8 + $0x560] sm:$0xff] }
0x104b   :  { %3934 = vmatpush.msra.mxu2 %v3864_v24  ;;  %3954 = vmatpush.msra.mxu3 %v3896_v26  ;;  %v4137_v19 = vld [vmem:[#allocation8 + $0x448] sm:$0xff]  ;;  %v4132_v42 = vld [vmem:[#allocation8 + $0x420] sm:$0xff] }
0x104c   :  { %4051 = vmatpush.msra.mxu0 %v3761_v51  ;;  %4075 = vmatpush.msrb.mxu1 %v3785_v43  ;;  %v4170_v51 = vld [vmem:[#allocation8 + $0x550] sm:$0xff]  ;;  %v4133_v43 = vld [vmem:[#allocation8 + $0x428] sm:$0xff] }
0x104d   :  { %3935 = vmatpush.msra.mxu2 %v3862_v47  ;;  %3955 = vmatpush.msra.mxu3 %v3894_v29  ;;  %v4157_v47 = vld [vmem:[#allocation8 + $0x4e8] sm:$0xff] }
0x104e   :  { %4052 = vmatpush.msra.mxu0 %v3759_v20  ;;  %4076 = vmatpush.msrb.mxu1 %v3783_v46  ;;  %v4189_v29 = vld [vmem:[#allocation8 + $0x5e8] sm:$0xff]  ;;  %v4168_v20 = vld [vmem:[#allocation8 + $0x540] sm:$0xff]  ;;  %v4130_v46 = vld [vmem:[#allocation8 + $0x410] sm:$0xff] }
0x104f   :  { %3936 = vmatpush.msra.mxu2 %v3860_v50  ;;  %3956 = vmatpush.msra.mxu3 %v3892_v35  ;;  %v4155_v50 = vld [vmem:[#allocation8 + $0x4d8] sm:$0xff] }
0x1050   :  { %4053 = vmatpush.msra.mxu0 %v3757_v2  ;;  %4077 = vmatpush.msrb.mxu1 %v3781_v36  ;;  %v4187_v35 = vld [vmem:[#allocation8 + $0x5d8] sm:$0xff]  ;;  %v4166_v2 = vld [vmem:[#allocation8 + $0x530] sm:$0xff] }
0x1051   :  { %3937 = vmatpush.msra.mxu2 %v3858_v40  ;;  %3957 = vmatpush.msra.mxu3 %v3890_v49  ;;  %v4158_v40 = vld [vmem:[#allocation8 + $0x4f0] sm:$0xff]  ;;  %v4131_v36 = vld [vmem:[#allocation8 + $0x418] sm:$0xff] }
0x1052   :  { %4054 = vmatpush.msra.mxu0 %v3755_v41  ;;  %v4190_v49 = vld [vmem:[#allocation8 + $0x5f0] sm:$0xff]  ;;  %v4167_v41 = vld [vmem:[#allocation8 + $0x538] sm:$0xff] }
0x1053   :  { %4002 = vmatpush.msrb.mxu2 %v3778_v52  ;;  %4022 = vmatpush.msrb.mxu3 %v3810_v57  ;;  %v4153_v52 = vld [vmem:[#allocation8 + $0x4c8] sm:$0xff] }
0x1054   :  { %4055 = vmatpush.msra.mxu0 %v3753_v4  ;;  %v4185_v57 = vld [vmem:[#allocation8 + $0x5c8] sm:$0xff]  ;;  %v4164_v4 = vld [vmem:[#allocation8 + $0x520] sm:$0xff] }
0x1055   :  { %4003 = vmatpush.msrb.mxu2 %v3776_v60  ;;  %4023 = vmatpush.msrb.mxu3 %v3808_v62  ;;  %v4154_v60 = vld [vmem:[#allocation8 + $0x4d0] sm:$0xff] }
0x1056   :  { %4056 = vmatpush.msra.mxu0 %v3751_v6  ;;  %v4186_v62 = vld [vmem:[#allocation8 + $0x5d0] sm:$0xff]  ;;  %v4165_v6 = vld [vmem:[#allocation8 + $0x528] sm:$0xff] }
0x1057   :  { %4004 = vmatpush.msrb.mxu2 %v3774_v63  ;;  %4024 = vmatpush.msrb.mxu3 %v3806_v5  ;;  %v5217_v63 = vld [vmem:[%s8320_s5 + $0x4] sm:$0x3] }
0x1058   :  { %4057 = vmatpush.msra.mxu0 %v3749_v58  ;;  %v4152_v5 = vld [vmem:[#allocation8 + $0x4c0] sm:$0xff]  ;;  %v4162_v58 = vld [vmem:[#allocation8 + $0x510] sm:$0xff] }
0x1059   :  { %4005 = vmatpush.msrb.mxu2 %v3772_v8  ;;  %4025 = vmatpush.msrb.mxu3 %v3804_v9  ;;  %v4184_v8 = vld [vmem:[#allocation8 + $0x5c0] sm:$0xff]  ;;  %v4150_v9 = vld [vmem:[#allocation8 + $0x4b0] sm:$0xff] }
0x105b   :  { %4006 = vmatpush.msrb.mxu2 %v3770_v12  ;;  %4026 = vmatpush.msrb.mxu3 %v3802_v13  ;;  %v4182_v12 = vld [vmem:[#allocation8 + $0x5b0] sm:$0xff]  ;;  %v4151_v13 = vld [vmem:[#allocation8 + $0x4b8] sm:$0xff] }
0x105d   :  { %4007 = vmatpush.msrb.mxu2 %v3768_v14  ;;  %4027 = vmatpush.msrb.mxu3 %v3800_v15  ;;  %v4183_v14 = vld [vmem:[#allocation8 + $0x5b8] sm:$0xff]  ;;  %v4148_v15 = vld [vmem:[#allocation8 + $0x4a0] sm:$0xff] }
0x105f   :  { %4008 = vmatpush.msrb.mxu2 %v3766_v25  ;;  %4028 = vmatpush.msrb.mxu3 %v3798_v31  ;;  %v4180_v25 = vld [vmem:[#allocation8 + $0x5a0] sm:$0xff]  ;;  %v4149_v31 = vld [vmem:[#allocation8 + $0x4a8] sm:$0xff] }
0x1061   :  { %4009 = vmatpush.msrb.mxu2 %v3764_v17  ;;  %4029 = vmatpush.msrb.mxu3 %v3796_v48  ;;  %v4181_v17 = vld [vmem:[#allocation8 + $0x5a8] sm:$0xff]  ;;  %v4146_v48 = vld [vmem:[#allocation8 + $0x490] sm:$0xff] }
0x1063   :  { %4010 = vmatpush.msrb.mxu2 %v3762_v3  ;;  %4030 = vmatpush.msrb.mxu3 %v3794_v1  ;;  %v4178_v3 = vld [vmem:[#allocation8 + $0x590] sm:$0xff]  ;;  %v4147_v1 = vld [vmem:[#allocation8 + $0x498] sm:$0xff] }
0x1065   :  { %4011 = vmatpush.msrb.mxu2 %v3760_v45  ;;  %4031 = vmatpush.msrb.mxu3 %v3792_v37  ;;  %v4179_v45 = vld [vmem:[#allocation8 + $0x598] sm:$0xff]  ;;  %v4144_v37 = vld [vmem:[#allocation8 + $0x480] sm:$0xff] }
0x1067   :  { %4012 = vmatpush.msrb.mxu2 %v3758_v61  ;;  %4032 = vmatpush.msrb.mxu3 %v3790_v39  ;;  %v4176_v61 = vld [vmem:[#allocation8 + $0x580] sm:$0xff]  ;;  %v4145_v39 = vld [vmem:[#allocation8 + $0x488] sm:$0xff] }
0x1069   :  { %4013 = vmatpush.msrb.mxu2 %v3756_v7  ;;  %4033 = vmatpush.msrb.mxu3 %v3788_v10  ;;  %v4177_v7 = vld [vmem:[#allocation8 + $0x588] sm:$0xff]  ;;  %v4142_v10 = vld [vmem:[#allocation8 + $0x470] sm:$0xff] }
0x106b   :  { %4014 = vmatpush.msrb.mxu2 %v3754_v21  ;;  %4034 = vmatpush.msrb.mxu3 %v3786_v30  ;;  %v4175_v21 = vld [vmem:[#allocation8 + $0x578] sm:$0xff]  ;;  %v4140_v30 = vld [vmem:[#allocation8 + $0x460] sm:$0xff] }
0x106d   :  { %4015 = vmatpush.msrb.mxu2 %v3752_v32  ;;  %4035 = vmatpush.msrb.mxu3 %v3784_v55  ;;  %v4173_v32 = vld [vmem:[#allocation8 + $0x568] sm:$0xff]  ;;  %v4138_v55 = vld [vmem:[#allocation8 + $0x450] sm:$0xff] }
0x106f   :  { %4016 = vmatpush.msrb.mxu2 %v3750_v22  ;;  %4036 = vmatpush.msrb.mxu3 %v3782_v23  ;;  %v4171_v22 = vld [vmem:[#allocation8 + $0x558] sm:$0xff]  ;;  %v4136_v23 = vld [vmem:[#allocation8 + $0x440] sm:$0xff] }
0x1071   :  { %4017 = vmatpush.msrb.mxu2 %v3748_v33  ;;  %4037 = vmatpush.msrb.mxu3 %v3780_v16  ;;  %v4169_v33 = vld [vmem:[#allocation8 + $0x548] sm:$0xff]  ;;  %v4134_v16 = vld [vmem:[#allocation8 + $0x430] sm:$0xff] }
0x10b3   :  { %v3725_v38 = vpop.f32.mrf.mxu2  ;;  %v3745_v0 = vpop.f32.mrf.mxu3 }
0x10bb   :  { %v3834_v24 = vpop.f32.mrf.mxu2  ;;  %v3854_v26 = vpop.f32.mrf.mxu3 }
0x10bc   :  { %3938 = vmatmul.f32.vlgmr.msra.gmra.mxu2 %v3834_v24  ;;  %3958 = vmatmul.f32.vlgmr.msra.gmra.mxu3 %v3854_v26 }
0x10bd   :  { %3978 = vmatmul.f32.vlgmr.msrb.gmra.mxu0 %v3834_v24  ;;  %3998 = vmatmul.f32.vlgmr.msra.gmra.mxu1 %v3854_v26  ;;  %v4160_v24 = vld [vmem:[#allocation8 + $0x500] sm:$0xff]  ;;  %v4129_v26 = vld [vmem:[#allocation8 + $0x408] sm:$0xff] }
0x10be   :  { %5218 = vmatpush.msk.msra.mxu2 %vm3476_vm1, %v7573_v53  ;;  %5220 = vmatpush.msk.msra.mxu3 %vm3476_vm1, %v7575_v54  ;;  %v4156_v53 = vld [vmem:[#allocation8 + $0x4e0] sm:$0xff] }
0x10bf   :  { %4232 = vmatpush.msrb.mxu0 %v4159_v27  ;;  %4252 = vmatpush.msra.mxu1 %v4191_v28  ;;  %v4188_v54 = vld [vmem:[#allocation8 + $0x5e0] sm:$0xff]  ;;  %v4161_v27 = vld [vmem:[#allocation8 + $0x508] sm:$0xff]  ;;  %v7604_v28 = vld [vmem:[%s8330_s15 + $0x1f0] sm:$0xff] }
0x10c1   :  { %4233 = vmatpush.msrb.mxu0 %v4157_v47  ;;  %4253 = vmatpush.msra.mxu1 %v4189_v29  ;;  %v7609_v47 = vld [vmem:[%s8330_s15 + $0x1f8] sm:$0xff]  ;;  %v7614_v29 = vld [vmem:[%s8330_s15 + $0x1e0] sm:$0xff] }
0x10c2   :  { %8384 = vst [vmem:[#allocation15_spill] sm:$0xff] %v7609_v47 }
0x10c3   :  { %4234 = vmatpush.msrb.mxu0 %v4155_v50  ;;  %4254 = vmatpush.msra.mxu1 %v4187_v35  ;;  %v7619_v50 = vld [vmem:[%s8330_s15 + $0x1e8] sm:$0xff]  ;;  %v7626_v35 = vld [vmem:[%s8330_s15 + $0xf0] sm:$0xff] }
0x10c4   :  { %4018 = vmatmul.f32.vlgmr.msrb.gmra.mxu2 %v3725_v38  ;;  %4038 = vmatmul.f32.vlgmr.msrb.gmra.mxu3 %v3745_v0  ;;  %8385 = vst [vmem:[#allocation16_spill] sm:$0xff] %v7619_v50 }
0x10c5   :  { %4058 = vmatmul.f32.vlgmr.msra.gmra.mxu0 %v3725_v38  ;;  %4078 = vmatmul.f32.vlgmr.msrb.gmra.mxu1 %v3745_v0  ;;  %v4163_v38 = vld [vmem:[#allocation8 + $0x518] sm:$0xff]  ;;  %v4128_v0 = vld [vmem:[#allocation8 + $0x400] sm:$0xff] }
0x10c6   :  { %4192 = vmatpush.msrb.mxu2 %v4158_v40  ;;  %4212 = vmatpush.msrb.mxu3 %v4190_v49  ;;  %v7631_v40 = vld [vmem:[%s8330_s15 + $0xf8] sm:$0xff]  ;;  %v7636_v49 = vld [vmem:[%s8330_s15 + $0x1d0] sm:$0xff] }
0x10c7   :  { %4235 = vmatpush.msrb.mxu0 %v4153_v52  ;;  %4255 = vmatpush.msra.mxu1 %v4185_v57  ;;  %8386 = vst [vmem:[#allocation17_spill] sm:$0xff] %v7631_v40  ;;  %v7641_v52 = vld [vmem:[%s8330_s15 + $0x1d8] sm:$0xff]  ;;  %v7648_v57 = vld [vmem:[%s8330_s15 + $0xe0] sm:$0xff] }
0x10c8   :  { %4193 = vmatpush.msrb.mxu2 %v4156_v53  ;;  %4213 = vmatpush.msrb.mxu3 %v4188_v54  ;;  %v7655_v53 = vld [vmem:[%s8330_s15 + $0xe8] sm:$0xff]  ;;  %v7660_v54 = vld [vmem:[%s8330_s15 + $0xd0] sm:$0xff] }
0x10c9   :  { %4236 = vmatpush.msrb.mxu0 %v4151_v13  ;;  %4256 = vmatpush.msra.mxu1 %v4183_v14  ;;  %8387 = vst [vmem:[#allocation18_spill] sm:$0xff] %v7655_v53  ;;  %v7708_v13 = vld [vmem:[%s8330_s15 + $0x1a0] sm:$0xff]  ;;  %v7713_v14 = vld [vmem:[%s8330_s15 + $0x1a8] sm:$0xff] }
0x10ca   :  { %4194 = vmatpush.msrb.mxu2 %v4154_v60  ;;  %4214 = vmatpush.msrb.mxu3 %v4186_v62  ;;  %v7665_v60 = vld [vmem:[%s8330_s15 + $0x1c0] sm:$0xff]  ;;  %v7670_v62 = vld [vmem:[%s8330_s15 + $0x1c8] sm:$0xff] }
0x10cb   :  { %4237 = vmatpush.msrb.mxu0 %v4149_v31  ;;  %4257 = vmatpush.msra.mxu1 %v4181_v17 }
0x10cc   :  { %5219 = vmatmul.msk.f32.vlgmr.msra.gmra.mxu2 %vm3698_vm6, %v5217_v63  ;;  %5221 = vmatmul.msk.f32.vlgmr.msra.gmra.mxu3 %vm3698_vm6, %v5217_v63  ;;  %v7677_v63 = vld [vmem:[%s8330_s15 + $0xd8] sm:$0xff] }
0x10cd   :  { %4195 = vmatpush.msrb.mxu2 %v4152_v5  ;;  %4215 = vmatpush.msrb.mxu3 %v4184_v8  ;;  %v7684_v5 = vld [vmem:[%s8330_s15 + $0xc0] sm:$0xff]  ;;  %v7689_v8 = vld [vmem:[%s8330_s15 + $0xc8] sm:$0xff] }
0x10ce   :  { %4238 = vmatpush.msrb.mxu0 %v4147_v1  ;;  %4258 = vmatpush.msra.mxu1 %v4179_v45 }
0x10cf   :  { %4196 = vmatpush.msrb.mxu2 %v4150_v9  ;;  %4216 = vmatpush.msrb.mxu3 %v4182_v12  ;;  %v7694_v9 = vld [vmem:[%s8330_s15 + $0x1b0] sm:$0xff]  ;;  %v7699_v12 = vld [vmem:[%s8330_s15 + $0x1b8] sm:$0xff] }
0x10d0   :  { %4239 = vmatpush.msrb.mxu0 %v4145_v39  ;;  %4259 = vmatpush.msra.mxu1 %v4177_v7  ;;  %v7738_v7 = vld [vmem:[%s8330_s15 + $0xb0] sm:$0xff] }
0x10d1   :  { %4197 = vmatpush.msrb.mxu2 %v4148_v15  ;;  %4217 = vmatpush.msrb.mxu3 %v4180_v25  ;;  %v7722_v15 = vld [vmem:[%s8330_s15 + $0x190] sm:$0xff]  ;;  %v7727_v25 = vld [vmem:[%s8330_s15 + $0x198] sm:$0xff] }
0x10d2   :  { %4240 = vmatpush.msrb.mxu0 %v4143_v18  ;;  %4260 = vmatpush.msra.mxu1 %v4175_v21  ;;  %v7755_v18 = vld [vmem:[%s8330_s15 + $0x188] sm:$0xff]  ;;  %v7762_v21 = vld [vmem:[%s8330_s15 + $0xa0] sm:$0xff] }
0x10d3   :  { %4198 = vmatpush.msrb.mxu2 %v4146_v48  ;;  %4218 = vmatpush.msrb.mxu3 %v4178_v3 }
0x10d4   :  { %4241 = vmatpush.msrb.mxu0 %v4141_v44  ;;  %4261 = vmatpush.msra.mxu1 %v4173_v32  ;;  %v7779_v44 = vld [vmem:[%s8330_s15 + $0x178] sm:$0xff]  ;;  %v7786_v32 = vld [vmem:[%s8330_s15 + $0x90] sm:$0xff] }
0x10d5   :  { %4199 = vmatpush.msrb.mxu2 %v4144_v37  ;;  %4219 = vmatpush.msrb.mxu3 %v4176_v61 }
0x10d6   :  { %4242 = vmatpush.msrb.mxu0 %v4139_v56  ;;  %4262 = vmatpush.msra.mxu1 %v4171_v22  ;;  %v7803_v56 = vld [vmem:[%s8330_s15 + $0x168] sm:$0xff]  ;;  %v7810_v22 = vld [vmem:[%s8330_s15 + $0x80] sm:$0xff] }
0x10d7   :  { %4200 = vmatpush.msrb.mxu2 %v4142_v10  ;;  %4220 = vmatpush.msrb.mxu3 %v4174_v11  ;;  %v7743_v10 = vld [vmem:[%s8330_s15 + $0x180] sm:$0xff]  ;;  %v7748_v11 = vld [vmem:[%s8330_s15 + $0xb8] sm:$0xff] }
0x10d8   :  { %4243 = vmatpush.msrb.mxu0 %v4137_v19  ;;  %4263 = vmatpush.msra.mxu1 %v4169_v33  ;;  %v7827_v19 = vld [vmem:[%s8330_s15 + $0x158] sm:$0xff]  ;;  %v7834_v33 = vld [vmem:[%s8330_s15 + $0x70] sm:$0xff] }
0x10d9   :  { %4201 = vmatpush.msrb.mxu2 %v4140_v30  ;;  %4221 = vmatpush.msrb.mxu3 %v4172_v59  ;;  %v7767_v30 = vld [vmem:[%s8330_s15 + $0x170] sm:$0xff]  ;;  %v7772_v59 = vld [vmem:[%s8330_s15 + $0xa8] sm:$0xff] }
0x10da   :  { %4244 = vmatpush.msrb.mxu0 %v4135_v34  ;;  %4264 = vmatpush.msra.mxu1 %v4167_v41  ;;  %v7851_v34 = vld [vmem:[%s8330_s15 + $0x148] sm:$0xff]  ;;  %v7858_v41 = vld [vmem:[%s8330_s15 + $0x60] sm:$0xff] }
0x10db   :  { %4202 = vmatpush.msrb.mxu2 %v4138_v55  ;;  %4222 = vmatpush.msrb.mxu3 %v4170_v51  ;;  %v7791_v55 = vld [vmem:[%s8330_s15 + $0x160] sm:$0xff]  ;;  %v7796_v51 = vld [vmem:[%s8330_s15 + $0x98] sm:$0xff] }
0x10dc   :  { %4245 = vmatpush.msrb.mxu0 %v4133_v43  ;;  %4265 = vmatpush.msra.mxu1 %v4165_v6  ;;  %v7875_v43 = vld [vmem:[%s8330_s15 + $0x138] sm:$0xff]  ;;  %v7882_v6 = vld [vmem:[%s8330_s15 + $0x50] sm:$0xff] }
0x10dd   :  { %4203 = vmatpush.msrb.mxu2 %v4136_v23  ;;  %4223 = vmatpush.msrb.mxu3 %v4168_v20  ;;  %v7815_v23 = vld [vmem:[%s8330_s15 + $0x150] sm:$0xff]  ;;  %v7820_v20 = vld [vmem:[%s8330_s15 + $0x88] sm:$0xff] }
0x10de   :  { %4246 = vmatpush.msrb.mxu0 %v4131_v36  ;;  %4266 = vmatpush.msra.mxu1 %v4163_v38 }
0x10df   :  { %4204 = vmatpush.msrb.mxu2 %v4134_v16  ;;  %4224 = vmatpush.msrb.mxu3 %v4166_v2  ;;  %v7839_v16 = vld [vmem:[%s8330_s15 + $0x140] sm:$0xff]  ;;  %v7844_v2 = vld [vmem:[%s8330_s15 + $0x78] sm:$0xff] }
0x10e0   :  { %4247 = vmatpush.msrb.mxu0 %v4129_v26  ;;  %4267 = vmatpush.msra.mxu1 %v4161_v27  ;;  %v7911_v26 = vld [vmem:[%s8330_s15 + $0x110] sm:$0xff]  ;;  %v7916_v27 = vld [vmem:[%s8330_s15 + $0x48] sm:$0xff] }
0x10e1   :  { %4205 = vmatpush.msrb.mxu2 %v4132_v42  ;;  %4225 = vmatpush.msrb.mxu3 %v4164_v4  ;;  %v7863_v42 = vld [vmem:[%s8330_s15 + $0x130] sm:$0xff]  ;;  %v7868_v4 = vld [vmem:[%s8330_s15 + $0x68] sm:$0xff]  ;;  %8391 = vst [vmem:[#allocation22_spill] sm:$0xff] %v7911_v26 }
0x10e2   :  { %4413 = vmatpush.msrb.mxu1 %v7609_v47  ;;  %4393 = vmatpush.msra.mxu0 %v7631_v40  ;;  %8388 = vst [vmem:[#allocation19_spill] sm:$0xff] %v7863_v42 }
0x10e3   :  { %4206 = vmatpush.msrb.mxu2 %v4130_v46  ;;  %4226 = vmatpush.msrb.mxu3 %v4162_v58  ;;  %v7887_v46 = vld [vmem:[%s8330_s15 + $0x120] sm:$0xff]  ;;  %v7892_v58 = vld [vmem:[%s8330_s15 + $0x58] sm:$0xff] }
0x10e4   :  { %4414 = vmatpush.msrb.mxu1 %v7619_v50  ;;  %4394 = vmatpush.msra.mxu0 %v7655_v53  ;;  %8389 = vst [vmem:[#allocation20_spill] sm:$0xff] %v7887_v46 }
0x10e5   :  { %4207 = vmatpush.msrb.mxu2 %v4128_v0  ;;  %4227 = vmatpush.msrb.mxu3 %v4160_v24  ;;  %v7899_v0 = vld [vmem:[%s8330_s15 + $0x128] sm:$0xff]  ;;  %v7906_v24 = vld [vmem:[%s8330_s15 + $0x40] sm:$0xff] }
0x10e6   :  { %4415 = vmatpush.msrb.mxu1 %v7641_v52  ;;  %4395 = vmatpush.msra.mxu0 %v7677_v63  ;;  %8390 = vst [vmem:[#allocation21_spill] sm:$0xff] %v7899_v0 }
0x10e7   :  { %4373 = vmatpush.msra.mxu3 %v7604_v28  ;;  %4353 = vmatpush.msra.mxu2 %v7626_v35 }
0x10e8   :  { %4416 = vmatpush.msrb.mxu1 %v7670_v62  ;;  %4396 = vmatpush.msra.mxu0 %v7689_v8 }
0x10e9   :  { %4374 = vmatpush.msra.mxu3 %v7614_v29  ;;  %4354 = vmatpush.msra.mxu2 %v7648_v57 }
0x10ea   :  { %4417 = vmatpush.msrb.mxu1 %v7699_v12  ;;  %4397 = vmatpush.msra.mxu0 %v7748_v11 }
0x10eb   :  { %4375 = vmatpush.msra.mxu3 %v7636_v49  ;;  %4355 = vmatpush.msra.mxu2 %v7660_v54 }
0x10ec   :  { %4418 = vmatpush.msrb.mxu1 %v7713_v14  ;;  %4398 = vmatpush.msra.mxu0 %v7772_v59 }
0x10ed   :  { %4376 = vmatpush.msra.mxu3 %v7665_v60  ;;  %4356 = vmatpush.msra.mxu2 %v7684_v5 }
0x10ee   :  { %4419 = vmatpush.msrb.mxu1 %v7727_v25  ;;  %4399 = vmatpush.msra.mxu0 %v7796_v51 }
0x10ef   :  { %4377 = vmatpush.msra.mxu3 %v7694_v9  ;;  %4357 = vmatpush.msra.mxu2 %v7738_v7 }
0x10f0   :  { %4420 = vmatpush.msrb.mxu1 %v7755_v18  ;;  %4400 = vmatpush.msra.mxu0 %v7820_v20 }
0x10f1   :  { %4378 = vmatpush.msra.mxu3 %v7708_v13  ;;  %4358 = vmatpush.msra.mxu2 %v7762_v21 }
0x10f2   :  { %4421 = vmatpush.msrb.mxu1 %v7779_v44  ;;  %4401 = vmatpush.msra.mxu0 %v7844_v2 }
0x10f3   :  { %4379 = vmatpush.msra.mxu3 %v7722_v15  ;;  %4359 = vmatpush.msra.mxu2 %v7786_v32 }
0x10f4   :  { %4422 = vmatpush.msrb.mxu1 %v7803_v56  ;;  %4402 = vmatpush.msra.mxu0 %v7868_v4 }
0x10f5   :  { %4380 = vmatpush.msra.mxu3 %v7743_v10  ;;  %4360 = vmatpush.msra.mxu2 %v7810_v22 }
0x10f6   :  { %4423 = vmatpush.msrb.mxu1 %v7827_v19  ;;  %4403 = vmatpush.msra.mxu0 %v7892_v58 }
0x10f7   :  { %4381 = vmatpush.msra.mxu3 %v7767_v30  ;;  %4361 = vmatpush.msra.mxu2 %v7834_v33 }
0x10f8   :  { %4424 = vmatpush.msrb.mxu1 %v7851_v34  ;;  %4404 = vmatpush.msra.mxu0 %v7916_v27 }
0x10f9   :  { %4382 = vmatpush.msra.mxu3 %v7791_v55  ;;  %4362 = vmatpush.msra.mxu2 %v7858_v41 }
0x10fa   :  { %4425 = vmatpush.msrb.mxu1 %v7875_v43 }
0x10fb   :  { %4383 = vmatpush.msra.mxu3 %v7815_v23  ;;  %4363 = vmatpush.msra.mxu2 %v7882_v6 }
0x10fc   :  { %4426 = vmatpush.msrb.mxu1 %v7899_v0 }
0x10fd   :  { %4384 = vmatpush.msra.mxu3 %v7839_v16  ;;  %4364 = vmatpush.msra.mxu2 %v7906_v24 }
0x10ff   :  { %4385 = vmatpush.msra.mxu3 %v7863_v42 }
0x1101   :  { %4386 = vmatpush.msra.mxu3 %v7887_v46 }
0x1103   :  { %4387 = vmatpush.msra.mxu3 %v7911_v26  ;;  %v7977_v26 = vld [vmem:[%s8330_s15] sm:$0xff] }
0x1104   :  { %8400 = vst [vmem:[#allocation31_spill] sm:$0xff] %v7977_v26 }
0x113a   :  { %v3979_v36 = vpop.f32.mrf.mxu0  ;;  %v3999_v38 = vpop.f32.mrf.mxu1 }
0x113f   :  { %v3939_v31 = vpop.f32.mrf.mxu2  ;;  %v3959_v17 = vpop.f32.mrf.mxu3 }
0x1140   :  { %v3960_v48 = vadd.f32 %v3959_v17, %v3939_v31  ;;  %v7923_v31 = vld [vmem:[%s8330_s15 + $0x118] sm:$0xff]  ;;  %v7930_v17 = vld [vmem:[%s8330_s15 + $0x30] sm:$0xff] }
0x1141   :  { %8392 = vst [vmem:[#allocation23_spill] sm:$0xff] %v7923_v31  ;;  %4427 = vmatpush.msrb.mxu1 %v7923_v31  ;;  %4365 = vmatpush.msra.mxu2 %v7930_v17 }
0x1142   :  { %8393 = vst [vmem:[#allocation24_spill] sm:$0xff] %v7930_v17  ;;  %v4079_v46 = vpop.f32.mrf.mxu1 }
0x1147   :  { %v4019_v3 = vpop.f32.mrf.mxu2  ;;  %v4039_v1 = vpop.f32.mrf.mxu3 }
0x1148   :  { %v4020_v45 = vadd.f32 %v4019_v3, %v3960_v48  ;;  %v7935_v48 = vld [vmem:[%s8330_s15 + $0x100] sm:$0xff]  ;;  %v7940_v3 = vld [vmem:[%s8330_s15 + $0x38] sm:$0xff] }
0x1149   :  { %8394 = vst [vmem:[#allocation25_spill] sm:$0xff] %v7935_v48  ;;  %4388 = vmatpush.msra.mxu3 %v7935_v48  ;;  %4405 = vmatpush.msra.mxu0 %v7940_v3  ;;  %v7972_v48 = vld [vmem:[%s8330_s15 + $0x18] sm:$0xff] }
0x114a   :  { %v7733_v37 = vadd.f32 %v4039_v1, %v4020_v45  ;;  %v7947_v1 = vld [vmem:[%s8330_s15 + $0x108] sm:$0xff]  ;;  %v7954_v45 = vld [vmem:[%s8330_s15 + $0x20] sm:$0xff]  ;;  %8399 = vst [vmem:[#allocation30_spill] sm:$0xff] %v7972_v48 }
0x114b   :  { %8395 = vst [vmem:[#allocation26_spill] sm:$0xff] %v7947_v1  ;;  %4428 = vmatpush.msrb.mxu1 %v7947_v1  ;;  %4366 = vmatpush.msra.mxu2 %v7954_v45  ;;  %v4059_v1 = vpop.f32.mrf.mxu0 }
0x114c   :  { %8396 = vst [vmem:[#allocation27_spill] sm:$0xff] %v7954_v45 }
0x114f   :  { %v4104_v61 = vpop.f32.mrf.mxu2  ;;  %v4124_v39 = vpop.f32.mrf.mxu3 }
0x1150   :  { %4208 = vmatmul.f32.vlgmr.msrb.gmra.mxu2 %v4104_v61  ;;  %4228 = vmatmul.f32.vlgmr.msrb.gmra.mxu3 %v4124_v39 }
0x1151   :  { %4248 = vmatmul.f32.vlgmr.msrb.gmra.mxu0 %v4104_v61  ;;  %4268 = vmatmul.f32.vlgmr.msra.gmra.mxu1 %v4124_v39  ;;  %v7959_v61 = vld [vmem:[%s8330_s15 + $0x28] sm:$0xff]  ;;  %v7967_v39 = vld [vmem:[%s8330_s15 + $0x10] sm:$0xff] }
0x1152   :  { %8397 = vst [vmem:[#allocation28_spill] sm:$0xff] %v7959_v61  ;;  %4462 = vmatpush.xpose.msrb.mxu3 %v7631_v40  ;;  %4406 = vmatpush.msra.mxu0 %v7959_v61  ;;  %v7984_v40 = vld [vmem:[%s8330_s15 + $0x8] sm:$0xff] }
0x1153   :  { %8398 = vst [vmem:[#allocation29_spill] sm:$0xff] %v7967_v39  ;;  %4502 = vmatpush.xpose.msra.mxu1 %v7609_v47  ;;  %4367 = vmatpush.msra.mxu2 %v7967_v39  ;;  %v4000_v39 = vadd.f32 %v3999_v38, %v3979_v36 }
0x1154   :  { %8401 = vst [vmem:[#allocation32_spill] sm:$0xff] %v7984_v40  ;;  %4407 = vmatpush.msra.mxu0 %v7972_v48 }
0x1155   :  { %4368 = vmatpush.msra.mxu2 %v7977_v26  ;;  %v4060_v47 = vadd.f32 %v4059_v1, %v4000_v39 }
0x1156   :  { %4463 = vmatpush.xpose.msrb.mxu3 %v7655_v53  ;;  %4408 = vmatpush.msra.mxu0 %v7984_v40 }
0x1157   :  { %4503 = vmatpush.xpose.msra.mxu1 %v7619_v50  ;;  %4442 = vmatpush.xpose.msrb.mxu2 %v7626_v35  ;;  %v4080_v40 = vadd.f32 %v4079_v46, %v4060_v47 }
0x1158   :  { %4482 = vmatpush.xpose.msrb.mxu0 %v7604_v28 }
0x115a   :  { %4464 = vmatpush.xpose.msrb.mxu3 %v7677_v63 }
0x115b   :  { %4504 = vmatpush.xpose.msra.mxu1 %v7641_v52  ;;  %4443 = vmatpush.xpose.msrb.mxu2 %v7648_v57 }
0x115c   :  { %4483 = vmatpush.xpose.msrb.mxu0 %v7614_v29 }
0x115e   :  { %4465 = vmatpush.xpose.msrb.mxu3 %v7689_v8 }
0x115f   :  { %4505 = vmatpush.xpose.msra.mxu1 %v7670_v62  ;;  %4444 = vmatpush.xpose.msrb.mxu2 %v7660_v54 }
0x1160   :  { %4484 = vmatpush.xpose.msrb.mxu0 %v7636_v49 }
0x1162   :  { %4466 = vmatpush.xpose.msrb.mxu3 %v7748_v11 }
0x1163   :  { %4506 = vmatpush.xpose.msra.mxu1 %v7699_v12  ;;  %4445 = vmatpush.xpose.msrb.mxu2 %v7684_v5 }
0x1164   :  { %4485 = vmatpush.xpose.msrb.mxu0 %v7665_v60 }
0x1166   :  { %4467 = vmatpush.xpose.msrb.mxu3 %v7772_v59 }
0x1167   :  { %4507 = vmatpush.xpose.msra.mxu1 %v7713_v14  ;;  %4446 = vmatpush.xpose.msrb.mxu2 %v7738_v7 }
0x1168   :  { %4486 = vmatpush.xpose.msrb.mxu0 %v7694_v9 }
0x116a   :  { %4468 = vmatpush.xpose.msrb.mxu3 %v7796_v51 }
0x116b   :  { %4508 = vmatpush.xpose.msra.mxu1 %v7727_v25  ;;  %4447 = vmatpush.xpose.msrb.mxu2 %v7762_v21 }
0x116c   :  { %4487 = vmatpush.xpose.msrb.mxu0 %v7708_v13 }
0x116e   :  { %4469 = vmatpush.xpose.msrb.mxu3 %v7820_v20 }
0x116f   :  { %4509 = vmatpush.xpose.msra.mxu1 %v7755_v18  ;;  %4448 = vmatpush.xpose.msrb.mxu2 %v7786_v32 }
0x1170   :  { %4488 = vmatpush.xpose.msrb.mxu0 %v7722_v15 }
0x1172   :  { %4470 = vmatpush.xpose.msrb.mxu3 %v7844_v2 }
0x1173   :  { %4510 = vmatpush.xpose.msra.mxu1 %v7779_v44  ;;  %4449 = vmatpush.xpose.msrb.mxu2 %v7810_v22 }
0x1174   :  { %4489 = vmatpush.xpose.msrb.mxu0 %v7743_v10 }
0x1176   :  { %4471 = vmatpush.xpose.msrb.mxu3 %v7868_v4 }
0x1177   :  { %4511 = vmatpush.xpose.msra.mxu1 %v7803_v56  ;;  %4450 = vmatpush.xpose.msrb.mxu2 %v7834_v33 }
0x1178   :  { %4490 = vmatpush.xpose.msrb.mxu0 %v7767_v30 }
0x117a   :  { %4472 = vmatpush.xpose.msrb.mxu3 %v7892_v58 }
0x117b   :  { %4512 = vmatpush.xpose.msra.mxu1 %v7827_v19  ;;  %4451 = vmatpush.xpose.msrb.mxu2 %v7858_v41 }
0x117c   :  { %4491 = vmatpush.xpose.msrb.mxu0 %v7791_v55 }
0x117e   :  { %4473 = vmatpush.xpose.msrb.mxu3 %v7916_v27 }
0x117f   :  { %4513 = vmatpush.xpose.msra.mxu1 %v7851_v34  ;;  %4452 = vmatpush.xpose.msrb.mxu2 %v7882_v6 }
0x1180   :  { %4492 = vmatpush.xpose.msrb.mxu0 %v7815_v23 }
0x1182   :  { %4474 = vmatpush.xpose.msrb.mxu3 %v7940_v3 }
0x1183   :  { %4514 = vmatpush.xpose.msra.mxu1 %v7875_v43  ;;  %4453 = vmatpush.xpose.msrb.mxu2 %v7906_v24 }
0x1184   :  { %4493 = vmatpush.xpose.msrb.mxu0 %v7839_v16 }
0x1186   :  { %4475 = vmatpush.xpose.msrb.mxu3 %v7959_v61 }
0x1187   :  { %4515 = vmatpush.xpose.msra.mxu1 %v7899_v0  ;;  %4454 = vmatpush.xpose.msrb.mxu2 %v7930_v17 }
0x1188   :  { %4494 = vmatpush.xpose.msrb.mxu0 %v7863_v42 }
0x118a   :  { %4476 = vmatpush.xpose.msrb.mxu3 %v7972_v48 }
0x118b   :  { %4516 = vmatpush.xpose.msra.mxu1 %v7923_v31  ;;  %4455 = vmatpush.xpose.msrb.mxu2 %v7954_v45 }
0x11ce   :  { %v4249_v26 = vpop.f32.mrf.mxu0  ;;  %v4269_v53 = vpop.f32.mrf.mxu1 }
0x11cf   :  { %v4270_v50 = vadd.f32 %v4269_v53, %v4249_v26 }
0x11d1   :  { %v8001_v36 = vadd.f32 %v4270_v50, %v4080_v40 }
0x11d3   :  { %8402 = vst [vmem:[#allocation33_spill] sm:$0xff] %v8001_v36  ;;  %v4346_v38 = vsel %vm4338_vm7, %v8001_v36, 0.0  ;;  %v4209_v1 = vpop.f32.mrf.mxu2  ;;  %v4229_v39 = vpop.f32.mrf.mxu3  ;;  %v8414_v36 = vld [vmem:[#allocation18_spill] sm:$0xff] }
0x11d4   :  { %v4347_v47 = vrot.slane %v4346_v38, 4  ;;  %v4230_v53 = vadd.f32 %v4229_v39, %v4209_v1 }
0x11d6   :  { %v4348_v46 = vadd.f32 %v4347_v47, %v4346_v38  ;;  %v8010_v26 = vadd.f32 %v4230_v53, %v7733_v37 }
0x11d8   :  { %8403 = vst [vmem:[#allocation34_spill] sm:$0xff] %v8010_v26  ;;  %v4349_v50 = vrot.slane %v4348_v46, 2  ;;  %v4339_v40 = vsel %vm4338_vm7, %v8010_v26, 0.0 }
0x11d9   :  { %v4340_v1 = vrot.slane %v4339_v40, 4 }
0x11da   :  { %v4350_v39 = vadd.f32 %v4349_v50, %v4348_v46 }
0x11db   :  { %v4341_v38 = vadd.f32 %v4340_v1, %v4339_v40  ;;  %v8405_v40 = vld [vmem:[#allocation32_spill] sm:$0xff]  ;;  %v8406_v1 = vld [vmem:[#allocation26_spill] sm:$0xff] }
0x11dc   :  { %v4351_v37 = vrot.slane %v4350_v39, 1  ;;  %4477 = vmatpush.xpose.msrb.mxu3 %v8405_v40  ;;  %4517 = vmatpush.xpose.msra.mxu1 %v8406_v1 }
0x11dd   :  { %v4342_v47 = vrot.slane %v4341_v38, 2 }
0x11de   :  { %v4352_v53 = vadd.f32 %v4351_v37, %v4350_v39  ;;  %v8407_v39 = vld [vmem:[#allocation15_spill] sm:$0xff]  ;;  %v8409_v37 = vld [vmem:[#allocation22_spill] sm:$0xff] }
0x11df   :  { %v4343_v26 = vadd.f32 %v4342_v47, %v4341_v38  ;;  %v8408_v38 = vld [vmem:[#allocation29_spill] sm:$0xff]  ;;  %v8410_v47 = vld [vmem:[#allocation16_spill] sm:$0xff] }
0x11e0   :  { %4389 = vmatmul.f32.vlgmr.msra.gmra.mxu3 %v4352_v53  ;;  %4429 = vmatmul.f32.vlgmr.msrb.gmra.mxu1 %v4352_v53  ;;  %v8411_v53 = vld [vmem:[#allocation31_spill] sm:$0xff] }
0x11e1   :  { %v4344_v46 = vrot.slane %v4343_v26, 1  ;;  %4562 = vmatpush.msra.mxu3 %v7604_v28  ;;  %4602 = vmatpush.msrb.mxu1 %v8407_v39 }
0x11e2   :  { %4456 = vmatpush.xpose.msrb.mxu2 %v8408_v38 }
0x11e3   :  { %v4345_v50 = vadd.f32 %v4344_v46, %v4343_v26  ;;  %v8404_v26 = vld [vmem:[#allocation20_spill] sm:$0xff]  ;;  %4563 = vmatpush.msra.mxu3 %v7614_v29  ;;  %4603 = vmatpush.msrb.mxu1 %v8410_v47  ;;  %v8412_v46 = vld [vmem:[#allocation25_spill] sm:$0xff] }
0x11e4   :  { %4495 = vmatpush.xpose.msrb.mxu0 %v8404_v26 }
0x11e5   :  { %4369 = vmatmul.f32.vlgmr.msra.gmra.mxu2 %v4345_v50  ;;  %4409 = vmatmul.f32.vlgmr.msra.gmra.mxu0 %v4345_v50  ;;  %v8413_v50 = vld [vmem:[#allocation17_spill] sm:$0xff] }
0x11e6   :  { %4564 = vmatpush.msra.mxu3 %v7636_v49  ;;  %4604 = vmatpush.msrb.mxu1 %v7641_v52 }
0x11e7   :  { %4457 = vmatpush.xpose.msrb.mxu2 %v8411_v53 }
0x11e8   :  { %4496 = vmatpush.xpose.msrb.mxu0 %v8409_v37  ;;  %4565 = vmatpush.msra.mxu3 %v7665_v60 }
0x11e9   :  { %4605 = vmatpush.msrb.mxu1 %v7670_v62 }
0x11ea   :  { %4566 = vmatpush.msra.mxu3 %v7694_v9 }
0x11eb   :  { %4542 = vmatpush.msra.mxu2 %v7626_v35  ;;  %4606 = vmatpush.msrb.mxu1 %v7699_v12 }
0x11ec   :  { %4497 = vmatpush.xpose.msrb.mxu0 %v8412_v46  ;;  %4567 = vmatpush.msra.mxu3 %v7708_v13 }
0x11ed   :  { %4543 = vmatpush.msra.mxu2 %v7648_v57  ;;  %4607 = vmatpush.msrb.mxu1 %v7713_v14 }
0x11ee   :  { %4568 = vmatpush.msra.mxu3 %v7722_v15 }
0x11ef   :  { %4544 = vmatpush.msra.mxu2 %v7660_v54  ;;  %4608 = vmatpush.msrb.mxu1 %v7727_v25 }
0x11f0   :  { %4582 = vmatpush.msra.mxu0 %v8413_v50  ;;  %4569 = vmatpush.msra.mxu3 %v7743_v10 }
0x11f1   :  { %4545 = vmatpush.msra.mxu2 %v7684_v5  ;;  %4609 = vmatpush.msrb.mxu1 %v7755_v18 }
0x11f2   :  { %4583 = vmatpush.msra.mxu0 %v8414_v36  ;;  %4570 = vmatpush.msra.mxu3 %v7767_v30 }
0x11f3   :  { %4546 = vmatpush.msra.mxu2 %v7738_v7  ;;  %4610 = vmatpush.msrb.mxu1 %v7779_v44 }
0x11f4   :  { %4584 = vmatpush.msra.mxu0 %v7677_v63  ;;  %4571 = vmatpush.msra.mxu3 %v7791_v55 }
0x11f5   :  { %4547 = vmatpush.msra.mxu2 %v7762_v21  ;;  %4611 = vmatpush.msrb.mxu1 %v7803_v56 }
0x11f6   :  { %4585 = vmatpush.msra.mxu0 %v7689_v8  ;;  %4572 = vmatpush.msra.mxu3 %v7815_v23 }
0x11f7   :  { %4548 = vmatpush.msra.mxu2 %v7786_v32  ;;  %4612 = vmatpush.msrb.mxu1 %v7827_v19 }
0x11f8   :  { %4586 = vmatpush.msra.mxu0 %v7748_v11  ;;  %4573 = vmatpush.msra.mxu3 %v7839_v16 }
0x11f9   :  { %4549 = vmatpush.msra.mxu2 %v7810_v22  ;;  %4613 = vmatpush.msrb.mxu1 %v7851_v34 }
0x11fa   :  { %4587 = vmatpush.msra.mxu0 %v7772_v59  ;;  %4574 = vmatpush.msra.mxu3 %v7863_v42 }
0x11fb   :  { %4550 = vmatpush.msra.mxu2 %v7834_v33  ;;  %4614 = vmatpush.msrb.mxu1 %v7875_v43 }
0x11fc   :  { %4588 = vmatpush.msra.mxu0 %v7796_v51  ;;  %4575 = vmatpush.msra.mxu3 %v8404_v26 }
0x11fd   :  { %4551 = vmatpush.msra.mxu2 %v7858_v41  ;;  %4615 = vmatpush.msrb.mxu1 %v7899_v0 }
0x11fe   :  { %4589 = vmatpush.msra.mxu0 %v7820_v20  ;;  %4576 = vmatpush.msra.mxu3 %v8409_v37  ;;  %v5399_v37 = vmov 2.0  }
0x11ff   :  { %4552 = vmatpush.msra.mxu2 %v7882_v6  ;;  %4616 = vmatpush.msrb.mxu1 %v7923_v31  ;;  %5255 = vrcp.f32 %v5399_v37 }
0x1200   :  { %4590 = vmatpush.msra.mxu0 %v7844_v2  ;;  %4577 = vmatpush.msra.mxu3 %v8412_v46 }
0x1201   :  { %4553 = vmatpush.msra.mxu2 %v7906_v24  ;;  %4617 = vmatpush.msrb.mxu1 %v8406_v1 }
0x1202   :  { %4591 = vmatpush.msra.mxu0 %v7868_v4 }
0x1203   :  { %4554 = vmatpush.msra.mxu2 %v7930_v17 }
0x1204   :  { %4592 = vmatpush.msra.mxu0 %v7892_v58 }
0x1205   :  { %4555 = vmatpush.msra.mxu2 %v7954_v45  ;;  %v5256_v26 = vpop.eup %5255 }
0x1206   :  { %4593 = vmatpush.msra.mxu0 %v7916_v27  ;;  %v4434_v46 = vmul.f32 2.0, %v5256_v26  ;;  %vm4438_vm8 = vweird.f32 %v5256_v26 }
0x1207   :  { %4556 = vmatpush.msra.mxu2 %v8408_v38 }
0x1208   :  { %4594 = vmatpush.msra.mxu0 %v7940_v3  ;;  %v4435_v31 = vsub.f32 1.0, %v4434_v46 }
0x1209   :  { %4557 = vmatpush.msra.mxu2 %v8411_v53 }
0x120a   :  { %4595 = vmatpush.msra.mxu0 %v7959_v61  ;;  %v4436_v42 = vmul.f32 %v5256_v26, %v4435_v31 }
0x120c   :  { %4596 = vmatpush.msra.mxu0 %v7972_v48  ;;  %v4437_v17 = vadd.f32 %v5256_v26, %v4436_v42 }
0x120e   :  { %4597 = vmatpush.msra.mxu0 %v8405_v40  ;;  %v8124_v0 = vsel %vm4438_vm8, %v5256_v26, %v4437_v17 }
0x125d   :  { %v4430_v1 = vpop.f32.mrf.mxu1 }
0x1262   :  { %v4410_v45 = vpop.f32.mrf.mxu0 }
0x1263   :  { %v4431_v61 = vadd.f32 %v4430_v1, %v4410_v45  ;;  %v4390_v53 = vpop.f32.mrf.mxu3 }
0x1265   :  { %v4441_v38 = vmul.f32 %v8124_v0, %v4431_v61 }
0x1267   :  { %4478 = vmatmul.f32.vlgmr.msrb.gmra.mxu3 %v4441_v38  ;;  %4518 = vmatmul.f32.vlgmr.msra.gmra.mxu1 %v4441_v38 }
0x1268   :  { %v4370_v48 = vpop.f32.mrf.mxu2  ;;  %4666 = vmatpush.xpose.msrb.mxu3 %v8413_v50  ;;  %4706 = vmatpush.xpose.msra.mxu1 %v8407_v39 }
0x1269   :  { %v4391_v37 = vadd.f32 %v4390_v53, %v4370_v48 }
0x126b   :  { %v4440_v31 = vmul.f32 %v8124_v0, %v4391_v37 }
0x126c   :  { %4667 = vmatpush.xpose.msrb.mxu3 %v8414_v36  ;;  %4707 = vmatpush.xpose.msra.mxu1 %v8410_v47 }
0x126d   :  { %4458 = vmatmul.f32.vlgmr.msrb.gmra.mxu2 %v4440_v31  ;;  %4498 = vmatmul.f32.vlgmr.msrb.gmra.mxu0 %v4440_v31 }
0x126e   :  { %4646 = vmatpush.xpose.msrb.mxu2 %v7626_v35  ;;  %4686 = vmatpush.xpose.msrb.mxu0 %v7604_v28  ;;  %v8415_v28 = vld [vmem:[#allocation28_spill] sm:$0xff] }
0x126f   :  { %v8417_v35 = vld [vmem:[#allocation24_spill] sm:$0xff] }
0x1270   :  { %4668 = vmatpush.xpose.msrb.mxu3 %v7677_v63  ;;  %4708 = vmatpush.xpose.msra.mxu1 %v7641_v52  ;;  %v8419_v52 = vld [vmem:[#allocation30_spill] sm:$0xff]  ;;  %v8424_v63 = vld [vmem:[#allocation29_spill] sm:$0xff] }
0x1272   :  { %4647 = vmatpush.xpose.msrb.mxu2 %v7648_v57  ;;  %4687 = vmatpush.xpose.msrb.mxu0 %v7614_v29  ;;  %v8416_v29 = vld [vmem:[#allocation21_spill] sm:$0xff]  ;;  %v8420_v57 = vld [vmem:[#allocation23_spill] sm:$0xff] }
0x1274   :  { %4669 = vmatpush.xpose.msrb.mxu3 %v7689_v8  ;;  %4709 = vmatpush.xpose.msra.mxu1 %v7670_v62  ;;  %v8423_v62 = vld [vmem:[#allocation26_spill] sm:$0xff]  ;;  %v8426_v8 = vld [vmem:[#allocation31_spill] sm:$0xff] }
0x1276   :  { %4648 = vmatpush.xpose.msrb.mxu2 %v7660_v54  ;;  %4688 = vmatpush.xpose.msrb.mxu0 %v7636_v49  ;;  %v8418_v49 = vld [vmem:[#allocation19_spill] sm:$0xff] }
0x1277   :  { %v8421_v54 = vld [vmem:[#allocation27_spill] sm:$0xff] }
0x1278   :  { %4670 = vmatpush.xpose.msrb.mxu3 %v7748_v11  ;;  %4710 = vmatpush.xpose.msra.mxu1 %v7699_v12 }
0x127a   :  { %4649 = vmatpush.xpose.msrb.mxu2 %v7684_v5  ;;  %4689 = vmatpush.xpose.msrb.mxu0 %v7665_v60  ;;  %v8422_v60 = vld [vmem:[#allocation20_spill] sm:$0xff]  ;;  %v8425_v5 = vld [vmem:[#allocation22_spill] sm:$0xff] }
0x127c   :  { %4671 = vmatpush.xpose.msrb.mxu3 %v7772_v59  ;;  %4711 = vmatpush.xpose.msra.mxu1 %v7713_v14 }
0x127e   :  { %4650 = vmatpush.xpose.msrb.mxu2 %v7738_v7  ;;  %4690 = vmatpush.xpose.msrb.mxu0 %v7694_v9  ;;  %v8427_v9 = vld [vmem:[#allocation25_spill] sm:$0xff] }
0x1280   :  { %4672 = vmatpush.xpose.msrb.mxu3 %v7796_v51  ;;  %4712 = vmatpush.xpose.msra.mxu1 %v7727_v25  ;;  %v8428_v25 = vld [vmem:[#allocation33_spill] sm:$0xff] }
0x1282   :  { %4651 = vmatpush.xpose.msrb.mxu2 %v7762_v21  ;;  %4691 = vmatpush.xpose.msrb.mxu0 %v7708_v13 }
0x1284   :  { %4673 = vmatpush.xpose.msrb.mxu3 %v7820_v20  ;;  %4713 = vmatpush.xpose.msra.mxu1 %v7755_v18 }
0x1286   :  { %4652 = vmatpush.xpose.msrb.mxu2 %v7786_v32  ;;  %4692 = vmatpush.xpose.msrb.mxu0 %v7722_v15  ;;  %v8429_v32 = vld [vmem:[#allocation34_spill] sm:$0xff] }
0x1288   :  { %4674 = vmatpush.xpose.msrb.mxu3 %v7844_v2  ;;  %4714 = vmatpush.xpose.msra.mxu1 %v7779_v44 }
0x128a   :  { %4653 = vmatpush.xpose.msrb.mxu2 %v7810_v22  ;;  %4693 = vmatpush.xpose.msrb.mxu0 %v7743_v10 }
0x128c   :  { %4675 = vmatpush.xpose.msrb.mxu3 %v7868_v4  ;;  %4715 = vmatpush.xpose.msra.mxu1 %v7803_v56 }
0x128e   :  { %4654 = vmatpush.xpose.msrb.mxu2 %v7834_v33  ;;  %4694 = vmatpush.xpose.msrb.mxu0 %v7767_v30 }
0x1290   :  { %4676 = vmatpush.xpose.msrb.mxu3 %v7892_v58  ;;  %4716 = vmatpush.xpose.msra.mxu1 %v7827_v19 }
0x1292   :  { %4655 = vmatpush.xpose.msrb.mxu2 %v7858_v41  ;;  %4695 = vmatpush.xpose.msrb.mxu0 %v7791_v55 }
0x1294   :  { %4677 = vmatpush.xpose.msrb.mxu3 %v7916_v27  ;;  %4717 = vmatpush.xpose.msra.mxu1 %v7851_v34 }
0x1296   :  { %4656 = vmatpush.xpose.msrb.mxu2 %v7882_v6  ;;  %4696 = vmatpush.xpose.msrb.mxu0 %v7815_v23 }
0x1298   :  { %4678 = vmatpush.xpose.msrb.mxu3 %v7940_v3  ;;  %4718 = vmatpush.xpose.msra.mxu1 %v7875_v43 }
0x129a   :  { %4657 = vmatpush.xpose.msrb.mxu2 %v7906_v24  ;;  %4697 = vmatpush.xpose.msrb.mxu0 %v7839_v16 }
0x129c   :  { %4679 = vmatpush.xpose.msrb.mxu3 %v8415_v28  ;;  %4719 = vmatpush.xpose.msra.mxu1 %v8416_v29 }
0x129e   :  { %4658 = vmatpush.xpose.msrb.mxu2 %v8417_v35  ;;  %4698 = vmatpush.xpose.msrb.mxu0 %v8418_v49 }
0x12a0   :  { %4680 = vmatpush.xpose.msrb.mxu3 %v8419_v52  ;;  %4720 = vmatpush.xpose.msra.mxu1 %v8420_v57 }
0x12a2   :  { %4659 = vmatpush.xpose.msrb.mxu2 %v8421_v54  ;;  %4699 = vmatpush.xpose.msrb.mxu0 %v8422_v60 }
0x12a4   :  { %4681 = vmatpush.xpose.msrb.mxu3 %v8405_v40  ;;  %4721 = vmatpush.xpose.msra.mxu1 %v8423_v62 }
0x12a6   :  { %4660 = vmatpush.xpose.msrb.mxu2 %v8424_v63  ;;  %4700 = vmatpush.xpose.msrb.mxu0 %v8425_v5  ;;  %v4814_v5 = vld [vmem:[%s8332_s17 + $0xf8] sm:$0xff] }
0x12aa   :  { %4661 = vmatpush.xpose.msrb.mxu2 %v8426_v8  ;;  %4701 = vmatpush.xpose.msrb.mxu0 %v8427_v9  ;;  %v4732_v9 = vld [vmem:[%s8331_s16] sm:$0x3] }
0x12e4   :  { %v4519_v12 = vpop.f32.mrf.mxu1 }
0x12ea   :  { %v4499_v13 = vpop.f32.mrf.mxu0  ;;  %v4479_v10 = vpop.f32.mrf.mxu3 }
0x12eb   :  { %v4520_v14 = vadd.f32 %v4519_v12, %v4499_v13  ;;  %v4813_v12 = vld [vmem:[%s8332_s17 + $0xf0] sm:$0xff] }
0x12ed   :  { %v4523_v15 = vperm.slane %v4520_v14, 0  ;;  %v4812_v14 = vld [vmem:[%s8332_s17 + $0xe8] sm:$0xff] }
0x12ef   :  { %v8193_v7 = vsub.f32 %v8428_v25, %v4523_v15  ;;  %v4798_v25 = vld [vmem:[%s8332_s17 + $0x78] sm:$0xff] }
0x12f0   :  { %v4459_v11 = vpop.f32.mrf.mxu2 }
0x12f1   :  { %v4527_v18 = vmul.f32 %v8193_v7, %v8193_v7  ;;  %v4480_v21 = vadd.f32 %v4479_v10, %v4459_v11  ;;  %v4797_v10 = vld [vmem:[%s8332_s17 + $0x70] sm:$0xff]  ;;  %v4810_v11 = vld [vmem:[%s8332_s17 + $0xd8] sm:$0xff] }
0x12f3   :  { %v4535_v30 = vsel %vm4338_vm7, %v4527_v18, 0.0  ;;  %v4522_v59 = vperm.slane %v4480_v21, 0  ;;  %v4796_v18 = vld [vmem:[%s8332_s17 + $0x68] sm:$0xff]  ;;  %v4809_v21 = vld [vmem:[%s8332_s17 + $0xd0] sm:$0xff] }
0x12f4   :  { %v4536_v44 = vrot.slane %v4535_v30, 4 }
0x12f5   :  { %v8199_v55 = vsub.f32 %v8429_v32, %v4522_v59  ;;  %v4808_v59 = vld [vmem:[%s8332_s17 + $0xc8] sm:$0xff]  ;;  %v4807_v32 = vld [vmem:[%s8332_s17 + $0xc0] sm:$0xff] }
0x12f6   :  { %v4537_v51 = vadd.f32 %v4536_v44, %v4535_v30  ;;  %v4795_v30 = vld [vmem:[%s8332_s17 + $0x60] sm:$0xff]  ;;  %v4794_v44 = vld [vmem:[%s8332_s17 + $0x58] sm:$0xff] }
0x12f7   :  { %v4526_v56 = vmul.f32 %v8199_v55, %v8199_v55 }
0x12f8   :  { %v4538_v22 = vrot.slane %v4537_v51, 2 }
0x12f9   :  { %v4528_v23 = vsel %vm4338_vm7, %v4526_v56, 0.0  ;;  %v4792_v56 = vld [vmem:[%s8332_s17 + $0x48] sm:$0xff] }
0x12fa   :  { %v4539_v20 = vadd.f32 %v4538_v22, %v4537_v51  ;;  %v4529_v19 = vrot.slane %v4528_v23, 4  ;;  %v4806_v51 = vld [vmem:[%s8332_s17 + $0xb8] sm:$0xff]  ;;  %v4805_v22 = vld [vmem:[%s8332_s17 + $0xb0] sm:$0xff] }
0x12fc   :  { %v4540_v33 = vrot.slane %v4539_v20, 1  ;;  %v4530_v16 = vadd.f32 %v4529_v19, %v4528_v23  ;;  %v4791_v23 = vld [vmem:[%s8332_s17 + $0x40] sm:$0xff]  ;;  %v4790_v19 = vld [vmem:[%s8332_s17 + $0x38] sm:$0xff] }
0x12fe   :  { %v4531_v2 = vrot.slane %v4530_v16, 2  ;;  %v4541_v34 = vadd.f32 %v4540_v33, %v4539_v20  ;;  %v4804_v20 = vld [vmem:[%s8332_s17 + $0xa8] sm:$0xff]  ;;  %v4803_v33 = vld [vmem:[%s8332_s17 + $0xa0] sm:$0xff] }
0x1300   :  { %v4532_v41 = vadd.f32 %v4531_v2, %v4530_v16  ;;  %4578 = vmatmul.f32.vlgmr.msra.gmra.mxu3 %v4541_v34  ;;  %4618 = vmatmul.f32.vlgmr.msrb.gmra.mxu1 %v4541_v34  ;;  %v4789_v16 = vld [vmem:[%s8332_s17 + $0x30] sm:$0xff]  ;;  %v4802_v2 = vld [vmem:[%s8332_s17 + $0x98] sm:$0xff]  ;;  %v4788_v34 = vld [vmem:[%s8332_s17 + $0x28] sm:$0xff] }
0x1302   :  { %v4533_v42 = vrot.slane %v4532_v41, 1 }
0x1304   :  { %v4534_v4 = vadd.f32 %v4533_v42, %v4532_v41  ;;  %v4801_v41 = vld [vmem:[%s8332_s17 + $0x90] sm:$0xff]  ;;  %v4787_v42 = vld [vmem:[%s8332_s17 + $0x20] sm:$0xff] }
0x1306   :  { %4558 = vmatmul.f32.vlgmr.msra.gmra.mxu2 %v4534_v4  ;;  %4598 = vmatmul.f32.vlgmr.msra.gmra.mxu0 %v4534_v4  ;;  %v4786_v4 = vld [vmem:[%s8332_s17 + $0x18] sm:$0xff] }
0x137d   :  { %v4619_v43 = vpop.f32.mrf.mxu1 }
0x1383   :  { %v4599_v6 = vpop.f32.mrf.mxu0  ;;  %v4579_v17 = vpop.f32.mrf.mxu3 }
0x1384   :  { %v4620_v58 = vadd.f32 %v4619_v43, %v4599_v6  ;;  %v4785_v43 = vld [vmem:[%s8332_s17 + $0x10] sm:$0xff]  ;;  %v4784_v6 = vld [vmem:[%s8332_s17 + $0x8] sm:$0xff] }
0x1386   :  { %v4623_v24 = vmul.f32 %v4620_v58, %v8124_v0  ;;  %v4783_v58 = vld [vmem:[%s8332_s17] sm:$0xff] }
0x1388   :  { %v4625_v27 = vadd.f32 1e-05, %v4623_v24  ;;  %v4800_v24 = vld [vmem:[%s8332_s17 + $0x88] sm:$0xff] }
0x1389   :  { %v4559_v48 = vpop.f32.mrf.mxu2 }
0x138a   :  { %5257 = vrsqrt.f32 %v4625_v27  ;;  %v4580_v3 = vadd.f32 %v4579_v17, %v4559_v48  ;;  %vm4642_vm10 = vweird.f32 %v4625_v27 }
0x138c   :  { %v4622_v45 = vmul.f32 %v4580_v3, %v8124_v0  ;;  %v5238_v3 = vld [vmem:[%s8333_s18] ss:$0 sm:$0xff] }
0x138e   :  { %v4624_v61 = vadd.f32 1e-05, %v4622_v45 }
0x1390   :  { %v5258_v36 = vpop.eup %5257  ;;  %5259 = vrsqrt.f32 %v4624_v61  ;;  %vm4632_vm13 = vweird.f32 %v4624_v61 }
0x1391   :  { %v4637_v26 = vmul.f32 %v5258_v36, %v4625_v27  ;;  %vm4643_vm9 = vweird.f32 %v5258_v36  ;;  %v4799_v27 = vld [vmem:[%s8332_s17 + $0x80] sm:$0xff] }
0x1392   :  { %vm4644_vm11 = vmor %vm4642_vm10, %vm4643_vm9 }
0x1393   :  { %v4638_v40 = vmul.f32 %v5258_v36, %v4637_v26 }
0x1395   :  { %v4639_v1 = vmul.f32 0.5, %v4638_v40 }
0x1396   :  { %v5260_v39 = vpop.eup %5259 }
0x1397   :  { %v4640_v38 = vsub.f32 1.5, %v4639_v1  ;;  %v4627_v47 = vmul.f32 %v5260_v39, %v4624_v61  ;;  %vm4633_vm12 = vweird.f32 %v5260_v39 }
0x1398   :  { %vm4634_vm14 = vmor %vm4632_vm13, %vm4633_vm12 }
0x1399   :  { %v4628_v53 = vmul.f32 %v5260_v39, %v4627_v47  ;;  %v4641_v46 = vmul.f32 %v5258_v36, %v4640_v38 }
0x139b   :  { %v4629_v50 = vmul.f32 0.5, %v4628_v53  ;;  %v4645_v37 = vsel %vm4644_vm11, %v5258_v36, %v4641_v46 }
0x139c   :  { %4682 = vmatmul.f32.vlgmr.msrb.gmra.mxu3 %v4645_v37  ;;  %4722 = vmatmul.f32.vlgmr.msra.gmra.mxu1 %v4645_v37 }
0x139d   :  { %v4630_v31 = vsub.f32 1.5, %v4629_v50 }
0x139f   :  { %v4631_v0 = vmul.f32 %v5260_v39, %v4630_v31 }
0x13a1   :  { %v4635_v28 = vsel %vm4634_vm14, %v5260_v39, %v4631_v0 }
0x13a2   :  { %4662 = vmatmul.f32.vlgmr.msrb.gmra.mxu2 %v4635_v28  ;;  %4702 = vmatmul.f32.vlgmr.msrb.gmra.mxu0 %v4635_v28 }
0x1419   :  { %v4723_v29 = vpop.f32.mrf.mxu1 }
0x141f   :  { %v4703_v35 = vpop.f32.mrf.mxu0  ;;  %v4683_v54 = vpop.f32.mrf.mxu3 }
0x1420   :  { %v4724_v49 = vadd.f32 %v4723_v29, %v4703_v35 }
0x1422   :  { %v4727_v52 = vperm.slane %v4724_v49, 0 }
0x1424   :  { %v4729_v57 = vmul.f32 %v4727_v52, %v8193_v7  ;;  %v4811_v7 = vld [vmem:[%s8332_s17 + $0xe0] sm:$0xff] }
0x1425   :  { %v4663_v60 = vpop.f32.mrf.mxu2 }
0x1426   :  { %v4731_v62 = vmax.f32 %v4729_v57, 0.0  ;;  %v4684_v63 = vadd.f32 %v4683_v54, %v4663_v60 }
0x1428   :  { %v4726_v8 = vperm.slane %v4684_v63, 0  ;;  %5224 = vmatpush.msk.msra.mxu3 %vm4338_vm7, %v4731_v62 }
0x1429   :  { %5225 = vmatmul.msk.f32.vlgmr.msra.gmra.mxu3 %vm4733_vm15, %v4732_v9 }
0x142a   :  { %v4728_v13 = vmul.f32 %v4726_v8, %v8199_v55  ;;  %4839 = vmatpush.msrb.mxu3 %v4814_v5  ;;  %v4793_v55 = vld [vmem:[%s8332_s17 + $0x50] sm:$0xff] }
0x142c   :  { %v4730_v15 = vmax.f32 %v4728_v13, 0.0  ;;  %4840 = vmatpush.msrb.mxu3 %v4813_v12 }
0x142e   :  { %5222 = vmatpush.msk.msra.mxu2 %vm4338_vm7, %v4730_v15  ;;  %4841 = vmatpush.msrb.mxu3 %v4812_v14 }
0x142f   :  { %5223 = vmatmul.msk.f32.vlgmr.msra.gmra.mxu2 %vm4733_vm15, %v4732_v9 }
0x1430   :  { %4819 = vmatpush.msrb.mxu2 %v4798_v25  ;;  %4842 = vmatpush.msrb.mxu3 %v4811_v7 }
0x1432   :  { %4820 = vmatpush.msrb.mxu2 %v4797_v10  ;;  %4843 = vmatpush.msrb.mxu3 %v4810_v11 }
0x1434   :  { %4821 = vmatpush.msrb.mxu2 %v4796_v18  ;;  %4844 = vmatpush.msrb.mxu3 %v4809_v21 }
0x1436   :  { %4822 = vmatpush.msrb.mxu2 %v4795_v30  ;;  %4845 = vmatpush.msrb.mxu3 %v4808_v59 }
0x1438   :  { %4823 = vmatpush.msrb.mxu2 %v4794_v44  ;;  %4846 = vmatpush.msrb.mxu3 %v4807_v32 }
0x143a   :  { %4824 = vmatpush.msrb.mxu2 %v4793_v55  ;;  %4847 = vmatpush.msrb.mxu3 %v4806_v51 }
0x143c   :  { %4825 = vmatpush.msrb.mxu2 %v4792_v56  ;;  %4848 = vmatpush.msrb.mxu3 %v4805_v22 }
0x143e   :  { %4826 = vmatpush.msrb.mxu2 %v4791_v23  ;;  %4849 = vmatpush.msrb.mxu3 %v4804_v20 }
0x1440   :  { %4827 = vmatpush.msrb.mxu2 %v4790_v19  ;;  %4850 = vmatpush.msrb.mxu3 %v4803_v33 }
0x1442   :  { %4828 = vmatpush.msrb.mxu2 %v4789_v16  ;;  %4851 = vmatpush.msrb.mxu3 %v4802_v2 }
0x1444   :  { %4829 = vmatpush.msrb.mxu2 %v4788_v34  ;;  %4852 = vmatpush.msrb.mxu3 %v4801_v41 }
0x1446   :  { %4830 = vmatpush.msrb.mxu2 %v4787_v42  ;;  %4853 = vmatpush.msrb.mxu3 %v4800_v24 }
0x1448   :  { %4831 = vmatpush.msrb.mxu2 %v4786_v4  ;;  %4854 = vmatpush.msrb.mxu3 %v4799_v27 }
0x144a   :  { %4832 = vmatpush.msrb.mxu2 %v4785_v43 }
0x144c   :  { %4833 = vmatpush.msrb.mxu2 %v4784_v6 }
0x144e   :  { %4834 = vmatpush.msrb.mxu2 %v4783_v58 }
0x14ac   :  { %v4780_v17 = vpop.f32.mrf.mxu3 }
0x14ad   :  { %4855 = vmatmul.f32.vlgmr.msrb.gmra.mxu3 %v4780_v17 }
0x14b2   :  { %v4760_v48 = vpop.f32.mrf.mxu2 }
0x14b3   :  { %4835 = vmatmul.f32.vlgmr.msrb.gmra.mxu2 %v4760_v48 }
0x1530   :  { %v4856_v61 = vpop.f32.mrf.mxu3 }
0x1536   :  { %v4836_v45 = vpop.f32.mrf.mxu2 }
0x1537   :  { %v4837_v36 = vadd.f32 %v5238_v3, %v4836_v45 }
0x1539   :  { %v4857_v26 = vadd.f32 %v4856_v61, %v4837_v36 }
0x153b   :  { %4860 = vst.msk [vmem:[#allocation10] sm:$0x3] %vm4859_vm0, %v4857_v26 }
0x153c   :  { %4871 = dma.vmem_to_hbm [thread:$0]  %s4867_s28, 32, %s4869_s30, [#allocation4]  }
0x153d   :  { %5387 = dma.done.wait [#allocation4], 32  }
0x153e   :  { %5388 = vsyncadd [#allocation4], 4294967264 }
0x153f   :  { %4876 = vsyncpa [#allocation3], 1 }
0x1540   :  { %4877 = vsyncpa [#allocation6], 1 }
0x1541   :  { %4878 = vsyncpa [#allocation9], 1 }
0x1542   :  { %4879 = vsyncpa [#allocation4], 1 }

</bundles_post_ra>
